<compile_context>
chip_gen: v7x
topology: tpu7x:2x2x1
jax: 0.10.0
libtpu: 0.0.40
codegen_flags: <defaults>
</compile_context>

<pallas_src>
import numpy as np
import jax
import jax.numpy as jnp
from jax.experimental import pallas as pl
from jax.experimental.pallas import tpu as pltpu


def _rup8(v):
    return ((v + 7) // 8) * 8


# ---------------------------------------------------------------------------
# Fused whole-network kernel
# ---------------------------------------------------------------------------
def _make_kernel(cfgs):
    """cfgs: tuple of per-block dicts of static ints: H, W, cin, chid, cout."""
    nb = len(cfgs)

    def kernel(*refs):
        it = iter(refs)
        x_ref = next(it)
        wrefs = [tuple(next(it) for _ in range(6)) for _ in range(nb)]
        wf_ref = next(it)
        bf_ref = next(it)
        o_ref = next(it)
        srefs = [tuple(next(it) for _ in range(5)) for _ in range(nb)]

        a_val = x_ref[0]                                   # (H, W, C0) f32
        out = None
        for l in range(nb):
            cfg = cfgs[l]
            Hl, Wl = cfg['H'], cfg['W']
            Cin, Chid, Cout = cfg['cin'], cfg['chid'], cfg['cout']
            Ho, Wo = Hl // 2, Wl // 2
            Wl8, Wo8 = _rup8(Wl), _rup8(Wo)
            w1_ref, b1_ref, w2_ref, b2_ref, ws_ref, bs_ref = wrefs[l]
            slab1, pad_a, pad_h, slab2, slab_s = srefs[l]

            # ---- stage the raw block input into a zero-padded VMEM scratch (p=1 halo) ----
            pad_a[...] = jnp.zeros(pad_a.shape, jnp.float32)
            pad_a[1:Hl + 1, 1:Wl + 1, :] = a_val

            # ---- conv1: ReLU -> 3x3 s1 p1, as ONE K=9*Cin matmul ----
            xr = jnp.maximum(pad_a[...], 0.0)              # relu(pad(x)) == pad(relu(x))
            slab1[...] = jnp.zeros(slab1.shape, jnp.float32)
            for di in range(3):
                for dj in range(3):
                    t = di * 3 + dj
                    slab1[:, 0:Wl, t * Cin:(t + 1) * Cin] = xr[di:di + Hl, dj:dj + Wl, :]
            s1 = slab1[...].reshape(Hl * Wl8, 9 * Cin)
            h = jnp.dot(s1.astype(jnp.bfloat16), w1_ref[...],
                        preferred_element_type=jnp.float32) + b1_ref[...]
            h = jnp.maximum(h, 0.0)                        # (Hl*Wl8, Chid) f32

            # ---- stage conv1 output into a zero-padded scratch for the stride-2 conv ----
            pad_h[...] = jnp.zeros(pad_h.shape, jnp.float32)
            pad_h[1:Hl + 1, 1:Wl + 1, :] = h.reshape(Hl, Wl8, Chid)[:, 0:Wl, :]

            # ---- conv2: 4x4 s2 p1, 16 stride-2 taps -> ONE K=16*Chid matmul ----
            slab2[...] = jnp.zeros(slab2.shape, jnp.float32)
            for i in range(4):
                for j in range(4):
                    t = i * 4 + j
                    slab2[:, 0:Wo, t * Chid:(t + 1) * Chid] = (
                        pad_h[pl.ds(i, Ho, 2), pl.ds(j, Wo, 2), :])
            s2 = slab2[...].reshape(Ho * Wo8, 16 * Chid)
            main = jnp.dot(s2.astype(jnp.bfloat16), w2_ref[...],
                           preferred_element_type=jnp.float32) + b2_ref[...]

            # ---- shortcut: AvgPool2d(2,2)+1x1 == 2x2 s2 conv (weight tiled /4, exact) ----
            slab_s[...] = jnp.zeros(slab_s.shape, jnp.float32)
            for i in range(2):
                for j in range(2):
                    t = i * 2 + j
                    slab_s[:, 0:Wo, t * Cin:(t + 1) * Cin] = (
                        pad_a[pl.ds(1 + i, Ho, 2), pl.ds(1 + j, Wo, 2), :])
            ss = slab_s[...].reshape(Ho * Wo8, 4 * Cin)
            sc = jnp.dot(ss.astype(jnp.bfloat16), ws_ref[...],
                         preferred_element_type=jnp.float32) + bs_ref[...]

            out = main + sc                                # (Ho*Wo8, Cout) f32 residual add
            a_val = out.reshape(Ho, Wo8, Cout)[:, 0:Wo, :]  # next block input (junk cols dropped)

        # ---- final: ReLU -> 1x1 conv (C_last -> 1) as VPU multiply + cross-lane reduce ----
        fr = jnp.maximum(out, 0.0)
        fin = jnp.sum(fr * wf_ref[...], axis=-1, keepdims=True) + bf_ref[...]
        o_ref[0] = fin                                     # (Mo8_last, 1) f32

    return kernel


def _full_spec(a):
    return pl.BlockSpec(a.shape, lambda n, nd=a.ndim: (0,) * nd)


def discriminator_forward(x_nchw, params):
    # layout: NCHW in/out (PyTorch convention); NHWC inside the kernel.
    N, C, H, W = x_nchw.shape
    x = jnp.transpose(x_nchw, (0, 2, 3, 1)).astype(jnp.float32)

    blocks = params['blocks']
    cfgs = []
    Hc, Wc = H, W
    for p in blocks:
        assert Hc % 2 == 0 and Wc % 2 == 0
        cfgs.append(dict(H=Hc, W=Wc, cin=p['ws'].shape[0] // 4,
                         chid=p['w1'].shape[1], cout=p['w2'].shape[1]))
        Hc, Wc = Hc // 2, Wc // 2
    cfgs = tuple(cfgs)
    Ho_l, Wo_l = cfgs[-1]['H'] // 2, cfgs[-1]['W'] // 2
    Wo8_l = _rup8(Wo_l)
    Mo8 = Ho_l * Wo8_l
    Clast = cfgs[-1]['cout']

    args = [x]
    in_specs = [pl.BlockSpec((1, H, W, C), lambda n: (n, 0, 0, 0))]
    for p in blocks:
        for name in ('w1', 'b1', 'w2', 'b2', 'ws', 'bs'):
            a = p[name]
            args.append(a)
            in_specs.append(_full_spec(a))
    args += [params['wf'], params['bf']]
    in_specs += [_full_spec(params['wf']), _full_spec(params['bf'])]

    scratch = []
    flops = 0
    for cfg in cfgs:
        Hl, Wl = cfg['H'], cfg['W']
        cin, chid, cout = cfg['cin'], cfg['chid'], cfg['cout']
        Ho, Wo = Hl // 2, Wl // 2
        Wl8, Wo8 = _rup8(Wl), _rup8(Wo)
        scratch += [
            pltpu.VMEM((Hl, Wl8, 9 * cin), jnp.float32),       # conv1 im2col slab
            pltpu.VMEM((Hl + 2, Wl + 2, cin), jnp.float32),    # padded block input
            pltpu.VMEM((Hl + 2, Wl + 2, chid), jnp.float32),   # padded conv1 output
            pltpu.VMEM((Ho, Wo8, 16 * chid), jnp.float32),     # conv2 im2col slab
            pltpu.VMEM((Ho, Wo8, 4 * cin), jnp.float32),       # shortcut im2col slab
        ]
        flops += 2 * Hl * Wl8 * (9 * cin) * chid
        flops += 2 * Ho * Wo8 * (16 * chid) * cout
        flops += 2 * Ho * Wo8 * (4 * cin) * cout
    flops = (flops + 2 * Mo8 * Clast) * N
    bytes_accessed = int(x.size * 4
                         + sum(int(np.prod(a.shape)) * a.dtype.itemsize for a in args[1:])
                         + N * Mo8 * 4)

    out = pl.pallas_call(
        _make_kernel(cfgs),
        out_shape=jax.ShapeDtypeStruct((N, Mo8, 1), jnp.float32),
        grid=(N,),
        in_specs=in_specs,
        out_specs=pl.BlockSpec((1, Mo8, 1), lambda n: (n, 0, 0)),
        scratch_shapes=scratch,
        compiler_params=pltpu.CompilerParams(dimension_semantics=("parallel",)),
        cost_estimate=pl.CostEstimate(flops=int(flops), transcendentals=0,
                                      bytes_accessed=bytes_accessed),
    )(*args)

    out = out.reshape(N, Ho_l, Wo8_l)[:, :, :Wo_l]      # drop lane-padding junk columns
    return out[:, None, :, :]                            # (N, 1, H/2^L, W/2^L)


# ---------------------------------------------------------------------------
# Deterministic parameter construction (host-side)
# ---------------------------------------------------------------------------
def _spectral_normalize(w_oihw):
    # TODO(synk): PyTorch spectral_norm runs a persistent 1-step power iteration;
    # here we apply its fixed point (exact top singular value) once at init.
    cout = w_oihw.shape[0]
    sigma = np.linalg.svd(w_oihw.reshape(cout, -1), compute_uv=False)[0]
    return w_oihw / np.float32(sigma)


def _make_conv(key, cin, cout, kh, kw):
    k_w, k_b = jax.random.split(key)
    w = np.asarray(jax.random.normal(k_w, (cout, cin, kh, kw), jnp.float32)) * 0.2  # OIHW
    w = _spectral_normalize(w)
    # (kh*kw*cin, cout) with K ordered (tap, cin) -- matches the in-kernel im2col slabs.
    w_mat = np.transpose(w, (2, 3, 1, 0)).reshape(kh * kw * cin, cout)
    b = np.asarray(jax.random.normal(k_b, (cout,), jnp.float32)) * 0.05
    return w_mat.astype(np.float32), b.reshape(1, cout).astype(np.float32)


def init_discriminator(key, input_nc=3, ndf=8, img_f=32, layers=3):
    blocks = []
    for i in range(layers):
        cin = input_nc if i == 0 else ndf * min(2 ** (i - 1), img_f // ndf)
        cout = ndf * min(2 ** i, img_f // ndf)
        chid = ndf * min(2 ** (i - 1), img_f // ndf) if i > 0 else ndf
        key, k1, k2, k3 = jax.random.split(key, 4)
        w1, b1 = _make_conv(k1, cin, chid, 3, 3)     # conv1 3x3 s1 p1
        w2, b2 = _make_conv(k2, chid, cout, 4, 4)    # conv2 4x4 s2 p1
        ws, bs = _make_conv(k3, cin, cout, 1, 1)     # bypass 1x1 (after AvgPool2d(2,2))
        ws_eff = np.tile(ws, (4, 1)) * 0.25          # fold avgpool+1x1 -> 2x2/s2 conv (exact)
        blocks.append(dict(
            w1=jnp.asarray(w1, jnp.bfloat16), b1=jnp.asarray(b1),
            w2=jnp.asarray(w2, jnp.bfloat16), b2=jnp.asarray(b2),
            ws=jnp.asarray(ws_eff, jnp.bfloat16), bs=jnp.asarray(bs)))
    key, kf = jax.random.split(key)
    c_last = ndf * min(2 ** (layers - 1), img_f // ndf)
    wf, bf = _make_conv(kf, c_last, 1, 1, 1)         # final 1x1 conv -> 1 channel
    return dict(blocks=blocks,
                wf=jnp.asarray(wf.reshape(1, c_last)),   # f32 row vector for the VPU path
                bf=jnp.asarray(bf))


if __name__ == "__main__":
    key = jax.random.PRNGKey(0)
    kx, kp = jax.random.split(key)
    N, C, H, W = 2, 3, 16, 16                 # small NCHW input
    layers = 3
    x = jax.random.normal(kx, (N, C, H, W), jnp.float32)
    params = init_discriminator(kp, input_nc=C, ndf=8, img_f=32, layers=layers)

    out = jax.jit(discriminator_forward)(x, params)
    jax.block_until_ready(out)
    assert out.shape == (N, 1, H // (2 ** layers), W // (2 ** layers)), out.shape
    assert out.dtype == jnp.float32
    assert bool(jnp.all(jnp.isfinite(out)))
    print("KERNEL_OK")
</pallas_src>

<mosaic_0001>
module attributes {stable_mosaic.version = 11 : i64} {
  func.func @kernel(%arg0: i32, %arg1: memref<1x16x16x3xf32, #tpu.memory_space<vmem>>, %arg2: memref<27x8xbf16, #tpu.memory_space<vmem>>, %arg3: memref<1x8xf32, #tpu.memory_space<vmem>>, %arg4: memref<128x8xbf16, #tpu.memory_space<vmem>>, %arg5: memref<1x8xf32, #tpu.memory_space<vmem>>, %arg6: memref<12x8xbf16, #tpu.memory_space<vmem>>, %arg7: memref<1x8xf32, #tpu.memory_space<vmem>>, %arg8: memref<72x8xbf16, #tpu.memory_space<vmem>>, %arg9: memref<1x8xf32, #tpu.memory_space<vmem>>, %arg10: memref<128x16xbf16, #tpu.memory_space<vmem>>, %arg11: memref<1x16xf32, #tpu.memory_space<vmem>>, %arg12: memref<32x16xbf16, #tpu.memory_space<vmem>>, %arg13: memref<1x16xf32, #tpu.memory_space<vmem>>, %arg14: memref<144x16xbf16, #tpu.memory_space<vmem>>, %arg15: memref<1x16xf32, #tpu.memory_space<vmem>>, %arg16: memref<256x32xbf16, #tpu.memory_space<vmem>>, %arg17: memref<1x32xf32, #tpu.memory_space<vmem>>, %arg18: memref<64x32xbf16, #tpu.memory_space<vmem>>, %arg19: memref<1x32xf32, #tpu.memory_space<vmem>>, %arg20: memref<1x32xf32, #tpu.memory_space<vmem>>, %arg21: memref<1x1xf32, #tpu.memory_space<vmem>>, %arg22: memref<1x16x1xf32, #tpu.memory_space<vmem>>, %arg23: memref<16x16x27xf32, #tpu.memory_space<vmem>>, %arg24: memref<18x18x3xf32, #tpu.memory_space<vmem>>, %arg25: memref<18x18x8xf32, #tpu.memory_space<vmem>>, %arg26: memref<8x8x128xf32, #tpu.memory_space<vmem>>, %arg27: memref<8x8x12xf32, #tpu.memory_space<vmem>>, %arg28: memref<8x8x72xf32, #tpu.memory_space<vmem>>, %arg29: memref<10x10x8xf32, #tpu.memory_space<vmem>>, %arg30: memref<10x10x8xf32, #tpu.memory_space<vmem>>, %arg31: memref<4x8x128xf32, #tpu.memory_space<vmem>>, %arg32: memref<4x8x32xf32, #tpu.memory_space<vmem>>, %arg33: memref<4x8x144xf32, #tpu.memory_space<vmem>>, %arg34: memref<6x6x16xf32, #tpu.memory_space<vmem>>, %arg35: memref<6x6x16xf32, #tpu.memory_space<vmem>>, %arg36: memref<2x8x256xf32, #tpu.memory_space<vmem>>, %arg37: memref<2x8x64xf32, #tpu.memory_space<vmem>>) attributes {dimension_semantics = [#tpu.dimension_semantics<parallel>], iteration_bounds = array<i64: 2>, scalar_prefetch = 0 : i64, scratch_operands = 15 : i64, tpu.core_type = #tpu.core_type<tc>, window_params = [{transform_indices = @transform_0, window_bounds = array<i64: 1, 16, 16, 3>}, {pipeline_mode = #tpu.pipeline_mode<synchronous>, transform_indices = @transform_1, window_bounds = array<i64: 27, 8>}, {pipeline_mode = #tpu.pipeline_mode<synchronous>, transform_indices = @transform_2, window_bounds = array<i64: 1, 8>}, {pipeline_mode = #tpu.pipeline_mode<synchronous>, transform_indices = @transform_3, window_bounds = array<i64: 128, 8>}, {pipeline_mode = #tpu.pipeline_mode<synchronous>, transform_indices = @transform_4, window_bounds = array<i64: 1, 8>}, {pipeline_mode = #tpu.pipeline_mode<synchronous>, transform_indices = @transform_5, window_bounds = array<i64: 12, 8>}, {pipeline_mode = #tpu.pipeline_mode<synchronous>, transform_indices = @transform_6, window_bounds = array<i64: 1, 8>}, {pipeline_mode = #tpu.pipeline_mode<synchronous>, transform_indices = @transform_7, window_bounds = array<i64: 72, 8>}, {pipeline_mode = #tpu.pipeline_mode<synchronous>, transform_indices = @transform_8, window_bounds = array<i64: 1, 8>}, {pipeline_mode = #tpu.pipeline_mode<synchronous>, transform_indices = @transform_9, window_bounds = array<i64: 128, 16>}, {pipeline_mode = #tpu.pipeline_mode<synchronous>, transform_indices = @transform_10, window_bounds = array<i64: 1, 16>}, {pipeline_mode = #tpu.pipeline_mode<synchronous>, transform_indices = @transform_11, window_bounds = array<i64: 32, 16>}, {pipeline_mode = #tpu.pipeline_mode<synchronous>, transform_indices = @transform_12, window_bounds = array<i64: 1, 16>}, {pipeline_mode = #tpu.pipeline_mode<synchronous>, transform_indices = @transform_13, window_bounds = array<i64: 144, 16>}, {pipeline_mode = #tpu.pipeline_mode<synchronous>, transform_indices = @transform_14, window_bounds = array<i64: 1, 16>}, {pipeline_mode = #tpu.pipeline_mode<synchronous>, transform_indices = @transform_15, window_bounds = array<i64: 256, 32>}, {pipeline_mode = #tpu.pipeline_mode<synchronous>, transform_indices = @transform_16, window_bounds = array<i64: 1, 32>}, {pipeline_mode = #tpu.pipeline_mode<synchronous>, transform_indices = @transform_17, window_bounds = array<i64: 64, 32>}, {pipeline_mode = #tpu.pipeline_mode<synchronous>, transform_indices = @transform_18, window_bounds = array<i64: 1, 32>}, {pipeline_mode = #tpu.pipeline_mode<synchronous>, transform_indices = @transform_19, window_bounds = array<i64: 1, 32>}, {pipeline_mode = #tpu.pipeline_mode<synchronous>, transform_indices = @transform_20, window_bounds = array<i64: 1, 1>}, {transform_indices = @transform_21, window_bounds = array<i64: 1, 16, 1>}]} {
    %c0 = arith.constant 0 : index
    %c0_0 = arith.constant 0 : index
    %c0_1 = arith.constant 0 : index
    %c0_2 = arith.constant 0 : index
    %0 = vector.load %arg1[%c0, %c0_0, %c0_1, %c0_2] : memref<1x16x16x3xf32, #tpu.memory_space<vmem>>, vector<1x16x16x3xf32>
    %1 = vector.shape_cast %0 : vector<1x16x16x3xf32> to vector<16x16x3xf32>
    %cst = arith.constant 0.000000e+00 : f32
    %2 = vector.broadcast %cst : f32 to vector<18x18x3xf32>
    %c0_3 = arith.constant 0 : index
    %c0_4 = arith.constant 0 : index
    %c0_5 = arith.constant 0 : index
    %3 = vector.load %arg24[%c0_3, %c0_4, %c0_5] : memref<18x18x3xf32, #tpu.memory_space<vmem>>, vector<18x18x3xf32>
    tpu.vector_store %arg24[%c0_3, %c0_4, %c0_5], %2 {strides = array<i32>} : memref<18x18x3xf32, #tpu.memory_space<vmem>>, vector<18x18x3xf32>,
    %c1 = arith.constant 1 : index
    %c1_6 = arith.constant 1 : index
    %c0_7 = arith.constant 0 : index
    %4 = vector.load %arg24[%c1, %c1_6, %c0_7] : memref<18x18x3xf32, #tpu.memory_space<vmem>>, vector<16x16x3xf32>
    tpu.vector_store %arg24[%c1, %c1_6, %c0_7], %1 {strides = array<i32>} : memref<18x18x3xf32, #tpu.memory_space<vmem>>, vector<16x16x3xf32>,
    %c0_8 = arith.constant 0 : index
    %c0_9 = arith.constant 0 : index
    %c0_10 = arith.constant 0 : index
    %5 = vector.load %arg24[%c0_8, %c0_9, %c0_10] : memref<18x18x3xf32, #tpu.memory_space<vmem>>, vector<18x18x3xf32>
    %cst_11 = arith.constant 0.000000e+00 : f32
    %6 = vector.broadcast %cst_11 : f32 to vector<18x18x3xf32>
    %7 = arith.maximumf %5, %6 : vector<18x18x3xf32>
    %cst_12 = arith.constant 0.000000e+00 : f32
    %8 = vector.broadcast %cst_12 : f32 to vector<16x16x27xf32>
    %c0_13 = arith.constant 0 : index
    %c0_14 = arith.constant 0 : index
    %c0_15 = arith.constant 0 : index
    %9 = vector.load %arg23[%c0_13, %c0_14, %c0_15] : memref<16x16x27xf32, #tpu.memory_space<vmem>>, vector<16x16x27xf32>
    tpu.vector_store %arg23[%c0_13, %c0_14, %c0_15], %8 {strides = array<i32>} : memref<16x16x27xf32, #tpu.memory_space<vmem>>, vector<16x16x27xf32>,
    %10 = vector.extract_strided_slice %7 {offsets = [0, 0, 0], sizes = [16, 16, 3], strides = [1, 1, 1]} : vector<18x18x3xf32> to vector<16x16x3xf32>
    %c0_16 = arith.constant 0 : index
    %c0_17 = arith.constant 0 : index
    %c0_18 = arith.constant 0 : index
    %11 = vector.load %arg23[%c0_16, %c0_17, %c0_18] : memref<16x16x27xf32, #tpu.memory_space<vmem>>, vector<16x16x3xf32>
    tpu.vector_store %arg23[%c0_16, %c0_17, %c0_18], %10 {strides = array<i32>} : memref<16x16x27xf32, #tpu.memory_space<vmem>>, vector<16x16x3xf32>,
    %12 = vector.extract_strided_slice %7 {offsets = [0, 1, 0], sizes = [16, 16, 3], strides = [1, 1, 1]} : vector<18x18x3xf32> to vector<16x16x3xf32>
    %c0_19 = arith.constant 0 : index
    %c0_20 = arith.constant 0 : index
    %c3 = arith.constant 3 : index
    %13 = vector.load %arg23[%c0_19, %c0_20, %c3] : memref<16x16x27xf32, #tpu.memory_space<vmem>>, vector<16x16x3xf32>
    tpu.vector_store %arg23[%c0_19, %c0_20, %c3], %12 {strides = array<i32>} : memref<16x16x27xf32, #tpu.memory_space<vmem>>, vector<16x16x3xf32>,
    %14 = vector.extract_strided_slice %7 {offsets = [0, 2, 0], sizes = [16, 16, 3], strides = [1, 1, 1]} : vector<18x18x3xf32> to vector<16x16x3xf32>
    %c0_21 = arith.constant 0 : index
    %c0_22 = arith.constant 0 : index
    %c6 = arith.constant 6 : index
    %15 = vector.load %arg23[%c0_21, %c0_22, %c6] : memref<16x16x27xf32, #tpu.memory_space<vmem>>, vector<16x16x3xf32>
    tpu.vector_store %arg23[%c0_21, %c0_22, %c6], %14 {strides = array<i32>} : memref<16x16x27xf32, #tpu.memory_space<vmem>>, vector<16x16x3xf32>,
    %16 = vector.extract_strided_slice %7 {offsets = [1, 0, 0], sizes = [16, 16, 3], strides = [1, 1, 1]} : vector<18x18x3xf32> to vector<16x16x3xf32>
    %c0_23 = arith.constant 0 : index
    %c0_24 = arith.constant 0 : index
    %c9 = arith.constant 9 : index
    %17 = vector.load %arg23[%c0_23, %c0_24, %c9] : memref<16x16x27xf32, #tpu.memory_space<vmem>>, vector<16x16x3xf32>
    tpu.vector_store %arg23[%c0_23, %c0_24, %c9], %16 {strides = array<i32>} : memref<16x16x27xf32, #tpu.memory_space<vmem>>, vector<16x16x3xf32>,
    %18 = vector.extract_strided_slice %7 {offsets = [1, 1, 0], sizes = [16, 16, 3], strides = [1, 1, 1]} : vector<18x18x3xf32> to vector<16x16x3xf32>
    %c0_25 = arith.constant 0 : index
    %c0_26 = arith.constant 0 : index
    %c12 = arith.constant 12 : index
    %19 = vector.load %arg23[%c0_25, %c0_26, %c12] : memref<16x16x27xf32, #tpu.memory_space<vmem>>, vector<16x16x3xf32>
    tpu.vector_store %arg23[%c0_25, %c0_26, %c12], %18 {strides = array<i32>} : memref<16x16x27xf32, #tpu.memory_space<vmem>>, vector<16x16x3xf32>,
    %20 = vector.extract_strided_slice %7 {offsets = [1, 2, 0], sizes = [16, 16, 3], strides = [1, 1, 1]} : vector<18x18x3xf32> to vector<16x16x3xf32>
    %c0_27 = arith.constant 0 : index
    %c0_28 = arith.constant 0 : index
    %c15 = arith.constant 15 : index
    %21 = vector.load %arg23[%c0_27, %c0_28, %c15] : memref<16x16x27xf32, #tpu.memory_space<vmem>>, vector<16x16x3xf32>
    tpu.vector_store %arg23[%c0_27, %c0_28, %c15], %20 {strides = array<i32>} : memref<16x16x27xf32, #tpu.memory_space<vmem>>, vector<16x16x3xf32>,
    %22 = vector.extract_strided_slice %7 {offsets = [2, 0, 0], sizes = [16, 16, 3], strides = [1, 1, 1]} : vector<18x18x3xf32> to vector<16x16x3xf32>
    %c0_29 = arith.constant 0 : index
    %c0_30 = arith.constant 0 : index
    %c18 = arith.constant 18 : index
    %23 = vector.load %arg23[%c0_29, %c0_30, %c18] : memref<16x16x27xf32, #tpu.memory_space<vmem>>, vector<16x16x3xf32>
    tpu.vector_store %arg23[%c0_29, %c0_30, %c18], %22 {strides = array<i32>} : memref<16x16x27xf32, #tpu.memory_space<vmem>>, vector<16x16x3xf32>,
    %24 = vector.extract_strided_slice %7 {offsets = [2, 1, 0], sizes = [16, 16, 3], strides = [1, 1, 1]} : vector<18x18x3xf32> to vector<16x16x3xf32>
    %c0_31 = arith.constant 0 : index
    %c0_32 = arith.constant 0 : index
    %c21 = arith.constant 21 : index
    %25 = vector.load %arg23[%c0_31, %c0_32, %c21] : memref<16x16x27xf32, #tpu.memory_space<vmem>>, vector<16x16x3xf32>
    tpu.vector_store %arg23[%c0_31, %c0_32, %c21], %24 {strides = array<i32>} : memref<16x16x27xf32, #tpu.memory_space<vmem>>, vector<16x16x3xf32>,
    %26 = vector.extract_strided_slice %7 {offsets = [2, 2, 0], sizes = [16, 16, 3], strides = [1, 1, 1]} : vector<18x18x3xf32> to vector<16x16x3xf32>
    %c0_33 = arith.constant 0 : index
    %c0_34 = arith.constant 0 : index
    %c24 = arith.constant 24 : index
    %27 = vector.load %arg23[%c0_33, %c0_34, %c24] : memref<16x16x27xf32, #tpu.memory_space<vmem>>, vector<16x16x3xf32>
    tpu.vector_store %arg23[%c0_33, %c0_34, %c24], %26 {strides = array<i32>} : memref<16x16x27xf32, #tpu.memory_space<vmem>>, vector<16x16x3xf32>,
    %c0_35 = arith.constant 0 : index
    %c0_36 = arith.constant 0 : index
    %c0_37 = arith.constant 0 : index
    %28 = vector.load %arg23[%c0_35, %c0_36, %c0_37] : memref<16x16x27xf32, #tpu.memory_space<vmem>>, vector<16x16x27xf32>
    %29 = vector.shape_cast %28 : vector<16x16x27xf32> to vector<256x27xf32>
    %30 = arith.truncf %29 : vector<256x27xf32> to vector<256x27xbf16>
    %c0_38 = arith.constant 0 : index
    %c0_39 = arith.constant 0 : index
    %31 = vector.load %arg2[%c0_38, %c0_39] : memref<27x8xbf16, #tpu.memory_space<vmem>>, vector<27x8xbf16>
    %cst_40 = arith.constant dense<0.000000e+00> : vector<256x8xf32>
    %32 = tpu.matmul %30, %31, %cst_40 {dimension_numbers = #tpu.dot_dimension_numbers<[1], [0], [0], [1], [0, 0, 1, 1], [], []>} : vector<256x27xbf16>, vector<27x8xbf16>, vector<256x8xf32> -> vector<256x8xf32>
    %c0_41 = arith.constant 0 : index
    %c0_42 = arith.constant 0 : index
    %33 = vector.load %arg3[%c0_41, %c0_42] : memref<1x8xf32, #tpu.memory_space<vmem>>, vector<1x8xf32>
    %34 = vector.broadcast %33 : vector<1x8xf32> to vector<256x8xf32>
    %35 = arith.addf %32, %34 : vector<256x8xf32>
    %cst_43 = arith.constant 0.000000e+00 : f32
    %36 = vector.broadcast %cst_43 : f32 to vector<256x8xf32>
    %37 = arith.maximumf %35, %36 : vector<256x8xf32>
    %cst_44 = arith.constant 0.000000e+00 : f32
    %38 = vector.broadcast %cst_44 : f32 to vector<18x18x8xf32>
    %c0_45 = arith.constant 0 : index
    %c0_46 = arith.constant 0 : index
    %c0_47 = arith.constant 0 : index
    %39 = vector.load %arg25[%c0_45, %c0_46, %c0_47] : memref<18x18x8xf32, #tpu.memory_space<vmem>>, vector<18x18x8xf32>
    tpu.vector_store %arg25[%c0_45, %c0_46, %c0_47], %38 {strides = array<i32>} : memref<18x18x8xf32, #tpu.memory_space<vmem>>, vector<18x18x8xf32>,
    %40 = vector.shape_cast %37 : vector<256x8xf32> to vector<16x16x8xf32>
    %c1_48 = arith.constant 1 : index
    %c1_49 = arith.constant 1 : index
    %c0_50 = arith.constant 0 : index
    %41 = vector.load %arg25[%c1_48, %c1_49, %c0_50] : memref<18x18x8xf32, #tpu.memory_space<vmem>>, vector<16x16x8xf32>
    tpu.vector_store %arg25[%c1_48, %c1_49, %c0_50], %40 {strides = array<i32>} : memref<18x18x8xf32, #tpu.memory_space<vmem>>, vector<16x16x8xf32>,
    %cst_51 = arith.constant 0.000000e+00 : f32
    %42 = vector.broadcast %cst_51 : f32 to vector<8x8x128xf32>
    %c0_52 = arith.constant 0 : index
    %c0_53 = arith.constant 0 : index
    %c0_54 = arith.constant 0 : index
    %43 = vector.load %arg26[%c0_52, %c0_53, %c0_54] : memref<8x8x128xf32, #tpu.memory_space<vmem>>, vector<8x8x128xf32>
    tpu.vector_store %arg26[%c0_52, %c0_53, %c0_54], %42 {strides = array<i32>} : memref<8x8x128xf32, #tpu.memory_space<vmem>>, vector<8x8x128xf32>,
    %c0_55 = arith.constant 0 : index
    %c0_56 = arith.constant 0 : index
    %c0_57 = arith.constant 0 : index
    %44 = tpu.strided_load %arg25[%c0_55, %c0_56, %c0_57] {strides = array<i32: 2, 2, 1>} : memref<18x18x8xf32, #tpu.memory_space<vmem>>, vector<8x8x8xf32>
    %c0_58 = arith.constant 0 : index
    %c0_59 = arith.constant 0 : index
    %c0_60 = arith.constant 0 : index
    %45 = vector.load %arg26[%c0_58, %c0_59, %c0_60] : memref<8x8x128xf32, #tpu.memory_space<vmem>>, vector<8x8x8xf32>
    tpu.vector_store %arg26[%c0_58, %c0_59, %c0_60], %44 {strides = array<i32>} : memref<8x8x128xf32, #tpu.memory_space<vmem>>, vector<8x8x8xf32>,
    %c0_61 = arith.constant 0 : index
    %c1_62 = arith.constant 1 : index
    %c0_63 = arith.constant 0 : index
    %46 = tpu.strided_load %arg25[%c0_61, %c1_62, %c0_63] {strides = array<i32: 2, 2, 1>} : memref<18x18x8xf32, #tpu.memory_space<vmem>>, vector<8x8x8xf32>
    %c0_64 = arith.constant 0 : index
    %c0_65 = arith.constant 0 : index
    %c8 = arith.constant 8 : index
    %47 = vector.load %arg26[%c0_64, %c0_65, %c8] : memref<8x8x128xf32, #tpu.memory_space<vmem>>, vector<8x8x8xf32>
    tpu.vector_store %arg26[%c0_64, %c0_65, %c8], %46 {strides = array<i32>} : memref<8x8x128xf32, #tpu.memory_space<vmem>>, vector<8x8x8xf32>,
    %c0_66 = arith.constant 0 : index
    %c2 = arith.constant 2 : index
    %c0_67 = arith.constant 0 : index
    %48 = tpu.strided_load %arg25[%c0_66, %c2, %c0_67] {strides = array<i32: 2, 2, 1>} : memref<18x18x8xf32, #tpu.memory_space<vmem>>, vector<8x8x8xf32>
    %c0_68 = arith.constant 0 : index
    %c0_69 = arith.constant 0 : index
    %c16 = arith.constant 16 : index
    %49 = vector.load %arg26[%c0_68, %c0_69, %c16] : memref<8x8x128xf32, #tpu.memory_space<vmem>>, vector<8x8x8xf32>
    tpu.vector_store %arg26[%c0_68, %c0_69, %c16], %48 {strides = array<i32>} : memref<8x8x128xf32, #tpu.memory_space<vmem>>, vector<8x8x8xf32>,
    %c0_70 = arith.constant 0 : index
    %c3_71 = arith.constant 3 : index
    %c0_72 = arith.constant 0 : index
    %50 = tpu.strided_load %arg25[%c0_70, %c3_71, %c0_72] {strides = array<i32: 2, 2, 1>} : memref<18x18x8xf32, #tpu.memory_space<vmem>>, vector<8x8x8xf32>
    %c0_73 = arith.constant 0 : index
    %c0_74 = arith.constant 0 : index
    %c24_75 = arith.constant 24 : index
    %51 = vector.load %arg26[%c0_73, %c0_74, %c24_75] : memref<8x8x128xf32, #tpu.memory_space<vmem>>, vector<8x8x8xf32>
    tpu.vector_store %arg26[%c0_73, %c0_74, %c24_75], %50 {strides = array<i32>} : memref<8x8x128xf32, #tpu.memory_space<vmem>>, vector<8x8x8xf32>,
    %c1_76 = arith.constant 1 : index
    %c0_77 = arith.constant 0 : index
    %c0_78 = arith.constant 0 : index
    %52 = tpu.strided_load %arg25[%c1_76, %c0_77, %c0_78] {strides = array<i32: 2, 2, 1>} : memref<18x18x8xf32, #tpu.memory_space<vmem>>, vector<8x8x8xf32>
    %c0_79 = arith.constant 0 : index
    %c0_80 = arith.constant 0 : index
    %c32 = arith.constant 32 : index
    %53 = vector.load %arg26[%c0_79, %c0_80, %c32] : memref<8x8x128xf32, #tpu.memory_space<vmem>>, vector<8x8x8xf32>
    tpu.vector_store %arg26[%c0_79, %c0_80, %c32], %52 {strides = array<i32>} : memref<8x8x128xf32, #tpu.memory_space<vmem>>, vector<8x8x8xf32>,
    %c1_81 = arith.constant 1 : index
    %c1_82 = arith.constant 1 : index
    %c0_83 = arith.constant 0 : index
    %54 = tpu.strided_load %arg25[%c1_81, %c1_82, %c0_83] {strides = array<i32: 2, 2, 1>} : memref<18x18x8xf32, #tpu.memory_space<vmem>>, vector<8x8x8xf32>
    %c0_84 = arith.constant 0 : index
    %c0_85 = arith.constant 0 : index
    %c40 = arith.constant 40 : index
    %55 = vector.load %arg26[%c0_84, %c0_85, %c40] : memref<8x8x128xf32, #tpu.memory_space<vmem>>, vector<8x8x8xf32>
    tpu.vector_store %arg26[%c0_84, %c0_85, %c40], %54 {strides = array<i32>} : memref<8x8x128xf32, #tpu.memory_space<vmem>>, vector<8x8x8xf32>,
    %c1_86 = arith.constant 1 : index
    %c2_87 = arith.constant 2 : index
    %c0_88 = arith.constant 0 : index
    %56 = tpu.strided_load %arg25[%c1_86, %c2_87, %c0_88] {strides = array<i32: 2, 2, 1>} : memref<18x18x8xf32, #tpu.memory_space<vmem>>, vector<8x8x8xf32>
    %c0_89 = arith.constant 0 : index
    %c0_90 = arith.constant 0 : index
    %c48 = arith.constant 48 : index
    %57 = vector.load %arg26[%c0_89, %c0_90, %c48] : memref<8x8x128xf32, #tpu.memory_space<vmem>>, vector<8x8x8xf32>
    tpu.vector_store %arg26[%c0_89, %c0_90, %c48], %56 {strides = array<i32>} : memref<8x8x128xf32, #tpu.memory_space<vmem>>, vector<8x8x8xf32>,
    %c1_91 = arith.constant 1 : index
    %c3_92 = arith.constant 3 : index
    %c0_93 = arith.constant 0 : index
    %58 = tpu.strided_load %arg25[%c1_91, %c3_92, %c0_93] {strides = array<i32: 2, 2, 1>} : memref<18x18x8xf32, #tpu.memory_space<vmem>>, vector<8x8x8xf32>
    %c0_94 = arith.constant 0 : index
    %c0_95 = arith.constant 0 : index
    %c56 = arith.constant 56 : index
    %59 = vector.load %arg26[%c0_94, %c0_95, %c56] : memref<8x8x128xf32, #tpu.memory_space<vmem>>, vector<8x8x8xf32>
    tpu.vector_store %arg26[%c0_94, %c0_95, %c56], %58 {strides = array<i32>} : memref<8x8x128xf32, #tpu.memory_space<vmem>>, vector<8x8x8xf32>,
    %c2_96 = arith.constant 2 : index
    %c0_97 = arith.constant 0 : index
    %c0_98 = arith.constant 0 : index
    %60 = tpu.strided_load %arg25[%c2_96, %c0_97, %c0_98] {strides = array<i32: 2, 2, 1>} : memref<18x18x8xf32, #tpu.memory_space<vmem>>, vector<8x8x8xf32>
    %c0_99 = arith.constant 0 : index
    %c0_100 = arith.constant 0 : index
    %c64 = arith.constant 64 : index
    %61 = vector.load %arg26[%c0_99, %c0_100, %c64] : memref<8x8x128xf32, #tpu.memory_space<vmem>>, vector<8x8x8xf32>
    tpu.vector_store %arg26[%c0_99, %c0_100, %c64], %60 {strides = array<i32>} : memref<8x8x128xf32, #tpu.memory_space<vmem>>, vector<8x8x8xf32>,
    %c2_101 = arith.constant 2 : index
    %c1_102 = arith.constant 1 : index
    %c0_103 = arith.constant 0 : index
    %62 = tpu.strided_load %arg25[%c2_101, %c1_102, %c0_103] {strides = array<i32: 2, 2, 1>} : memref<18x18x8xf32, #tpu.memory_space<vmem>>, vector<8x8x8xf32>
    %c0_104 = arith.constant 0 : index
    %c0_105 = arith.constant 0 : index
    %c72 = arith.constant 72 : index
    %63 = vector.load %arg26[%c0_104, %c0_105, %c72] : memref<8x8x128xf32, #tpu.memory_space<vmem>>, vector<8x8x8xf32>
    tpu.vector_store %arg26[%c0_104, %c0_105, %c72], %62 {strides = array<i32>} : memref<8x8x128xf32, #tpu.memory_space<vmem>>, vector<8x8x8xf32>,
    %c2_106 = arith.constant 2 : index
    %c2_107 = arith.constant 2 : index
    %c0_108 = arith.constant 0 : index
    %64 = tpu.strided_load %arg25[%c2_106, %c2_107, %c0_108] {strides = array<i32: 2, 2, 1>} : memref<18x18x8xf32, #tpu.memory_space<vmem>>, vector<8x8x8xf32>
    %c0_109 = arith.constant 0 : index
    %c0_110 = arith.constant 0 : index
    %c80 = arith.constant 80 : index
    %65 = vector.load %arg26[%c0_109, %c0_110, %c80] : memref<8x8x128xf32, #tpu.memory_space<vmem>>, vector<8x8x8xf32>
    tpu.vector_store %arg26[%c0_109, %c0_110, %c80], %64 {strides = array<i32>} : memref<8x8x128xf32, #tpu.memory_space<vmem>>, vector<8x8x8xf32>,
    %c2_111 = arith.constant 2 : index
    %c3_112 = arith.constant 3 : index
    %c0_113 = arith.constant 0 : index
    %66 = tpu.strided_load %arg25[%c2_111, %c3_112, %c0_113] {strides = array<i32: 2, 2, 1>} : memref<18x18x8xf32, #tpu.memory_space<vmem>>, vector<8x8x8xf32>
    %c0_114 = arith.constant 0 : index
    %c0_115 = arith.constant 0 : index
    %c88 = arith.constant 88 : index
    %67 = vector.load %arg26[%c0_114, %c0_115, %c88] : memref<8x8x128xf32, #tpu.memory_space<vmem>>, vector<8x8x8xf32>
    tpu.vector_store %arg26[%c0_114, %c0_115, %c88], %66 {strides = array<i32>} : memref<8x8x128xf32, #tpu.memory_space<vmem>>, vector<8x8x8xf32>,
    %c3_116 = arith.constant 3 : index
    %c0_117 = arith.constant 0 : index
    %c0_118 = arith.constant 0 : index
    %68 = tpu.strided_load %arg25[%c3_116, %c0_117, %c0_118] {strides = array<i32: 2, 2, 1>} : memref<18x18x8xf32, #tpu.memory_space<vmem>>, vector<8x8x8xf32>
    %c0_119 = arith.constant 0 : index
    %c0_120 = arith.constant 0 : index
    %c96 = arith.constant 96 : index
    %69 = vector.load %arg26[%c0_119, %c0_120, %c96] : memref<8x8x128xf32, #tpu.memory_space<vmem>>, vector<8x8x8xf32>
    tpu.vector_store %arg26[%c0_119, %c0_120, %c96], %68 {strides = array<i32>} : memref<8x8x128xf32, #tpu.memory_space<vmem>>, vector<8x8x8xf32>,
    %c3_121 = arith.constant 3 : index
    %c1_122 = arith.constant 1 : index
    %c0_123 = arith.constant 0 : index
    %70 = tpu.strided_load %arg25[%c3_121, %c1_122, %c0_123] {strides = array<i32: 2, 2, 1>} : memref<18x18x8xf32, #tpu.memory_space<vmem>>, vector<8x8x8xf32>
    %c0_124 = arith.constant 0 : index
    %c0_125 = arith.constant 0 : index
    %c104 = arith.constant 104 : index
    %71 = vector.load %arg26[%c0_124, %c0_125, %c104] : memref<8x8x128xf32, #tpu.memory_space<vmem>>, vector<8x8x8xf32>
    tpu.vector_store %arg26[%c0_124, %c0_125, %c104], %70 {strides = array<i32>} : memref<8x8x128xf32, #tpu.memory_space<vmem>>, vector<8x8x8xf32>,
    %c3_126 = arith.constant 3 : index
    %c2_127 = arith.constant 2 : index
    %c0_128 = arith.constant 0 : index
    %72 = tpu.strided_load %arg25[%c3_126, %c2_127, %c0_128] {strides = array<i32: 2, 2, 1>} : memref<18x18x8xf32, #tpu.memory_space<vmem>>, vector<8x8x8xf32>
    %c0_129 = arith.constant 0 : index
    %c0_130 = arith.constant 0 : index
    %c112 = arith.constant 112 : index
    %73 = vector.load %arg26[%c0_129, %c0_130, %c112] : memref<8x8x128xf32, #tpu.memory_space<vmem>>, vector<8x8x8xf32>
    tpu.vector_store %arg26[%c0_129, %c0_130, %c112], %72 {strides = array<i32>} : memref<8x8x128xf32, #tpu.memory_space<vmem>>, vector<8x8x8xf32>,
    %c3_131 = arith.constant 3 : index
    %c3_132 = arith.constant 3 : index
    %c0_133 = arith.constant 0 : index
    %74 = tpu.strided_load %arg25[%c3_131, %c3_132, %c0_133] {strides = array<i32: 2, 2, 1>} : memref<18x18x8xf32, #tpu.memory_space<vmem>>, vector<8x8x8xf32>
    %c0_134 = arith.constant 0 : index
    %c0_135 = arith.constant 0 : index
    %c120 = arith.constant 120 : index
    %75 = vector.load %arg26[%c0_134, %c0_135, %c120] : memref<8x8x128xf32, #tpu.memory_space<vmem>>, vector<8x8x8xf32>
    tpu.vector_store %arg26[%c0_134, %c0_135, %c120], %74 {strides = array<i32>} : memref<8x8x128xf32, #tpu.memory_space<vmem>>, vector<8x8x8xf32>,
    %c0_136 = arith.constant 0 : index
    %c0_137 = arith.constant 0 : index
    %c0_138 = arith.constant 0 : index
    %76 = vector.load %arg26[%c0_136, %c0_137, %c0_138] : memref<8x8x128xf32, #tpu.memory_space<vmem>>, vector<8x8x128xf32>
    %77 = vector.shape_cast %76 : vector<8x8x128xf32> to vector<64x128xf32>
    %78 = arith.truncf %77 : vector<64x128xf32> to vector<64x128xbf16>
    %c0_139 = arith.constant 0 : index
    %c0_140 = arith.constant 0 : index
    %79 = vector.load %arg4[%c0_139, %c0_140] : memref<128x8xbf16, #tpu.memory_space<vmem>>, vector<128x8xbf16>
    %cst_141 = arith.constant dense<0.000000e+00> : vector<64x8xf32>
    %80 = tpu.matmul %78, %79, %cst_141 {dimension_numbers = #tpu.dot_dimension_numbers<[1], [0], [0], [1], [0, 0, 1, 1], [], []>} : vector<64x128xbf16>, vector<128x8xbf16>, vector<64x8xf32> -> vector<64x8xf32>
    %c0_142 = arith.constant 0 : index
    %c0_143 = arith.constant 0 : index
    %81 = vector.load %arg5[%c0_142, %c0_143] : memref<1x8xf32, #tpu.memory_space<vmem>>, vector<1x8xf32>
    %82 = vector.broadcast %81 : vector<1x8xf32> to vector<64x8xf32>
    %83 = arith.addf %80, %82 : vector<64x8xf32>
    %cst_144 = arith.constant 0.000000e+00 : f32
    %84 = vector.broadcast %cst_144 : f32 to vector<8x8x12xf32>
    %c0_145 = arith.constant 0 : index
    %c0_146 = arith.constant 0 : index
    %c0_147 = arith.constant 0 : index
    %85 = vector.load %arg27[%c0_145, %c0_146, %c0_147] : memref<8x8x12xf32, #tpu.memory_space<vmem>>, vector<8x8x12xf32>
    tpu.vector_store %arg27[%c0_145, %c0_146, %c0_147], %84 {strides = array<i32>} : memref<8x8x12xf32, #tpu.memory_space<vmem>>, vector<8x8x12xf32>,
    %c1_148 = arith.constant 1 : index
    %c1_149 = arith.constant 1 : index
    %c0_150 = arith.constant 0 : index
    %86 = tpu.strided_load %arg24[%c1_148, %c1_149, %c0_150] {strides = array<i32: 2, 2, 1>} : memref<18x18x3xf32, #tpu.memory_space<vmem>>, vector<8x8x3xf32>
    %c0_151 = arith.constant 0 : index
    %c0_152 = arith.constant 0 : index
    %c0_153 = arith.constant 0 : index
    %87 = vector.load %arg27[%c0_151, %c0_152, %c0_153] : memref<8x8x12xf32, #tpu.memory_space<vmem>>, vector<8x8x3xf32>
    tpu.vector_store %arg27[%c0_151, %c0_152, %c0_153], %86 {strides = array<i32>} : memref<8x8x12xf32, #tpu.memory_space<vmem>>, vector<8x8x3xf32>,
    %c1_154 = arith.constant 1 : index
    %c2_155 = arith.constant 2 : index
    %c0_156 = arith.constant 0 : index
    %88 = tpu.strided_load %arg24[%c1_154, %c2_155, %c0_156] {strides = array<i32: 2, 2, 1>} : memref<18x18x3xf32, #tpu.memory_space<vmem>>, vector<8x8x3xf32>
    %c0_157 = arith.constant 0 : index
    %c0_158 = arith.constant 0 : index
    %c3_159 = arith.constant 3 : index
    %89 = vector.load %arg27[%c0_157, %c0_158, %c3_159] : memref<8x8x12xf32, #tpu.memory_space<vmem>>, vector<8x8x3xf32>
    tpu.vector_store %arg27[%c0_157, %c0_158, %c3_159], %88 {strides = array<i32>} : memref<8x8x12xf32, #tpu.memory_space<vmem>>, vector<8x8x3xf32>,
    %c2_160 = arith.constant 2 : index
    %c1_161 = arith.constant 1 : index
    %c0_162 = arith.constant 0 : index
    %90 = tpu.strided_load %arg24[%c2_160, %c1_161, %c0_162] {strides = array<i32: 2, 2, 1>} : memref<18x18x3xf32, #tpu.memory_space<vmem>>, vector<8x8x3xf32>
    %c0_163 = arith.constant 0 : index
    %c0_164 = arith.constant 0 : index
    %c6_165 = arith.constant 6 : index
    %91 = vector.load %arg27[%c0_163, %c0_164, %c6_165] : memref<8x8x12xf32, #tpu.memory_space<vmem>>, vector<8x8x3xf32>
    tpu.vector_store %arg27[%c0_163, %c0_164, %c6_165], %90 {strides = array<i32>} : memref<8x8x12xf32, #tpu.memory_space<vmem>>, vector<8x8x3xf32>,
    %c2_166 = arith.constant 2 : index
    %c2_167 = arith.constant 2 : index
    %c0_168 = arith.constant 0 : index
    %92 = tpu.strided_load %arg24[%c2_166, %c2_167, %c0_168] {strides = array<i32: 2, 2, 1>} : memref<18x18x3xf32, #tpu.memory_space<vmem>>, vector<8x8x3xf32>
    %c0_169 = arith.constant 0 : index
    %c0_170 = arith.constant 0 : index
    %c9_171 = arith.constant 9 : index
    %93 = vector.load %arg27[%c0_169, %c0_170, %c9_171] : memref<8x8x12xf32, #tpu.memory_space<vmem>>, vector<8x8x3xf32>
    tpu.vector_store %arg27[%c0_169, %c0_170, %c9_171], %92 {strides = array<i32>} : memref<8x8x12xf32, #tpu.memory_space<vmem>>, vector<8x8x3xf32>,
    %c0_172 = arith.constant 0 : index
    %c0_173 = arith.constant 0 : index
    %c0_174 = arith.constant 0 : index
    %94 = vector.load %arg27[%c0_172, %c0_173, %c0_174] : memref<8x8x12xf32, #tpu.memory_space<vmem>>, vector<8x8x12xf32>
    %95 = vector.shape_cast %94 : vector<8x8x12xf32> to vector<64x12xf32>
    %96 = arith.truncf %95 : vector<64x12xf32> to vector<64x12xbf16>
    %c0_175 = arith.constant 0 : index
    %c0_176 = arith.constant 0 : index
    %97 = vector.load %arg6[%c0_175, %c0_176] : memref<12x8xbf16, #tpu.memory_space<vmem>>, vector<12x8xbf16>
    %cst_177 = arith.constant dense<0.000000e+00> : vector<64x8xf32>
    %98 = tpu.matmul %96, %97, %cst_177 {dimension_numbers = #tpu.dot_dimension_numbers<[1], [0], [0], [1], [0, 0, 1, 1], [], []>} : vector<64x12xbf16>, vector<12x8xbf16>, vector<64x8xf32> -> vector<64x8xf32>
    %c0_178 = arith.constant 0 : index
    %c0_179 = arith.constant 0 : index
    %99 = vector.load %arg7[%c0_178, %c0_179] : memref<1x8xf32, #tpu.memory_space<vmem>>, vector<1x8xf32>
    %100 = vector.broadcast %99 : vector<1x8xf32> to vector<64x8xf32>
    %101 = arith.addf %98, %100 : vector<64x8xf32>
    %102 = arith.addf %83, %101 : vector<64x8xf32>
    %103 = vector.shape_cast %102 : vector<64x8xf32> to vector<8x8x8xf32>
    %cst_180 = arith.constant 0.000000e+00 : f32
    %104 = vector.broadcast %cst_180 : f32 to vector<10x10x8xf32>
    %c0_181 = arith.constant 0 : index
    %c0_182 = arith.constant 0 : index
    %c0_183 = arith.constant 0 : index
    %105 = vector.load %arg29[%c0_181, %c0_182, %c0_183] : memref<10x10x8xf32, #tpu.memory_space<vmem>>, vector<10x10x8xf32>
    tpu.vector_store %arg29[%c0_181, %c0_182, %c0_183], %104 {strides = array<i32>} : memref<10x10x8xf32, #tpu.memory_space<vmem>>, vector<10x10x8xf32>,
    %c1_184 = arith.constant 1 : index
    %c1_185 = arith.constant 1 : index
    %c0_186 = arith.constant 0 : index
    %106 = vector.load %arg29[%c1_184, %c1_185, %c0_186] : memref<10x10x8xf32, #tpu.memory_space<vmem>>, vector<8x8x8xf32>
    tpu.vector_store %arg29[%c1_184, %c1_185, %c0_186], %103 {strides = array<i32>} : memref<10x10x8xf32, #tpu.memory_space<vmem>>, vector<8x8x8xf32>,
    %c0_187 = arith.constant 0 : index
    %c0_188 = arith.constant 0 : index
    %c0_189 = arith.constant 0 : index
    %107 = vector.load %arg29[%c0_187, %c0_188, %c0_189] : memref<10x10x8xf32, #tpu.memory_space<vmem>>, vector<10x10x8xf32>
    %cst_190 = arith.constant 0.000000e+00 : f32
    %108 = vector.broadcast %cst_190 : f32 to vector<10x10x8xf32>
    %109 = arith.maximumf %107, %108 : vector<10x10x8xf32>
    %cst_191 = arith.constant 0.000000e+00 : f32
    %110 = vector.broadcast %cst_191 : f32 to vector<8x8x72xf32>
    %c0_192 = arith.constant 0 : index
    %c0_193 = arith.constant 0 : index
    %c0_194 = arith.constant 0 : index
    %111 = vector.load %arg28[%c0_192, %c0_193, %c0_194] : memref<8x8x72xf32, #tpu.memory_space<vmem>>, vector<8x8x72xf32>
    tpu.vector_store %arg28[%c0_192, %c0_193, %c0_194], %110 {strides = array<i32>} : memref<8x8x72xf32, #tpu.memory_space<vmem>>, vector<8x8x72xf32>,
    %112 = vector.extract_strided_slice %109 {offsets = [0, 0, 0], sizes = [8, 8, 8], strides = [1, 1, 1]} : vector<10x10x8xf32> to vector<8x8x8xf32>
    %c0_195 = arith.constant 0 : index
    %c0_196 = arith.constant 0 : index
    %c0_197 = arith.constant 0 : index
    %113 = vector.load %arg28[%c0_195, %c0_196, %c0_197] : memref<8x8x72xf32, #tpu.memory_space<vmem>>, vector<8x8x8xf32>
    tpu.vector_store %arg28[%c0_195, %c0_196, %c0_197], %112 {strides = array<i32>} : memref<8x8x72xf32, #tpu.memory_space<vmem>>, vector<8x8x8xf32>,
    %114 = vector.extract_strided_slice %109 {offsets = [0, 1, 0], sizes = [8, 8, 8], strides = [1, 1, 1]} : vector<10x10x8xf32> to vector<8x8x8xf32>
    %c0_198 = arith.constant 0 : index
    %c0_199 = arith.constant 0 : index
    %c8_200 = arith.constant 8 : index
    %115 = vector.load %arg28[%c0_198, %c0_199, %c8_200] : memref<8x8x72xf32, #tpu.memory_space<vmem>>, vector<8x8x8xf32>
    tpu.vector_store %arg28[%c0_198, %c0_199, %c8_200], %114 {strides = array<i32>} : memref<8x8x72xf32, #tpu.memory_space<vmem>>, vector<8x8x8xf32>,
    %116 = vector.extract_strided_slice %109 {offsets = [0, 2, 0], sizes = [8, 8, 8], strides = [1, 1, 1]} : vector<10x10x8xf32> to vector<8x8x8xf32>
    %c0_201 = arith.constant 0 : index
    %c0_202 = arith.constant 0 : index
    %c16_203 = arith.constant 16 : index
    %117 = vector.load %arg28[%c0_201, %c0_202, %c16_203] : memref<8x8x72xf32, #tpu.memory_space<vmem>>, vector<8x8x8xf32>
    tpu.vector_store %arg28[%c0_201, %c0_202, %c16_203], %116 {strides = array<i32>} : memref<8x8x72xf32, #tpu.memory_space<vmem>>, vector<8x8x8xf32>,
    %118 = vector.extract_strided_slice %109 {offsets = [1, 0, 0], sizes = [8, 8, 8], strides = [1, 1, 1]} : vector<10x10x8xf32> to vector<8x8x8xf32>
    %c0_204 = arith.constant 0 : index
    %c0_205 = arith.constant 0 : index
    %c24_206 = arith.constant 24 : index
    %119 = vector.load %arg28[%c0_204, %c0_205, %c24_206] : memref<8x8x72xf32, #tpu.memory_space<vmem>>, vector<8x8x8xf32>
    tpu.vector_store %arg28[%c0_204, %c0_205, %c24_206], %118 {strides = array<i32>} : memref<8x8x72xf32, #tpu.memory_space<vmem>>, vector<8x8x8xf32>,
    %120 = vector.extract_strided_slice %109 {offsets = [1, 1, 0], sizes = [8, 8, 8], strides = [1, 1, 1]} : vector<10x10x8xf32> to vector<8x8x8xf32>
    %c0_207 = arith.constant 0 : index
    %c0_208 = arith.constant 0 : index
    %c32_209 = arith.constant 32 : index
    %121 = vector.load %arg28[%c0_207, %c0_208, %c32_209] : memref<8x8x72xf32, #tpu.memory_space<vmem>>, vector<8x8x8xf32>
    tpu.vector_store %arg28[%c0_207, %c0_208, %c32_209], %120 {strides = array<i32>} : memref<8x8x72xf32, #tpu.memory_space<vmem>>, vector<8x8x8xf32>,
    %122 = vector.extract_strided_slice %109 {offsets = [1, 2, 0], sizes = [8, 8, 8], strides = [1, 1, 1]} : vector<10x10x8xf32> to vector<8x8x8xf32>
    %c0_210 = arith.constant 0 : index
    %c0_211 = arith.constant 0 : index
    %c40_212 = arith.constant 40 : index
    %123 = vector.load %arg28[%c0_210, %c0_211, %c40_212] : memref<8x8x72xf32, #tpu.memory_space<vmem>>, vector<8x8x8xf32>
    tpu.vector_store %arg28[%c0_210, %c0_211, %c40_212], %122 {strides = array<i32>} : memref<8x8x72xf32, #tpu.memory_space<vmem>>, vector<8x8x8xf32>,
    %124 = vector.extract_strided_slice %109 {offsets = [2, 0, 0], sizes = [8, 8, 8], strides = [1, 1, 1]} : vector<10x10x8xf32> to vector<8x8x8xf32>
    %c0_213 = arith.constant 0 : index
    %c0_214 = arith.constant 0 : index
    %c48_215 = arith.constant 48 : index
    %125 = vector.load %arg28[%c0_213, %c0_214, %c48_215] : memref<8x8x72xf32, #tpu.memory_space<vmem>>, vector<8x8x8xf32>
    tpu.vector_store %arg28[%c0_213, %c0_214, %c48_215], %124 {strides = array<i32>} : memref<8x8x72xf32, #tpu.memory_space<vmem>>, vector<8x8x8xf32>,
    %126 = vector.extract_strided_slice %109 {offsets = [2, 1, 0], sizes = [8, 8, 8], strides = [1, 1, 1]} : vector<10x10x8xf32> to vector<8x8x8xf32>
    %c0_216 = arith.constant 0 : index
    %c0_217 = arith.constant 0 : index
    %c56_218 = arith.constant 56 : index
    %127 = vector.load %arg28[%c0_216, %c0_217, %c56_218] : memref<8x8x72xf32, #tpu.memory_space<vmem>>, vector<8x8x8xf32>
    tpu.vector_store %arg28[%c0_216, %c0_217, %c56_218], %126 {strides = array<i32>} : memref<8x8x72xf32, #tpu.memory_space<vmem>>, vector<8x8x8xf32>,
    %128 = vector.extract_strided_slice %109 {offsets = [2, 2, 0], sizes = [8, 8, 8], strides = [1, 1, 1]} : vector<10x10x8xf32> to vector<8x8x8xf32>
    %c0_219 = arith.constant 0 : index
    %c0_220 = arith.constant 0 : index
    %c64_221 = arith.constant 64 : index
    %129 = vector.load %arg28[%c0_219, %c0_220, %c64_221] : memref<8x8x72xf32, #tpu.memory_space<vmem>>, vector<8x8x8xf32>
    tpu.vector_store %arg28[%c0_219, %c0_220, %c64_221], %128 {strides = array<i32>} : memref<8x8x72xf32, #tpu.memory_space<vmem>>, vector<8x8x8xf32>,
    %c0_222 = arith.constant 0 : index
    %c0_223 = arith.constant 0 : index
    %c0_224 = arith.constant 0 : index
    %130 = vector.load %arg28[%c0_222, %c0_223, %c0_224] : memref<8x8x72xf32, #tpu.memory_space<vmem>>, vector<8x8x72xf32>
    %131 = vector.shape_cast %130 : vector<8x8x72xf32> to vector<64x72xf32>
    %132 = arith.truncf %131 : vector<64x72xf32> to vector<64x72xbf16>
    %c0_225 = arith.constant 0 : index
    %c0_226 = arith.constant 0 : index
    %133 = vector.load %arg8[%c0_225, %c0_226] : memref<72x8xbf16, #tpu.memory_space<vmem>>, vector<72x8xbf16>
    %cst_227 = arith.constant dense<0.000000e+00> : vector<64x8xf32>
    %134 = tpu.matmul %132, %133, %cst_227 {dimension_numbers = #tpu.dot_dimension_numbers<[1], [0], [0], [1], [0, 0, 1, 1], [], []>} : vector<64x72xbf16>, vector<72x8xbf16>, vector<64x8xf32> -> vector<64x8xf32>
    %c0_228 = arith.constant 0 : index
    %c0_229 = arith.constant 0 : index
    %135 = vector.load %arg9[%c0_228, %c0_229] : memref<1x8xf32, #tpu.memory_space<vmem>>, vector<1x8xf32>
    %136 = vector.broadcast %135 : vector<1x8xf32> to vector<64x8xf32>
    %137 = arith.addf %134, %136 : vector<64x8xf32>
    %cst_230 = arith.constant 0.000000e+00 : f32
    %138 = vector.broadcast %cst_230 : f32 to vector<64x8xf32>
    %139 = arith.maximumf %137, %138 : vector<64x8xf32>
    %cst_231 = arith.constant 0.000000e+00 : f32
    %140 = vector.broadcast %cst_231 : f32 to vector<10x10x8xf32>
    %c0_232 = arith.constant 0 : index
    %c0_233 = arith.constant 0 : index
    %c0_234 = arith.constant 0 : index
    %141 = vector.load %arg30[%c0_232, %c0_233, %c0_234] : memref<10x10x8xf32, #tpu.memory_space<vmem>>, vector<10x10x8xf32>
    tpu.vector_store %arg30[%c0_232, %c0_233, %c0_234], %140 {strides = array<i32>} : memref<10x10x8xf32, #tpu.memory_space<vmem>>, vector<10x10x8xf32>,
    %142 = vector.shape_cast %139 : vector<64x8xf32> to vector<8x8x8xf32>
    %c1_235 = arith.constant 1 : index
    %c1_236 = arith.constant 1 : index
    %c0_237 = arith.constant 0 : index
    %143 = vector.load %arg30[%c1_235, %c1_236, %c0_237] : memref<10x10x8xf32, #tpu.memory_space<vmem>>, vector<8x8x8xf32>
    tpu.vector_store %arg30[%c1_235, %c1_236, %c0_237], %142 {strides = array<i32>} : memref<10x10x8xf32, #tpu.memory_space<vmem>>, vector<8x8x8xf32>,
    %cst_238 = arith.constant 0.000000e+00 : f32
    %144 = vector.broadcast %cst_238 : f32 to vector<4x8x128xf32>
    %c0_239 = arith.constant 0 : index
    %c0_240 = arith.constant 0 : index
    %c0_241 = arith.constant 0 : index
    %145 = vector.load %arg31[%c0_239, %c0_240, %c0_241] : memref<4x8x128xf32, #tpu.memory_space<vmem>>, vector<4x8x128xf32>
    tpu.vector_store %arg31[%c0_239, %c0_240, %c0_241], %144 {strides = array<i32>} : memref<4x8x128xf32, #tpu.memory_space<vmem>>, vector<4x8x128xf32>,
    %c0_242 = arith.constant 0 : index
    %c0_243 = arith.constant 0 : index
    %c0_244 = arith.constant 0 : index
    %146 = tpu.strided_load %arg30[%c0_242, %c0_243, %c0_244] {strides = array<i32: 2, 2, 1>} : memref<10x10x8xf32, #tpu.memory_space<vmem>>, vector<4x4x8xf32>
    %c0_245 = arith.constant 0 : index
    %c0_246 = arith.constant 0 : index
    %c0_247 = arith.constant 0 : index
    %147 = vector.load %arg31[%c0_245, %c0_246, %c0_247] : memref<4x8x128xf32, #tpu.memory_space<vmem>>, vector<4x4x8xf32>
    tpu.vector_store %arg31[%c0_245, %c0_246, %c0_247], %146 {strides = array<i32>} : memref<4x8x128xf32, #tpu.memory_space<vmem>>, vector<4x4x8xf32>,
    %c0_248 = arith.constant 0 : index
    %c1_249 = arith.constant 1 : index
    %c0_250 = arith.constant 0 : index
    %148 = tpu.strided_load %arg30[%c0_248, %c1_249, %c0_250] {strides = array<i32: 2, 2, 1>} : memref<10x10x8xf32, #tpu.memory_space<vmem>>, vector<4x4x8xf32>
    %c0_251 = arith.constant 0 : index
    %c0_252 = arith.constant 0 : index
    %c8_253 = arith.constant 8 : index
    %149 = vector.load %arg31[%c0_251, %c0_252, %c8_253] : memref<4x8x128xf32, #tpu.memory_space<vmem>>, vector<4x4x8xf32>
    tpu.vector_store %arg31[%c0_251, %c0_252, %c8_253], %148 {strides = array<i32>} : memref<4x8x128xf32, #tpu.memory_space<vmem>>, vector<4x4x8xf32>,
    %c0_254 = arith.constant 0 : index
    %c2_255 = arith.constant 2 : index
    %c0_256 = arith.constant 0 : index
    %150 = tpu.strided_load %arg30[%c0_254, %c2_255, %c0_256] {strides = array<i32: 2, 2, 1>} : memref<10x10x8xf32, #tpu.memory_space<vmem>>, vector<4x4x8xf32>
    %c0_257 = arith.constant 0 : index
    %c0_258 = arith.constant 0 : index
    %c16_259 = arith.constant 16 : index
    %151 = vector.load %arg31[%c0_257, %c0_258, %c16_259] : memref<4x8x128xf32, #tpu.memory_space<vmem>>, vector<4x4x8xf32>
    tpu.vector_store %arg31[%c0_257, %c0_258, %c16_259], %150 {strides = array<i32>} : memref<4x8x128xf32, #tpu.memory_space<vmem>>, vector<4x4x8xf32>,
    %c0_260 = arith.constant 0 : index
    %c3_261 = arith.constant 3 : index
    %c0_262 = arith.constant 0 : index
    %152 = tpu.strided_load %arg30[%c0_260, %c3_261, %c0_262] {strides = array<i32: 2, 2, 1>} : memref<10x10x8xf32, #tpu.memory_space<vmem>>, vector<4x4x8xf32>
    %c0_263 = arith.constant 0 : index
    %c0_264 = arith.constant 0 : index
    %c24_265 = arith.constant 24 : index
    %153 = vector.load %arg31[%c0_263, %c0_264, %c24_265] : memref<4x8x128xf32, #tpu.memory_space<vmem>>, vector<4x4x8xf32>
    tpu.vector_store %arg31[%c0_263, %c0_264, %c24_265], %152 {strides = array<i32>} : memref<4x8x128xf32, #tpu.memory_space<vmem>>, vector<4x4x8xf32>,
    %c1_266 = arith.constant 1 : index
    %c0_267 = arith.constant 0 : index
    %c0_268 = arith.constant 0 : index
    %154 = tpu.strided_load %arg30[%c1_266, %c0_267, %c0_268] {strides = array<i32: 2, 2, 1>} : memref<10x10x8xf32, #tpu.memory_space<vmem>>, vector<4x4x8xf32>
    %c0_269 = arith.constant 0 : index
    %c0_270 = arith.constant 0 : index
    %c32_271 = arith.constant 32 : index
    %155 = vector.load %arg31[%c0_269, %c0_270, %c32_271] : memref<4x8x128xf32, #tpu.memory_space<vmem>>, vector<4x4x8xf32>
    tpu.vector_store %arg31[%c0_269, %c0_270, %c32_271], %154 {strides = array<i32>} : memref<4x8x128xf32, #tpu.memory_space<vmem>>, vector<4x4x8xf32>,
    %c1_272 = arith.constant 1 : index
    %c1_273 = arith.constant 1 : index
    %c0_274 = arith.constant 0 : index
    %156 = tpu.strided_load %arg30[%c1_272, %c1_273, %c0_274] {strides = array<i32: 2, 2, 1>} : memref<10x10x8xf32, #tpu.memory_space<vmem>>, vector<4x4x8xf32>
    %c0_275 = arith.constant 0 : index
    %c0_276 = arith.constant 0 : index
    %c40_277 = arith.constant 40 : index
    %157 = vector.load %arg31[%c0_275, %c0_276, %c40_277] : memref<4x8x128xf32, #tpu.memory_space<vmem>>, vector<4x4x8xf32>
    tpu.vector_store %arg31[%c0_275, %c0_276, %c40_277], %156 {strides = array<i32>} : memref<4x8x128xf32, #tpu.memory_space<vmem>>, vector<4x4x8xf32>,
    %c1_278 = arith.constant 1 : index
    %c2_279 = arith.constant 2 : index
    %c0_280 = arith.constant 0 : index
    %158 = tpu.strided_load %arg30[%c1_278, %c2_279, %c0_280] {strides = array<i32: 2, 2, 1>} : memref<10x10x8xf32, #tpu.memory_space<vmem>>, vector<4x4x8xf32>
    %c0_281 = arith.constant 0 : index
    %c0_282 = arith.constant 0 : index
    %c48_283 = arith.constant 48 : index
    %159 = vector.load %arg31[%c0_281, %c0_282, %c48_283] : memref<4x8x128xf32, #tpu.memory_space<vmem>>, vector<4x4x8xf32>
    tpu.vector_store %arg31[%c0_281, %c0_282, %c48_283], %158 {strides = array<i32>} : memref<4x8x128xf32, #tpu.memory_space<vmem>>, vector<4x4x8xf32>,
    %c1_284 = arith.constant 1 : index
    %c3_285 = arith.constant 3 : index
    %c0_286 = arith.constant 0 : index
    %160 = tpu.strided_load %arg30[%c1_284, %c3_285, %c0_286] {strides = array<i32: 2, 2, 1>} : memref<10x10x8xf32, #tpu.memory_space<vmem>>, vector<4x4x8xf32>
    %c0_287 = arith.constant 0 : index
    %c0_288 = arith.constant 0 : index
    %c56_289 = arith.constant 56 : index
    %161 = vector.load %arg31[%c0_287, %c0_288, %c56_289] : memref<4x8x128xf32, #tpu.memory_space<vmem>>, vector<4x4x8xf32>
    tpu.vector_store %arg31[%c0_287, %c0_288, %c56_289], %160 {strides = array<i32>} : memref<4x8x128xf32, #tpu.memory_space<vmem>>, vector<4x4x8xf32>,
    %c2_290 = arith.constant 2 : index
    %c0_291 = arith.constant 0 : index
    %c0_292 = arith.constant 0 : index
    %162 = tpu.strided_load %arg30[%c2_290, %c0_291, %c0_292] {strides = array<i32: 2, 2, 1>} : memref<10x10x8xf32, #tpu.memory_space<vmem>>, vector<4x4x8xf32>
    %c0_293 = arith.constant 0 : index
    %c0_294 = arith.constant 0 : index
    %c64_295 = arith.constant 64 : index
    %163 = vector.load %arg31[%c0_293, %c0_294, %c64_295] : memref<4x8x128xf32, #tpu.memory_space<vmem>>, vector<4x4x8xf32>
    tpu.vector_store %arg31[%c0_293, %c0_294, %c64_295], %162 {strides = array<i32>} : memref<4x8x128xf32, #tpu.memory_space<vmem>>, vector<4x4x8xf32>,
    %c2_296 = arith.constant 2 : index
    %c1_297 = arith.constant 1 : index
    %c0_298 = arith.constant 0 : index
    %164 = tpu.strided_load %arg30[%c2_296, %c1_297, %c0_298] {strides = array<i32: 2, 2, 1>} : memref<10x10x8xf32, #tpu.memory_space<vmem>>, vector<4x4x8xf32>
    %c0_299 = arith.constant 0 : index
    %c0_300 = arith.constant 0 : index
    %c72_301 = arith.constant 72 : index
    %165 = vector.load %arg31[%c0_299, %c0_300, %c72_301] : memref<4x8x128xf32, #tpu.memory_space<vmem>>, vector<4x4x8xf32>
    tpu.vector_store %arg31[%c0_299, %c0_300, %c72_301], %164 {strides = array<i32>} : memref<4x8x128xf32, #tpu.memory_space<vmem>>, vector<4x4x8xf32>,
    %c2_302 = arith.constant 2 : index
    %c2_303 = arith.constant 2 : index
    %c0_304 = arith.constant 0 : index
    %166 = tpu.strided_load %arg30[%c2_302, %c2_303, %c0_304] {strides = array<i32: 2, 2, 1>} : memref<10x10x8xf32, #tpu.memory_space<vmem>>, vector<4x4x8xf32>
    %c0_305 = arith.constant 0 : index
    %c0_306 = arith.constant 0 : index
    %c80_307 = arith.constant 80 : index
    %167 = vector.load %arg31[%c0_305, %c0_306, %c80_307] : memref<4x8x128xf32, #tpu.memory_space<vmem>>, vector<4x4x8xf32>
    tpu.vector_store %arg31[%c0_305, %c0_306, %c80_307], %166 {strides = array<i32>} : memref<4x8x128xf32, #tpu.memory_space<vmem>>, vector<4x4x8xf32>,
    %c2_308 = arith.constant 2 : index
    %c3_309 = arith.constant 3 : index
    %c0_310 = arith.constant 0 : index
    %168 = tpu.strided_load %arg30[%c2_308, %c3_309, %c0_310] {strides = array<i32: 2, 2, 1>} : memref<10x10x8xf32, #tpu.memory_space<vmem>>, vector<4x4x8xf32>
    %c0_311 = arith.constant 0 : index
    %c0_312 = arith.constant 0 : index
    %c88_313 = arith.constant 88 : index
    %169 = vector.load %arg31[%c0_311, %c0_312, %c88_313] : memref<4x8x128xf32, #tpu.memory_space<vmem>>, vector<4x4x8xf32>
    tpu.vector_store %arg31[%c0_311, %c0_312, %c88_313], %168 {strides = array<i32>} : memref<4x8x128xf32, #tpu.memory_space<vmem>>, vector<4x4x8xf32>,
    %c3_314 = arith.constant 3 : index
    %c0_315 = arith.constant 0 : index
    %c0_316 = arith.constant 0 : index
    %170 = tpu.strided_load %arg30[%c3_314, %c0_315, %c0_316] {strides = array<i32: 2, 2, 1>} : memref<10x10x8xf32, #tpu.memory_space<vmem>>, vector<4x4x8xf32>
    %c0_317 = arith.constant 0 : index
    %c0_318 = arith.constant 0 : index
    %c96_319 = arith.constant 96 : index
    %171 = vector.load %arg31[%c0_317, %c0_318, %c96_319] : memref<4x8x128xf32, #tpu.memory_space<vmem>>, vector<4x4x8xf32>
    tpu.vector_store %arg31[%c0_317, %c0_318, %c96_319], %170 {strides = array<i32>} : memref<4x8x128xf32, #tpu.memory_space<vmem>>, vector<4x4x8xf32>,
    %c3_320 = arith.constant 3 : index
    %c1_321 = arith.constant 1 : index
    %c0_322 = arith.constant 0 : index
    %172 = tpu.strided_load %arg30[%c3_320, %c1_321, %c0_322] {strides = array<i32: 2, 2, 1>} : memref<10x10x8xf32, #tpu.memory_space<vmem>>, vector<4x4x8xf32>
    %c0_323 = arith.constant 0 : index
    %c0_324 = arith.constant 0 : index
    %c104_325 = arith.constant 104 : index
    %173 = vector.load %arg31[%c0_323, %c0_324, %c104_325] : memref<4x8x128xf32, #tpu.memory_space<vmem>>, vector<4x4x8xf32>
    tpu.vector_store %arg31[%c0_323, %c0_324, %c104_325], %172 {strides = array<i32>} : memref<4x8x128xf32, #tpu.memory_space<vmem>>, vector<4x4x8xf32>,
    %c3_326 = arith.constant 3 : index
    %c2_327 = arith.constant 2 : index
    %c0_328 = arith.constant 0 : index
    %174 = tpu.strided_load %arg30[%c3_326, %c2_327, %c0_328] {strides = array<i32: 2, 2, 1>} : memref<10x10x8xf32, #tpu.memory_space<vmem>>, vector<4x4x8xf32>
    %c0_329 = arith.constant 0 : index
    %c0_330 = arith.constant 0 : index
    %c112_331 = arith.constant 112 : index
    %175 = vector.load %arg31[%c0_329, %c0_330, %c112_331] : memref<4x8x128xf32, #tpu.memory_space<vmem>>, vector<4x4x8xf32>
    tpu.vector_store %arg31[%c0_329, %c0_330, %c112_331], %174 {strides = array<i32>} : memref<4x8x128xf32, #tpu.memory_space<vmem>>, vector<4x4x8xf32>,
    %c3_332 = arith.constant 3 : index
    %c3_333 = arith.constant 3 : index
    %c0_334 = arith.constant 0 : index
    %176 = tpu.strided_load %arg30[%c3_332, %c3_333, %c0_334] {strides = array<i32: 2, 2, 1>} : memref<10x10x8xf32, #tpu.memory_space<vmem>>, vector<4x4x8xf32>
    %c0_335 = arith.constant 0 : index
    %c0_336 = arith.constant 0 : index
    %c120_337 = arith.constant 120 : index
    %177 = vector.load %arg31[%c0_335, %c0_336, %c120_337] : memref<4x8x128xf32, #tpu.memory_space<vmem>>, vector<4x4x8xf32>
    tpu.vector_store %arg31[%c0_335, %c0_336, %c120_337], %176 {strides = array<i32>} : memref<4x8x128xf32, #tpu.memory_space<vmem>>, vector<4x4x8xf32>,
    %c0_338 = arith.constant 0 : index
    %c0_339 = arith.constant 0 : index
    %c0_340 = arith.constant 0 : index
    %178 = vector.load %arg31[%c0_338, %c0_339, %c0_340] : memref<4x8x128xf32, #tpu.memory_space<vmem>>, vector<4x8x128xf32>
    %179 = vector.shape_cast %178 : vector<4x8x128xf32> to vector<32x128xf32>
    %180 = arith.truncf %179 : vector<32x128xf32> to vector<32x128xbf16>
    %c0_341 = arith.constant 0 : index
    %c0_342 = arith.constant 0 : index
    %181 = vector.load %arg10[%c0_341, %c0_342] : memref<128x16xbf16, #tpu.memory_space<vmem>>, vector<128x16xbf16>
    %cst_343 = arith.constant dense<0.000000e+00> : vector<32x16xf32>
    %182 = tpu.matmul %180, %181, %cst_343 {dimension_numbers = #tpu.dot_dimension_numbers<[1], [0], [0], [1], [0, 0, 1, 1], [], []>} : vector<32x128xbf16>, vector<128x16xbf16>, vector<32x16xf32> -> vector<32x16xf32>
    %c0_344 = arith.constant 0 : index
    %c0_345 = arith.constant 0 : index
    %183 = vector.load %arg11[%c0_344, %c0_345] : memref<1x16xf32, #tpu.memory_space<vmem>>, vector<1x16xf32>
    %184 = vector.broadcast %183 : vector<1x16xf32> to vector<32x16xf32>
    %185 = arith.addf %182, %184 : vector<32x16xf32>
    %cst_346 = arith.constant 0.000000e+00 : f32
    %186 = vector.broadcast %cst_346 : f32 to vector<4x8x32xf32>
    %c0_347 = arith.constant 0 : index
    %c0_348 = arith.constant 0 : index
    %c0_349 = arith.constant 0 : index
    %187 = vector.load %arg32[%c0_347, %c0_348, %c0_349] : memref<4x8x32xf32, #tpu.memory_space<vmem>>, vector<4x8x32xf32>
    tpu.vector_store %arg32[%c0_347, %c0_348, %c0_349], %186 {strides = array<i32>} : memref<4x8x32xf32, #tpu.memory_space<vmem>>, vector<4x8x32xf32>,
    %c1_350 = arith.constant 1 : index
    %c1_351 = arith.constant 1 : index
    %c0_352 = arith.constant 0 : index
    %188 = tpu.strided_load %arg29[%c1_350, %c1_351, %c0_352] {strides = array<i32: 2, 2, 1>} : memref<10x10x8xf32, #tpu.memory_space<vmem>>, vector<4x4x8xf32>
    %c0_353 = arith.constant 0 : index
    %c0_354 = arith.constant 0 : index
    %c0_355 = arith.constant 0 : index
    %189 = vector.load %arg32[%c0_353, %c0_354, %c0_355] : memref<4x8x32xf32, #tpu.memory_space<vmem>>, vector<4x4x8xf32>
    tpu.vector_store %arg32[%c0_353, %c0_354, %c0_355], %188 {strides = array<i32>} : memref<4x8x32xf32, #tpu.memory_space<vmem>>, vector<4x4x8xf32>,
    %c1_356 = arith.constant 1 : index
    %c2_357 = arith.constant 2 : index
    %c0_358 = arith.constant 0 : index
    %190 = tpu.strided_load %arg29[%c1_356, %c2_357, %c0_358] {strides = array<i32: 2, 2, 1>} : memref<10x10x8xf32, #tpu.memory_space<vmem>>, vector<4x4x8xf32>
    %c0_359 = arith.constant 0 : index
    %c0_360 = arith.constant 0 : index
    %c8_361 = arith.constant 8 : index
    %191 = vector.load %arg32[%c0_359, %c0_360, %c8_361] : memref<4x8x32xf32, #tpu.memory_space<vmem>>, vector<4x4x8xf32>
    tpu.vector_store %arg32[%c0_359, %c0_360, %c8_361], %190 {strides = array<i32>} : memref<4x8x32xf32, #tpu.memory_space<vmem>>, vector<4x4x8xf32>,
    %c2_362 = arith.constant 2 : index
    %c1_363 = arith.constant 1 : index
    %c0_364 = arith.constant 0 : index
    %192 = tpu.strided_load %arg29[%c2_362, %c1_363, %c0_364] {strides = array<i32: 2, 2, 1>} : memref<10x10x8xf32, #tpu.memory_space<vmem>>, vector<4x4x8xf32>
    %c0_365 = arith.constant 0 : index
    %c0_366 = arith.constant 0 : index
    %c16_367 = arith.constant 16 : index
    %193 = vector.load %arg32[%c0_365, %c0_366, %c16_367] : memref<4x8x32xf32, #tpu.memory_space<vmem>>, vector<4x4x8xf32>
    tpu.vector_store %arg32[%c0_365, %c0_366, %c16_367], %192 {strides = array<i32>} : memref<4x8x32xf32, #tpu.memory_space<vmem>>, vector<4x4x8xf32>,
    %c2_368 = arith.constant 2 : index
    %c2_369 = arith.constant 2 : index
    %c0_370 = arith.constant 0 : index
    %194 = tpu.strided_load %arg29[%c2_368, %c2_369, %c0_370] {strides = array<i32: 2, 2, 1>} : memref<10x10x8xf32, #tpu.memory_space<vmem>>, vector<4x4x8xf32>
    %c0_371 = arith.constant 0 : index
    %c0_372 = arith.constant 0 : index
    %c24_373 = arith.constant 24 : index
    %195 = vector.load %arg32[%c0_371, %c0_372, %c24_373] : memref<4x8x32xf32, #tpu.memory_space<vmem>>, vector<4x4x8xf32>
    tpu.vector_store %arg32[%c0_371, %c0_372, %c24_373], %194 {strides = array<i32>} : memref<4x8x32xf32, #tpu.memory_space<vmem>>, vector<4x4x8xf32>,
    %c0_374 = arith.constant 0 : index
    %c0_375 = arith.constant 0 : index
    %c0_376 = arith.constant 0 : index
    %196 = vector.load %arg32[%c0_374, %c0_375, %c0_376] : memref<4x8x32xf32, #tpu.memory_space<vmem>>, vector<4x8x32xf32>
    %197 = vector.shape_cast %196 : vector<4x8x32xf32> to vector<32x32xf32>
    %198 = arith.truncf %197 : vector<32x32xf32> to vector<32x32xbf16>
    %c0_377 = arith.constant 0 : index
    %c0_378 = arith.constant 0 : index
    %199 = vector.load %arg12[%c0_377, %c0_378] : memref<32x16xbf16, #tpu.memory_space<vmem>>, vector<32x16xbf16>
    %cst_379 = arith.constant dense<0.000000e+00> : vector<32x16xf32>
    %200 = tpu.matmul %198, %199, %cst_379 {dimension_numbers = #tpu.dot_dimension_numbers<[1], [0], [0], [1], [0, 0, 1, 1], [], []>} : vector<32x32xbf16>, vector<32x16xbf16>, vector<32x16xf32> -> vector<32x16xf32>
    %c0_380 = arith.constant 0 : index
    %c0_381 = arith.constant 0 : index
    %201 = vector.load %arg13[%c0_380, %c0_381] : memref<1x16xf32, #tpu.memory_space<vmem>>, vector<1x16xf32>
    %202 = vector.broadcast %201 : vector<1x16xf32> to vector<32x16xf32>
    %203 = arith.addf %200, %202 : vector<32x16xf32>
    %204 = arith.addf %185, %203 : vector<32x16xf32>
    %205 = vector.shape_cast %204 : vector<32x16xf32> to vector<4x8x16xf32>
    %206 = vector.extract_strided_slice %205 {offsets = [0, 0, 0], sizes = [4, 4, 16], strides = [1, 1, 1]} : vector<4x8x16xf32> to vector<4x4x16xf32>
    %cst_382 = arith.constant 0.000000e+00 : f32
    %207 = vector.broadcast %cst_382 : f32 to vector<6x6x16xf32>
    %c0_383 = arith.constant 0 : index
    %c0_384 = arith.constant 0 : index
    %c0_385 = arith.constant 0 : index
    %208 = vector.load %arg34[%c0_383, %c0_384, %c0_385] : memref<6x6x16xf32, #tpu.memory_space<vmem>>, vector<6x6x16xf32>
    tpu.vector_store %arg34[%c0_383, %c0_384, %c0_385], %207 {strides = array<i32>} : memref<6x6x16xf32, #tpu.memory_space<vmem>>, vector<6x6x16xf32>,
    %c1_386 = arith.constant 1 : index
    %c1_387 = arith.constant 1 : index
    %c0_388 = arith.constant 0 : index
    %209 = vector.load %arg34[%c1_386, %c1_387, %c0_388] : memref<6x6x16xf32, #tpu.memory_space<vmem>>, vector<4x4x16xf32>
    tpu.vector_store %arg34[%c1_386, %c1_387, %c0_388], %206 {strides = array<i32>} : memref<6x6x16xf32, #tpu.memory_space<vmem>>, vector<4x4x16xf32>,
    %c0_389 = arith.constant 0 : index
    %c0_390 = arith.constant 0 : index
    %c0_391 = arith.constant 0 : index
    %210 = vector.load %arg34[%c0_389, %c0_390, %c0_391] : memref<6x6x16xf32, #tpu.memory_space<vmem>>, vector<6x6x16xf32>
    %cst_392 = arith.constant 0.000000e+00 : f32
    %211 = vector.broadcast %cst_392 : f32 to vector<6x6x16xf32>
    %212 = arith.maximumf %210, %211 : vector<6x6x16xf32>
    %cst_393 = arith.constant 0.000000e+00 : f32
    %213 = vector.broadcast %cst_393 : f32 to vector<4x8x144xf32>
    %c0_394 = arith.constant 0 : index
    %c0_395 = arith.constant 0 : index
    %c0_396 = arith.constant 0 : index
    %214 = vector.load %arg33[%c0_394, %c0_395, %c0_396] : memref<4x8x144xf32, #tpu.memory_space<vmem>>, vector<4x8x144xf32>
    tpu.vector_store %arg33[%c0_394, %c0_395, %c0_396], %213 {strides = array<i32>} : memref<4x8x144xf32, #tpu.memory_space<vmem>>, vector<4x8x144xf32>,
    %215 = vector.extract_strided_slice %212 {offsets = [0, 0, 0], sizes = [4, 4, 16], strides = [1, 1, 1]} : vector<6x6x16xf32> to vector<4x4x16xf32>
    %c0_397 = arith.constant 0 : index
    %c0_398 = arith.constant 0 : index
    %c0_399 = arith.constant 0 : index
    %216 = vector.load %arg33[%c0_397, %c0_398, %c0_399] : memref<4x8x144xf32, #tpu.memory_space<vmem>>, vector<4x4x16xf32>
    tpu.vector_store %arg33[%c0_397, %c0_398, %c0_399], %215 {strides = array<i32>} : memref<4x8x144xf32, #tpu.memory_space<vmem>>, vector<4x4x16xf32>,
    %217 = vector.extract_strided_slice %212 {offsets = [0, 1, 0], sizes = [4, 4, 16], strides = [1, 1, 1]} : vector<6x6x16xf32> to vector<4x4x16xf32>
    %c0_400 = arith.constant 0 : index
    %c0_401 = arith.constant 0 : index
    %c16_402 = arith.constant 16 : index
    %218 = vector.load %arg33[%c0_400, %c0_401, %c16_402] : memref<4x8x144xf32, #tpu.memory_space<vmem>>, vector<4x4x16xf32>
    tpu.vector_store %arg33[%c0_400, %c0_401, %c16_402], %217 {strides = array<i32>} : memref<4x8x144xf32, #tpu.memory_space<vmem>>, vector<4x4x16xf32>,
    %219 = vector.extract_strided_slice %212 {offsets = [0, 2, 0], sizes = [4, 4, 16], strides = [1, 1, 1]} : vector<6x6x16xf32> to vector<4x4x16xf32>
    %c0_403 = arith.constant 0 : index
    %c0_404 = arith.constant 0 : index
    %c32_405 = arith.constant 32 : index
    %220 = vector.load %arg33[%c0_403, %c0_404, %c32_405] : memref<4x8x144xf32, #tpu.memory_space<vmem>>, vector<4x4x16xf32>
    tpu.vector_store %arg33[%c0_403, %c0_404, %c32_405], %219 {strides = array<i32>} : memref<4x8x144xf32, #tpu.memory_space<vmem>>, vector<4x4x16xf32>,
    %221 = vector.extract_strided_slice %212 {offsets = [1, 0, 0], sizes = [4, 4, 16], strides = [1, 1, 1]} : vector<6x6x16xf32> to vector<4x4x16xf32>
    %c0_406 = arith.constant 0 : index
    %c0_407 = arith.constant 0 : index
    %c48_408 = arith.constant 48 : index
    %222 = vector.load %arg33[%c0_406, %c0_407, %c48_408] : memref<4x8x144xf32, #tpu.memory_space<vmem>>, vector<4x4x16xf32>
    tpu.vector_store %arg33[%c0_406, %c0_407, %c48_408], %221 {strides = array<i32>} : memref<4x8x144xf32, #tpu.memory_space<vmem>>, vector<4x4x16xf32>,
    %223 = vector.extract_strided_slice %212 {offsets = [1, 1, 0], sizes = [4, 4, 16], strides = [1, 1, 1]} : vector<6x6x16xf32> to vector<4x4x16xf32>
    %c0_409 = arith.constant 0 : index
    %c0_410 = arith.constant 0 : index
    %c64_411 = arith.constant 64 : index
    %224 = vector.load %arg33[%c0_409, %c0_410, %c64_411] : memref<4x8x144xf32, #tpu.memory_space<vmem>>, vector<4x4x16xf32>
    tpu.vector_store %arg33[%c0_409, %c0_410, %c64_411], %223 {strides = array<i32>} : memref<4x8x144xf32, #tpu.memory_space<vmem>>, vector<4x4x16xf32>,
    %225 = vector.extract_strided_slice %212 {offsets = [1, 2, 0], sizes = [4, 4, 16], strides = [1, 1, 1]} : vector<6x6x16xf32> to vector<4x4x16xf32>
    %c0_412 = arith.constant 0 : index
    %c0_413 = arith.constant 0 : index
    %c80_414 = arith.constant 80 : index
    %226 = vector.load %arg33[%c0_412, %c0_413, %c80_414] : memref<4x8x144xf32, #tpu.memory_space<vmem>>, vector<4x4x16xf32>
    tpu.vector_store %arg33[%c0_412, %c0_413, %c80_414], %225 {strides = array<i32>} : memref<4x8x144xf32, #tpu.memory_space<vmem>>, vector<4x4x16xf32>,
    %227 = vector.extract_strided_slice %212 {offsets = [2, 0, 0], sizes = [4, 4, 16], strides = [1, 1, 1]} : vector<6x6x16xf32> to vector<4x4x16xf32>
    %c0_415 = arith.constant 0 : index
    %c0_416 = arith.constant 0 : index
    %c96_417 = arith.constant 96 : index
    %228 = vector.load %arg33[%c0_415, %c0_416, %c96_417] : memref<4x8x144xf32, #tpu.memory_space<vmem>>, vector<4x4x16xf32>
    tpu.vector_store %arg33[%c0_415, %c0_416, %c96_417], %227 {strides = array<i32>} : memref<4x8x144xf32, #tpu.memory_space<vmem>>, vector<4x4x16xf32>,
    %229 = vector.extract_strided_slice %212 {offsets = [2, 1, 0], sizes = [4, 4, 16], strides = [1, 1, 1]} : vector<6x6x16xf32> to vector<4x4x16xf32>
    %c0_418 = arith.constant 0 : index
    %c0_419 = arith.constant 0 : index
    %c112_420 = arith.constant 112 : index
    %230 = vector.load %arg33[%c0_418, %c0_419, %c112_420] : memref<4x8x144xf32, #tpu.memory_space<vmem>>, vector<4x4x16xf32>
    tpu.vector_store %arg33[%c0_418, %c0_419, %c112_420], %229 {strides = array<i32>} : memref<4x8x144xf32, #tpu.memory_space<vmem>>, vector<4x4x16xf32>,
    %231 = vector.extract_strided_slice %212 {offsets = [2, 2, 0], sizes = [4, 4, 16], strides = [1, 1, 1]} : vector<6x6x16xf32> to vector<4x4x16xf32>
    %c0_421 = arith.constant 0 : index
    %c0_422 = arith.constant 0 : index
    %c128 = arith.constant 128 : index
    %232 = vector.load %arg33[%c0_421, %c0_422, %c128] : memref<4x8x144xf32, #tpu.memory_space<vmem>>, vector<4x4x16xf32>
    tpu.vector_store %arg33[%c0_421, %c0_422, %c128], %231 {strides = array<i32>} : memref<4x8x144xf32, #tpu.memory_space<vmem>>, vector<4x4x16xf32>,
    %c0_423 = arith.constant 0 : index
    %c0_424 = arith.constant 0 : index
    %c0_425 = arith.constant 0 : index
    %233 = vector.load %arg33[%c0_423, %c0_424, %c0_425] : memref<4x8x144xf32, #tpu.memory_space<vmem>>, vector<4x8x144xf32>
    %234 = vector.shape_cast %233 : vector<4x8x144xf32> to vector<32x144xf32>
    %235 = arith.truncf %234 : vector<32x144xf32> to vector<32x144xbf16>
    %c0_426 = arith.constant 0 : index
    %c0_427 = arith.constant 0 : index
    %236 = vector.load %arg14[%c0_426, %c0_427] : memref<144x16xbf16, #tpu.memory_space<vmem>>, vector<144x16xbf16>
    %cst_428 = arith.constant dense<0.000000e+00> : vector<32x16xf32>
    %237 = tpu.matmul %235, %236, %cst_428 {dimension_numbers = #tpu.dot_dimension_numbers<[1], [0], [0], [1], [0, 0, 1, 1], [], []>} : vector<32x144xbf16>, vector<144x16xbf16>, vector<32x16xf32> -> vector<32x16xf32>
    %c0_429 = arith.constant 0 : index
    %c0_430 = arith.constant 0 : index
    %238 = vector.load %arg15[%c0_429, %c0_430] : memref<1x16xf32, #tpu.memory_space<vmem>>, vector<1x16xf32>
    %239 = vector.broadcast %238 : vector<1x16xf32> to vector<32x16xf32>
    %240 = arith.addf %237, %239 : vector<32x16xf32>
    %cst_431 = arith.constant 0.000000e+00 : f32
    %241 = vector.broadcast %cst_431 : f32 to vector<32x16xf32>
    %242 = arith.maximumf %240, %241 : vector<32x16xf32>
    %cst_432 = arith.constant 0.000000e+00 : f32
    %243 = vector.broadcast %cst_432 : f32 to vector<6x6x16xf32>
    %c0_433 = arith.constant 0 : index
    %c0_434 = arith.constant 0 : index
    %c0_435 = arith.constant 0 : index
    %244 = vector.load %arg35[%c0_433, %c0_434, %c0_435] : memref<6x6x16xf32, #tpu.memory_space<vmem>>, vector<6x6x16xf32>
    tpu.vector_store %arg35[%c0_433, %c0_434, %c0_435], %243 {strides = array<i32>} : memref<6x6x16xf32, #tpu.memory_space<vmem>>, vector<6x6x16xf32>,
    %245 = vector.shape_cast %242 : vector<32x16xf32> to vector<4x8x16xf32>
    %246 = vector.extract_strided_slice %245 {offsets = [0, 0, 0], sizes = [4, 4, 16], strides = [1, 1, 1]} : vector<4x8x16xf32> to vector<4x4x16xf32>
    %c1_436 = arith.constant 1 : index
    %c1_437 = arith.constant 1 : index
    %c0_438 = arith.constant 0 : index
    %247 = vector.load %arg35[%c1_436, %c1_437, %c0_438] : memref<6x6x16xf32, #tpu.memory_space<vmem>>, vector<4x4x16xf32>
    tpu.vector_store %arg35[%c1_436, %c1_437, %c0_438], %246 {strides = array<i32>} : memref<6x6x16xf32, #tpu.memory_space<vmem>>, vector<4x4x16xf32>,
    %cst_439 = arith.constant 0.000000e+00 : f32
    %248 = vector.broadcast %cst_439 : f32 to vector<2x8x256xf32>
    %c0_440 = arith.constant 0 : index
    %c0_441 = arith.constant 0 : index
    %c0_442 = arith.constant 0 : index
    %249 = vector.load %arg36[%c0_440, %c0_441, %c0_442] : memref<2x8x256xf32, #tpu.memory_space<vmem>>, vector<2x8x256xf32>
    tpu.vector_store %arg36[%c0_440, %c0_441, %c0_442], %248 {strides = array<i32>} : memref<2x8x256xf32, #tpu.memory_space<vmem>>, vector<2x8x256xf32>,
    %c0_443 = arith.constant 0 : index
    %c0_444 = arith.constant 0 : index
    %c0_445 = arith.constant 0 : index
    %250 = tpu.strided_load %arg35[%c0_443, %c0_444, %c0_445] {strides = array<i32: 2, 2, 1>} : memref<6x6x16xf32, #tpu.memory_space<vmem>>, vector<2x2x16xf32>
    %c0_446 = arith.constant 0 : index
    %c0_447 = arith.constant 0 : index
    %c0_448 = arith.constant 0 : index
    %251 = vector.load %arg36[%c0_446, %c0_447, %c0_448] : memref<2x8x256xf32, #tpu.memory_space<vmem>>, vector<2x2x16xf32>
    tpu.vector_store %arg36[%c0_446, %c0_447, %c0_448], %250 {strides = array<i32>} : memref<2x8x256xf32, #tpu.memory_space<vmem>>, vector<2x2x16xf32>,
    %c0_449 = arith.constant 0 : index
    %c1_450 = arith.constant 1 : index
    %c0_451 = arith.constant 0 : index
    %252 = tpu.strided_load %arg35[%c0_449, %c1_450, %c0_451] {strides = array<i32: 2, 2, 1>} : memref<6x6x16xf32, #tpu.memory_space<vmem>>, vector<2x2x16xf32>
    %c0_452 = arith.constant 0 : index
    %c0_453 = arith.constant 0 : index
    %c16_454 = arith.constant 16 : index
    %253 = vector.load %arg36[%c0_452, %c0_453, %c16_454] : memref<2x8x256xf32, #tpu.memory_space<vmem>>, vector<2x2x16xf32>
    tpu.vector_store %arg36[%c0_452, %c0_453, %c16_454], %252 {strides = array<i32>} : memref<2x8x256xf32, #tpu.memory_space<vmem>>, vector<2x2x16xf32>,
    %c0_455 = arith.constant 0 : index
    %c2_456 = arith.constant 2 : index
    %c0_457 = arith.constant 0 : index
    %254 = tpu.strided_load %arg35[%c0_455, %c2_456, %c0_457] {strides = array<i32: 2, 2, 1>} : memref<6x6x16xf32, #tpu.memory_space<vmem>>, vector<2x2x16xf32>
    %c0_458 = arith.constant 0 : index
    %c0_459 = arith.constant 0 : index
    %c32_460 = arith.constant 32 : index
    %255 = vector.load %arg36[%c0_458, %c0_459, %c32_460] : memref<2x8x256xf32, #tpu.memory_space<vmem>>, vector<2x2x16xf32>
    tpu.vector_store %arg36[%c0_458, %c0_459, %c32_460], %254 {strides = array<i32>} : memref<2x8x256xf32, #tpu.memory_space<vmem>>, vector<2x2x16xf32>,
    %c0_461 = arith.constant 0 : index
    %c3_462 = arith.constant 3 : index
    %c0_463 = arith.constant 0 : index
    %256 = tpu.strided_load %arg35[%c0_461, %c3_462, %c0_463] {strides = array<i32: 2, 2, 1>} : memref<6x6x16xf32, #tpu.memory_space<vmem>>, vector<2x2x16xf32>
    %c0_464 = arith.constant 0 : index
    %c0_465 = arith.constant 0 : index
    %c48_466 = arith.constant 48 : index
    %257 = vector.load %arg36[%c0_464, %c0_465, %c48_466] : memref<2x8x256xf32, #tpu.memory_space<vmem>>, vector<2x2x16xf32>
    tpu.vector_store %arg36[%c0_464, %c0_465, %c48_466], %256 {strides = array<i32>} : memref<2x8x256xf32, #tpu.memory_space<vmem>>, vector<2x2x16xf32>,
    %c1_467 = arith.constant 1 : index
    %c0_468 = arith.constant 0 : index
    %c0_469 = arith.constant 0 : index
    %258 = tpu.strided_load %arg35[%c1_467, %c0_468, %c0_469] {strides = array<i32: 2, 2, 1>} : memref<6x6x16xf32, #tpu.memory_space<vmem>>, vector<2x2x16xf32>
    %c0_470 = arith.constant 0 : index
    %c0_471 = arith.constant 0 : index
    %c64_472 = arith.constant 64 : index
    %259 = vector.load %arg36[%c0_470, %c0_471, %c64_472] : memref<2x8x256xf32, #tpu.memory_space<vmem>>, vector<2x2x16xf32>
    tpu.vector_store %arg36[%c0_470, %c0_471, %c64_472], %258 {strides = array<i32>} : memref<2x8x256xf32, #tpu.memory_space<vmem>>, vector<2x2x16xf32>,
    %c1_473 = arith.constant 1 : index
    %c1_474 = arith.constant 1 : index
    %c0_475 = arith.constant 0 : index
    %260 = tpu.strided_load %arg35[%c1_473, %c1_474, %c0_475] {strides = array<i32: 2, 2, 1>} : memref<6x6x16xf32, #tpu.memory_space<vmem>>, vector<2x2x16xf32>
    %c0_476 = arith.constant 0 : index
    %c0_477 = arith.constant 0 : index
    %c80_478 = arith.constant 80 : index
    %261 = vector.load %arg36[%c0_476, %c0_477, %c80_478] : memref<2x8x256xf32, #tpu.memory_space<vmem>>, vector<2x2x16xf32>
    tpu.vector_store %arg36[%c0_476, %c0_477, %c80_478], %260 {strides = array<i32>} : memref<2x8x256xf32, #tpu.memory_space<vmem>>, vector<2x2x16xf32>,
    %c1_479 = arith.constant 1 : index
    %c2_480 = arith.constant 2 : index
    %c0_481 = arith.constant 0 : index
    %262 = tpu.strided_load %arg35[%c1_479, %c2_480, %c0_481] {strides = array<i32: 2, 2, 1>} : memref<6x6x16xf32, #tpu.memory_space<vmem>>, vector<2x2x16xf32>
    %c0_482 = arith.constant 0 : index
    %c0_483 = arith.constant 0 : index
    %c96_484 = arith.constant 96 : index
    %263 = vector.load %arg36[%c0_482, %c0_483, %c96_484] : memref<2x8x256xf32, #tpu.memory_space<vmem>>, vector<2x2x16xf32>
    tpu.vector_store %arg36[%c0_482, %c0_483, %c96_484], %262 {strides = array<i32>} : memref<2x8x256xf32, #tpu.memory_space<vmem>>, vector<2x2x16xf32>,
    %c1_485 = arith.constant 1 : index
    %c3_486 = arith.constant 3 : index
    %c0_487 = arith.constant 0 : index
    %264 = tpu.strided_load %arg35[%c1_485, %c3_486, %c0_487] {strides = array<i32: 2, 2, 1>} : memref<6x6x16xf32, #tpu.memory_space<vmem>>, vector<2x2x16xf32>
    %c0_488 = arith.constant 0 : index
    %c0_489 = arith.constant 0 : index
    %c112_490 = arith.constant 112 : index
    %265 = vector.load %arg36[%c0_488, %c0_489, %c112_490] : memref<2x8x256xf32, #tpu.memory_space<vmem>>, vector<2x2x16xf32>
    tpu.vector_store %arg36[%c0_488, %c0_489, %c112_490], %264 {strides = array<i32>} : memref<2x8x256xf32, #tpu.memory_space<vmem>>, vector<2x2x16xf32>,
    %c2_491 = arith.constant 2 : index
    %c0_492 = arith.constant 0 : index
    %c0_493 = arith.constant 0 : index
    %266 = tpu.strided_load %arg35[%c2_491, %c0_492, %c0_493] {strides = array<i32: 2, 2, 1>} : memref<6x6x16xf32, #tpu.memory_space<vmem>>, vector<2x2x16xf32>
    %c0_494 = arith.constant 0 : index
    %c0_495 = arith.constant 0 : index
    %c128_496 = arith.constant 128 : index
    %267 = vector.load %arg36[%c0_494, %c0_495, %c128_496] : memref<2x8x256xf32, #tpu.memory_space<vmem>>, vector<2x2x16xf32>
    tpu.vector_store %arg36[%c0_494, %c0_495, %c128_496], %266 {strides = array<i32>} : memref<2x8x256xf32, #tpu.memory_space<vmem>>, vector<2x2x16xf32>,
    %c2_497 = arith.constant 2 : index
    %c1_498 = arith.constant 1 : index
    %c0_499 = arith.constant 0 : index
    %268 = tpu.strided_load %arg35[%c2_497, %c1_498, %c0_499] {strides = array<i32: 2, 2, 1>} : memref<6x6x16xf32, #tpu.memory_space<vmem>>, vector<2x2x16xf32>
    %c0_500 = arith.constant 0 : index
    %c0_501 = arith.constant 0 : index
    %c144 = arith.constant 144 : index
    %269 = vector.load %arg36[%c0_500, %c0_501, %c144] : memref<2x8x256xf32, #tpu.memory_space<vmem>>, vector<2x2x16xf32>
    tpu.vector_store %arg36[%c0_500, %c0_501, %c144], %268 {strides = array<i32>} : memref<2x8x256xf32, #tpu.memory_space<vmem>>, vector<2x2x16xf32>,
    %c2_502 = arith.constant 2 : index
    %c2_503 = arith.constant 2 : index
    %c0_504 = arith.constant 0 : index
    %270 = tpu.strided_load %arg35[%c2_502, %c2_503, %c0_504] {strides = array<i32: 2, 2, 1>} : memref<6x6x16xf32, #tpu.memory_space<vmem>>, vector<2x2x16xf32>
    %c0_505 = arith.constant 0 : index
    %c0_506 = arith.constant 0 : index
    %c160 = arith.constant 160 : index
    %271 = vector.load %arg36[%c0_505, %c0_506, %c160] : memref<2x8x256xf32, #tpu.memory_space<vmem>>, vector<2x2x16xf32>
    tpu.vector_store %arg36[%c0_505, %c0_506, %c160], %270 {strides = array<i32>} : memref<2x8x256xf32, #tpu.memory_space<vmem>>, vector<2x2x16xf32>,
    %c2_507 = arith.constant 2 : index
    %c3_508 = arith.constant 3 : index
    %c0_509 = arith.constant 0 : index
    %272 = tpu.strided_load %arg35[%c2_507, %c3_508, %c0_509] {strides = array<i32: 2, 2, 1>} : memref<6x6x16xf32, #tpu.memory_space<vmem>>, vector<2x2x16xf32>
    %c0_510 = arith.constant 0 : index
    %c0_511 = arith.constant 0 : index
    %c176 = arith.constant 176 : index
    %273 = vector.load %arg36[%c0_510, %c0_511, %c176] : memref<2x8x256xf32, #tpu.memory_space<vmem>>, vector<2x2x16xf32>
    tpu.vector_store %arg36[%c0_510, %c0_511, %c176], %272 {strides = array<i32>} : memref<2x8x256xf32, #tpu.memory_space<vmem>>, vector<2x2x16xf32>,
    %c3_512 = arith.constant 3 : index
    %c0_513 = arith.constant 0 : index
    %c0_514 = arith.constant 0 : index
    %274 = tpu.strided_load %arg35[%c3_512, %c0_513, %c0_514] {strides = array<i32: 2, 2, 1>} : memref<6x6x16xf32, #tpu.memory_space<vmem>>, vector<2x2x16xf32>
    %c0_515 = arith.constant 0 : index
    %c0_516 = arith.constant 0 : index
    %c192 = arith.constant 192 : index
    %275 = vector.load %arg36[%c0_515, %c0_516, %c192] : memref<2x8x256xf32, #tpu.memory_space<vmem>>, vector<2x2x16xf32>
    tpu.vector_store %arg36[%c0_515, %c0_516, %c192], %274 {strides = array<i32>} : memref<2x8x256xf32, #tpu.memory_space<vmem>>, vector<2x2x16xf32>,
    %c3_517 = arith.constant 3 : index
    %c1_518 = arith.constant 1 : index
    %c0_519 = arith.constant 0 : index
    %276 = tpu.strided_load %arg35[%c3_517, %c1_518, %c0_519] {strides = array<i32: 2, 2, 1>} : memref<6x6x16xf32, #tpu.memory_space<vmem>>, vector<2x2x16xf32>
    %c0_520 = arith.constant 0 : index
    %c0_521 = arith.constant 0 : index
    %c208 = arith.constant 208 : index
    %277 = vector.load %arg36[%c0_520, %c0_521, %c208] : memref<2x8x256xf32, #tpu.memory_space<vmem>>, vector<2x2x16xf32>
    tpu.vector_store %arg36[%c0_520, %c0_521, %c208], %276 {strides = array<i32>} : memref<2x8x256xf32, #tpu.memory_space<vmem>>, vector<2x2x16xf32>,
    %c3_522 = arith.constant 3 : index
    %c2_523 = arith.constant 2 : index
    %c0_524 = arith.constant 0 : index
    %278 = tpu.strided_load %arg35[%c3_522, %c2_523, %c0_524] {strides = array<i32: 2, 2, 1>} : memref<6x6x16xf32, #tpu.memory_space<vmem>>, vector<2x2x16xf32>
    %c0_525 = arith.constant 0 : index
    %c0_526 = arith.constant 0 : index
    %c224 = arith.constant 224 : index
    %279 = vector.load %arg36[%c0_525, %c0_526, %c224] : memref<2x8x256xf32, #tpu.memory_space<vmem>>, vector<2x2x16xf32>
    tpu.vector_store %arg36[%c0_525, %c0_526, %c224], %278 {strides = array<i32>} : memref<2x8x256xf32, #tpu.memory_space<vmem>>, vector<2x2x16xf32>,
    %c3_527 = arith.constant 3 : index
    %c3_528 = arith.constant 3 : index
    %c0_529 = arith.constant 0 : index
    %280 = tpu.strided_load %arg35[%c3_527, %c3_528, %c0_529] {strides = array<i32: 2, 2, 1>} : memref<6x6x16xf32, #tpu.memory_space<vmem>>, vector<2x2x16xf32>
    %c0_530 = arith.constant 0 : index
    %c0_531 = arith.constant 0 : index
    %c240 = arith.constant 240 : index
    %281 = vector.load %arg36[%c0_530, %c0_531, %c240] : memref<2x8x256xf32, #tpu.memory_space<vmem>>, vector<2x2x16xf32>
    tpu.vector_store %arg36[%c0_530, %c0_531, %c240], %280 {strides = array<i32>} : memref<2x8x256xf32, #tpu.memory_space<vmem>>, vector<2x2x16xf32>,
    %c0_532 = arith.constant 0 : index
    %c0_533 = arith.constant 0 : index
    %c0_534 = arith.constant 0 : index
    %282 = vector.load %arg36[%c0_532, %c0_533, %c0_534] : memref<2x8x256xf32, #tpu.memory_space<vmem>>, vector<2x8x256xf32>
    %283 = vector.shape_cast %282 : vector<2x8x256xf32> to vector<16x256xf32>
    %284 = arith.truncf %283 : vector<16x256xf32> to vector<16x256xbf16>
    %c0_535 = arith.constant 0 : index
    %c0_536 = arith.constant 0 : index
    %285 = vector.load %arg16[%c0_535, %c0_536] : memref<256x32xbf16, #tpu.memory_space<vmem>>, vector<256x32xbf16>
    %cst_537 = arith.constant dense<0.000000e+00> : vector<16x32xf32>
    %286 = tpu.matmul %284, %285, %cst_537 {dimension_numbers = #tpu.dot_dimension_numbers<[1], [0], [0], [1], [0, 0, 1, 1], [], []>} : vector<16x256xbf16>, vector<256x32xbf16>, vector<16x32xf32> -> vector<16x32xf32>
    %c0_538 = arith.constant 0 : index
    %c0_539 = arith.constant 0 : index
    %287 = vector.load %arg17[%c0_538, %c0_539] : memref<1x32xf32, #tpu.memory_space<vmem>>, vector<1x32xf32>
    %288 = vector.broadcast %287 : vector<1x32xf32> to vector<16x32xf32>
    %289 = arith.addf %286, %288 : vector<16x32xf32>
    %cst_540 = arith.constant 0.000000e+00 : f32
    %290 = vector.broadcast %cst_540 : f32 to vector<2x8x64xf32>
    %c0_541 = arith.constant 0 : index
    %c0_542 = arith.constant 0 : index
    %c0_543 = arith.constant 0 : index
    %291 = vector.load %arg37[%c0_541, %c0_542, %c0_543] : memref<2x8x64xf32, #tpu.memory_space<vmem>>, vector<2x8x64xf32>
    tpu.vector_store %arg37[%c0_541, %c0_542, %c0_543], %290 {strides = array<i32>} : memref<2x8x64xf32, #tpu.memory_space<vmem>>, vector<2x8x64xf32>,
    %c1_544 = arith.constant 1 : index
    %c1_545 = arith.constant 1 : index
    %c0_546 = arith.constant 0 : index
    %292 = tpu.strided_load %arg34[%c1_544, %c1_545, %c0_546] {strides = array<i32: 2, 2, 1>} : memref<6x6x16xf32, #tpu.memory_space<vmem>>, vector<2x2x16xf32>
    %c0_547 = arith.constant 0 : index
    %c0_548 = arith.constant 0 : index
    %c0_549 = arith.constant 0 : index
    %293 = vector.load %arg37[%c0_547, %c0_548, %c0_549] : memref<2x8x64xf32, #tpu.memory_space<vmem>>, vector<2x2x16xf32>
    tpu.vector_store %arg37[%c0_547, %c0_548, %c0_549], %292 {strides = array<i32>} : memref<2x8x64xf32, #tpu.memory_space<vmem>>, vector<2x2x16xf32>,
    %c1_550 = arith.constant 1 : index
    %c2_551 = arith.constant 2 : index
    %c0_552 = arith.constant 0 : index
    %294 = tpu.strided_load %arg34[%c1_550, %c2_551, %c0_552] {strides = array<i32: 2, 2, 1>} : memref<6x6x16xf32, #tpu.memory_space<vmem>>, vector<2x2x16xf32>
    %c0_553 = arith.constant 0 : index
    %c0_554 = arith.constant 0 : index
    %c16_555 = arith.constant 16 : index
    %295 = vector.load %arg37[%c0_553, %c0_554, %c16_555] : memref<2x8x64xf32, #tpu.memory_space<vmem>>, vector<2x2x16xf32>
    tpu.vector_store %arg37[%c0_553, %c0_554, %c16_555], %294 {strides = array<i32>} : memref<2x8x64xf32, #tpu.memory_space<vmem>>, vector<2x2x16xf32>,
    %c2_556 = arith.constant 2 : index
    %c1_557 = arith.constant 1 : index
    %c0_558 = arith.constant 0 : index
    %296 = tpu.strided_load %arg34[%c2_556, %c1_557, %c0_558] {strides = array<i32: 2, 2, 1>} : memref<6x6x16xf32, #tpu.memory_space<vmem>>, vector<2x2x16xf32>
    %c0_559 = arith.constant 0 : index
    %c0_560 = arith.constant 0 : index
    %c32_561 = arith.constant 32 : index
    %297 = vector.load %arg37[%c0_559, %c0_560, %c32_561] : memref<2x8x64xf32, #tpu.memory_space<vmem>>, vector<2x2x16xf32>
    tpu.vector_store %arg37[%c0_559, %c0_560, %c32_561], %296 {strides = array<i32>} : memref<2x8x64xf32, #tpu.memory_space<vmem>>, vector<2x2x16xf32>,
    %c2_562 = arith.constant 2 : index
    %c2_563 = arith.constant 2 : index
    %c0_564 = arith.constant 0 : index
    %298 = tpu.strided_load %arg34[%c2_562, %c2_563, %c0_564] {strides = array<i32: 2, 2, 1>} : memref<6x6x16xf32, #tpu.memory_space<vmem>>, vector<2x2x16xf32>
    %c0_565 = arith.constant 0 : index
    %c0_566 = arith.constant 0 : index
    %c48_567 = arith.constant 48 : index
    %299 = vector.load %arg37[%c0_565, %c0_566, %c48_567] : memref<2x8x64xf32, #tpu.memory_space<vmem>>, vector<2x2x16xf32>
    tpu.vector_store %arg37[%c0_565, %c0_566, %c48_567], %298 {strides = array<i32>} : memref<2x8x64xf32, #tpu.memory_space<vmem>>, vector<2x2x16xf32>,
    %c0_568 = arith.constant 0 : index
    %c0_569 = arith.constant 0 : index
    %c0_570 = arith.constant 0 : index
    %300 = vector.load %arg37[%c0_568, %c0_569, %c0_570] : memref<2x8x64xf32, #tpu.memory_space<vmem>>, vector<2x8x64xf32>
    %301 = vector.shape_cast %300 : vector<2x8x64xf32> to vector<16x64xf32>
    %302 = arith.truncf %301 : vector<16x64xf32> to vector<16x64xbf16>
    %c0_571 = arith.constant 0 : index
    %c0_572 = arith.constant 0 : index
    %303 = vector.load %arg18[%c0_571, %c0_572] : memref<64x32xbf16, #tpu.memory_space<vmem>>, vector<64x32xbf16>
    %cst_573 = arith.constant dense<0.000000e+00> : vector<16x32xf32>
    %304 = tpu.matmul %302, %303, %cst_573 {dimension_numbers = #tpu.dot_dimension_numbers<[1], [0], [0], [1], [0, 0, 1, 1], [], []>} : vector<16x64xbf16>, vector<64x32xbf16>, vector<16x32xf32> -> vector<16x32xf32>
    %c0_574 = arith.constant 0 : index
    %c0_575 = arith.constant 0 : index
    %305 = vector.load %arg19[%c0_574, %c0_575] : memref<1x32xf32, #tpu.memory_space<vmem>>, vector<1x32xf32>
    %306 = vector.broadcast %305 : vector<1x32xf32> to vector<16x32xf32>
    %307 = arith.addf %304, %306 : vector<16x32xf32>
    %308 = arith.addf %289, %307 : vector<16x32xf32>
    %cst_576 = arith.constant 0.000000e+00 : f32
    %309 = vector.broadcast %cst_576 : f32 to vector<16x32xf32>
    %310 = arith.maximumf %308, %309 : vector<16x32xf32>
    %c0_577 = arith.constant 0 : index
    %c0_578 = arith.constant 0 : index
    %311 = vector.load %arg20[%c0_577, %c0_578] : memref<1x32xf32, #tpu.memory_space<vmem>>, vector<1x32xf32>
    %312 = vector.broadcast %311 : vector<1x32xf32> to vector<16x32xf32>
    %313 = arith.mulf %310, %312 : vector<16x32xf32>
    %cst_579 = arith.constant dense<0.000000e+00> : vector<16xf32>
    %314 = vector.multi_reduction <add>, %313, %cst_579 [1] : vector<16x32xf32> to vector<16xf32>
    %315 = vector.shape_cast %314 : vector<16xf32> to vector<16x1xf32>
    %c0_580 = arith.constant 0 : index
    %c0_581 = arith.constant 0 : index
    %316 = vector.load %arg21[%c0_580, %c0_581] : memref<1x1xf32, #tpu.memory_space<vmem>>, vector<1x1xf32>
    %317 = vector.broadcast %316 : vector<1x1xf32> to vector<16x1xf32>
    %318 = arith.addf %315, %317 : vector<16x1xf32>
    %c0_582 = arith.constant 0 : index
    %c0_583 = arith.constant 0 : index
    %c0_584 = arith.constant 0 : index
    %319 = vector.load %arg22[%c0_582, %c0_583, %c0_584] : memref<1x16x1xf32, #tpu.memory_space<vmem>>, vector<1x16x1xf32>
    %320 = vector.shape_cast %319 : vector<1x16x1xf32> to vector<16x1xf32>
    %321 = vector.shape_cast %318 : vector<16x1xf32> to vector<1x16x1xf32>
    tpu.vector_store %arg22[%c0_582, %c0_583, %c0_584], %321 {strides = array<i32>} : memref<1x16x1xf32, #tpu.memory_space<vmem>>, vector<1x16x1xf32>,
    return
  }
  func.func @transform_0(%arg0: i32) -> (i32, i32, i32, i32) {
    %c0_i32 = arith.constant 0 : i32
    %c0_i32_0 = arith.constant 0 : i32
    %c0_i32_1 = arith.constant 0 : i32
    %c0_i32_2 = arith.constant 0 : i32
    return %arg0, %c0_i32, %c0_i32_0, %c0_i32_1 : i32, i32, i32, i32
  }
  func.func @transform_1(%arg0: i32) -> (i32, i32) {
    %c0_i32 = arith.constant 0 : i32
    %c0_i32_0 = arith.constant 0 : i32
    %c0_i32_1 = arith.constant 0 : i32
    return %c0_i32, %c0_i32_0 : i32, i32
  }
  func.func @transform_2(%arg0: i32) -> (i32, i32) {
    %c0_i32 = arith.constant 0 : i32
    %c0_i32_0 = arith.constant 0 : i32
    %c0_i32_1 = arith.constant 0 : i32
    return %c0_i32, %c0_i32_0 : i32, i32
  }
  func.func @transform_3(%arg0: i32) -> (i32, i32) {
    %c0_i32 = arith.constant 0 : i32
    %c0_i32_0 = arith.constant 0 : i32
    %c0_i32_1 = arith.constant 0 : i32
    return %c0_i32, %c0_i32_0 : i32, i32
  }
  func.func @transform_4(%arg0: i32) -> (i32, i32) {
    %c0_i32 = arith.constant 0 : i32
    %c0_i32_0 = arith.constant 0 : i32
    %c0_i32_1 = arith.constant 0 : i32
    return %c0_i32, %c0_i32_0 : i32, i32
  }
  func.func @transform_5(%arg0: i32) -> (i32, i32) {
    %c0_i32 = arith.constant 0 : i32
    %c0_i32_0 = arith.constant 0 : i32
    %c0_i32_1 = arith.constant 0 : i32
    return %c0_i32, %c0_i32_0 : i32, i32
  }
  func.func @transform_6(%arg0: i32) -> (i32, i32) {
    %c0_i32 = arith.constant 0 : i32
    %c0_i32_0 = arith.constant 0 : i32
    %c0_i32_1 = arith.constant 0 : i32
    return %c0_i32, %c0_i32_0 : i32, i32
  }
  func.func @transform_7(%arg0: i32) -> (i32, i32) {
    %c0_i32 = arith.constant 0 : i32
    %c0_i32_0 = arith.constant 0 : i32
    %c0_i32_1 = arith.constant 0 : i32
    return %c0_i32, %c0_i32_0 : i32, i32
  }
  func.func @transform_8(%arg0: i32) -> (i32, i32) {
    %c0_i32 = arith.constant 0 : i32
    %c0_i32_0 = arith.constant 0 : i32
    %c0_i32_1 = arith.constant 0 : i32
    return %c0_i32, %c0_i32_0 : i32, i32
  }
  func.func @transform_9(%arg0: i32) -> (i32, i32) {
    %c0_i32 = arith.constant 0 : i32
    %c0_i32_0 = arith.constant 0 : i32
    %c0_i32_1 = arith.constant 0 : i32
    return %c0_i32, %c0_i32_0 : i32, i32
  }
  func.func @transform_10(%arg0: i32) -> (i32, i32) {
    %c0_i32 = arith.constant 0 : i32
    %c0_i32_0 = arith.constant 0 : i32
    %c0_i32_1 = arith.constant 0 : i32
    return %c0_i32, %c0_i32_0 : i32, i32
  }
  func.func @transform_11(%arg0: i32) -> (i32, i32) {
    %c0_i32 = arith.constant 0 : i32
    %c0_i32_0 = arith.constant 0 : i32
    %c0_i32_1 = arith.constant 0 : i32
    return %c0_i32, %c0_i32_0 : i32, i32
  }
  func.func @transform_12(%arg0: i32) -> (i32, i32) {
    %c0_i32 = arith.constant 0 : i32
    %c0_i32_0 = arith.constant 0 : i32
    %c0_i32_1 = arith.constant 0 : i32
    return %c0_i32, %c0_i32_0 : i32, i32
  }
  func.func @transform_13(%arg0: i32) -> (i32, i32) {
    %c0_i32 = arith.constant 0 : i32
    %c0_i32_0 = arith.constant 0 : i32
    %c0_i32_1 = arith.constant 0 : i32
    return %c0_i32, %c0_i32_0 : i32, i32
  }
  func.func @transform_14(%arg0: i32) -> (i32, i32) {
    %c0_i32 = arith.constant 0 : i32
    %c0_i32_0 = arith.constant 0 : i32
    %c0_i32_1 = arith.constant 0 : i32
    return %c0_i32, %c0_i32_0 : i32, i32
  }
  func.func @transform_15(%arg0: i32) -> (i32, i32) {
    %c0_i32 = arith.constant 0 : i32
    %c0_i32_0 = arith.constant 0 : i32
    %c0_i32_1 = arith.constant 0 : i32
    return %c0_i32, %c0_i32_0 : i32, i32
  }
  func.func @transform_16(%arg0: i32) -> (i32, i32) {
    %c0_i32 = arith.constant 0 : i32
    %c0_i32_0 = arith.constant 0 : i32
    %c0_i32_1 = arith.constant 0 : i32
    return %c0_i32, %c0_i32_0 : i32, i32
  }
  func.func @transform_17(%arg0: i32) -> (i32, i32) {
    %c0_i32 = arith.constant 0 : i32
    %c0_i32_0 = arith.constant 0 : i32
    %c0_i32_1 = arith.constant 0 : i32
    return %c0_i32, %c0_i32_0 : i32, i32
  }
  func.func @transform_18(%arg0: i32) -> (i32, i32) {
    %c0_i32 = arith.constant 0 : i32
    %c0_i32_0 = arith.constant 0 : i32
    %c0_i32_1 = arith.constant 0 : i32
    return %c0_i32, %c0_i32_0 : i32, i32
  }
  func.func @transform_19(%arg0: i32) -> (i32, i32) {
    %c0_i32 = arith.constant 0 : i32
    %c0_i32_0 = arith.constant 0 : i32
    %c0_i32_1 = arith.constant 0 : i32
    return %c0_i32, %c0_i32_0 : i32, i32
  }
  func.func @transform_20(%arg0: i32) -> (i32, i32) {
    %c0_i32 = arith.constant 0 : i32
    %c0_i32_0 = arith.constant 0 : i32
    %c0_i32_1 = arith.constant 0 : i32
    return %c0_i32, %c0_i32_0 : i32, i32
  }
  func.func @transform_21(%arg0: i32) -> (i32, i32, i32) {
    %c0_i32 = arith.constant 0 : i32
    %c0_i32_0 = arith.constant 0 : i32
    %c0_i32_1 = arith.constant 0 : i32
    return %arg0, %c0_i32, %c0_i32_0 : i32, i32, i32
  }
}

</mosaic_0001>

<bundles_post_ra>
// kernel: discriminator_forward.1
= control target key start
LH: loop header
LB: loop body
LE: loop exit
PB: predicated region body
PF: predicated region fallthrough
CT: control target
= control target key end

     0   :  { %s7479_s26 = smov 0   ;;  %s10559_s0 = inlined_call_operand.vmem [shape: f32[2,16,16,3], index: 0, kind: input, shape index: {}]   ;;  %s10560_s1 = inlined_call_operand.vmem [shape: bf16[27,8], index: 1, kind: input, shape index: {}]   ;;  %s10561_s2 = inlined_call_operand.vmem [shape: f32[1,8], index: 2, kind: input, shape index: {}]   ;;  %s10562_s3 = inlined_call_operand.vmem [shape: bf16[128,8], index: 3, kind: input, shape index: {}]   ;;  %s10563_s4 = inlined_call_operand.vmem [shape: f32[1,8], index: 4, kind: input, shape index: {}]   ;;  %s10564_s5 = inlined_call_operand.vmem [shape: bf16[12,8], index: 5, kind: input, shape index: {}]   ;;  %s10565_s6 = inlined_call_operand.vmem [shape: f32[1,8], index: 6, kind: input, shape index: {}]   ;;  %s10566_s7 = inlined_call_operand.vmem [shape: bf16[72,8], index: 7, kind: input, shape index: {}]   ;;  %s10567_s8 = inlined_call_operand.vmem [shape: f32[1,8], index: 8, kind: input, shape index: {}]   ;;  %s10568_s9 = inlined_call_operand.vmem [shape: bf16[128,16], index: 9, kind: input, shape index: {}]   ;;  %s10569_s10 = inlined_call_operand.vmem [shape: f32[1,16], index: 10, kind: input, shape index: {}]   ;;  %s10570_s11 = inlined_call_operand.vmem [shape: bf16[32,16], index: 11, kind: input, shape index: {}]   ;;  %s10571_s12 = inlined_call_operand.vmem [shape: f32[1,16], index: 12, kind: input, shape index: {}]   ;;  %s10572_s13 = inlined_call_operand.vmem [shape: bf16[144,16], index: 13, kind: input, shape index: {}]   ;;  %s10573_s14 = inlined_call_operand.vmem [shape: f32[1,16], index: 14, kind: input, shape index: {}]   ;;  %s10574_s15 = inlined_call_operand.vmem [shape: bf16[256,32], index: 15, kind: input, shape index: {}]   ;;  %s10575_s16 = inlined_call_operand.vmem [shape: f32[1,32], index: 16, kind: input, shape index: {}]   ;;  %s10576_s17 = inlined_call_operand.vmem [shape: bf16[64,32], index: 17, kind: input, shape index: {}]   ;;  %s10577_s18 = inlined_call_operand.vmem [shape: f32[1,32], index: 18, kind: input, shape index: {}]   ;;  %s10578_s19 = inlined_call_operand.vmem [shape: f32[1,32], index: 19, kind: input, shape index: {}]   ;;  %s10579_s20 = inlined_call_operand.<no memory space> [shape: f32[1,1], index: 20, kind: input, shape index: {}]   ;;  %s10580_s21 = inlined_call_operand.vmem [shape: f32[2,16,1], index: 21, kind: output, shape index: {}]  }
   0x1   :  { %10644 = sst [smem:[#allocation19_spill]] %s10559_s0  ;;  %v26_v0 = vstv %s10579_s20 }
   0x2   :  { %10645 = sst [smem:[#allocation20_spill]] %s10560_s1  ;;  %27 = vst [vmem:[#allocation17] sm:$0x1] %v26_v0 }
   0x3   :  { %10646 = sst [smem:[#allocation21_spill]] %s10561_s2 }
   0x4   :  { %10647 = sst [smem:[#allocation22_spill]] %s10562_s3 }
   0x5   :  { %10648 = sst [smem:[#allocation23_spill]] %s10563_s4 }
   0x6   :  { %10649 = sst [smem:[#allocation24_spill]] %s10564_s5 }
   0x7   :  { %10650 = sst [smem:[#allocation25_spill]] %s10565_s6 }
   0x8 LB: > { %10651 = sst [smem:[#allocation18_spill]] %s7338_s26  ;;  %s6880_s27 = sadd.s32 4294967295, %s7338_s26   ;;  %s7338_s26 = sphi %s7479_s26, %s33_s26  }
   0x9   : > { %p6884_p0 = scmp.ge.s32.totalorder %s7338_s26, 1  ;;  %p589_p1 = scmp.lt.s32.totalorder %s7338_s26, 3 }
   0xb   : > { %p590_p2 = pnand %p6884_p0, %p589_p1 }
   0xc   : > { %vm695_vm0 = vcmask (!%p590_p2), 17408   ;;  %vm10611_vm1 = vcmask (!%p590_p2), 23552   ;;  %vm889_vm2 = vcmask (!%p590_p2), 220160   ;;  %v7340_v1 = vmov (!%p590_p2), 0.0   ;;  %p7617_p3 = scmp.lt.s32.totalorder (!%p590_p2), %s6880_s27, 1  ;;  %s10653_s0 = sld [smem:[#allocation19_spill]] (!%p590_p2) }
   0xd   : > { %593 = sbr.rel (%p590_p2) target bundleno = 3600 (0xe10), region = 104  ;;  %696 = vst.msk [vmem:[#allocation3 + $0x10] sm:$0x3] (!%p590_p2), %vm695_vm0, %v7340_v1  ;;  %699 = vst.msk [vmem:[#allocation3 + $0x28] sm:$0x3] (!%p590_p2), %vm695_vm0, %v7340_v1  ;;  %s10602_s30 = smov (!%p590_p2), 3  }
   0xe   : > { %702 = vst.msk [vmem:[#allocation3 + $0x40] sm:$0x3] (!%p590_p2), %vm695_vm0, %v7340_v1  ;;  %705 = vst.msk [vmem:[#allocation3 + $0x58] sm:$0x3] (!%p590_p2), %vm695_vm0, %v7340_v1  ;;  %s10600_s5 = smov (!%p590_p2), 6   ;;  %s10598_s22 = smov (!%p590_p2), 9  }
   0xf   : > { %708 = vst.msk [vmem:[#allocation3 + $0x70] sm:$0x3] (!%p590_p2), %vm695_vm0, %v7340_v1  ;;  %711 = vst.msk [vmem:[#allocation3 + $0x88] sm:$0x3] (!%p590_p2), %vm695_vm0, %v7340_v1  ;;  %s7344_s23 = smov (!%p590_p2), 12   ;;  %s7345_s1 = smov (!%p590_p2), 15  }
  0x10   : > { %714 = vst.msk [vmem:[#allocation3 + $0xa0] sm:$0x3] (!%p590_p2), %vm695_vm0, %v7340_v1  ;;  %717 = vst.msk [vmem:[#allocation3 + $0xb8] sm:$0x3] (!%p590_p2), %vm695_vm0, %v7340_v1  ;;  %s7346_s24 = smov (!%p590_p2), 18   ;;  %s7347_s2 = smov (!%p590_p2), 21  }
  0x11   : > { %720 = vst.msk [vmem:[#allocation3 + $0xd0] sm:$0x3] (!%p590_p2), %vm695_vm0, %v7340_v1  ;;  %723 = vst.msk [vmem:[#allocation3 + $0xe8] sm:$0x3] (!%p590_p2), %vm695_vm0, %v7340_v1  ;;  %s10608_s25 = smov (!%p590_p2), 24   ;;  %s10654_s28 = sld [smem:[#allocation20_spill]] (!%p590_p2) }
  0x12   : > { %726 = vst.msk [vmem:[#allocation3 + $0x100] sm:$0x3] (!%p590_p2), %vm695_vm0, %v7340_v1  ;;  %729 = vst.msk [vmem:[#allocation3 + $0x118] sm:$0x3] (!%p590_p2), %vm695_vm0, %v7340_v1  ;;  %vm2554_vm3 = vcmask (!%p590_p2), 1044480   ;;  %vm10584_vm4 = vcmask (!%p590_p2), 1045504  }
  0x13   : > { %732 = vst.msk [vmem:[#allocation3 + $0x130] sm:$0x3] (!%p590_p2), %vm695_vm0, %v7340_v1  ;;  %735 = vst.msk [vmem:[#allocation3 + $0x148] sm:$0x3] (!%p590_p2), %vm695_vm0, %v7340_v1  ;;  %v7349_v52 = vmov (!%p590_p2), 65535   ;;  %vm1150_vm5 = vcmask (!%p590_p2), 40984  }
  0x14   : > { %738 = vst.msk [vmem:[#allocation3 + $0x160] sm:$0x3] %vm695_vm0, %v7340_v1  ;;  %741 = vst.msk [vmem:[#allocation3 + $0x178] sm:$0x3] %vm695_vm0, %v7340_v1  ;;  %s10966_s27 = smov (!%p7617_p3, %s6880_s27), 1  ;;  %v2556_v53 = vsel %vm2554_vm3, 4294967295, %v7349_v52 }
  0x15   : > { %744 = vst.msk [vmem:[#allocation3 + $0x190] sm:$0x3] %vm695_vm0, %v7340_v1  ;;  %747 = vst.msk [vmem:[#allocation3 + $0x1a8] sm:$0x3] %vm695_vm0, %v7340_v1  ;;  %s6986_s3 = sshll.u32 %s10966_s27, 8  ;;  %v2557_v54 = vsel %vm10584_vm4, %v2556_v53, 0 }
  0x16   : > { %2843 = vst [vmem:[#allocation5] sm:$0xff] %v7340_v1  ;;  %2844 = vst [vmem:[#allocation5 + $0x8] sm:$0xff] %v7340_v1  ;;  %s7695_s4 = scalar_lea.vmem %s10653_s0, %s6986_s3  ;;  %v783_v5 = vld [vmem:[#allocation3 + $0x10] sm:$0x3]  ;;  %vm1146_vm6 = vcmask 48153   ;;  %vm10610_vm7 = vcmask 48152  }
  0x17   : > { %2845 = vst [vmem:[#allocation5 + $0x10] sm:$0xff] %v7340_v1  ;;  %2846 = vst [vmem:[#allocation5 + $0x18] sm:$0xff] %v7340_v1  ;;  %v660_v2 = vld [vmem:[%s7695_s4] sm:$0xff]  ;;  %v661_v3 = vld [vmem:[%s7695_s4 + $0x8] sm:$0xff]  ;;  %v837_v8 = vmax.f32 %v783_v5, 0.0  ;;  %vm10597_vm8 = vcmask 72752  }
  0x18   : > { %2847 = vst [vmem:[#allocation5 + $0x20] sm:$0xff] %v7340_v1  ;;  %2848 = vst [vmem:[#allocation5 + $0x28] sm:$0xff] %v7340_v1  ;;  %v662_v4 = vld [vmem:[%s7695_s4 + $0x10] sm:$0xff]  ;;  %v663_v11 = vld [vmem:[%s7695_s4 + $0x18] sm:$0xff]  ;;  %vm1341_vm9 = vcmask 72754   ;;  %vm10596_vm10 = vcmask 66608  }
  0x19   : > { %2849 = vst [vmem:[#allocation5 + $0x30] sm:$0xff] %v7340_v1  ;;  %2850 = vst [vmem:[#allocation5 + $0x38] sm:$0xff] %v7340_v1  ;;  %v664_v12 = vld [vmem:[%s7695_s4 + $0x20] sm:$0xff]  ;;  %v665_v13 = vld [vmem:[%s7695_s4 + $0x28] sm:$0xff]  ;;  %1006 = vrot.lane.b32.xlu1 %v837_v8, %s10602_s30  ;;  %vm10592_vm11 = vcmask 97352   ;;  %vm10591_vm12 = vcmask 121953  }
  0x1a   : > { %4931 = vst [vmem:[#allocation10] sm:$0xff] %v7340_v1  ;;  %4932 = vst [vmem:[#allocation10 + $0x8] sm:$0xff] %v7340_v1  ;;  %v666_v14 = vld [vmem:[%s7695_s4 + $0x30] sm:$0xff]  ;;  %v667_v15 = vld [vmem:[%s7695_s4 + $0x38] sm:$0xff]  ;;  %vm10594_vm13 = vcmask 121952   ;;  %vm10593_vm14 = vcmask 114784  }
  0x1b   : > { %4933 = vst [vmem:[#allocation10 + $0x10] sm:$0xff] %v7340_v1  ;;  %4934 = vst [vmem:[#allocation10 + $0x18] sm:$0xff] %v7340_v1  ;;  %v668_v34 = vld [vmem:[%s7695_s4 + $0x40] sm:$0xff]  ;;  %v669_v35 = vld [vmem:[%s7695_s4 + $0x48] sm:$0xff]  ;;  %vm10589_vm15 = vcmask 146554   ;;  %vm10586_vm0 = vcmask 146552  }
  0x1c   : > { %5722 = vst [vmem:[#allocation12] sm:$0xff] %v7340_v1  ;;  %5725 = vst [vmem:[#allocation12 + $0x10] sm:$0xff] %v7340_v1  ;;  %v670_v43 = vld [vmem:[%s7695_s4 + $0x50] sm:$0xff]  ;;  %v671_v44 = vld [vmem:[%s7695_s4 + $0x58] sm:$0xff]  ;;  %vm10585_vm3 = vcmask 140408   ;;  %vm10587_vm4 = vcmask 171152  }
  0x1d   : > { %5727 = vst [vmem:[#allocation12 + $0x20] sm:$0xff] %v7340_v1  ;;  %5729 = vst [vmem:[#allocation12 + $0x30] sm:$0xff] %v7340_v1  ;;  %v7273_v50 = vld [vmem:[%s10654_s28] sm:$0xff]   ;;  %v7274_v51 = vld [vmem:[%s10654_s28 + $0x8] sm:$0x3f]   ;;  %s10704_s29 = sld [smem:[#allocation21_spill]] }
  0x1e   : > { %6041 = vst [vmem:[#allocation15] sm:$0xff] %v7340_v1  ;;  %6042 = vst [vmem:[#allocation15 + $0x8] sm:$0xff] %v7340_v1  ;;  %7073 = vmatprep.subr.bf16.mxu0 %v7273_v50  ;;  %v2559_v55 = vand.u32 %v7274_v51, %v2557_v54  ;;  %v672_v56 = vld [vmem:[%s7695_s4 + $0x60] sm:$0xff]  ;;  %v673_v57 = vld [vmem:[%s7695_s4 + $0x68] sm:$0xff]  ;;  %s10618_s0 = smov 40   ;;  %s10622_s20 = smov 48  }
  0x1f   : > { %6043 = vst [vmem:[#allocation15 + $0x10] sm:$0xff] %v7340_v1  ;;  %6044 = vst [vmem:[#allocation15 + $0x18] sm:$0xff] %v7340_v1  ;;  %7074 = vmatpush3.bf16.msra.mxu0 %v7273_v50  ;;  %v676_v50 = vld [vmem:[%s7695_s4 + $0x80] sm:$0xff]  ;;  %v677_v51 = vld [vmem:[%s7695_s4 + $0x88] sm:$0xff]  ;;  %s10640_s3 = smov 56   ;;  %s10913_s6 = sld [smem:[#allocation25_spill]] }
  0x20   : > { %693 = vst.msk [vmem:[#allocation3] sm:$0xff] %vm10611_vm1, %v7340_v1  ;;  %694 = vst.msk [vmem:[#allocation3 + $0x8] sm:$0xff] %vm10611_vm1, %v7340_v1  ;;  %7075 = vmatprep.subr.bf16.mxu0 %v2559_v55  ;;  %s10939_s28 = smov 56  }
  0x21   : > { %697 = vst.msk [vmem:[#allocation3 + $0x18] sm:$0xff] %vm10611_vm1, %v7340_v1  ;;  %698 = vst.msk [vmem:[#allocation3 + $0x20] sm:$0xff] %vm10611_vm1, %v7340_v1 }
  0x22   : > { %700 = vst.msk [vmem:[#allocation3 + $0x30] sm:$0xff] %vm10611_vm1, %v7340_v1  ;;  %701 = vst.msk [vmem:[#allocation3 + $0x38] sm:$0xff] %vm10611_vm1, %v7340_v1 }
  0x23   : > { %703 = vst.msk [vmem:[#allocation3 + $0x48] sm:$0xff] %vm10611_vm1, %v7340_v1  ;;  %704 = vst.msk [vmem:[#allocation3 + $0x50] sm:$0xff] %vm10611_vm1, %v7340_v1  ;;  %7076 = vmatpush3.bf16.msra.mxu0 %v2559_v55 }
  0x24   : > { %706 = vst.msk [vmem:[#allocation3 + $0x60] sm:$0xff] %vm10611_vm1, %v7340_v1  ;;  %707 = vst.msk [vmem:[#allocation3 + $0x68] sm:$0xff] %vm10611_vm1, %v7340_v1 }
  0x25   : > { %709 = vst.msk [vmem:[#allocation3 + $0x78] sm:$0xff] %vm10611_vm1, %v7340_v1  ;;  %710 = vst.msk [vmem:[#allocation3 + $0x80] sm:$0xff] %vm10611_vm1, %v7340_v1 }
  0x26   : > { %712 = vst.msk [vmem:[#allocation3 + $0x90] sm:$0xff] %vm10611_vm1, %v7340_v1  ;;  %713 = vst.msk [vmem:[#allocation3 + $0x98] sm:$0xff] %vm10611_vm1, %v7340_v1 }
  0x27   : > { %715 = vst.msk [vmem:[#allocation3 + $0xa8] sm:$0xff] %vm10611_vm1, %v7340_v1  ;;  %716 = vst.msk [vmem:[#allocation3 + $0xb0] sm:$0xff] %vm10611_vm1, %v7340_v1  ;;  %v781_v6 = vld [vmem:[#allocation3] sm:$0xff]  ;;  %v782_v7 = vld [vmem:[#allocation3 + $0x8] sm:$0xff] }
  0x28   : > { %718 = vst.msk [vmem:[#allocation3 + $0xc0] sm:$0xff] %vm10611_vm1, %v7340_v1  ;;  %719 = vst.msk [vmem:[#allocation3 + $0xc8] sm:$0xff] %vm10611_vm1, %v7340_v1  ;;  %v835_v9 = vmax.f32 %v781_v6, 0.0  ;;  %v836_v10 = vmax.f32 %v782_v7, 0.0 }
  0x29   : > { %721 = vst.msk [vmem:[#allocation3 + $0xd8] sm:$0xff] %vm10611_vm1, %v7340_v1  ;;  %722 = vst.msk [vmem:[#allocation3 + $0xe0] sm:$0xff] %vm10611_vm1, %v7340_v1 }
  0x2a   : > { %724 = vst.msk [vmem:[#allocation3 + $0xf0] sm:$0xff] %vm10611_vm1, %v7340_v1  ;;  %725 = vst.msk [vmem:[#allocation3 + $0xf8] sm:$0xff] %vm10611_vm1, %v7340_v1  ;;  %1002 = vrot.lane.b32.xlu0 %v835_v9, %s10602_s30  ;;  %1199 = vrot.lane.b32.xlu1 %v836_v10, %s10600_s5 }
  0x2b   : > { %727 = vst.msk [vmem:[#allocation3 + $0x108] sm:$0xff] %vm10611_vm1, %v7340_v1  ;;  %728 = vst.msk [vmem:[#allocation3 + $0x110] sm:$0xff] %vm10611_vm1, %v7340_v1 }
  0x2c   : > { %730 = vst.msk [vmem:[#allocation3 + $0x120] sm:$0xff] %vm10611_vm1, %v7340_v1  ;;  %731 = vst.msk [vmem:[#allocation3 + $0x128] sm:$0xff] %vm10611_vm1, %v7340_v1 }
  0x2d   : > { %733 = vst.msk [vmem:[#allocation3 + $0x138] sm:$0xff] %vm10611_vm1, %v7340_v1  ;;  %734 = vst.msk [vmem:[#allocation3 + $0x140] sm:$0xff] %vm10611_vm1, %v7340_v1 }
  0x2e   : > { %736 = vst.msk [vmem:[#allocation3 + $0x150] sm:$0xff] %vm10611_vm1, %v7340_v1  ;;  %737 = vst.msk [vmem:[#allocation3 + $0x158] sm:$0xff] %vm10611_vm1, %v7340_v1  ;;  %1004 = vrot.lane.b32.xlu0 %v836_v10, %s10602_s30 }
  0x2f   : > { %739 = vst.msk [vmem:[#allocation3 + $0x168] sm:$0xff] %vm10611_vm1, %v7340_v1  ;;  %740 = vst.msk [vmem:[#allocation3 + $0x170] sm:$0xff] %vm10611_vm1, %v7340_v1 }
  0x30   : > { %742 = vst.msk [vmem:[#allocation3 + $0x180] sm:$0xff] %vm10611_vm1, %v7340_v1  ;;  %743 = vst.msk [vmem:[#allocation3 + $0x188] sm:$0xff] %vm10611_vm1, %v7340_v1 }
  0x31   : > { %745 = vst.msk [vmem:[#allocation3 + $0x198] sm:$0xff] %vm10611_vm1, %v7340_v1  ;;  %746 = vst.msk [vmem:[#allocation3 + $0x1a0] sm:$0xff] %vm10611_vm1, %v7340_v1 }
  0x32   : > { %891 = vst.msk [vmem:[#allocation2 + $0x8] sm:$0xff] %vm889_vm2, %v7340_v1  ;;  %890 = vst.msk [vmem:[#allocation2] sm:$0xff] %vm889_vm2, %v7340_v1  ;;  %1197 = vrot.lane.b32.xlu0 %v835_v9, %s10600_s5 }
  0x33   : > { %892 = vst.msk [vmem:[#allocation2 + $0x10] sm:$0xff] %vm889_vm2, %v7340_v1  ;;  %893 = vst.msk [vmem:[#allocation2 + $0x18] sm:$0xff] %vm889_vm2, %v7340_v1 }
  0x34   : > { %894 = vst.msk [vmem:[#allocation2 + $0x20] sm:$0xff] %vm889_vm2, %v7340_v1  ;;  %895 = vst.msk [vmem:[#allocation2 + $0x28] sm:$0xff] %vm889_vm2, %v7340_v1 }
  0x35   : > { %896 = vst.msk [vmem:[#allocation2 + $0x30] sm:$0xff] %vm889_vm2, %v7340_v1  ;;  %897 = vst.msk [vmem:[#allocation2 + $0x38] sm:$0xff] %vm889_vm2, %v7340_v1 }
  0x36   : > { %898 = vst.msk [vmem:[#allocation2 + $0x40] sm:$0xff] %vm889_vm2, %v7340_v1  ;;  %899 = vst.msk [vmem:[#allocation2 + $0x48] sm:$0xff] %vm889_vm2, %v7340_v1  ;;  %1201 = vrot.lane.b32.xlu0 %v837_v8, %s10600_s5 }
  0x37   : > { %900 = vst.msk [vmem:[#allocation2 + $0x50] sm:$0xff] %vm889_vm2, %v7340_v1  ;;  %901 = vst.msk [vmem:[#allocation2 + $0x58] sm:$0xff] %vm889_vm2, %v7340_v1 }
  0x38   : > { %902 = vst.msk [vmem:[#allocation2 + $0x60] sm:$0xff] %vm889_vm2, %v7340_v1  ;;  %903 = vst.msk [vmem:[#allocation2 + $0x68] sm:$0xff] %vm889_vm2, %v7340_v1 }
  0x39   : > { %904 = vst.msk [vmem:[#allocation2 + $0x70] sm:$0xff] %vm889_vm2, %v7340_v1  ;;  %905 = vst.msk [vmem:[#allocation2 + $0x78] sm:$0xff] %vm889_vm2, %v7340_v1 }
  0x3a   : > { %906 = vst.msk [vmem:[#allocation2 + $0x80] sm:$0xff] %vm889_vm2, %v7340_v1  ;;  %907 = vst.msk [vmem:[#allocation2 + $0x88] sm:$0xff] %vm889_vm2, %v7340_v1 }
  0x3b   : > { %908 = vst.msk [vmem:[#allocation2 + $0x90] sm:$0xff] %vm889_vm2, %v7340_v1  ;;  %909 = vst.msk [vmem:[#allocation2 + $0x98] sm:$0xff] %vm889_vm2, %v7340_v1 }
  0x3c   : > { %910 = vst.msk [vmem:[#allocation2 + $0xa0] sm:$0xff] %vm889_vm2, %v7340_v1  ;;  %911 = vst.msk [vmem:[#allocation2 + $0xa8] sm:$0xff] %vm889_vm2, %v7340_v1 }
  0x3d   : > { %912 = vst.msk [vmem:[#allocation2 + $0xb0] sm:$0xff] %vm889_vm2, %v7340_v1  ;;  %913 = vst.msk [vmem:[#allocation2 + $0xb8] sm:$0xff] %vm889_vm2, %v7340_v1 }
  0x3e   : > { %914 = vst.msk [vmem:[#allocation2 + $0xc0] sm:$0xff] %vm889_vm2, %v7340_v1  ;;  %915 = vst.msk [vmem:[#allocation2 + $0xc8] sm:$0xff] %vm889_vm2, %v7340_v1 }
  0x3f   : > { %916 = vst.msk [vmem:[#allocation2 + $0xd0] sm:$0xff] %vm889_vm2, %v7340_v1  ;;  %917 = vst.msk [vmem:[#allocation2 + $0xd8] sm:$0xff] %vm889_vm2, %v7340_v1 }
  0x40   : > { %918 = vst.msk [vmem:[#allocation2 + $0xe0] sm:$0xff] %vm889_vm2, %v7340_v1  ;;  %919 = vst.msk [vmem:[#allocation2 + $0xe8] sm:$0xff] %vm889_vm2, %v7340_v1 }
  0x41   : > { %920 = vst.msk [vmem:[#allocation2 + $0xf0] sm:$0xff] %vm889_vm2, %v7340_v1  ;;  %921 = vst.msk [vmem:[#allocation2 + $0xf8] sm:$0xff] %vm889_vm2, %v7340_v1 }
  0x42   : > { %749 = vst.msk [vmem:[#allocation3 + $0x19] sm:$0xff] %vm10611_vm1, %v660_v2  ;;  %750 = vst.msk [vmem:[#allocation3 + $0x21] sm:$0xff] %vm10611_vm1, %v661_v3 }
  0x43   : > { %751 = vst.msk [vmem:[#allocation3 + $0x31] sm:$0xff] %vm10611_vm1, %v662_v4  ;;  %752 = vst.msk [vmem:[#allocation3 + $0x39] sm:$0xff] %vm10611_vm1, %v663_v11 }
  0x44   : > { %753 = vst.msk [vmem:[#allocation3 + $0x49] sm:$0xff] %vm10611_vm1, %v664_v12  ;;  %754 = vst.msk [vmem:[#allocation3 + $0x51] sm:$0xff] %vm10611_vm1, %v665_v13 }
  0x45   : > { %923 = vst.msk [vmem:[#allocation2 + $0x8] sm:$0xff] %vm10611_vm1, %v836_v10  ;;  %922 = vst.msk [vmem:[#allocation2] sm:$0xff] %vm10611_vm1, %v835_v9 }
  0x46   : > { %755 = vst.msk [vmem:[#allocation3 + $0x61] sm:$0xff] %vm10611_vm1, %v666_v14  ;;  %756 = vst.msk [vmem:[#allocation3 + $0x69] sm:$0xff] %vm10611_vm1, %v667_v15 }
  0x47   : > { %757 = vst.msk [vmem:[#allocation3 + $0x79] sm:$0xff] %vm10611_vm1, %v668_v34  ;;  %758 = vst.msk [vmem:[#allocation3 + $0x81] sm:$0xff] %vm10611_vm1, %v669_v35 }
  0x48   : > { %759 = vst.msk [vmem:[#allocation3 + $0x91] sm:$0xff] %vm10611_vm1, %v670_v43  ;;  %760 = vst.msk [vmem:[#allocation3 + $0x99] sm:$0xff] %vm10611_vm1, %v671_v44 }
  0x49   : > { %v784_v16 = vld [vmem:[#allocation3 + $0x18] sm:$0xff]  ;;  %v786_v17 = vld [vmem:[#allocation3 + $0x28] sm:$0x3]  ;;  %v785_v18 = vld [vmem:[#allocation3 + $0x20] sm:$0xff]  ;;  %761 = vst.msk [vmem:[#allocation3 + $0xa9] sm:$0xff] %vm10611_vm1, %v672_v56 }
  0x4a   : > { %v838_v19 = vmax.f32 %v784_v16, 0.0  ;;  %v839_v20 = vmax.f32 %v785_v18, 0.0  ;;  %v787_v21 = vld [vmem:[#allocation3 + $0x30] sm:$0xff]  ;;  %v788_v23 = vld [vmem:[#allocation3 + $0x38] sm:$0xff]  ;;  %v840_v28 = vmax.f32 %v786_v17, 0.0  ;;  %762 = vst.msk [vmem:[#allocation3 + $0xb1] sm:$0xff] %vm10611_vm1, %v673_v57 }
  0x4b   : > { %v7719_v22 = vmax.f32 %v787_v21, 0.0  ;;  %v790_v24 = vld [vmem:[#allocation3 + $0x48] sm:$0xff]  ;;  %v7721_v25 = vmax.f32 %v788_v23, 0.0  ;;  %v791_v27 = vld [vmem:[#allocation3 + $0x50] sm:$0xff]  ;;  %v789_v40 = vld [vmem:[#allocation3 + $0x40] sm:$0x3] }
  0x4c   : > { %v7723_v26 = vmax.f32 %v790_v24, 0.0  ;;  %924 = vst.msk [vmem:[#allocation2 + $0x10] sm:$0xff] %vm10611_vm1, %v838_v19  ;;  %925 = vst.msk [vmem:[#allocation2 + $0x18] sm:$0xff] %vm10611_vm1, %v839_v20  ;;  %1008 = vrot.lane.b32.xlu1 %v838_v19, %s10602_s30  ;;  %v7729_v29 = vmax.f32 %v791_v27, 0.0  ;;  %1010 = vrot.lane.b32.xlu0 %v839_v20, %s10602_s30  ;;  %v7776_v41 = vmax.f32 %v789_v40, 0.0  ;;  %v674_v21 = vld [vmem:[%s7695_s4 + $0x70] sm:$0xff] }
  0x4d   : > { %926 = vst.msk [vmem:[#allocation2 + $0x20] sm:$0xff] %vm10611_vm1, %v7719_v22  ;;  %v793_v30 = vld [vmem:[#allocation3 + $0x60] sm:$0xff]  ;;  %v794_v31 = vld [vmem:[#allocation3 + $0x68] sm:$0xff]  ;;  %927 = vst.msk [vmem:[#allocation2 + $0x28] sm:$0xff] %vm10611_vm1, %v7721_v25 }
  0x4e   : > { %928 = vst.msk [vmem:[#allocation2 + $0x30] sm:$0xff] %vm10611_vm1, %v7723_v26  ;;  %v7737_v32 = vmax.f32 %v793_v30, 0.0  ;;  %v7739_v33 = vmax.f32 %v794_v31, 0.0  ;;  %929 = vst.msk [vmem:[#allocation2 + $0x38] sm:$0xff] %vm10611_vm1, %v7729_v29  ;;  %v796_v36 = vld [vmem:[#allocation3 + $0x78] sm:$0xff]  ;;  %v797_v37 = vld [vmem:[#allocation3 + $0x80] sm:$0xff] }
  0x4f   : > { %v7755_v38 = vmax.f32 %v796_v36, 0.0  ;;  %v7757_v39 = vmax.f32 %v797_v37, 0.0  ;;  %v792_v42 = vld [vmem:[#allocation3 + $0x58] sm:$0x3]  ;;  %v799_v46 = vld [vmem:[#allocation3 + $0x90] sm:$0xff]  ;;  %763 = vst.msk [vmem:[#allocation3 + $0xc1] sm:$0xff] %vm10611_vm1, %v674_v21 }
  0x50   : > { %930 = vst.msk [vmem:[#allocation2 + $0x40] sm:$0xff] %vm10611_vm1, %v7737_v32  ;;  %931 = vst.msk [vmem:[#allocation2 + $0x48] sm:$0xff] %vm10611_vm1, %v7739_v33  ;;  %1012 = vrot.lane.b32.xlu1 %v840_v28, %s10602_s30  ;;  %1205 = vrot.lane.b32.xlu0 %v839_v20, %s10600_s5  ;;  %v7811_v45 = vmax.f32 %v792_v42, 0.0  ;;  %v800_v47 = vld [vmem:[#allocation3 + $0x98] sm:$0xff]  ;;  %v7817_v48 = vmax.f32 %v799_v46, 0.0  ;;  %v802_v58 = vld [vmem:[#allocation3 + $0xa8] sm:$0xff] }
  0x51   : > { %932 = vst.msk [vmem:[#allocation2 + $0x50] sm:$0xff] %vm10611_vm1, %v7755_v38  ;;  %933 = vst.msk [vmem:[#allocation2 + $0x58] sm:$0xff] %vm10611_vm1, %v7757_v39  ;;  %v7819_v49 = vmax.f32 %v800_v47, 0.0  ;;  %v803_v59 = vld [vmem:[#allocation3 + $0xb0] sm:$0xff]  ;;  %v7868_v60 = vmax.f32 %v802_v58, 0.0 }
  0x52   : > { %934 = vst.msk [vmem:[#allocation2 + $0x60] sm:$0xff] %vm10611_vm1, %v7817_v48  ;;  %v7870_v61 = vmax.f32 %v803_v59, 0.0  ;;  %v795_v2 = vld [vmem:[#allocation3 + $0x70] sm:$0x3]  ;;  %765 = vst.msk [vmem:[#allocation3 + $0xd9] sm:$0xff] %vm10611_vm1, %v676_v50 }
  0x53   : > { %935 = vst.msk [vmem:[#allocation2 + $0x68] sm:$0xff] %vm10611_vm1, %v7819_v49  ;;  %936 = vst.msk [vmem:[#allocation2 + $0x70] sm:$0xff] %vm10611_vm1, %v7868_v60  ;;  %v7902_v5 = vmax.f32 %v795_v2, 0.0 }
  0x54   : > { %1203 = vrot.lane.b32.xlu1 %v838_v19, %s10600_s5  ;;  %1394 = vrot.lane.b32.xlu0 %v838_v19, %s10598_s22  ;;  %937 = vst.msk [vmem:[#allocation2 + $0x78] sm:$0xff] %vm10611_vm1, %v7870_v61  ;;  %766 = vst.msk [vmem:[#allocation3 + $0xe1] sm:$0xff] %vm10611_vm1, %v677_v51 }
  0x58   : > { %1207 = vrot.lane.b32.xlu1 %v840_v28, %s10600_s5  ;;  %1398 = vrot.lane.b32.xlu0 %v7719_v22, %s10598_s22 }
  0x59   : > { %v808_v56 = vld [vmem:[#allocation3 + $0xd8] sm:$0xff] }
  0x5c   : > { %1396 = vrot.lane.b32.xlu1 %v839_v20, %s10598_s22  ;;  %1524 = vrot.lane.b32.xlu0 %v838_v19, %s7344_s23 }
  0x60   : > { %1400 = vrot.lane.b32.xlu1 %v7721_v25, %s10598_s22  ;;  %1528 = vrot.lane.b32.xlu0 %v840_v28, %s7344_s23 }
  0x64   : > { %1526 = vrot.lane.b32.xlu1 %v839_v20, %s7344_s23  ;;  %1532 = vrot.lane.b32.xlu0 %v7721_v25, %s7344_s23 }
  0x68   : > { %1530 = vrot.lane.b32.xlu1 %v7719_v22, %s7344_s23  ;;  %1719 = vrot.lane.b32.xlu0 %v838_v19, %s7345_s1 }
  0x6c   : > { %1534 = vrot.lane.b32.xlu1 %v7776_v41, %s7344_s23  ;;  %1723 = vrot.lane.b32.xlu0 %v840_v28, %s7345_s1  ;;  %v805_v28 = vld [vmem:[#allocation3 + $0xc0] sm:$0xff] }
  0x6d   : > { %v7964_v34 = vmax.f32 %v805_v28, 0.0  ;;  %v679_v28 = vld [vmem:[%s7695_s4 + $0x98] sm:$0xff] }
  0x6e   : > { %768 = vst.msk [vmem:[#allocation3 + $0xf9] sm:$0xff] %vm10611_vm1, %v679_v28 }
  0x6f   : > { %938 = vst.msk [vmem:[#allocation2 + $0x80] sm:$0xff] %vm10611_vm1, %v7964_v34 }
  0x70   : > { %1721 = vrot.lane.b32.xlu1 %v839_v20, %s7345_s1  ;;  %1727 = vrot.lane.b32.xlu0 %v7721_v25, %s7345_s1  ;;  %v798_v20 = vld [vmem:[#allocation3 + $0x88] sm:$0x3] }
  0x74   : > { %1725 = vrot.lane.b32.xlu1 %v7719_v22, %s7345_s1  ;;  %1916 = vrot.lane.b32.xlu0 %v7719_v22, %s7346_s24 }
  0x78   : > { %1729 = vrot.lane.b32.xlu1 %v7776_v41, %s7345_s1  ;;  %1920 = vrot.lane.b32.xlu0 %v7723_v26, %s7346_s24 }
  0x7c   : > { %1918 = vrot.lane.b32.xlu1 %v7721_v25, %s7346_s24  ;;  %2046 = vrot.lane.b32.xlu0 %v7719_v22, %s7347_s2 }
  0x80   : > { %1922 = vrot.lane.b32.xlu1 %v7729_v29, %s7346_s24  ;;  %2050 = vrot.lane.b32.xlu0 %v7776_v41, %s7347_s2 }
  0x84   : > { %2048 = vrot.lane.b32.xlu1 %v7721_v25, %s7347_s2  ;;  %2054 = vrot.lane.b32.xlu0 %v7729_v29, %s7347_s2 }
  0x88   : > { %2052 = vrot.lane.b32.xlu1 %v7723_v26, %s7347_s2  ;;  %2241 = vrot.lane.b32.xlu0 %v7719_v22, %s10608_s25 }
  0x8b   : > { %v1007_v62 = vpop.permute.xlu1 %1006 }
  0x8c   : > { %2056 = vrot.lane.b32.xlu1 %v7811_v45, %s7347_s2  ;;  %2245 = vrot.lane.b32.xlu0 %v7776_v41, %s10608_s25  ;;  %1151 = vst.msk [vmem:[#allocation2 + $0xf] sm:$0x1] %vm1150_vm5, %v1007_v62 }
  0x90   : > { %2243 = vrot.lane.b32.xlu1 %v7721_v25, %s10608_s25  ;;  %1016 = vrot.lane.b32.xlu0 %v7721_v25, %s10602_s30 }
  0x94   : > { %1014 = vrot.lane.b32.xlu1 %v7719_v22, %s10602_s30  ;;  %2247 = vrot.lane.b32.xlu0 %v7723_v26, %s10608_s25 }
  0x98   : > { %1018 = vrot.lane.b32.xlu1 %v7776_v41, %s10602_s30  ;;  %2251 = vrot.lane.b32.xlu0 %v7811_v45, %s10608_s25 }
  0x9c   : > { %2249 = vrot.lane.b32.xlu1 %v7729_v29, %s10608_s25  ;;  %1022 = vrot.lane.b32.xlu0 %v7729_v29, %s10602_s30  ;;  %v1003_v63 = vpop.permute.xlu0 %1002  ;;  %v1200_v0 = vpop.permute.xlu1 %1199 }
  0x9d   : > { %1147 = vst.msk [vmem:[#allocation2 - $0x1] sm:$0xfe] %vm1146_vm6, %v1003_v63 }
  0xa0   : > { %1020 = vrot.lane.b32.xlu1 %v7723_v26, %s10602_s30  ;;  %1209 = vrot.lane.b32.xlu0 %v7719_v22, %s10600_s5  ;;  %v1005_v1 = vpop.permute.xlu0 %1004  ;;  %v675_v22 = vld [vmem:[%s7695_s4 + $0x78] sm:$0xff] }
  0xa1   : > { %1149 = vst.msk [vmem:[#allocation2 + $0x7] sm:$0xff] %vm10610_vm7, %v1005_v1 }
  0xa2   : > { %1344 = vst.msk [vmem:[#allocation2 + $0x6] sm:$0xff] %vm10597_vm8, %v1200_v0 }
  0xa3   : > { %764 = vst.msk [vmem:[#allocation3 + $0xc9] sm:$0xff] %vm10611_vm1, %v675_v22 }
  0xa4   : > { %1024 = vrot.lane.b32.xlu1 %v7811_v45, %s10602_s30  ;;  %1213 = vrot.lane.b32.xlu0 %v7776_v41, %s10600_s5  ;;  %v1198_v3 = vpop.permute.xlu0 %1197 }
  0xa5   : > { %1342 = vst.msk [vmem:[#allocation2 - $0x2] sm:$0xfc] %vm1341_vm9, %v1198_v3 }
  0xa8   : > { %1211 = vrot.lane.b32.xlu1 %v7721_v25, %s10600_s5  ;;  %1217 = vrot.lane.b32.xlu0 %v7729_v29, %s10600_s5  ;;  %v1202_v6 = vpop.permute.xlu0 %1201  ;;  %v7956_v25 = vmax.f32 %v798_v20, 0.0 }
  0xa9   : > { %1346 = vst.msk [vmem:[#allocation2 + $0xe] sm:$0x3] %vm10596_vm10, %v1202_v6 }
  0xac   : > { %1215 = vrot.lane.b32.xlu1 %v7723_v26, %s10600_s5  ;;  %1402 = vrot.lane.b32.xlu0 %v7723_v26, %s10598_s22 }
  0xb0   : > { %1219 = vrot.lane.b32.xlu1 %v7811_v45, %s10600_s5  ;;  %1406 = vrot.lane.b32.xlu0 %v7737_v32, %s10598_s22 }
  0xb4   : > { %1404 = vrot.lane.b32.xlu1 %v7729_v29, %s10598_s22  ;;  %1536 = vrot.lane.b32.xlu0 %v7723_v26, %s7344_s23 }
  0xb8   : > { %1408 = vrot.lane.b32.xlu1 %v7739_v33, %s10598_s22  ;;  %1540 = vrot.lane.b32.xlu0 %v7811_v45, %s7344_s23 }
  0xbc   : > { %1538 = vrot.lane.b32.xlu1 %v7729_v29, %s7344_s23  ;;  %1544 = vrot.lane.b32.xlu0 %v7739_v33, %s7344_s23 }
  0xbe   : > { %v1009_v4 = vpop.permute.xlu1 %1008  ;;  %v1011_v8 = vpop.permute.xlu0 %1010 }
  0xbf   : > { %1152 = vst.msk [vmem:[#allocation2 + $0xf] sm:$0xfe] %vm1146_vm6, %v1009_v4 }
  0xc0   : > { %1542 = vrot.lane.b32.xlu1 %v7737_v32, %s7344_s23  ;;  %1153 = vst.msk [vmem:[#allocation2 + $0x17] sm:$0xff] %vm10610_vm7, %v1011_v8  ;;  %1731 = vrot.lane.b32.xlu0 %v7723_v26, %s7345_s1 }
  0xc2   : > { %v1013_v7 = vpop.permute.xlu1 %1012  ;;  %v1206_v10 = vpop.permute.xlu0 %1205 }
  0xc3   : > { %1154 = vst.msk [vmem:[#allocation2 + $0x1f] sm:$0x1] %vm1150_vm5, %v1013_v7  ;;  %v801_v7 = vld [vmem:[#allocation3 + $0xa0] sm:$0x3] }
  0xc4   : > { %1546 = vrot.lane.b32.xlu1 %v7902_v5, %s7344_s23  ;;  %1348 = vst.msk [vmem:[#allocation2 + $0x16] sm:$0xff] %vm10597_vm8, %v1206_v10  ;;  %1735 = vrot.lane.b32.xlu0 %v7811_v45, %s7345_s1  ;;  %v8063_v10 = vmax.f32 %v801_v7, 0.0 }
  0xc6   : > { %v1204_v9 = vpop.permute.xlu1 %1203  ;;  %v1395_v12 = vpop.permute.xlu0 %1394 }
  0xc7   : > { %1347 = vst.msk [vmem:[#allocation2 + $0xe] sm:$0xfc] %vm1341_vm9, %v1204_v9 }
  0xc8   : > { %1733 = vrot.lane.b32.xlu1 %v7729_v29, %s7345_s1  ;;  %1491 = vst.msk [vmem:[#allocation2] sm:$0xff] %vm10592_vm11, %v1395_v12  ;;  %1739 = vrot.lane.b32.xlu0 %v7739_v33, %s7345_s1  ;;  %v806_v29 = vld [vmem:[#allocation3 + $0xc8] sm:$0xff] }
  0xc9   : > { %v7966_v35 = vmax.f32 %v806_v29, 0.0 }
  0xca   : > { %v1208_v11 = vpop.permute.xlu1 %1207  ;;  %v1399_v14 = vpop.permute.xlu0 %1398 }
  0xcb   : > { %1349 = vst.msk [vmem:[#allocation2 + $0x1e] sm:$0x3] %vm10596_vm10, %v1208_v11 }
  0xcc   : > { %1737 = vrot.lane.b32.xlu1 %v7737_v32, %s7345_s1  ;;  %1493 = vst.msk [vmem:[#allocation2 + $0x10] sm:$0xff] %vm10592_vm11, %v1399_v14  ;;  %1924 = vrot.lane.b32.xlu0 %v7737_v32, %s7346_s24 }
  0xcd   : > { %939 = vst.msk [vmem:[#allocation2 + $0x88] sm:$0xff] %vm10611_vm1, %v7966_v35 }
  0xce   : > { %v1397_v13 = vpop.permute.xlu1 %1396  ;;  %v1525_v16 = vpop.permute.xlu0 %1524 }
  0xcf   : > { %1492 = vst.msk [vmem:[#allocation2 + $0x8] sm:$0xff] %vm10592_vm11, %v1397_v13 }
  0xd0   : > { %1741 = vrot.lane.b32.xlu1 %v7902_v5, %s7345_s1  ;;  %1669 = vst.msk [vmem:[#allocation2 - $0x1] sm:$0xfe] %vm10591_vm12, %v1525_v16  ;;  %1928 = vrot.lane.b32.xlu0 %v7755_v38, %s7346_s24 }
  0xd2   : > { %v1401_v15 = vpop.permute.xlu1 %1400  ;;  %v1529_v18 = vpop.permute.xlu0 %1528 }
  0xd3   : > { %1494 = vst.msk [vmem:[#allocation2 + $0x18] sm:$0xff] %vm10592_vm11, %v1401_v15 }
  0xd4   : > { %1926 = vrot.lane.b32.xlu1 %v7739_v33, %s7346_s24  ;;  %1673 = vst.msk [vmem:[#allocation2 + $0xf] sm:$0x1] %vm10593_vm14, %v1529_v18  ;;  %2058 = vrot.lane.b32.xlu0 %v7737_v32, %s7347_s2 }
  0xd6   : > { %v1527_v17 = vpop.permute.xlu1 %1526  ;;  %v1533_v23 = vpop.permute.xlu0 %1532 }
  0xd7   : > { %1671 = vst.msk [vmem:[#allocation2 + $0x7] sm:$0xff] %vm10594_vm13, %v1527_v17  ;;  %1675 = vst.msk [vmem:[#allocation2 + $0x17] sm:$0xff] %vm10594_vm13, %v1533_v23 }
  0xd8   : > { %1930 = vrot.lane.b32.xlu1 %v7757_v39, %s7346_s24  ;;  %2062 = vrot.lane.b32.xlu0 %v7902_v5, %s7347_s2 }
  0xda   : > { %v1531_v19 = vpop.permute.xlu1 %1530  ;;  %v1720_v26 = vpop.permute.xlu0 %1719 }
  0xdb   : > { %1674 = vst.msk [vmem:[#allocation2 + $0xf] sm:$0xfe] %vm10591_vm12, %v1531_v19 }
  0xdc   : > { %2060 = vrot.lane.b32.xlu1 %v7739_v33, %s7347_s2  ;;  %1864 = vst.msk [vmem:[#allocation2 - $0x2] sm:$0xfc] %vm10589_vm15, %v1720_v26  ;;  %2066 = vrot.lane.b32.xlu0 %v7757_v39, %s7347_s2  ;;  %v804_v26 = vld [vmem:[#allocation3 + $0xb8] sm:$0x3] }
  0xde   : > { %v1535_v24 = vpop.permute.xlu1 %1534  ;;  %v1724_v30 = vpop.permute.xlu0 %1723 }
  0xdf   : > { %1676 = vst.msk [vmem:[#allocation2 + $0x1f] sm:$0x1] %vm10593_vm14, %v1535_v24 }
  0xe0   : > { %2064 = vrot.lane.b32.xlu1 %v7755_v38, %s7347_s2  ;;  %1868 = vst.msk [vmem:[#allocation2 + $0xe] sm:$0x3] %vm10585_vm3, %v1724_v30  ;;  %2253 = vrot.lane.b32.xlu0 %v7737_v32, %s10608_s25 }
  0xe2   : > { %v1722_v27 = vpop.permute.xlu1 %1721  ;;  %v1728_v36 = vpop.permute.xlu0 %1727 }
  0xe3   : > { %1866 = vst.msk [vmem:[#allocation2 + $0x6] sm:$0xff] %vm10586_vm0, %v1722_v27  ;;  %1870 = vst.msk [vmem:[#allocation2 + $0x16] sm:$0xff] %vm10586_vm0, %v1728_v36  ;;  %vm2192_vm0 = vcmask 195752   ;;  %v678_v27 = vld [vmem:[%s7695_s4 + $0x90] sm:$0xff] }
  0xe4   : > { %2068 = vrot.lane.b32.xlu1 %v7956_v25, %s7347_s2  ;;  %2257 = vrot.lane.b32.xlu0 %v7902_v5, %s10608_s25  ;;  %767 = vst.msk [vmem:[#allocation3 + $0xf1] sm:$0xff] %vm10611_vm1, %v678_v27 }
  0xe6   : > { %v1726_v31 = vpop.permute.xlu1 %1725  ;;  %v1917_v40 = vpop.permute.xlu0 %1916 }
  0xe7   : > { %1869 = vst.msk [vmem:[#allocation2 + $0xe] sm:$0xfc] %vm10589_vm15, %v1726_v31  ;;  %vm2387_vm15 = vcmask 220352   ;;  %v8118_v31 = vmax.f32 %v804_v26, 0.0 }
  0xe8   : > { %2255 = vrot.lane.b32.xlu1 %v7739_v33, %s10608_s25  ;;  %2013 = vst.msk [vmem:[#allocation2] sm:$0xff] %vm10587_vm4, %v1917_v40  ;;  %1028 = vrot.lane.b32.xlu0 %v7739_v33, %s10602_s30 }
  0xea   : > { %v1730_v37 = vpop.permute.xlu1 %1729  ;;  %v1921_v42 = vpop.permute.xlu0 %1920 }
  0xeb   : > { %1871 = vst.msk [vmem:[#allocation2 + $0x1e] sm:$0x3] %vm10585_vm3, %v1730_v37  ;;  %vm10588_vm3 = vcmask 195753   ;;  %v811_v40 = vld [vmem:[#allocation3 + $0xf0] sm:$0xff] }
  0xec   : > { %1026 = vrot.lane.b32.xlu1 %v7737_v32, %s10602_s30  ;;  %2015 = vst.msk [vmem:[#allocation2 + $0x10] sm:$0xff] %vm10587_vm4, %v1921_v42  ;;  %2259 = vrot.lane.b32.xlu0 %v7755_v38, %s10608_s25 }
  0xee   : > { %v1919_v41 = vpop.permute.xlu1 %1918  ;;  %v2047_v44 = vpop.permute.xlu0 %2046 }
  0xef   : > { %2014 = vst.msk [vmem:[#allocation2 + $0x8] sm:$0xff] %vm10587_vm4, %v1919_v41  ;;  %v812_v41 = vld [vmem:[#allocation3 + $0xf8] sm:$0xff] }
  0xf0   : > { %1030 = vrot.lane.b32.xlu1 %v7902_v5, %s10602_s30  ;;  %2191 = vst.msk [vmem:[#allocation2 - $0x1] sm:$0xfe] %vm10588_vm3, %v2047_v44  ;;  %2263 = vrot.lane.b32.xlu0 %v7956_v25, %s10608_s25  ;;  %v8126_v44 = vmax.f32 %v811_v40, 0.0 }
  0xf2   : > { %v1923_v43 = vpop.permute.xlu1 %1922  ;;  %v2051_v46 = vpop.permute.xlu0 %2050  ;;  %942 = vst.msk [vmem:[#allocation2 + $0xa0] sm:$0xff] %vm10611_vm1, %v8126_v44 }
  0xf3   : > { %2016 = vst.msk [vmem:[#allocation2 + $0x18] sm:$0xff] %vm10587_vm4, %v1923_v43  ;;  %vm10590_vm4 = vcmask 188584  }
  0xf4   : > { %2261 = vrot.lane.b32.xlu1 %v7757_v39, %s10608_s25  ;;  %2195 = vst.msk [vmem:[#allocation2 + $0xf] sm:$0x1] %vm10590_vm4, %v2051_v46  ;;  %1034 = vrot.lane.b32.xlu0 %v7757_v39, %s10602_s30 }
  0xf6   : > { %v2049_v45 = vpop.permute.xlu1 %2048  ;;  %v2055_v52 = vpop.permute.xlu0 %2054 }
  0xf7   : > { %2193 = vst.msk [vmem:[#allocation2 + $0x7] sm:$0xff] %vm2192_vm0, %v2049_v45  ;;  %2197 = vst.msk [vmem:[#allocation2 + $0x17] sm:$0xff] %vm2192_vm0, %v2055_v52  ;;  %v8128_v45 = vmax.f32 %v812_v41, 0.0 }
  0xf8   : > { %1032 = vrot.lane.b32.xlu1 %v7755_v38, %s10602_s30  ;;  %1221 = vrot.lane.b32.xlu0 %v7737_v32, %s10600_s5  ;;  %v809_v32 = vld [vmem:[#allocation3 + $0xe0] sm:$0xff] }
  0xf9   : > { %v8026_v59 = vmax.f32 %v809_v32, 0.0  ;;  %943 = vst.msk [vmem:[#allocation2 + $0xa8] sm:$0xff] %vm10611_vm1, %v8128_v45 }
  0xfa   : > { %v2053_v47 = vpop.permute.xlu1 %2052  ;;  %v2242_v54 = vpop.permute.xlu0 %2241 }
  0xfb   : > { %2196 = vst.msk [vmem:[#allocation2 + $0xf] sm:$0xfe] %vm10588_vm3, %v2053_v47  ;;  %vm2385_vm3 = vcmask 220354  }
  0xfc   : > { %1036 = vrot.lane.b32.xlu1 %v7956_v25, %s10602_s30  ;;  %2386 = vst.msk [vmem:[#allocation2 - $0x2] sm:$0xfc] %vm2385_vm3, %v2242_v54  ;;  %1225 = vrot.lane.b32.xlu0 %v7902_v5, %s10600_s5 }
  0xfd   : > { %941 = vst.msk [vmem:[#allocation2 + $0x98] sm:$0xff] %vm10611_vm1, %v8026_v59 }
  0xfe   : > { %v2057_v53 = vpop.permute.xlu1 %2056  ;;  %v2246_v57 = vpop.permute.xlu0 %2245 }
  0xff   : > { %2198 = vst.msk [vmem:[#allocation2 + $0x1f] sm:$0x1] %vm10590_vm4, %v2057_v53  ;;  %vm2389_vm4 = vcmask 214208  }
 0x100   : > { %1223 = vrot.lane.b32.xlu1 %v7739_v33, %s10600_s5  ;;  %v8024_v33 = vmax.f32 %v808_v56, 0.0  ;;  %2390 = vst.msk [vmem:[#allocation2 + $0xe] sm:$0x3] %vm2389_vm4, %v2246_v57  ;;  %1229 = vrot.lane.b32.xlu0 %v7757_v39, %s10600_s5  ;;  %v680_v57 = vld [vmem:[%s7695_s4 + $0xa0] sm:$0xff] }
 0x101   : > { %769 = vst.msk [vmem:[#allocation3 + $0x109] sm:$0xff] %vm10611_vm1, %v680_v57 }
 0x102   : > { %v2244_v55 = vpop.permute.xlu1 %2243  ;;  %940 = vst.msk [vmem:[#allocation2 + $0x90] sm:$0xff] %vm10611_vm1, %v8024_v33  ;;  %v1017_v62 = vpop.permute.xlu0 %1016 }
 0x103   : > { %2388 = vst.msk [vmem:[#allocation2 + $0x6] sm:$0xff] %vm2387_vm15, %v2244_v55 }
 0x104   : > { %1227 = vrot.lane.b32.xlu1 %v7755_v38, %s10600_s5  ;;  %1156 = vst.msk [vmem:[#allocation2 + $0x27] sm:$0xff] %vm10610_vm7, %v1017_v62  ;;  %1410 = vrot.lane.b32.xlu0 %v7755_v38, %s10598_s22 }
 0x106   : > { %v1015_v58 = vpop.permute.xlu1 %1014  ;;  %v2248_v0 = vpop.permute.xlu0 %2247 }
 0x107   : > { %1155 = vst.msk [vmem:[#allocation2 + $0x1f] sm:$0xfe] %vm1146_vm6, %v1015_v58  ;;  %v681_v58 = vld [vmem:[%s7695_s4 + $0xa8] sm:$0xff] }
 0x108   : > { %1231 = vrot.lane.b32.xlu1 %v7956_v25, %s10600_s5  ;;  %2391 = vst.msk [vmem:[#allocation2 + $0xe] sm:$0xfc] %vm2385_vm3, %v2248_v0  ;;  %1414 = vrot.lane.b32.xlu0 %v7817_v48, %s10598_s22 }
 0x109   : > { %770 = vst.msk [vmem:[#allocation3 + $0x111] sm:$0xff] %vm10611_vm1, %v681_v58 }
 0x10a   : > { %v1019_v63 = vpop.permute.xlu1 %1018  ;;  %v2436_v2 = vld [vmem:[#allocation2] sm:$0xff]  ;;  %v2437_v3 = vld [vmem:[#allocation2 + $0x8] sm:$0xff]  ;;  %v2252_v5 = vpop.permute.xlu0 %2251 }
 0x10b   : > { %1157 = vst.msk [vmem:[#allocation2 + $0x2f] sm:$0x1] %vm1150_vm5, %v1019_v63  ;;  %v2468_v4 = vpack.c.bf16 %v2437_v3, %v2436_v2  ;;  %v814_v2 = vld [vmem:[#allocation3 + $0x108] sm:$0xff] }
 0x10c   : > { %1412 = vrot.lane.b32.xlu1 %v7757_v39, %s10598_s22  ;;  %2393 = vst.msk [vmem:[#allocation2 + $0x1e] sm:$0x3] %vm2389_vm4, %v2252_v5  ;;  %1548 = vrot.lane.b32.xlu0 %v7755_v38, %s7344_s23 }
 0x10d   : > { %7077 = vmatprep.mubr.msk.bf16.mxu0 %vm889_vm2, %v2468_v4 }
 0x10e   : > { %v2250_v1 = vpop.permute.xlu1 %2249  ;;  %v1023_v8 = vpop.permute.xlu0 %1022 }
 0x10f   : > { %2392 = vst.msk [vmem:[#allocation2 + $0x16] sm:$0xff] %vm2387_vm15, %v2250_v1 }
 0x110   : > { %1416 = vrot.lane.b32.xlu1 %v7819_v49, %s10598_s22  ;;  %1159 = vst.msk [vmem:[#allocation2 + $0x37] sm:$0xff] %vm10610_vm7, %v1023_v8  ;;  %1552 = vrot.lane.b32.xlu0 %v7956_v25, %s7344_s23  ;;  %v815_v3 = vld [vmem:[#allocation3 + $0x110] sm:$0xff] }
 0x112   : > { %v1021_v6 = vpop.permute.xlu1 %1020  ;;  %v1210_v11 = vpop.permute.xlu0 %1209 }
 0x113   : > { %1158 = vst.msk [vmem:[#allocation2 + $0x2f] sm:$0xfe] %vm1146_vm6, %v1021_v6  ;;  %v8188_v6 = vmax.f32 %v815_v3, 0.0 }
 0x114   : > { %1550 = vrot.lane.b32.xlu1 %v7757_v39, %s7344_s23  ;;  %1350 = vst.msk [vmem:[#allocation2 + $0x1e] sm:$0xfc] %vm1341_vm9, %v1210_v11  ;;  %1556 = vrot.lane.b32.xlu0 %v7819_v49, %s7344_s23 }
 0x115   : > { %945 = vst.msk [vmem:[#allocation2 + $0xb8] sm:$0xff] %vm10611_vm1, %v8188_v6 }
 0x116   : > { %v1025_v9 = vpop.permute.xlu1 %1024  ;;  %v2438_v13 = vld [vmem:[#allocation2 + $0x10] sm:$0xff]  ;;  %v2439_v14 = vld [vmem:[#allocation2 + $0x18] sm:$0xff]  ;;  %v1214_v16 = vpop.permute.xlu0 %1213 }
 0x117   : > { %1160 = vst.msk [vmem:[#allocation2 + $0x3f] sm:$0x1] %vm1150_vm5, %v1025_v9  ;;  %v2469_v15 = vpack.c.bf16 %v2439_v14, %v2438_v13 }
 0x118   : > { %1554 = vrot.lane.b32.xlu1 %v7817_v48, %s7344_s23  ;;  %1352 = vst.msk [vmem:[#allocation2 + $0x2e] sm:$0x3] %vm10596_vm10, %v1214_v16  ;;  %1743 = vrot.lane.b32.xlu0 %v7755_v38, %s7345_s1 }
 0x119   : > { %7078 = vmatmul.mubr.msk.bf16.vlgmr.msra.gmra.mrb[0].mxu0 %vm889_vm2, %v2469_v15  ;;  %v807_v15 = vld [vmem:[#allocation3 + $0xd0] sm:$0x3] }
 0x11a   : > { %v1212_v12 = vpop.permute.xlu1 %1211  ;;  %v1218_v18 = vpop.permute.xlu0 %1217 }
 0x11b   : > { %1351 = vst.msk [vmem:[#allocation2 + $0x26] sm:$0xff] %vm10597_vm8, %v1212_v12  ;;  %1354 = vst.msk [vmem:[#allocation2 + $0x36] sm:$0xff] %vm10597_vm8, %v1218_v18  ;;  %v8225_v18 = vmax.f32 %v807_v15, 0.0 }
 0x11c   : > { %1558 = vrot.lane.b32.xlu1 %v8063_v10, %s7344_s23  ;;  %1747 = vrot.lane.b32.xlu0 %v7956_v25, %s7345_s1 }
 0x11e   : > { %v1216_v17 = vpop.permute.xlu1 %1215  ;;  %v1403_v20 = vpop.permute.xlu0 %1402 }
 0x11f   : > { %1353 = vst.msk [vmem:[#allocation2 + $0x2e] sm:$0xfc] %vm1341_vm9, %v1216_v17 }
 0x120   : > { %1745 = vrot.lane.b32.xlu1 %v7757_v39, %s7345_s1  ;;  %1495 = vst.msk [vmem:[#allocation2 + $0x20] sm:$0xff] %vm10592_vm11, %v1403_v20  ;;  %1751 = vrot.lane.b32.xlu0 %v7819_v49, %s7345_s1 }
 0x122   : > { %v1220_v19 = vpop.permute.xlu1 %1219  ;;  %v1407_v38 = vpop.permute.xlu0 %1406 }
 0x123   : > { %1355 = vst.msk [vmem:[#allocation2 + $0x3e] sm:$0x3] %vm10596_vm10, %v1220_v19 }
 0x124   : > { %1749 = vrot.lane.b32.xlu1 %v7817_v48, %s7345_s1  ;;  %1497 = vst.msk [vmem:[#allocation2 + $0x30] sm:$0xff] %vm10592_vm11, %v1407_v38  ;;  %1932 = vrot.lane.b32.xlu0 %v7817_v48, %s7346_s24 }
 0x126   : > { %v1405_v21 = vpop.permute.xlu1 %1404  ;;  %v1537_v22 = vpop.permute.xlu0 %1536 }
 0x127   : > { %1496 = vst.msk [vmem:[#allocation2 + $0x28] sm:$0xff] %vm10592_vm11, %v1405_v21 }
 0x128   : > { %1753 = vrot.lane.b32.xlu1 %v8063_v10, %s7345_s1  ;;  %1677 = vst.msk [vmem:[#allocation2 + $0x1f] sm:$0xfe] %vm10591_vm12, %v1537_v22  ;;  %1936 = vrot.lane.b32.xlu0 %v7868_v60, %s7346_s24  ;;  %v8239_v22 = vld [vmem:[#allocation5] sm:$0xff] }
 0x12a   : > { %v1409_v39 = vpop.permute.xlu1 %1408  ;;  %v1541_v24 = vpop.permute.xlu0 %1540 }
 0x12b   : > { %1498 = vst.msk [vmem:[#allocation2 + $0x38] sm:$0xff] %vm10592_vm11, %v1409_v39  ;;  %vm10656_vm11 = vcmask 146552  }
 0x12c   : > { %1934 = vrot.lane.b32.xlu1 %v7819_v49, %s7346_s24  ;;  %1679 = vst.msk [vmem:[#allocation2 + $0x2f] sm:$0x1] %vm10593_vm14, %v1541_v24  ;;  %2070 = vrot.lane.b32.xlu0 %v7817_v48, %s7347_s2 }
 0x12e   : > { %v1539_v23 = vpop.permute.xlu1 %1538  ;;  %v1545_v29 = vpop.permute.xlu0 %1544 }
 0x12f   : > { %1678 = vst.msk [vmem:[#allocation2 + $0x27] sm:$0xff] %vm10594_vm13, %v1539_v23  ;;  %1681 = vst.msk [vmem:[#allocation2 + $0x37] sm:$0xff] %vm10594_vm13, %v1545_v29 }
 0x130   : > { %1938 = vrot.lane.b32.xlu1 %v7870_v61, %s7346_s24  ;;  %2074 = vrot.lane.b32.xlu0 %v8063_v10, %s7347_s2 }
 0x132   : > { %v1543_v25 = vpop.permute.xlu1 %1542  ;;  %v1732_v36 = vpop.permute.xlu0 %1731 }
 0x133   : > { %1680 = vst.msk [vmem:[#allocation2 + $0x2f] sm:$0xfe] %vm10591_vm12, %v1543_v25  ;;  %vm10655_vm12 = vcmask 146554  }
 0x134   : > { %2072 = vrot.lane.b32.xlu1 %v7819_v49, %s7347_s2  ;;  %1872 = vst.msk [vmem:[#allocation2 + $0x1e] sm:$0xfc] %vm10655_vm12, %v1732_v36  ;;  %2078 = vrot.lane.b32.xlu0 %v7870_v61, %s7347_s2  ;;  %vm10658_vm13 = vmmov %vm10655_vm12 }
 0x136   : > { %v1547_v30 = vpop.permute.xlu1 %1546  ;;  %v1736_v42 = vpop.permute.xlu0 %1735 }
 0x137   : > { %1682 = vst.msk [vmem:[#allocation2 + $0x3f] sm:$0x1] %vm10593_vm14, %v1547_v30  ;;  %vm10657_vm14 = vcmask 140408  }
 0x138   : > { %2076 = vrot.lane.b32.xlu1 %v7868_v60, %s7347_s2  ;;  %1874 = vst.msk [vmem:[#allocation2 + $0x2e] sm:$0x3] %vm10657_vm14, %v1736_v42  ;;  %2265 = vrot.lane.b32.xlu0 %v7817_v48, %s10608_s25  ;;  %vm10659_vm12 = vmmov %vm10657_vm14  ;;  %v682_v42 = vld [vmem:[%s7695_s4 + $0xb0] sm:$0xff] }
 0x139   : > { %771 = vst.msk [vmem:[#allocation3 + $0x121] sm:$0xff] %vm10611_vm1, %v682_v42 }
 0x13a   : > { %v1734_v37 = vpop.permute.xlu1 %1733  ;;  %v1740_v46 = vpop.permute.xlu0 %1739 }
 0x13b   : > { %1873 = vst.msk [vmem:[#allocation2 + $0x26] sm:$0xff] %vm10656_vm11, %v1734_v37  ;;  %1876 = vst.msk [vmem:[#allocation2 + $0x36] sm:$0xff] %vm10656_vm11, %v1740_v46  ;;  %v810_v37 = vld [vmem:[#allocation3 + $0xe8] sm:$0x3] }
 0x13c   : > { %2080 = vrot.lane.b32.xlu1 %v8118_v31, %s7347_s2  ;;  %2269 = vrot.lane.b32.xlu0 %v8063_v10, %s10608_s25  ;;  %v8476_v46 = vmax.f32 %v810_v37, 0.0 }
 0x13e   : > { %v1738_v43 = vpop.permute.xlu1 %1737  ;;  %v1925_v50 = vpop.permute.xlu0 %1924 }
 0x13f   : > { %1875 = vst.msk [vmem:[#allocation2 + $0x2e] sm:$0xfc] %vm10658_vm13, %v1738_v43  ;;  %vm10660_vm13 = vcmask 171152   ;;  %v683_v43 = vld [vmem:[%s7695_s4 + $0xb8] sm:$0xff] }
 0x140   : > { %2267 = vrot.lane.b32.xlu1 %v7819_v49, %s10608_s25  ;;  %2017 = vst.msk [vmem:[#allocation2 + $0x20] sm:$0xff] %vm10660_vm13, %v1925_v50  ;;  %vm10661_vm14 = vmmov %vm10660_vm13  ;;  %1040 = vrot.lane.b32.xlu0 %v7819_v49, %s10602_s30 }
 0x141   : > { %vm10662_vm11 = vmmov %vm10660_vm13  ;;  %vm10664_vm13 = vcmask 195753   ;;  %772 = vst.msk [vmem:[#allocation3 + $0x129] sm:$0xff] %vm10611_vm1, %v683_v43 }
 0x142   : > { %v1742_v47 = vpop.permute.xlu1 %1741  ;;  %v1929_v52 = vpop.permute.xlu0 %1928 }
 0x143   : > { %1877 = vst.msk [vmem:[#allocation2 + $0x3e] sm:$0x3] %vm10659_vm12, %v1742_v47  ;;  %vm10663_vm12 = vmmov %vm10662_vm11 }
 0x144   : > { %1038 = vrot.lane.b32.xlu1 %v7817_v48, %s10602_s30  ;;  %2019 = vst.msk [vmem:[#allocation2 + $0x30] sm:$0xff] %vm10662_vm11, %v1929_v52  ;;  %2271 = vrot.lane.b32.xlu0 %v7868_v60, %s10608_s25  ;;  %vm10666_vm11 = vmmov %vm10664_vm13 }
 0x146   : > { %v1927_v51 = vpop.permute.xlu1 %1926  ;;  %v2059_v54 = vpop.permute.xlu0 %2058 }
 0x147   : > { %2018 = vst.msk [vmem:[#allocation2 + $0x28] sm:$0xff] %vm10661_vm14, %v1927_v51  ;;  %vm10665_vm14 = vcmask 188584  }
 0x148   : > { %1042 = vrot.lane.b32.xlu1 %v8063_v10, %s10602_s30  ;;  %2199 = vst.msk [vmem:[#allocation2 + $0x1f] sm:$0xfe] %vm10664_vm13, %v2059_v54  ;;  %2275 = vrot.lane.b32.xlu0 %v8118_v31, %s10608_s25  ;;  %vm10595_vm13 = vcmask 64512   ;;  %v818_v54 = vld [vmem:[#allocation3 + $0x128] sm:$0xff] }
 0x149   : > { %2762 = vst.msk [vmem:[#allocation4 + $0x30] sm:$0xff] %vm10595_vm13, %v8239_v22  ;;  %2763 = vst.msk [vmem:[#allocation4 + $0x38] sm:$0xff] %vm10595_vm13, %v8239_v22 }
 0x14a   : > { %v1931_v53 = vpop.permute.xlu1 %1930  ;;  %v2063_v56 = vpop.permute.xlu0 %2062  ;;  %2755 = vst.msk [vmem:[#allocation4] sm:$0xff] %vm10595_vm13, %v8239_v22  ;;  %2756 = vst.msk [vmem:[#allocation4 + $0x8] sm:$0xff] %vm10595_vm13, %v8239_v22 }
 0x14b   : > { %2020 = vst.msk [vmem:[#allocation2 + $0x38] sm:$0xff] %vm10663_vm12, %v1931_v53  ;;  %vm10667_vm12 = vmmov %vm10665_vm14  ;;  %v817_v53 = vld [vmem:[#allocation3 + $0x120] sm:$0xff] }
 0x14c   : > { %2273 = vrot.lane.b32.xlu1 %v7870_v61, %s10608_s25  ;;  %2201 = vst.msk [vmem:[#allocation2 + $0x2f] sm:$0x1] %vm10665_vm14, %v2063_v56  ;;  %1046 = vrot.lane.b32.xlu0 %v7870_v61, %s10602_s30  ;;  %vm2757_vm14 = vcmask 58368   ;;  %v8488_v56 = vmax.f32 %v818_v54, 0.0 }
 0x14d   : > { %2759 = vst.msk [vmem:[#allocation4 + $0x18] sm:$0xff] %vm10595_vm13, %v8239_v22  ;;  %2760 = vst.msk [vmem:[#allocation4 + $0x20] sm:$0xff] %vm10595_vm13, %v8239_v22 }
 0x14e   : > { %v2061_v55 = vpop.permute.xlu1 %2060  ;;  %v2067_v62 = vpop.permute.xlu0 %2066  ;;  %2765 = vst.msk [vmem:[#allocation4 + $0x48] sm:$0xff] %vm10595_vm13, %v8239_v22  ;;  %2766 = vst.msk [vmem:[#allocation4 + $0x50] sm:$0xff] %vm10595_vm13, %v8239_v22 }
 0x14f   : > { %2200 = vst.msk [vmem:[#allocation2 + $0x27] sm:$0xff] %vm2192_vm0, %v2061_v55  ;;  %2203 = vst.msk [vmem:[#allocation2 + $0x37] sm:$0xff] %vm2192_vm0, %v2067_v62  ;;  %v8486_v55 = vmax.f32 %v817_v53, 0.0  ;;  %v687_v53 = vld [vmem:[%s7695_s4 + $0xd8] sm:$0xff] }
 0x150   : > { %1044 = vrot.lane.b32.xlu1 %v7868_v60, %s10602_s30  ;;  %1233 = vrot.lane.b32.xlu0 %v7817_v48, %s10600_s5  ;;  %v8186_v48 = vmax.f32 %v814_v2, 0.0  ;;  %2768 = vst.msk [vmem:[#allocation4 + $0x60] sm:$0xff] %vm10595_vm13, %v8239_v22  ;;  %2769 = vst.msk [vmem:[#allocation4 + $0x68] sm:$0xff] %vm10595_vm13, %v8239_v22 }
 0x151   : > { %2771 = vst.msk [vmem:[#allocation4 + $0x78] sm:$0xff] %vm10595_vm13, %v8239_v22  ;;  %2772 = vst.msk [vmem:[#allocation4 + $0x80] sm:$0xff] %vm10595_vm13, %v8239_v22 }
 0x152   : > { %v2065_v32 = vpop.permute.xlu1 %2064  ;;  %v2254_v0 = vpop.permute.xlu0 %2253  ;;  %944 = vst.msk [vmem:[#allocation2 + $0xb0] sm:$0xff] %vm10611_vm1, %v8186_v48  ;;  %946 = vst.msk [vmem:[#allocation2 + $0xc0] sm:$0xff] %vm10611_vm1, %v8486_v55 }
 0x153   : > { %2202 = vst.msk [vmem:[#allocation2 + $0x2f] sm:$0xfe] %vm10666_vm11, %v2065_v32  ;;  %vm10668_vm11 = vcmask 97352  }
 0x154   : > { %1048 = vrot.lane.b32.xlu1 %v8118_v31, %s10602_s30  ;;  %2394 = vst.msk [vmem:[#allocation2 + $0x1e] sm:$0xfc] %vm2385_vm3, %v2254_v0  ;;  %1237 = vrot.lane.b32.xlu0 %v8063_v10, %s10600_s5 }
 0x155   : > { %2774 = vst.msk [vmem:[#allocation4 + $0x90] sm:$0xff] %vm10595_vm13, %v8239_v22  ;;  %2775 = vst.msk [vmem:[#allocation4 + $0x98] sm:$0xff] %vm10595_vm13, %v8239_v22 }
 0x156   : > { %v2069_v63 = vpop.permute.xlu1 %2068  ;;  %v2258_v4 = vpop.permute.xlu0 %2257  ;;  %2777 = vst.msk [vmem:[#allocation4 + $0xa8] sm:$0xff] %vm10595_vm13, %v8239_v22  ;;  %2778 = vst.msk [vmem:[#allocation4 + $0xb0] sm:$0xff] %vm10595_vm13, %v8239_v22 }
 0x157   : > { %2204 = vst.msk [vmem:[#allocation2 + $0x3f] sm:$0x1] %vm10667_vm12, %v2069_v63  ;;  %vm10669_vm12 = vmmov %vm10668_vm11 }
 0x158   : > { %1235 = vrot.lane.b32.xlu1 %v7819_v49, %s10600_s5  ;;  %2396 = vst.msk [vmem:[#allocation2 + $0x2e] sm:$0x3] %vm2389_vm4, %v2258_v4  ;;  %1241 = vrot.lane.b32.xlu0 %v7870_v61, %s10600_s5 }
 0x159   : > { %2780 = vst.msk [vmem:[#allocation4 + $0xc0] sm:$0xff] %vm10595_vm13, %v8239_v22  ;;  %2781 = vst.msk [vmem:[#allocation4 + $0xc8] sm:$0xff] %vm10595_vm13, %v8239_v22 }
 0x15a   : > { %v2256_v1 = vpop.permute.xlu1 %2255  ;;  %v1029_v49 = vpop.permute.xlu0 %1028  ;;  %2783 = vst.msk [vmem:[#allocation4 + $0xd8] sm:$0xff] %vm10595_vm13, %v8239_v22  ;;  %2784 = vst.msk [vmem:[#allocation4 + $0xe0] sm:$0xff] %vm10595_vm13, %v8239_v22 }
 0x15b   : > { %2395 = vst.msk [vmem:[#allocation2 + $0x26] sm:$0xff] %vm2387_vm15, %v2256_v1 }
 0x15c   : > { %1239 = vrot.lane.b32.xlu1 %v7868_v60, %s10600_s5  ;;  %1162 = vst.msk [vmem:[#allocation2 + $0x47] sm:$0xff] %vm10610_vm7, %v1029_v49  ;;  %1418 = vrot.lane.b32.xlu0 %v7868_v60, %s10598_s22 }
 0x15d   : > { %2786 = vst.msk [vmem:[#allocation4 + $0xf0] sm:$0xff] %vm10595_vm13, %v8239_v22  ;;  %2787 = vst.msk [vmem:[#allocation4 + $0xf8] sm:$0xff] %vm10595_vm13, %v8239_v22 }
 0x15e   : > { %v1027_v5 = vpop.permute.xlu1 %1026  ;;  %v2260_v8 = vpop.permute.xlu0 %2259  ;;  %2789 = vst.msk [vmem:[#allocation4 + $0x108] sm:$0xff] %vm10595_vm13, %v8239_v22  ;;  %2790 = vst.msk [vmem:[#allocation4 + $0x110] sm:$0xff] %vm10595_vm13, %v8239_v22 }
 0x15f   : > { %1161 = vst.msk [vmem:[#allocation2 + $0x3f] sm:$0xfe] %vm1146_vm6, %v1027_v5 }
 0x160   : > { %1243 = vrot.lane.b32.xlu1 %v8118_v31, %s10600_s5  ;;  %2397 = vst.msk [vmem:[#allocation2 + $0x2e] sm:$0xfc] %vm2385_vm3, %v2260_v8  ;;  %1422 = vrot.lane.b32.xlu0 %v7964_v34, %s10598_s22  ;;  %v685_v8 = vld [vmem:[%s7695_s4 + $0xc8] sm:$0xff] }
 0x161   : > { %2792 = vst.msk [vmem:[#allocation4 + $0x120] sm:$0xff] %vm10595_vm13, %v8239_v22  ;;  %2793 = vst.msk [vmem:[#allocation4 + $0x128] sm:$0xff] %vm10595_vm13, %v8239_v22 }
 0x162   : > { %v1031_v7 = vpop.permute.xlu1 %1030  ;;  %v2440_v10 = vld [vmem:[#allocation2 + $0x20] sm:$0xff]  ;;  %v2441_v11 = vld [vmem:[#allocation2 + $0x28] sm:$0xff]  ;;  %v2264_v13 = vpop.permute.xlu0 %2263  ;;  %2795 = vst.msk [vmem:[#allocation4 + $0x138] sm:$0xff] %vm10595_vm13, %v8239_v22  ;;  %2796 = vst.msk [vmem:[#allocation4 + $0x140] sm:$0xff] %vm10595_vm13, %v8239_v22 }
 0x163   : > { %1163 = vst.msk [vmem:[#allocation2 + $0x4f] sm:$0x1] %vm1150_vm5, %v1031_v7  ;;  %v2470_v12 = vpack.c.bf16 %v2441_v11, %v2440_v10  ;;  %v684_v7 = vld [vmem:[%s7695_s4 + $0xc0] sm:$0xff] }
 0x164   : > { %1420 = vrot.lane.b32.xlu1 %v7870_v61, %s10598_s22  ;;  %2399 = vst.msk [vmem:[#allocation2 + $0x3e] sm:$0x3] %vm2389_vm4, %v2264_v13  ;;  %1560 = vrot.lane.b32.xlu0 %v7868_v60, %s7344_s23 }
 0x165   : > { %7081 = vmatprep.mubr.msk.bf16.mxu0 %vm889_vm2, %v2470_v12  ;;  %2798 = vst.msk [vmem:[#allocation4 + $0x150] sm:$0xff] %vm10595_vm13, %v8239_v22  ;;  %2799 = vst.msk [vmem:[#allocation4 + $0x158] sm:$0xff] %vm10595_vm13, %v8239_v22 }
 0x166   : > { %v2262_v9 = vpop.permute.xlu1 %2261  ;;  %v1035_v16 = vpop.permute.xlu0 %1034  ;;  %2801 = vst.msk [vmem:[#allocation4 + $0x168] sm:$0xff] %vm10595_vm13, %v8239_v22  ;;  %2802 = vst.msk [vmem:[#allocation4 + $0x170] sm:$0xff] %vm10595_vm13, %v8239_v22 }
 0x167   : > { %2398 = vst.msk [vmem:[#allocation2 + $0x36] sm:$0xff] %vm2387_vm15, %v2262_v9 }
 0x168   : > { %1424 = vrot.lane.b32.xlu1 %v7966_v35, %s10598_s22  ;;  %1165 = vst.msk [vmem:[#allocation2 + $0x57] sm:$0xff] %vm10610_vm7, %v1035_v16  ;;  %1564 = vrot.lane.b32.xlu0 %v8118_v31, %s7344_s23 }
 0x169   : > { %2804 = vst.msk [vmem:[#allocation4 + $0x180] sm:$0xff] %vm10595_vm13, %v8239_v22  ;;  %2805 = vst.msk [vmem:[#allocation4 + $0x188] sm:$0xff] %vm10595_vm13, %v8239_v22 }
 0x16a   : > { %v1033_v14 = vpop.permute.xlu1 %1032  ;;  %v1222_v19 = vpop.permute.xlu0 %1221  ;;  %2807 = vst.msk [vmem:[#allocation4 + $0x198] sm:$0xff] %vm10595_vm13, %v8239_v22  ;;  %2808 = vst.msk [vmem:[#allocation4 + $0x1a0] sm:$0xff] %vm10595_vm13, %v8239_v22 }
 0x16b   : > { %1164 = vst.msk [vmem:[#allocation2 + $0x4f] sm:$0xfe] %vm1146_vm6, %v1033_v14 }
 0x16c   : > { %1562 = vrot.lane.b32.xlu1 %v7870_v61, %s7344_s23  ;;  %1356 = vst.msk [vmem:[#allocation2 + $0x3e] sm:$0xfc] %vm1341_vm9, %v1222_v19  ;;  %1568 = vrot.lane.b32.xlu0 %v7966_v35, %s7344_s23 }
 0x16d   : > { %4192 = vst.msk [vmem:[#allocation8] sm:$0xff] %vm10595_vm13, %v8239_v22  ;;  %4194 = vst.msk [vmem:[#allocation8 + $0x10] sm:$0xff] %vm10595_vm13, %v8239_v22 }
 0x16e   : > { %v1037_v17 = vpop.permute.xlu1 %1036  ;;  %v8227_v21 = vld [vmem:[#allocation2 + $0x30] sm:$0xff]  ;;  %v8229_v38 = vld [vmem:[#allocation2 + $0x38] sm:$0xff]  ;;  %4196 = vst.msk [vmem:[#allocation8 + $0x20] sm:$0xff] %vm10595_vm13, %v8239_v22  ;;  %4198 = vst.msk [vmem:[#allocation8 + $0x30] sm:$0xff] %vm10595_vm13, %v8239_v22  ;;  %v1226_v23 = vpop.permute.xlu0 %1225 }
 0x16f   : > { %1166 = vst.msk [vmem:[#allocation2 + $0x5f] sm:$0x1] %vm1150_vm5, %v1037_v17  ;;  %v2471_v39 = vpack.c.bf16 %v8229_v38, %v8227_v21 }
 0x170   : > { %1566 = vrot.lane.b32.xlu1 %v7964_v34, %s7344_s23  ;;  %4200 = vst.msk [vmem:[#allocation8 + $0x40] sm:$0xff] %vm10595_vm13, %v8239_v22  ;;  %4202 = vst.msk [vmem:[#allocation8 + $0x50] sm:$0xff] %vm10595_vm13, %v8239_v22  ;;  %1755 = vrot.lane.b32.xlu0 %v7868_v60, %s7345_s1 }
 0x171   : > { %4204 = vst.msk [vmem:[#allocation8 + $0x60] sm:$0xff] %vm10595_vm13, %v8239_v22  ;;  %4206 = vst.msk [vmem:[#allocation8 + $0x70] sm:$0xff] %vm10595_vm13, %v8239_v22  ;;  %7082 = vmatmul.mubr.msk.bf16.gmra.mrb[4].mxu0 %vm889_vm2, %v2471_v39 }
 0x172   : > { %v1224_v20 = vpop.permute.xlu1 %1223  ;;  %4208 = vst.msk [vmem:[#allocation8 + $0x80] sm:$0xff] %vm10595_vm13, %v8239_v22  ;;  %4210 = vst.msk [vmem:[#allocation8 + $0x90] sm:$0xff] %vm10595_vm13, %v8239_v22  ;;  %v1230_v25 = vpop.permute.xlu0 %1229 }
 0x173   : > { %1357 = vst.msk [vmem:[#allocation2 + $0x46] sm:$0xff] %vm10597_vm8, %v1224_v20  ;;  %1360 = vst.msk [vmem:[#allocation2 + $0x56] sm:$0xff] %vm10597_vm8, %v1230_v25 }
 0x174   : > { %1570 = vrot.lane.b32.xlu1 %v8225_v18, %s7344_s23  ;;  %4902 = vst.msk [vmem:[#allocation9] sm:$0xff] %vm10595_vm13, %v8239_v22  ;;  %4904 = vst.msk [vmem:[#allocation9 + $0x10] sm:$0xff] %vm10595_vm13, %v8239_v22  ;;  %1759 = vrot.lane.b32.xlu0 %v8118_v31, %s7345_s1 }
 0x175   : > { %4906 = vst.msk [vmem:[#allocation9 + $0x20] sm:$0xff] %vm10595_vm13, %v8239_v22  ;;  %4908 = vst.msk [vmem:[#allocation9 + $0x30] sm:$0xff] %vm10595_vm13, %v8239_v22 }
 0x176   : > { %4910 = vst.msk [vmem:[#allocation9 + $0x40] sm:$0xff] %vm10595_vm13, %v8239_v22  ;;  %4912 = vst.msk [vmem:[#allocation9 + $0x50] sm:$0xff] %vm10595_vm13, %v8239_v22  ;;  %v1228_v24 = vpop.permute.xlu1 %1227  ;;  %v1411_v27 = vpop.permute.xlu0 %1410 }
 0x177   : > { %4914 = vst.msk [vmem:[#allocation9 + $0x60] sm:$0xff] %vm10595_vm13, %v8239_v22  ;;  %4916 = vst.msk [vmem:[#allocation9 + $0x70] sm:$0xff] %vm10595_vm13, %v8239_v22 }
 0x178   : > { %4918 = vst.msk [vmem:[#allocation9 + $0x80] sm:$0xff] %vm10595_vm13, %v8239_v22  ;;  %4920 = vst.msk [vmem:[#allocation9 + $0x90] sm:$0xff] %vm10595_vm13, %v8239_v22  ;;  %1757 = vrot.lane.b32.xlu1 %v7870_v61, %s7345_s1  ;;  %1763 = vrot.lane.b32.xlu0 %v7966_v35, %s7345_s1 }
 0x179   : > { %1358 = vst.msk [vmem:[#allocation2 + $0x4e] sm:$0x3] %vm10596_vm10, %v1226_v23  ;;  %vm10671_vm13 = vmmov %vm10668_vm11 }
 0x17a   : > { %1359 = vst.msk [vmem:[#allocation2 + $0x4e] sm:$0xfc] %vm1341_vm9, %v1228_v24  ;;  %v1232_v26 = vpop.permute.xlu1 %1231  ;;  %v1415_v60 = vpop.permute.xlu0 %1414 }
 0x17b   : > { %2764 = vst.msk [vmem:[#allocation4 + $0x40] sm:$0x3] %vm2757_vm14, %v8239_v22  ;;  %2758 = vst.msk [vmem:[#allocation4 + $0x10] sm:$0x3] %vm2757_vm14, %v8239_v22 }
 0x17c   : > { %2761 = vst.msk [vmem:[#allocation4 + $0x28] sm:$0x3] %vm2757_vm14, %v8239_v22  ;;  %2767 = vst.msk [vmem:[#allocation4 + $0x58] sm:$0x3] %vm2757_vm14, %v8239_v22  ;;  %1761 = vrot.lane.b32.xlu1 %v7964_v34, %s7345_s1  ;;  %1940 = vrot.lane.b32.xlu0 %v7964_v34, %s7346_s24 }
 0x17d   : > { %2770 = vst.msk [vmem:[#allocation4 + $0x70] sm:$0x3] %vm2757_vm14, %v8239_v22  ;;  %2773 = vst.msk [vmem:[#allocation4 + $0x88] sm:$0x3] %vm2757_vm14, %v8239_v22 }
 0x17e   : > { %2776 = vst.msk [vmem:[#allocation4 + $0xa0] sm:$0x3] %vm2757_vm14, %v8239_v22  ;;  %2779 = vst.msk [vmem:[#allocation4 + $0xb8] sm:$0x3] %vm2757_vm14, %v8239_v22  ;;  %v1413_v28 = vpop.permute.xlu1 %1412  ;;  %v1549_v29 = vpop.permute.xlu0 %1548 }
 0x17f   : > { %2782 = vst.msk [vmem:[#allocation4 + $0xd0] sm:$0x3] %vm2757_vm14, %v8239_v22  ;;  %2785 = vst.msk [vmem:[#allocation4 + $0xe8] sm:$0x3] %vm2757_vm14, %v8239_v22 }
 0x180   : > { %2788 = vst.msk [vmem:[#allocation4 + $0x100] sm:$0x3] %vm2757_vm14, %v8239_v22  ;;  %2791 = vst.msk [vmem:[#allocation4 + $0x118] sm:$0x3] %vm2757_vm14, %v8239_v22  ;;  %1765 = vrot.lane.b32.xlu1 %v8225_v18, %s7345_s1  ;;  %1944 = vrot.lane.b32.xlu0 %v8024_v33, %s7346_s24 }
 0x181   : > { %2794 = vst.msk [vmem:[#allocation4 + $0x130] sm:$0x3] %vm2757_vm14, %v8239_v22  ;;  %2797 = vst.msk [vmem:[#allocation4 + $0x148] sm:$0x3] %vm2757_vm14, %v8239_v22 }
 0x182   : > { %2800 = vst.msk [vmem:[#allocation4 + $0x160] sm:$0x3] %vm2757_vm14, %v8239_v22  ;;  %2803 = vst.msk [vmem:[#allocation4 + $0x178] sm:$0x3] %vm2757_vm14, %v8239_v22  ;;  %v1417_v61 = vpop.permute.xlu1 %1416  ;;  %v1553_v31 = vpop.permute.xlu0 %1552 }
 0x183   : > { %2806 = vst.msk [vmem:[#allocation4 + $0x190] sm:$0x3] %vm2757_vm14, %v8239_v22  ;;  %2809 = vst.msk [vmem:[#allocation4 + $0x1a8] sm:$0x3] %vm2757_vm14, %v8239_v22 }
 0x184   : > { %4193 = vst.msk [vmem:[#allocation8 + $0x8] sm:$0x3] %vm2757_vm14, %v8239_v22  ;;  %4195 = vst.msk [vmem:[#allocation8 + $0x18] sm:$0x3] %vm2757_vm14, %v8239_v22  ;;  %1942 = vrot.lane.b32.xlu1 %v7966_v35, %s7346_s24  ;;  %2082 = vrot.lane.b32.xlu0 %v7964_v34, %s7347_s2 }
 0x185   : > { %4197 = vst.msk [vmem:[#allocation8 + $0x28] sm:$0x3] %vm2757_vm14, %v8239_v22  ;;  %4199 = vst.msk [vmem:[#allocation8 + $0x38] sm:$0x3] %vm2757_vm14, %v8239_v22 }
 0x186   : > { %4201 = vst.msk [vmem:[#allocation8 + $0x48] sm:$0x3] %vm2757_vm14, %v8239_v22  ;;  %4203 = vst.msk [vmem:[#allocation8 + $0x58] sm:$0x3] %vm2757_vm14, %v8239_v22  ;;  %v1551_v30 = vpop.permute.xlu1 %1550  ;;  %v1557_v40 = vpop.permute.xlu0 %1556 }
 0x187   : > { %4205 = vst.msk [vmem:[#allocation8 + $0x68] sm:$0x3] %vm2757_vm14, %v8239_v22  ;;  %4207 = vst.msk [vmem:[#allocation8 + $0x78] sm:$0x3] %vm2757_vm14, %v8239_v22 }
 0x188   : > { %4209 = vst.msk [vmem:[#allocation8 + $0x88] sm:$0x3] %vm2757_vm14, %v8239_v22  ;;  %4211 = vst.msk [vmem:[#allocation8 + $0x98] sm:$0x3] %vm2757_vm14, %v8239_v22  ;;  %1946 = vrot.lane.b32.xlu1 %v8026_v59, %s7346_s24  ;;  %2086 = vrot.lane.b32.xlu0 %v8225_v18, %s7347_s2 }
 0x189   : > { %4903 = vst.msk [vmem:[#allocation9 + $0x8] sm:$0x3] %vm2757_vm14, %v8239_v22  ;;  %4905 = vst.msk [vmem:[#allocation9 + $0x18] sm:$0x3] %vm2757_vm14, %v8239_v22 }
 0x18a   : > { %4907 = vst.msk [vmem:[#allocation9 + $0x28] sm:$0x3] %vm2757_vm14, %v8239_v22  ;;  %4909 = vst.msk [vmem:[#allocation9 + $0x38] sm:$0x3] %vm2757_vm14, %v8239_v22  ;;  %v1555_v36 = vpop.permute.xlu1 %1554  ;;  %v1744_v47 = vpop.permute.xlu0 %1743 }
 0x18b   : > { %4911 = vst.msk [vmem:[#allocation9 + $0x48] sm:$0x3] %vm2757_vm14, %v8239_v22  ;;  %4913 = vst.msk [vmem:[#allocation9 + $0x58] sm:$0x3] %vm2757_vm14, %v8239_v22 }
 0x18c   : > { %4915 = vst.msk [vmem:[#allocation9 + $0x68] sm:$0x3] %vm2757_vm14, %v8239_v22  ;;  %4917 = vst.msk [vmem:[#allocation9 + $0x78] sm:$0x3] %vm2757_vm14, %v8239_v22  ;;  %2084 = vrot.lane.b32.xlu1 %v7966_v35, %s7347_s2  ;;  %2090 = vrot.lane.b32.xlu0 %v8026_v59, %s7347_s2 }
 0x18d   : > { %4919 = vst.msk [vmem:[#allocation9 + $0x88] sm:$0x3] %vm2757_vm14, %v8239_v22  ;;  %4921 = vst.msk [vmem:[#allocation9 + $0x98] sm:$0x3] %vm2757_vm14, %v8239_v22  ;;  %v813_v22 = vld [vmem:[#allocation3 + $0x100] sm:$0x3] }
 0x18e   : > { %1361 = vst.msk [vmem:[#allocation2 + $0x5e] sm:$0x3] %vm10596_vm10, %v1232_v26  ;;  %vm10670_vm14 = vmmov %vm10668_vm11  ;;  %v1559_v41 = vpop.permute.xlu1 %1558  ;;  %v1748_v51 = vpop.permute.xlu0 %1747  ;;  %v8583_v25 = vmax.f32 %v813_v22, 0.0 }
 0x18f   : > { %1499 = vst.msk [vmem:[#allocation2 + $0x40] sm:$0xff] %vm10668_vm11, %v1411_v27  ;;  %vm10672_vm11 = vcmask 121953  }
 0x190   : > { %1500 = vst.msk [vmem:[#allocation2 + $0x48] sm:$0xff] %vm10669_vm12, %v1413_v28  ;;  %vm10673_vm12 = vcmask 121952   ;;  %2088 = vrot.lane.b32.xlu1 %v8024_v33, %s7347_s2  ;;  %2277 = vrot.lane.b32.xlu0 %v7964_v34, %s10608_s25 }
 0x191   : > { %1501 = vst.msk [vmem:[#allocation2 + $0x50] sm:$0xff] %vm10670_vm14, %v1415_v60  ;;  %vm10675_vm14 = vmmov %vm10672_vm11 }
 0x192   : > { %1502 = vst.msk [vmem:[#allocation2 + $0x58] sm:$0xff] %vm10671_vm13, %v1417_v61  ;;  %vm10674_vm13 = vcmask 114784   ;;  %v1746_v50 = vpop.permute.xlu1 %1745  ;;  %v1752_v32 = vpop.permute.xlu0 %1751 }
 0x193   : > { %1683 = vst.msk [vmem:[#allocation2 + $0x3f] sm:$0xfe] %vm10672_vm11, %v1549_v29  ;;  %vm10676_vm11 = vmmov %vm10673_vm12 }
 0x194   : > { %1684 = vst.msk [vmem:[#allocation2 + $0x47] sm:$0xff] %vm10673_vm12, %v1551_v30  ;;  %vm10677_vm12 = vmmov %vm10674_vm13  ;;  %2092 = vrot.lane.b32.xlu1 %v8476_v46, %s7347_s2  ;;  %2281 = vrot.lane.b32.xlu0 %v8225_v18, %s10608_s25 }
 0x195   : > { %1685 = vst.msk [vmem:[#allocation2 + $0x4f] sm:$0x1] %vm10674_vm13, %v1553_v31  ;;  %vm10678_vm13 = vcmask 146554  }
 0x196   : > { %1686 = vst.msk [vmem:[#allocation2 + $0x4f] sm:$0xfe] %vm10675_vm14, %v1555_v36  ;;  %vm10679_vm14 = vcmask 146552   ;;  %v1750_v52 = vpop.permute.xlu1 %1749  ;;  %v1933_v58 = vpop.permute.xlu0 %1932 }
 0x197   : > { %1687 = vst.msk [vmem:[#allocation2 + $0x57] sm:$0xff] %vm10676_vm11, %v1557_v40  ;;  %vm10680_vm11 = vcmask 140408  }
 0x198   : > { %1688 = vst.msk [vmem:[#allocation2 + $0x5f] sm:$0x1] %vm10677_vm12, %v1559_v41  ;;  %vm10681_vm12 = vmmov %vm10678_vm13  ;;  %2279 = vrot.lane.b32.xlu1 %v7966_v35, %s10608_s25  ;;  %1052 = vrot.lane.b32.xlu0 %v7966_v35, %s10602_s30 }
 0x199   : > { %1878 = vst.msk [vmem:[#allocation2 + $0x3e] sm:$0xfc] %vm10678_vm13, %v1744_v47  ;;  %vm10682_vm13 = vmmov %vm10679_vm14  ;;  %v816_v47 = vld [vmem:[#allocation3 + $0x118] sm:$0x3] }
 0x19a   : > { %1879 = vst.msk [vmem:[#allocation2 + $0x46] sm:$0xff] %vm10679_vm14, %v1746_v50  ;;  %v1754_v57 = vpop.permute.xlu1 %1753  ;;  %vm10683_vm14 = vmmov %vm10680_vm11  ;;  %v1937_v63 = vpop.permute.xlu0 %1936  ;;  %v8638_v54 = vmax.f32 %v816_v47, 0.0 }
 0x19b   : > { %1880 = vst.msk [vmem:[#allocation2 + $0x4e] sm:$0x3] %vm10680_vm11, %v1748_v51  ;;  %vm10684_vm11 = vcmask 171152  }
 0x19c   : > { %1881 = vst.msk [vmem:[#allocation2 + $0x4e] sm:$0xfc] %vm10681_vm12, %v1750_v52  ;;  %1050 = vrot.lane.b32.xlu1 %v7964_v34, %s10602_s30  ;;  %vm10685_vm12 = vmmov %vm10684_vm11  ;;  %2283 = vrot.lane.b32.xlu0 %v8024_v33, %s10608_s25  ;;  %v686_v52 = vld [vmem:[%s7695_s4 + $0xd0] sm:$0xff] }
 0x19d   : > { %947 = vst.msk [vmem:[#allocation2 + $0xc8] sm:$0xff] %vm10611_vm1, %v8488_v56  ;;  %773 = vst.msk [vmem:[#allocation3 + $0x139] sm:$0xff] %vm10611_vm1, %v684_v7 }
 0x19e   : > { %1882 = vst.msk [vmem:[#allocation2 + $0x56] sm:$0xff] %vm10682_vm13, %v1752_v32  ;;  %v1935_v62 = vpop.permute.xlu1 %1934  ;;  %vm10686_vm13 = vmmov %vm10684_vm11  ;;  %v2071_v1 = vpop.permute.xlu0 %2070 }
 0x19f   : > { %1883 = vst.msk [vmem:[#allocation2 + $0x5e] sm:$0x3] %vm10683_vm14, %v1754_v57  ;;  %vm10687_vm14 = vmmov %vm10684_vm11 }
 0x1a0   : > { %2021 = vst.msk [vmem:[#allocation2 + $0x40] sm:$0xff] %vm10684_vm11, %v1933_v58  ;;  %1054 = vrot.lane.b32.xlu1 %v8225_v18, %s10602_s30  ;;  %vm10688_vm11 = vcmask 195753   ;;  %2287 = vrot.lane.b32.xlu0 %v8476_v46, %s10608_s25 }
 0x1a1   : > { %2022 = vst.msk [vmem:[#allocation2 + $0x48] sm:$0xff] %vm10685_vm12, %v1935_v62  ;;  %vm10689_vm12 = vcmask 188584  }
 0x1a2   : > { %v1939_v0 = vpop.permute.xlu1 %1938  ;;  %2023 = vst.msk [vmem:[#allocation2 + $0x50] sm:$0xff] %vm10686_vm13, %v1937_v63  ;;  %v2075_v3 = vpop.permute.xlu0 %2074  ;;  %vm10690_vm13 = vmmov %vm10688_vm11  ;;  %v8649_v63 = vld [vmem:[%s10704_s29] ss:$0 sm:$0xff] }
 0x1a3   : > { %2024 = vst.msk [vmem:[#allocation2 + $0x58] sm:$0xff] %vm10687_vm14, %v1939_v0  ;;  %vm10691_vm14 = vmmov %vm10689_vm12 }
 0x1a4   : > { %2285 = vrot.lane.b32.xlu1 %v8026_v59, %s10608_s25  ;;  %2205 = vst.msk [vmem:[#allocation2 + $0x3f] sm:$0xfe] %vm10688_vm11, %v2071_v1  ;;  %1058 = vrot.lane.b32.xlu0 %v8026_v59, %s10602_s30  ;;  %v820_v13 = vld [vmem:[#allocation3 + $0x138] sm:$0xff]  ;;  %vm10692_vm11 = vcmask 97352  }
 0x1a5   : > { %2207 = vst.msk [vmem:[#allocation2 + $0x4f] sm:$0x1] %vm10689_vm12, %v2075_v3  ;;  %vm10693_vm12 = vmmov %vm10692_vm11 }
 0x1a6   : > { %v2073_v2 = vpop.permute.xlu1 %2072  ;;  %v2079_v5 = vpop.permute.xlu0 %2078  ;;  %774 = vst.msk [vmem:[#allocation3 + $0x141] sm:$0xff] %vm10611_vm1, %v685_v8  ;;  %775 = vst.msk [vmem:[#allocation3 + $0x151] sm:$0xff] %vm10611_vm1, %v686_v52 }
 0x1a7   : > { %2206 = vst.msk [vmem:[#allocation2 + $0x47] sm:$0xff] %vm2192_vm0, %v2073_v2  ;;  %2209 = vst.msk [vmem:[#allocation2 + $0x57] sm:$0xff] %vm2192_vm0, %v2079_v5 }
 0x1a8   : > { %1056 = vrot.lane.b32.xlu1 %v8024_v33, %s10602_s30  ;;  %1245 = vrot.lane.b32.xlu0 %v7964_v34, %s10600_s5  ;;  %v8546_v34 = vmax.f32 %v820_v13, 0.0  ;;  %776 = vst.msk [vmem:[#allocation3 + $0x159] sm:$0xff] %vm10611_vm1, %v687_v53 }
 0x1aa   : > { %v2077_v4 = vpop.permute.xlu1 %2076  ;;  %v2266_v9 = vpop.permute.xlu0 %2265  ;;  %948 = vst.msk [vmem:[#allocation2 + $0xd0] sm:$0xff] %vm10611_vm1, %v8546_v34 }
 0x1ab   : > { %2208 = vst.msk [vmem:[#allocation2 + $0x4f] sm:$0xfe] %vm10690_vm13, %v2077_v4  ;;  %vm10694_vm13 = vmmov %vm10692_vm11 }
 0x1ac   : > { %1060 = vrot.lane.b32.xlu1 %v8476_v46, %s10602_s30  ;;  %2400 = vst.msk [vmem:[#allocation2 + $0x3e] sm:$0xfc] %vm2385_vm3, %v2266_v9  ;;  %1249 = vrot.lane.b32.xlu0 %v8225_v18, %s10600_s5 }
 0x1ad   : > { %v821_v14 = vld [vmem:[#allocation3 + $0x140] sm:$0xff]  ;;  %v823_v0 = vld [vmem:[#allocation3 + $0x150] sm:$0xff] }
 0x1ae   : > { %v2081_v49 = vpop.permute.xlu1 %2080  ;;  %v2270_v11 = vpop.permute.xlu0 %2269  ;;  %v8653_v2 = vmax.f32 %v823_v0, 0.0 }
 0x1af   : > { %2210 = vst.msk [vmem:[#allocation2 + $0x5f] sm:$0x1] %vm10691_vm14, %v2081_v49  ;;  %vm10695_vm14 = vmmov %vm10692_vm11  ;;  %v824_v1 = vld [vmem:[#allocation3 + $0x158] sm:$0xff] }
 0x1b0   : > { %1247 = vrot.lane.b32.xlu1 %v7966_v35, %s10600_s5  ;;  %2402 = vst.msk [vmem:[#allocation2 + $0x4e] sm:$0x3] %vm2389_vm4, %v2270_v11  ;;  %v8548_v35 = vmax.f32 %v821_v14, 0.0  ;;  %1253 = vrot.lane.b32.xlu0 %v8026_v59, %s10600_s5  ;;  %v8655_v3 = vmax.f32 %v824_v1, 0.0 }
 0x1b1   : > { %950 = vst.msk [vmem:[#allocation2 + $0xe0] sm:$0xff] %vm10611_vm1, %v8653_v2 }
 0x1b2   : > { %v2268_v10 = vpop.permute.xlu1 %2267  ;;  %949 = vst.msk [vmem:[#allocation2 + $0xd8] sm:$0xff] %vm10611_vm1, %v8548_v35  ;;  %v1041_v15 = vpop.permute.xlu0 %1040  ;;  %951 = vst.msk [vmem:[#allocation2 + $0xe8] sm:$0xff] %vm10611_vm1, %v8655_v3 }
 0x1b3   : > { %2401 = vst.msk [vmem:[#allocation2 + $0x46] sm:$0xff] %vm2387_vm15, %v2268_v10 }
 0x1b4   : > { %1251 = vrot.lane.b32.xlu1 %v8024_v33, %s10600_s5  ;;  %1168 = vst.msk [vmem:[#allocation2 + $0x67] sm:$0xff] %vm10610_vm7, %v1041_v15  ;;  %1426 = vrot.lane.b32.xlu0 %v8024_v33, %s10598_s22 }
 0x1b6   : > { %v1039_v12 = vpop.permute.xlu1 %1038  ;;  %v2272_v17 = vpop.permute.xlu0 %2271 }
 0x1b7   : > { %1167 = vst.msk [vmem:[#allocation2 + $0x5f] sm:$0xfe] %vm1146_vm6, %v1039_v12 }
 0x1b8   : > { %1255 = vrot.lane.b32.xlu1 %v8476_v46, %s10600_s5  ;;  %2403 = vst.msk [vmem:[#allocation2 + $0x4e] sm:$0xfc] %vm2385_vm3, %v2272_v17  ;;  %1430 = vrot.lane.b32.xlu0 %v8126_v44, %s10598_s22 }
 0x1ba   : > { %v1043_v16 = vpop.permute.xlu1 %1042  ;;  %v2444_v19 = vld [vmem:[#allocation2 + $0x40] sm:$0xff]  ;;  %v2445_v20 = vld [vmem:[#allocation2 + $0x48] sm:$0xff]  ;;  %v2276_v38 = vpop.permute.xlu0 %2275 }
 0x1bb   : > { %1169 = vst.msk [vmem:[#allocation2 + $0x6f] sm:$0x1] %vm1150_vm5, %v1043_v16  ;;  %v2472_v21 = vpack.c.bf16 %v2445_v20, %v2444_v19 }
 0x1bc   : > { %1428 = vrot.lane.b32.xlu1 %v8026_v59, %s10598_s22  ;;  %2405 = vst.msk [vmem:[#allocation2 + $0x5e] sm:$0x3] %vm2389_vm4, %v2276_v38  ;;  %1572 = vrot.lane.b32.xlu0 %v8024_v33, %s7344_s23 }
 0x1bd   : > { %7085 = vmatprep.mubr.msk.bf16.mxu0 %vm889_vm2, %v2472_v21 }
 0x1be   : > { %v2274_v18 = vpop.permute.xlu1 %2273  ;;  %v1047_v23 = vpop.permute.xlu0 %1046 }
 0x1bf   : > { %2404 = vst.msk [vmem:[#allocation2 + $0x56] sm:$0xff] %vm2387_vm15, %v2274_v18 }
 0x1c0   : > { %1432 = vrot.lane.b32.xlu1 %v8128_v45, %s10598_s22  ;;  %1171 = vst.msk [vmem:[#allocation2 + $0x77] sm:$0xff] %vm10610_vm7, %v1047_v23  ;;  %1576 = vrot.lane.b32.xlu0 %v8476_v46, %s7344_s23 }
 0x1c2   : > { %v1045_v39 = vpop.permute.xlu1 %1044  ;;  %v1234_v26 = vpop.permute.xlu0 %1233 }
 0x1c3   : > { %1170 = vst.msk [vmem:[#allocation2 + $0x6f] sm:$0xfe] %vm1146_vm6, %v1045_v39 }
 0x1c4   : > { %1574 = vrot.lane.b32.xlu1 %v8026_v59, %s7344_s23  ;;  %1362 = vst.msk [vmem:[#allocation2 + $0x5e] sm:$0xfc] %vm1341_vm9, %v1234_v26  ;;  %1580 = vrot.lane.b32.xlu0 %v8128_v45, %s7344_s23 }
 0x1c6   : > { %v1049_v24 = vpop.permute.xlu1 %1048  ;;  %v2446_v28 = vld [vmem:[#allocation2 + $0x50] sm:$0xff]  ;;  %v2447_v60 = vld [vmem:[#allocation2 + $0x58] sm:$0xff]  ;;  %v1238_v29 = vpop.permute.xlu0 %1237 }
 0x1c7   : > { %1172 = vst.msk [vmem:[#allocation2 + $0x7f] sm:$0x1] %vm1150_vm5, %v1049_v24  ;;  %v2473_v61 = vpack.c.bf16 %v2447_v60, %v2446_v28  ;;  %v688_v28 = vld [vmem:[%s7695_s4 + $0xe0] sm:$0xff]  ;;  %v689_v60 = vld [vmem:[%s7695_s4 + $0xe8] sm:$0xff] }
 0x1c8   : > { %1578 = vrot.lane.b32.xlu1 %v8126_v44, %s7344_s23  ;;  %1364 = vst.msk [vmem:[#allocation2 + $0x6e] sm:$0x3] %vm10596_vm10, %v1238_v29  ;;  %1767 = vrot.lane.b32.xlu0 %v8024_v33, %s7345_s1 }
 0x1c9   : > { %7086 = vmatmul.mubr.msk.bf16.gmra.mrb[8].mxu0 %vm889_vm2, %v2473_v61  ;;  %777 = vst.msk [vmem:[#allocation3 + $0x169] sm:$0xff] %vm10611_vm1, %v688_v28  ;;  %778 = vst.msk [vmem:[#allocation3 + $0x171] sm:$0xff] %vm10611_vm1, %v689_v60 }
 0x1ca   : > { %v1236_v27 = vpop.permute.xlu1 %1235  ;;  %v1242_v31 = vpop.permute.xlu0 %1241 }
 0x1cb   : > { %1363 = vst.msk [vmem:[#allocation2 + $0x66] sm:$0xff] %vm10597_vm8, %v1236_v27  ;;  %1366 = vst.msk [vmem:[#allocation2 + $0x76] sm:$0xff] %vm10597_vm8, %v1242_v31 }
 0x1cc   : > { %1582 = vrot.lane.b32.xlu1 %v8583_v25, %s7344_s23  ;;  %1771 = vrot.lane.b32.xlu0 %v8476_v46, %s7345_s1 }
 0x1ce   : > { %v1240_v30 = vpop.permute.xlu1 %1239  ;;  %v1419_v37 = vpop.permute.xlu0 %1418 }
 0x1cf   : > { %1365 = vst.msk [vmem:[#allocation2 + $0x6e] sm:$0xfc] %vm1341_vm9, %v1240_v30 }
 0x1d0   : > { %1769 = vrot.lane.b32.xlu1 %v8026_v59, %s7345_s1  ;;  %1503 = vst.msk [vmem:[#allocation2 + $0x60] sm:$0xff] %vm10692_vm11, %v1419_v37  ;;  %1775 = vrot.lane.b32.xlu0 %v8128_v45, %s7345_s1  ;;  %vm10696_vm11 = vcmask 121953   ;;  %v827_v37 = vld [vmem:[#allocation3 + $0x170] sm:$0xff] }
 0x1d2   : > { %v1244_v36 = vpop.permute.xlu1 %1243  ;;  %v1423_v33 = vpop.permute.xlu0 %1422 }
 0x1d3   : > { %1367 = vst.msk [vmem:[#allocation2 + $0x7e] sm:$0x3] %vm10596_vm10, %v1244_v36  ;;  %v826_v36 = vld [vmem:[#allocation3 + $0x168] sm:$0xff] }
 0x1d4   : > { %1773 = vrot.lane.b32.xlu1 %v8126_v44, %s7345_s1  ;;  %1505 = vst.msk [vmem:[#allocation2 + $0x70] sm:$0xff] %vm10694_vm13, %v1423_v33  ;;  %1948 = vrot.lane.b32.xlu0 %v8126_v44, %s7346_s24  ;;  %vm10698_vm13 = vcmask 114784  }
 0x1d6   : > { %v1421_v40 = vpop.permute.xlu1 %1420  ;;  %v1561_v41 = vpop.permute.xlu0 %1560 }
 0x1d7   : > { %1504 = vst.msk [vmem:[#allocation2 + $0x68] sm:$0xff] %vm10693_vm12, %v1421_v40  ;;  %vm10697_vm12 = vcmask 121952  }
 0x1d8   : > { %1777 = vrot.lane.b32.xlu1 %v8583_v25, %s7345_s1  ;;  %1689 = vst.msk [vmem:[#allocation2 + $0x5f] sm:$0xfe] %vm10696_vm11, %v1561_v41  ;;  %1952 = vrot.lane.b32.xlu0 %v8186_v48, %s7346_s24 }
 0x1da   : > { %v1425_v59 = vpop.permute.xlu1 %1424  ;;  %v1565_v43 = vpop.permute.xlu0 %1564 }
 0x1db   : > { %1506 = vst.msk [vmem:[#allocation2 + $0x78] sm:$0xff] %vm10695_vm14, %v1425_v59  ;;  %vm10699_vm14 = vmmov %vm10696_vm11 }
 0x1dc   : > { %1950 = vrot.lane.b32.xlu1 %v8128_v45, %s7346_s24  ;;  %1691 = vst.msk [vmem:[#allocation2 + $0x6f] sm:$0x1] %vm10698_vm13, %v1565_v43  ;;  %2094 = vrot.lane.b32.xlu0 %v8126_v44, %s7347_s2  ;;  %vm10700_vm11 = vmmov %vm10697_vm12 }
 0x1de   : > { %v1563_v42 = vpop.permute.xlu1 %1562  ;;  %v1569_v50 = vpop.permute.xlu0 %1568 }
 0x1df   : > { %1690 = vst.msk [vmem:[#allocation2 + $0x67] sm:$0xff] %vm10697_vm12, %v1563_v42  ;;  %vm10701_vm12 = vmmov %vm10698_vm13  ;;  %vm10702_vm13 = vcmask 146554  }
 0x1e0   : > { %1954 = vrot.lane.b32.xlu1 %v8188_v6, %s7346_s24  ;;  %1693 = vst.msk [vmem:[#allocation2 + $0x77] sm:$0xff] %vm10700_vm11, %v1569_v50  ;;  %2098 = vrot.lane.b32.xlu0 %v8583_v25, %s7347_s2  ;;  %vm10705_vm11 = vcmask 140408   ;;  %v819_v50 = vld [vmem:[#allocation3 + $0x130] sm:$0x3] }
 0x1e1   : > { %v8759_v53 = vmax.f32 %v819_v50, 0.0 }
 0x1e2   : > { %v1567_v46 = vpop.permute.xlu1 %1566  ;;  %v1756_v32 = vpop.permute.xlu0 %1755 }
 0x1e3   : > { %1692 = vst.msk [vmem:[#allocation2 + $0x6f] sm:$0xfe] %vm10699_vm14, %v1567_v46  ;;  %vm10703_vm14 = vcmask 146552  }
 0x1e4   : > { %2096 = vrot.lane.b32.xlu1 %v8128_v45, %s7347_s2  ;;  %1884 = vst.msk [vmem:[#allocation2 + $0x5e] sm:$0xfc] %vm10702_vm13, %v1756_v32  ;;  %2102 = vrot.lane.b32.xlu0 %v8188_v6, %s7347_s2 }
 0x1e6   : > { %v1571_v51 = vpop.permute.xlu1 %1570  ;;  %v1760_v58 = vpop.permute.xlu0 %1759 }
 0x1e7   : > { %1694 = vst.msk [vmem:[#allocation2 + $0x7f] sm:$0x1] %vm10701_vm12, %v1571_v51  ;;  %vm10706_vm12 = vmmov %vm10702_vm13 }
 0x1e8   : > { %2100 = vrot.lane.b32.xlu1 %v8186_v48, %s7347_s2  ;;  %1886 = vst.msk [vmem:[#allocation2 + $0x6e] sm:$0x3] %vm10705_vm11, %v1760_v58  ;;  %2289 = vrot.lane.b32.xlu0 %v8126_v44, %s10608_s25  ;;  %vm10707_vm13 = vmmov %vm10703_vm14 }
 0x1ea   : > { %v1758_v57 = vpop.permute.xlu1 %1757  ;;  %v1764_v8 = vpop.permute.xlu0 %1763 }
 0x1eb   : > { %1885 = vst.msk [vmem:[#allocation2 + $0x66] sm:$0xff] %vm10703_vm14, %v1758_v57  ;;  %vm10708_vm14 = vmmov %vm10705_vm11  ;;  %vm10709_vm11 = vcmask 64512  }
 0x1ec   : > { %2104 = vrot.lane.b32.xlu1 %v8638_v54, %s7347_s2  ;;  %v7079_v4 = vpop.f32.mrb[0].mxu0  ;;  %1888 = vst.msk [vmem:[#allocation2 + $0x76] sm:$0xff] %vm10707_vm13, %v1764_v8  ;;  %2293 = vrot.lane.b32.xlu0 %v8583_v25, %s10608_s25  ;;  %vm10711_vm13 = vcmask 171152   ;;  %vm10713_vm10 = vmmov %vm10709_vm11 }
 0x1ed   : > { %v2604_v5 = vadd.f32 %v7079_v4, %v8649_v63  ;;  %v2595_v49 = vpop.f32.mrb[1].mxu0 }
 0x1ee   : > { %v1762_v62 = vpop.permute.xlu1 %1761  ;;  %v2596_v7 = vadd.f32 %v8649_v63, %v2595_v49  ;;  %v7080_v11 = vpop.f32.mrb[2].mxu0 }
 0x1ef   : > { %1887 = vst.msk [vmem:[#allocation2 + $0x6e] sm:$0xfc] %vm10706_vm12, %v1762_v62  ;;  %v2724_v10 = vmax.f32 %v2604_v5, 0.0  ;;  %v2607_v13 = vadd.f32 %v7080_v11, %v8649_v63  ;;  %v2598_v14 = vpop.f32.mrb[3].mxu0  ;;  %vm10710_vm12 = vmmov %vm10709_vm11  ;;  %v1941_v17 = vpop.permute.xlu0 %1940 }
 0x1f0   : > { %2291 = vrot.lane.b32.xlu1 %v8128_v45, %s10608_s25  ;;  %v2722_v12 = vmax.f32 %v2596_v7, 0.0  ;;  %v2599_v15 = vadd.f32 %v8649_v63, %v2598_v14  ;;  %2025 = vst.msk [vmem:[#allocation2 + $0x60] sm:$0xff] %vm10711_vm13, %v1941_v17  ;;  %1064 = vrot.lane.b32.xlu0 %v8128_v45, %s10602_s30 }
 0x1f1   : > { %2813 = vst.msk [vmem:[#allocation4 + $0x31] sm:$0xff] %vm10709_vm11, %v2724_v10  ;;  %v2725_v16 = vmax.f32 %v2607_v13, 0.0  ;;  %vm10714_vm11 = vmmov %vm10713_vm10 }
 0x1f2   : > { %v1766_v9 = vpop.permute.xlu1 %1765  ;;  %2811 = vst.msk [vmem:[#allocation4 + $0x19] sm:$0xff] %vm10710_vm12, %v2722_v12  ;;  %v2723_v19 = vmax.f32 %v2599_v15, 0.0  ;;  %vm10715_vm12 = vmmov %vm10711_vm13  ;;  %v822_v12 = vld [vmem:[#allocation3 + $0x148] sm:$0x3]  ;;  %v690_v15 = vld [vmem:[%s7695_s4 + $0xf0] sm:$0xff] }
 0x1f3   : > { %1889 = vst.msk [vmem:[#allocation2 + $0x7e] sm:$0x3] %vm10708_vm14, %v1766_v9  ;;  %vm10712_vm14 = vmmov %vm10711_vm13  ;;  %v1945_v20 = vpop.permute.xlu0 %1944  ;;  %v8814_v17 = vmax.f32 %v822_v12, 0.0 }
 0x1f4   : > { %1062 = vrot.lane.b32.xlu1 %v8126_v44, %s10602_s30  ;;  %2814 = vst.msk [vmem:[#allocation4 + $0x39] sm:$0xff] %vm10713_vm10, %v2725_v16  ;;  %vm10716_vm8 = vmmov %vm10715_vm12  ;;  %2295 = vrot.lane.b32.xlu0 %v8186_v48, %s10608_s25  ;;  %vm10717_vm10 = vcmask 195753   ;;  %v691_v16 = vld [vmem:[%s7695_s4 + $0xf8] sm:$0xff]  ;;  %s10632_s4 = smov 64  }
 0x1f5   : > { %2812 = vst.msk [vmem:[#allocation4 + $0x21] sm:$0xff] %vm10714_vm11, %v2723_v19  ;;  %vm10719_vm13 = vmmov %vm10717_vm10 }
 0x1f6   : > { %v1943_v18 = vpop.permute.xlu1 %1942  ;;  %2027 = vst.msk [vmem:[#allocation2 + $0x70] sm:$0xff] %vm10715_vm12, %v1945_v20  ;;  %vm10722_vm12 = vcmask 72752  }
 0x1f7   : > { %2026 = vst.msk [vmem:[#allocation2 + $0x68] sm:$0xff] %vm10712_vm14, %v1943_v18  ;;  %v2083_v38 = vpop.permute.xlu0 %2082  ;;  %vm10720_vm14 = vmmov %vm10714_vm11 }
 0x1f8   : > { %1066 = vrot.lane.b32.xlu1 %v8583_v25, %s10602_s30  ;;  %2211 = vst.msk [vmem:[#allocation2 + $0x5f] sm:$0xfe] %vm10717_vm10, %v2083_v38  ;;  %2299 = vrot.lane.b32.xlu0 %v8638_v54, %s10608_s25  ;;  %vm10723_vm10 = vcmask 66608  }
 0x1f9   : > { %779 = vst.msk [vmem:[#allocation3 + $0x181] sm:$0xff] %vm10611_vm1, %v690_v15  ;;  %780 = vst.msk [vmem:[#allocation3 + $0x189] sm:$0xff] %vm10611_vm1, %v691_v16 }
 0x1fa   : > { %v1947_v21 = vpop.permute.xlu1 %1946 }
 0x1fb   : > { %2028 = vst.msk [vmem:[#allocation2 + $0x78] sm:$0xff] %vm10716_vm8, %v1947_v21  ;;  %v2087_v22 = vpop.permute.xlu0 %2086  ;;  %v2853_v24 = vld [vmem:[#allocation4 + $0x30] ss:$2 sm:$0xff]  ;;  %vm10718_vm8 = vcmask 188584  }
 0x1fc   : > { %2297 = vrot.lane.b32.xlu1 %v8188_v6, %s10608_s25  ;;  %2213 = vst.msk [vmem:[#allocation2 + $0x6f] sm:$0x1] %vm10718_vm8, %v2087_v22  ;;  %1070 = vrot.lane.b32.xlu0 %v8188_v6, %s10602_s30  ;;  %vm10721_vm11 = vmmov %vm10718_vm8 }
 0x1fd   : > { %2867 = vst.msk [vmem:[#allocation5 + $0x8] sm:$0xff] %vm10720_vm14, %v2853_v24  ;;  %vm10724_vm8 = vmmov %vm10722_vm12  ;;  %vm10726_vm14 = vcmask 97352  }
 0x1fe   : > { %v2085_v39 = vpop.permute.xlu1 %2084 }
 0x1ff   : > { %2212 = vst.msk [vmem:[#allocation2 + $0x67] sm:$0xff] %vm2192_vm0, %v2085_v39  ;;  %v2091_v26 = vpop.permute.xlu0 %2090 }
 0x200   : > { %1068 = vrot.lane.b32.xlu1 %v8186_v48, %s10602_s30  ;;  %2215 = vst.msk [vmem:[#allocation2 + $0x77] sm:$0xff] %vm2192_vm0, %v2091_v26  ;;  %1257 = vrot.lane.b32.xlu0 %v8126_v44, %s10600_s5  ;;  %v8722_v44 = vmax.f32 %v826_v36, 0.0 }
 0x202   : > { %v2089_v23 = vpop.permute.xlu1 %2088  ;;  %952 = vst.msk [vmem:[#allocation2 + $0xf0] sm:$0xff] %vm10611_vm1, %v8722_v44 }
 0x203   : > { %2214 = vst.msk [vmem:[#allocation2 + $0x6f] sm:$0xfe] %vm10719_vm13, %v2089_v23  ;;  %v2278_v61 = vpop.permute.xlu0 %2277  ;;  %vm10725_vm13 = vmmov %vm10723_vm10 }
 0x204   : > { %1072 = vrot.lane.b32.xlu1 %v8638_v54, %s10602_s30  ;;  %2406 = vst.msk [vmem:[#allocation2 + $0x5e] sm:$0xfc] %vm2385_vm3, %v2278_v61  ;;  %1261 = vrot.lane.b32.xlu0 %v8583_v25, %s10600_s5 }
 0x206   : > { %v2093_v27 = vpop.permute.xlu1 %2092 }
 0x207   : > { %2216 = vst.msk [vmem:[#allocation2 + $0x7f] sm:$0x1] %vm10721_vm11, %v2093_v27  ;;  %v2282_v30 = vpop.permute.xlu0 %2281  ;;  %vm10727_vm11 = vmmov %vm10726_vm14 }
 0x208   : > { %1259 = vrot.lane.b32.xlu1 %v8128_v45, %s10600_s5  ;;  %2408 = vst.msk [vmem:[#allocation2 + $0x6e] sm:$0x3] %vm2389_vm4, %v2282_v30  ;;  %v8724_v45 = vmax.f32 %v827_v37, 0.0  ;;  %1265 = vrot.lane.b32.xlu0 %v8188_v6, %s10600_s5 }
 0x20a   : > { %v2280_v29 = vpop.permute.xlu1 %2279  ;;  %953 = vst.msk [vmem:[#allocation2 + $0xf8] sm:$0xff] %vm10611_vm1, %v8724_v45 }
 0x20b   : > { %2407 = vst.msk [vmem:[#allocation2 + $0x66] sm:$0xff] %vm2387_vm15, %v2280_v29  ;;  %v1053_v25 = vpop.permute.xlu0 %1052 }
 0x20c   : > { %1263 = vrot.lane.b32.xlu1 %v8186_v48, %s10600_s5  ;;  %1174 = vst.msk [vmem:[#allocation2 + $0x87] sm:$0xff] %vm10610_vm7, %v1053_v25  ;;  %1434 = vrot.lane.b32.xlu0 %v8186_v48, %s10598_s22 }
 0x20e   : > { %v1051_v31 = vpop.permute.xlu1 %1050 }
 0x20f   : > { %1173 = vst.msk [vmem:[#allocation2 + $0x7f] sm:$0xfe] %vm1146_vm6, %v1051_v31  ;;  %v2284_v33 = vpop.permute.xlu0 %2283 }
 0x210   : > { %1267 = vrot.lane.b32.xlu1 %v8638_v54, %s10600_s5  ;;  %2409 = vst.msk [vmem:[#allocation2 + $0x6e] sm:$0xfc] %vm2385_vm3, %v2284_v33  ;;  %1438 = vrot.lane.b32.xlu0 %v8486_v55, %s10598_s22 }
 0x212   : > { %v1055_v40 = vpop.permute.xlu1 %1054  ;;  %v2448_v41 = vld [vmem:[#allocation2 + $0x60] sm:$0xff]  ;;  %v2449_v42 = vld [vmem:[#allocation2 + $0x68] sm:$0xff] }
 0x213   : > { %1175 = vst.msk [vmem:[#allocation2 + $0x8f] sm:$0x1] %vm1150_vm5, %v1055_v40  ;;  %v2474_v43 = vpack.c.bf16 %v2449_v42, %v2448_v41  ;;  %v2288_v46 = vpop.permute.xlu0 %2287 }
 0x214   : > { %1436 = vrot.lane.b32.xlu1 %v8188_v6, %s10598_s22  ;;  %2411 = vst.msk [vmem:[#allocation2 + $0x7e] sm:$0x3] %vm2389_vm4, %v2288_v46  ;;  %1584 = vrot.lane.b32.xlu0 %v8186_v48, %s7344_s23 }
 0x215   : > { %7089 = vmatprep.mubr.msk.bf16.mxu0 %vm889_vm2, %v2474_v43 }
 0x216   : > { %v2286_v59 = vpop.permute.xlu1 %2285 }
 0x217   : > { %2410 = vst.msk [vmem:[#allocation2 + $0x76] sm:$0xff] %vm2387_vm15, %v2286_v59  ;;  %v1059_v51 = vpop.permute.xlu0 %1058 }
 0x218   : > { %1440 = vrot.lane.b32.xlu1 %v8488_v56, %s10598_s22  ;;  %1177 = vst.msk [vmem:[#allocation2 + $0x97] sm:$0xff] %vm10610_vm7, %v1059_v51  ;;  %1588 = vrot.lane.b32.xlu0 %v8638_v54, %s7344_s23 }
 0x21a   : > { %v1057_v47 = vpop.permute.xlu1 %1056 }
 0x21b   : > { %1176 = vst.msk [vmem:[#allocation2 + $0x8f] sm:$0xfe] %vm1146_vm6, %v1057_v47  ;;  %v1246_v32 = vpop.permute.xlu0 %1245 }
 0x21c   : > { %1586 = vrot.lane.b32.xlu1 %v8188_v6, %s7344_s23  ;;  %1368 = vst.msk [vmem:[#allocation2 + $0x7e] sm:$0xfc] %vm1341_vm9, %v1246_v32  ;;  %1592 = vrot.lane.b32.xlu0 %v8488_v56, %s7344_s23 }
 0x21e   : > { %v1061_v52 = vpop.permute.xlu1 %1060  ;;  %v2450_v58 = vld [vmem:[#allocation2 + $0x70] sm:$0xff]  ;;  %v2451_v62 = vld [vmem:[#allocation2 + $0x78] sm:$0xff] }
 0x21f   : > { %1178 = vst.msk [vmem:[#allocation2 + $0x9f] sm:$0x1] %vm1150_vm5, %v1061_v52  ;;  %v2475_v0 = vpack.c.bf16 %v2451_v62, %v2450_v58  ;;  %v1250_v1 = vpop.permute.xlu0 %1249 }
 0x220   : > { %1590 = vrot.lane.b32.xlu1 %v8486_v55, %s7344_s23  ;;  %1370 = vst.msk [vmem:[#allocation2 + $0x8e] sm:$0x3] %vm10723_vm10, %v1250_v1  ;;  %1779 = vrot.lane.b32.xlu0 %v8186_v48, %s7345_s1  ;;  %vm10729_vm10 = vmmov %vm10727_vm11 }
 0x221   : > { %7090 = vmatmul.mubr.msk.bf16.gmra.mrb[12].mxu0 %vm889_vm2, %v2475_v0 }
 0x222   : > { %v1248_v57 = vpop.permute.xlu1 %1247 }
 0x223   : > { %1369 = vst.msk [vmem:[#allocation2 + $0x86] sm:$0xff] %vm10722_vm12, %v1248_v57  ;;  %v1254_v5 = vpop.permute.xlu0 %1253  ;;  %vm10728_vm12 = vmmov %vm10727_vm11 }
 0x224   : > { %1594 = vrot.lane.b32.xlu1 %v8759_v53, %s7344_s23  ;;  %1372 = vst.msk [vmem:[#allocation2 + $0x96] sm:$0xff] %vm10724_vm8, %v1254_v5  ;;  %1783 = vrot.lane.b32.xlu0 %v8638_v54, %s7345_s1  ;;  %vm10730_vm8 = vcmask 121953  }
 0x226   : > { %v1252_v4 = vpop.permute.xlu1 %1251 }
 0x227   : > { %1371 = vst.msk [vmem:[#allocation2 + $0x8e] sm:$0xfc] %vm1341_vm9, %v1252_v4  ;;  %v1427_v7 = vpop.permute.xlu0 %1426 }
 0x228   : > { %1781 = vrot.lane.b32.xlu1 %v8188_v6, %s7345_s1  ;;  %1507 = vst.msk [vmem:[#allocation2 + $0x80] sm:$0xff] %vm10726_vm14, %v1427_v7  ;;  %1787 = vrot.lane.b32.xlu0 %v8488_v56, %s7345_s1  ;;  %vm10732_vm14 = vcmask 114784  }
 0x22a   : > { %v1256_v49 = vpop.permute.xlu1 %1255 }
 0x22b   : > { %1373 = vst.msk [vmem:[#allocation2 + $0x9e] sm:$0x3] %vm10725_vm13, %v1256_v49  ;;  %v1431_v48 = vpop.permute.xlu0 %1430  ;;  %vm10731_vm13 = vcmask 121952   ;;  %v825_v49 = vld [vmem:[#allocation3 + $0x160] sm:$0x3] }
 0x22c   : > { %1785 = vrot.lane.b32.xlu1 %v8486_v55, %s7345_s1  ;;  %1509 = vst.msk [vmem:[#allocation2 + $0x90] sm:$0xff] %vm10728_vm12, %v1431_v48  ;;  %1956 = vrot.lane.b32.xlu0 %v8486_v55, %s7346_s24  ;;  %vm10734_vm12 = vmmov %vm10731_vm13  ;;  %v8910_v48 = vmax.f32 %v825_v49, 0.0 }
 0x22e   : > { %v1429_v8 = vpop.permute.xlu1 %1428 }
 0x22f   : > { %1508 = vst.msk [vmem:[#allocation2 + $0x88] sm:$0xff] %vm10727_vm11, %v1429_v8  ;;  %v1573_v54 = vpop.permute.xlu0 %1572  ;;  %vm10733_vm11 = vmmov %vm10730_vm8 }
 0x230   : > { %1789 = vrot.lane.b32.xlu1 %v8759_v53, %s7345_s1  ;;  %1695 = vst.msk [vmem:[#allocation2 + $0x7f] sm:$0xfe] %vm10730_vm8, %v1573_v54  ;;  %1960 = vrot.lane.b32.xlu0 %v8546_v34, %s7346_s24  ;;  %vm10736_vm8 = vcmask 146554  }
 0x232   : > { %v1433_v6 = vpop.permute.xlu1 %1432 }
 0x233   : > { %1510 = vst.msk [vmem:[#allocation2 + $0x98] sm:$0xff] %vm10729_vm10, %v1433_v6  ;;  %v1577_v10 = vpop.permute.xlu0 %1576  ;;  %vm10735_vm10 = vmmov %vm10732_vm14 }
 0x234   : > { %1958 = vrot.lane.b32.xlu1 %v8488_v56, %s7346_s24  ;;  %1697 = vst.msk [vmem:[#allocation2 + $0x8f] sm:$0x1] %vm10732_vm14, %v1577_v10  ;;  %2106 = vrot.lane.b32.xlu0 %v8486_v55, %s7347_s2  ;;  %vm10738_vm14 = vcmask 140408  }
 0x236   : > { %v1575_v9 = vpop.permute.xlu1 %1574 }
 0x237   : > { %1696 = vst.msk [vmem:[#allocation2 + $0x87] sm:$0xff] %vm10731_vm13, %v1575_v9  ;;  %v1581_v13 = vpop.permute.xlu0 %1580  ;;  %vm10737_vm13 = vcmask 146552  }
 0x238   : > { %1962 = vrot.lane.b32.xlu1 %v8548_v35, %s7346_s24  ;;  %1699 = vst.msk [vmem:[#allocation2 + $0x97] sm:$0xff] %vm10734_vm12, %v1581_v13  ;;  %2110 = vrot.lane.b32.xlu0 %v8759_v53, %s7347_s2  ;;  %vm10740_vm12 = vmmov %vm10737_vm13 }
 0x23a   : > { %v1579_v11 = vpop.permute.xlu1 %1578 }
 0x23b   : > { %1698 = vst.msk [vmem:[#allocation2 + $0x8f] sm:$0xfe] %vm10733_vm11, %v1579_v11  ;;  %v1768_v18 = vpop.permute.xlu0 %1767  ;;  %vm10739_vm11 = vmmov %vm10736_vm8 }
 0x23c   : > { %2108 = vrot.lane.b32.xlu1 %v8488_v56, %s7347_s2  ;;  %1890 = vst.msk [vmem:[#allocation2 + $0x7e] sm:$0xfc] %vm10736_vm8, %v1768_v18  ;;  %2114 = vrot.lane.b32.xlu0 %v8548_v35, %s7347_s2  ;;  %vm10742_vm8 = vcmask 64512  }
 0x23e   : > { %v1583_v14 = vpop.permute.xlu1 %1582 }
 0x23f   : > { %1700 = vst.msk [vmem:[#allocation2 + $0x9f] sm:$0x1] %vm10735_vm10, %v1583_v14  ;;  %v1772_v20 = vpop.permute.xlu0 %1771  ;;  %vm10741_vm10 = vmmov %vm10738_vm14 }
 0x240   : > { %2112 = vrot.lane.b32.xlu1 %v8546_v34, %s7347_s2  ;;  %1892 = vst.msk [vmem:[#allocation2 + $0x8e] sm:$0x3] %vm10738_vm14, %v1772_v20  ;;  %2301 = vrot.lane.b32.xlu0 %v8486_v55, %s10608_s25  ;;  %vm10744_vm14 = vcmask 171152  }
 0x242   : > { %v1770_v19 = vpop.permute.xlu1 %1769 }
 0x243   : > { %1891 = vst.msk [vmem:[#allocation2 + $0x86] sm:$0xff] %vm10737_vm13, %v1770_v19  ;;  %v1776_v24 = vpop.permute.xlu0 %1775  ;;  %vm10743_vm13 = vmmov %vm10742_vm8 }
 0x244   : > { %2116 = vrot.lane.b32.xlu1 %v8814_v17, %s7347_s2  ;;  %v7083_v38 = vpop.f32.mrb[4].mxu0  ;;  %1894 = vst.msk [vmem:[#allocation2 + $0x96] sm:$0xff] %vm10740_vm12, %v1776_v24  ;;  %2305 = vrot.lane.b32.xlu0 %v8759_v53, %s10608_s25  ;;  %vm10746_vm12 = vmmov %vm10742_vm8 }
 0x245   : > { %v2620_v39 = vadd.f32 %v7083_v38, %v8649_v63  ;;  %v2611_v22 = vpop.f32.mrb[5].mxu0  ;;  %v828_v38 = vld [vmem:[#allocation3 + $0x178] sm:$0x3] }
 0x246   : > { %v1774_v21 = vpop.permute.xlu1 %1773  ;;  %v2612_v23 = vadd.f32 %v8649_v63, %v2611_v22  ;;  %v7084_v28 = vpop.f32.mrb[6].mxu0 }
 0x247   : > { %1893 = vst.msk [vmem:[#allocation2 + $0x8e] sm:$0xfc] %vm10739_vm11, %v1774_v21  ;;  %v2728_v27 = vmax.f32 %v2620_v39, 0.0  ;;  %v2623_v61 = vadd.f32 %v7084_v28, %v8649_v63  ;;  %v2614_v29 = vpop.f32.mrb[7].mxu0  ;;  %v1949_v36 = vpop.permute.xlu0 %1948  ;;  %vm10745_vm11 = vmmov %vm10744_vm14 }
 0x248   : > { %2303 = vrot.lane.b32.xlu1 %v8488_v56, %s10608_s25  ;;  %v2726_v60 = vmax.f32 %v2612_v23, 0.0  ;;  %v2615_v30 = vadd.f32 %v8649_v63, %v2614_v29  ;;  %2029 = vst.msk [vmem:[#allocation2 + $0x80] sm:$0xff] %vm10744_vm14, %v1949_v36  ;;  %1076 = vrot.lane.b32.xlu0 %v8488_v56, %s10602_s30  ;;  %vm10750_vm14 = vcmask 195753   ;;  %v8961_v23 = vmax.f32 %v828_v38, 0.0 }
 0x249   : > { %2817 = vst.msk [vmem:[#allocation4 + $0x61] sm:$0xff] %vm10742_vm8, %v2728_v27  ;;  %v2729_v31 = vmax.f32 %v2623_v61, 0.0 }
 0x24a   : > { %v1778_v26 = vpop.permute.xlu1 %1777  ;;  %2815 = vst.msk [vmem:[#allocation4 + $0x49] sm:$0xff] %vm10743_vm13, %v2726_v60  ;;  %v2727_v25 = vmax.f32 %v2615_v30, 0.0 }
 0x24b   : > { %1895 = vst.msk [vmem:[#allocation2 + $0x9e] sm:$0x3] %vm10741_vm10, %v1778_v26  ;;  %vm10747_vm10 = vmmov %vm10742_vm8  ;;  %v1953_v40 = vpop.permute.xlu0 %1952 }
 0x24c   : > { %1074 = vrot.lane.b32.xlu1 %v8486_v55, %s10602_s30  ;;  %2818 = vst.msk [vmem:[#allocation4 + $0x69] sm:$0xff] %vm10746_vm12, %v2729_v31  ;;  %vm10748_vm8 = vmmov %vm10745_vm11  ;;  %2307 = vrot.lane.b32.xlu0 %v8546_v34, %s10608_s25 }
 0x24d   : > { %2816 = vst.msk [vmem:[#allocation4 + $0x51] sm:$0xff] %vm10747_vm10, %v2727_v25  ;;  %vm10749_vm13 = vmmov %vm10748_vm8 }
 0x24e   : > { %v1951_v37 = vpop.permute.xlu1 %1950  ;;  %2031 = vst.msk [vmem:[#allocation2 + $0x90] sm:$0xff] %vm10748_vm8, %v1953_v40  ;;  %vm10752_vm12 = vmmov %vm10750_vm14 }
 0x24f   : > { %2030 = vst.msk [vmem:[#allocation2 + $0x88] sm:$0xff] %vm10745_vm11, %v1951_v37  ;;  %v2095_v59 = vpop.permute.xlu0 %2094  ;;  %vm10751_vm11 = vcmask 188584  }
 0x250   : > { %1078 = vrot.lane.b32.xlu1 %v8759_v53, %s10602_s30  ;;  %2217 = vst.msk [vmem:[#allocation2 + $0x7f] sm:$0xfe] %vm10750_vm14, %v2095_v59  ;;  %2311 = vrot.lane.b32.xlu0 %v8814_v17, %s10608_s25  ;;  %vm10753_vm8 = vmmov %vm10751_vm11  ;;  %vm10755_vm14 = vcmask 66608  }
 0x252   : > { %v1955_v33 = vpop.permute.xlu1 %1954 }
 0x253   : > { %2032 = vst.msk [vmem:[#allocation2 + $0x98] sm:$0xff] %vm10749_vm13, %v1955_v33  ;;  %v2099_v42 = vpop.permute.xlu0 %2098  ;;  %v2855_v46 = vld [vmem:[#allocation4 + $0x60] ss:$2 sm:$0xff]  ;;  %vm10754_vm13 = vcmask 72752  }
 0x254   : > { %2309 = vrot.lane.b32.xlu1 %v8548_v35, %s10608_s25  ;;  %2219 = vst.msk [vmem:[#allocation2 + $0x8f] sm:$0x1] %vm10751_vm11, %v2099_v42  ;;  %1082 = vrot.lane.b32.xlu0 %v8548_v35, %s10602_s30  ;;  %vm10756_vm11 = vmmov %vm10754_vm13 }
 0x255   : > { %2868 = vst.msk [vmem:[#allocation5 + $0x10] sm:$0xff] %vm10747_vm10, %v2855_v46  ;;  %vm10758_vm10 = vcmask 97352  }
 0x256   : > { %v2097_v41 = vpop.permute.xlu1 %2096 }
 0x257   : > { %2218 = vst.msk [vmem:[#allocation2 + $0x87] sm:$0xff] %vm2192_vm0, %v2097_v41  ;;  %v2103_v47 = vpop.permute.xlu0 %2102 }
 0x258   : > { %1080 = vrot.lane.b32.xlu1 %v8546_v34, %s10602_s30  ;;  %2221 = vst.msk [vmem:[#allocation2 + $0x97] sm:$0xff] %vm2192_vm0, %v2103_v47  ;;  %1269 = vrot.lane.b32.xlu0 %v8486_v55, %s10600_s5 }
 0x25a   : > { %v2101_v43 = vpop.permute.xlu1 %2100 }
 0x25b   : > { %2220 = vst.msk [vmem:[#allocation2 + $0x8f] sm:$0xfe] %vm10752_vm12, %v2101_v43  ;;  %v2290_v51 = vpop.permute.xlu0 %2289  ;;  %vm10757_vm12 = vmmov %vm10755_vm14 }
 0x25c   : > { %1084 = vrot.lane.b32.xlu1 %v8814_v17, %s10602_s30  ;;  %2412 = vst.msk [vmem:[#allocation2 + $0x7e] sm:$0xfc] %vm2385_vm3, %v2290_v51  ;;  %1273 = vrot.lane.b32.xlu0 %v8759_v53, %s10600_s5 }
 0x25e   : > { %v2105_v50 = vpop.permute.xlu1 %2104 }
 0x25f   : > { %2222 = vst.msk [vmem:[#allocation2 + $0x9f] sm:$0x1] %vm10753_vm8, %v2105_v50  ;;  %v2294_v32 = vpop.permute.xlu0 %2293  ;;  %vm10759_vm8 = vmmov %vm10758_vm10 }
 0x260   : > { %1271 = vrot.lane.b32.xlu1 %v8488_v56, %s10600_s5  ;;  %2414 = vst.msk [vmem:[#allocation2 + $0x8e] sm:$0x3] %vm2389_vm4, %v2294_v32  ;;  %1277 = vrot.lane.b32.xlu0 %v8548_v35, %s10600_s5 }
 0x262   : > { %v2292_v52 = vpop.permute.xlu1 %2291 }
 0x263   : > { %2413 = vst.msk [vmem:[#allocation2 + $0x86] sm:$0xff] %vm2387_vm15, %v2292_v52  ;;  %v1065_v55 = vpop.permute.xlu0 %1064 }
 0x264   : > { %1275 = vrot.lane.b32.xlu1 %v8546_v34, %s10600_s5  ;;  %1180 = vst.msk [vmem:[#allocation2 + $0xa7] sm:$0xff] %vm10610_vm7, %v1065_v55  ;;  %1442 = vrot.lane.b32.xlu0 %v8546_v34, %s10598_s22 }
 0x266   : > { %v1063_v57 = vpop.permute.xlu1 %1062 }
 0x267   : > { %1179 = vst.msk [vmem:[#allocation2 + $0x9f] sm:$0xfe] %vm1146_vm6, %v1063_v57  ;;  %v2296_v53 = vpop.permute.xlu0 %2295 }
 0x268   : > { %1279 = vrot.lane.b32.xlu1 %v8814_v17, %s10600_s5  ;;  %2415 = vst.msk [vmem:[#allocation2 + $0x8e] sm:$0xfc] %vm2385_vm3, %v2296_v53  ;;  %1446 = vrot.lane.b32.xlu0 %v8653_v2, %s10598_s22 }
 0x26a   : > { %v1067_v56 = vpop.permute.xlu1 %1066  ;;  %v2452_v62 = vld [vmem:[#allocation2 + $0x80] sm:$0xff]  ;;  %v2453_v0 = vld [vmem:[#allocation2 + $0x88] sm:$0xff] }
 0x26b   : > { %1181 = vst.msk [vmem:[#allocation2 + $0xaf] sm:$0x1] %vm1150_vm5, %v1067_v56  ;;  %v2476_v1 = vpack.c.bf16 %v2453_v0, %v2452_v62  ;;  %v2300_v4 = vpop.permute.xlu0 %2299 }
 0x26c   : > { %1444 = vrot.lane.b32.xlu1 %v8548_v35, %s10598_s22  ;;  %2417 = vst.msk [vmem:[#allocation2 + $0x9e] sm:$0x3] %vm2389_vm4, %v2300_v4  ;;  %1596 = vrot.lane.b32.xlu0 %v8546_v34, %s7344_s23 }
 0x26d   : > { %7093 = vmatprep.mubr.msk.bf16.mxu0 %vm889_vm2, %v2476_v1 }
 0x26e   : > { %v2298_v58 = vpop.permute.xlu1 %2297 }
 0x26f   : > { %2416 = vst.msk [vmem:[#allocation2 + $0x96] sm:$0xff] %vm2387_vm15, %v2298_v58  ;;  %v1071_v7 = vpop.permute.xlu0 %1070 }
 0x270   : > { %1448 = vrot.lane.b32.xlu1 %v8655_v3, %s10598_s22  ;;  %1183 = vst.msk [vmem:[#allocation2 + $0xb7] sm:$0xff] %vm10610_vm7, %v1071_v7  ;;  %1600 = vrot.lane.b32.xlu0 %v8814_v17, %s7344_s23 }
 0x272   : > { %v1069_v5 = vpop.permute.xlu1 %1068 }
 0x273   : > { %1182 = vst.msk [vmem:[#allocation2 + $0xaf] sm:$0xfe] %vm1146_vm6, %v1069_v5  ;;  %v1258_v6 = vpop.permute.xlu0 %1257 }
 0x274   : > { %1598 = vrot.lane.b32.xlu1 %v8548_v35, %s7344_s23  ;;  %1374 = vst.msk [vmem:[#allocation2 + $0x9e] sm:$0xfc] %vm1341_vm9, %v1258_v6  ;;  %1604 = vrot.lane.b32.xlu0 %v8655_v3, %s7344_s23 }
 0x276   : > { %v1073_v8 = vpop.permute.xlu1 %1072  ;;  %v2454_v9 = vld [vmem:[#allocation2 + $0x90] sm:$0xff]  ;;  %v2455_v10 = vld [vmem:[#allocation2 + $0x98] sm:$0xff] }
 0x277   : > { %1184 = vst.msk [vmem:[#allocation2 + $0xbf] sm:$0x1] %vm1150_vm5, %v1073_v8  ;;  %v2477_v11 = vpack.c.bf16 %v2455_v10, %v2454_v9  ;;  %v1262_v12 = vpop.permute.xlu0 %1261 }
 0x278   : > { %1602 = vrot.lane.b32.xlu1 %v8653_v2, %s7344_s23  ;;  %1376 = vst.msk [vmem:[#allocation2 + $0xae] sm:$0x3] %vm10755_vm14, %v1262_v12  ;;  %1791 = vrot.lane.b32.xlu0 %v8546_v34, %s7345_s1  ;;  %vm10761_vm14 = vmmov %vm10759_vm8  ;;  %v831_v12 = vld [vmem:[#allocation3 + $0x190] sm:$0x3] }
 0x279   : > { %7094 = vmatmul.mubr.msk.bf16.gmra.mrb[16].mxu0 %vm889_vm2, %v2477_v11 }
 0x27a   : > { %v1260_v54 = vpop.permute.xlu1 %1259 }
 0x27b   : > { %1375 = vst.msk [vmem:[#allocation2 + $0xa6] sm:$0xff] %vm10754_vm13, %v1260_v54  ;;  %v1266_v14 = vpop.permute.xlu0 %1265  ;;  %vm10760_vm13 = vmmov %vm10759_vm8 }
 0x27c   : > { %1606 = vrot.lane.b32.xlu1 %v8910_v48, %s7344_s23  ;;  %1378 = vst.msk [vmem:[#allocation2 + $0xb6] sm:$0xff] %vm10756_vm11, %v1266_v14  ;;  %1795 = vrot.lane.b32.xlu0 %v8814_v17, %s7345_s1  ;;  %vm10762_vm11 = vcmask 121953  }
 0x27e   : > { %v1264_v13 = vpop.permute.xlu1 %1263 }
 0x27f   : > { %1377 = vst.msk [vmem:[#allocation2 + $0xae] sm:$0xfc] %vm1341_vm9, %v1264_v13  ;;  %v1435_v16 = vpop.permute.xlu0 %1434 }
 0x280   : > { %1793 = vrot.lane.b32.xlu1 %v8548_v35, %s7345_s1  ;;  %1511 = vst.msk [vmem:[#allocation2 + $0xa0] sm:$0xff] %vm10758_vm10, %v1435_v16  ;;  %1799 = vrot.lane.b32.xlu0 %v8655_v3, %s7345_s1  ;;  %vm10764_vm10 = vcmask 114784  }
 0x282   : > { %v1268_v15 = vpop.permute.xlu1 %1267 }
 0x283   : > { %1379 = vst.msk [vmem:[#allocation2 + $0xbe] sm:$0x3] %vm10757_vm12, %v1268_v15  ;;  %v1439_v34 = vpop.permute.xlu0 %1438  ;;  %vm10763_vm12 = vcmask 121952   ;;  %v9061_v15 = vmax.f32 %v831_v12, 0.0 }
 0x284   : > { %1797 = vrot.lane.b32.xlu1 %v8653_v2, %s7345_s1  ;;  %1513 = vst.msk [vmem:[#allocation2 + $0xb0] sm:$0xff] %vm10760_vm13, %v1439_v34  ;;  %1964 = vrot.lane.b32.xlu0 %v8653_v2, %s7346_s24  ;;  %vm10766_vm13 = vmmov %vm10763_vm12 }
 0x286   : > { %v1437_v18 = vpop.permute.xlu1 %1436 }
 0x287   : > { %1512 = vst.msk [vmem:[#allocation2 + $0xa8] sm:$0xff] %vm10759_vm8, %v1437_v18  ;;  %v1585_v17 = vpop.permute.xlu0 %1584  ;;  %vm10765_vm8 = vmmov %vm10762_vm11 }
 0x288   : > { %1801 = vrot.lane.b32.xlu1 %v8910_v48, %s7345_s1  ;;  %1701 = vst.msk [vmem:[#allocation2 + $0x9f] sm:$0xfe] %vm10762_vm11, %v1585_v17  ;;  %1968 = vrot.lane.b32.xlu0 %v8722_v44, %s7346_s24  ;;  %vm10768_vm11 = vcmask 146554  }
 0x28a   : > { %v1441_v35 = vpop.permute.xlu1 %1440 }
 0x28b   : > { %1514 = vst.msk [vmem:[#allocation2 + $0xb8] sm:$0xff] %vm10761_vm14, %v1441_v35  ;;  %v1589_v20 = vpop.permute.xlu0 %1588  ;;  %vm10767_vm14 = vmmov %vm10764_vm10 }
 0x28c   : > { %1966 = vrot.lane.b32.xlu1 %v8655_v3, %s7346_s24  ;;  %1703 = vst.msk [vmem:[#allocation2 + $0xaf] sm:$0x1] %vm10764_vm10, %v1589_v20  ;;  %2118 = vrot.lane.b32.xlu0 %v8653_v2, %s7347_s2  ;;  %vm10770_vm10 = vcmask 140408  }
 0x28e   : > { %v1587_v19 = vpop.permute.xlu1 %1586 }
 0x28f   : > { %1702 = vst.msk [vmem:[#allocation2 + $0xa7] sm:$0xff] %vm10763_vm12, %v1587_v19  ;;  %v1593_v39 = vpop.permute.xlu0 %1592  ;;  %vm10769_vm12 = vcmask 146552  }
 0x290   : > { %1970 = vrot.lane.b32.xlu1 %v8724_v45, %s7346_s24  ;;  %1705 = vst.msk [vmem:[#allocation2 + $0xb7] sm:$0xff] %vm10766_vm13, %v1593_v39  ;;  %2122 = vrot.lane.b32.xlu0 %v8910_v48, %s7347_s2  ;;  %vm10772_vm13 = vmmov %vm10769_vm12 }
 0x292   : > { %v1591_v21 = vpop.permute.xlu1 %1590 }
 0x293   : > { %1704 = vst.msk [vmem:[#allocation2 + $0xaf] sm:$0xfe] %vm10765_vm8, %v1591_v21  ;;  %v1780_v24 = vpop.permute.xlu0 %1779  ;;  %vm10771_vm8 = vmmov %vm10768_vm11 }
 0x294   : > { %2120 = vrot.lane.b32.xlu1 %v8655_v3, %s7347_s2  ;;  %1896 = vst.msk [vmem:[#allocation2 + $0x9e] sm:$0xfc] %vm10768_vm11, %v1780_v24  ;;  %2126 = vrot.lane.b32.xlu0 %v8724_v45, %s7347_s2  ;;  %vm10774_vm11 = vcmask 64512  }
 0x296   : > { %v1595_v22 = vpop.permute.xlu1 %1594 }
 0x297   : > { %1706 = vst.msk [vmem:[#allocation2 + $0xbf] sm:$0x1] %vm10767_vm14, %v1595_v22  ;;  %v1784_v27 = vpop.permute.xlu0 %1783  ;;  %vm10773_vm14 = vmmov %vm10770_vm10 }
 0x298   : > { %2124 = vrot.lane.b32.xlu1 %v8722_v44, %s7347_s2  ;;  %1898 = vst.msk [vmem:[#allocation2 + $0xae] sm:$0x3] %vm10770_vm10, %v1784_v27  ;;  %2313 = vrot.lane.b32.xlu0 %v8653_v2, %s10608_s25  ;;  %vm10776_vm10 = vcmask 171152  }
 0x29a   : > { %v1782_v26 = vpop.permute.xlu1 %1781 }
 0x29b   : > { %1897 = vst.msk [vmem:[#allocation2 + $0xa6] sm:$0xff] %vm10769_vm12, %v1782_v26  ;;  %v1788_v31 = vpop.permute.xlu0 %1787  ;;  %vm10775_vm12 = vmmov %vm10774_vm11 }
 0x29c   : > { %2128 = vrot.lane.b32.xlu1 %v8961_v23, %s7347_s2  ;;  %v7087_v60 = vpop.f32.mrb[8].mxu0  ;;  %1900 = vst.msk [vmem:[#allocation2 + $0xb6] sm:$0xff] %vm10772_vm13, %v1788_v31  ;;  %2317 = vrot.lane.b32.xlu0 %v8910_v48, %s10608_s25  ;;  %vm10778_vm13 = vmmov %vm10774_vm11 }
 0x29d   : > { %v2636_v61 = vadd.f32 %v7087_v60, %v8649_v63  ;;  %v2627_v29 = vpop.f32.mrb[9].mxu0 }
 0x29e   : > { %v1786_v28 = vpop.permute.xlu1 %1785  ;;  %v2628_v30 = vadd.f32 %v8649_v63, %v2627_v29  ;;  %v7088_v25 = vpop.f32.mrb[10].mxu0 }
 0x29f   : > { %1899 = vst.msk [vmem:[#allocation2 + $0xae] sm:$0xfc] %vm10771_vm8, %v1786_v28  ;;  %v2732_v37 = vmax.f32 %v2636_v61, 0.0  ;;  %v2639_v33 = vadd.f32 %v7088_v25, %v8649_v63  ;;  %v2630_v59 = vpop.f32.mrb[11].mxu0  ;;  %v1957_v43 = vpop.permute.xlu0 %1956  ;;  %vm10777_vm8 = vmmov %vm10776_vm10 }
 0x2a0   : > { %2315 = vrot.lane.b32.xlu1 %v8655_v3, %s10608_s25  ;;  %v2730_v40 = vmax.f32 %v2628_v30, 0.0  ;;  %v2631_v41 = vadd.f32 %v8649_v63, %v2630_v59  ;;  %2033 = vst.msk [vmem:[#allocation2 + $0xa0] sm:$0xff] %vm10776_vm10, %v1957_v43  ;;  %1088 = vrot.lane.b32.xlu0 %v8655_v3, %s10602_s30  ;;  %vm10782_vm10 = vcmask 195753   ;;  %v834_v30 = vld [vmem:[#allocation3 + $0x1a8] sm:$0x3] }
 0x2a1   : > { %2821 = vst.msk [vmem:[#allocation4 + $0x91] sm:$0xff] %vm10774_vm11, %v2732_v37  ;;  %v2733_v42 = vmax.f32 %v2639_v33, 0.0  ;;  %v888_v37 = vmax.f32 %v834_v30, 0.0  ;;  %v2851_v33 = vld [vmem:[#allocation4] ss:$2 sm:$0xff] }
 0x2a2   : > { %v1790_v36 = vpop.permute.xlu1 %1789  ;;  %2819 = vst.msk [vmem:[#allocation4 + $0x79] sm:$0xff] %vm10775_vm12, %v2730_v40  ;;  %v2731_v47 = vmax.f32 %v2631_v41, 0.0  ;;  %vm10781_vm12 = vmmov %vm10777_vm8  ;;  %v9123_v43 = vld [vmem:[%s10704_s29] ss:$0 sm:$0xff]  ;;  %v3104_v30 = vld [vmem:[#allocation4 + $0x49] ss:$2 sm:$0xff] }
 0x2a3   : > { %1901 = vst.msk [vmem:[#allocation2 + $0xbe] sm:$0x3] %vm10773_vm14, %v1790_v36  ;;  %vm10779_vm14 = vmmov %vm10774_vm11  ;;  %v1961_v63 = vpop.permute.xlu0 %1960  ;;  %s10934_s29 = smov 64  }
 0x2a4   : > { %1086 = vrot.lane.b32.xlu1 %v8653_v2, %s10602_s30  ;;  %2822 = vst.msk [vmem:[#allocation4 + $0x99] sm:$0xff] %vm10778_vm13, %v2733_v42  ;;  %vm10780_vm11 = vmmov %vm10777_vm8  ;;  %2319 = vrot.lane.b32.xlu0 %v8722_v44, %s10608_s25 }
 0x2a5   : > { %2820 = vst.msk [vmem:[#allocation4 + $0x81] sm:$0xff] %vm10779_vm14, %v2731_v47  ;;  %vm10785_vm14 = vmmov %vm10782_vm10 }
 0x2a6   : > { %v1959_v46 = vpop.permute.xlu1 %1958  ;;  %2035 = vst.msk [vmem:[#allocation2 + $0xb0] sm:$0xff] %vm10780_vm11, %v1961_v63 }
 0x2a7   : > { %2034 = vst.msk [vmem:[#allocation2 + $0xa8] sm:$0xff] %vm10777_vm8, %v1959_v46  ;;  %v2107_v51 = vpop.permute.xlu0 %2106  ;;  %vm10783_vm8 = vmmov %vm10778_vm13  ;;  %vm10784_vm13 = vcmask 188584  }
 0x2a8   : > { %1090 = vrot.lane.b32.xlu1 %v8910_v48, %s10602_s30  ;;  %2223 = vst.msk [vmem:[#allocation2 + $0x9f] sm:$0xfe] %vm10782_vm10, %v2107_v51  ;;  %2323 = vrot.lane.b32.xlu0 %v8961_v23, %s10608_s25  ;;  %vm10786_vm11 = vmmov %vm10784_vm13  ;;  %vm10788_vm10 = vcmask 66608  }
 0x2aa   : > { %v1963_v50 = vpop.permute.xlu1 %1962 }
 0x2ab   : > { %2036 = vst.msk [vmem:[#allocation2 + $0xb8] sm:$0xff] %vm10781_vm12, %v1963_v50  ;;  %v2857_v32 = vld [vmem:[#allocation4 + $0x90] ss:$2 sm:$0xff]  ;;  %v2111_v57 = vpop.permute.xlu0 %2110  ;;  %vm10787_vm12 = vcmask 72752  }
 0x2ac   : > { %2321 = vrot.lane.b32.xlu1 %v8724_v45, %s10608_s25  ;;  %2869 = vst.msk [vmem:[#allocation5 + $0x18] sm:$0xff] %vm10783_vm8, %v2857_v32  ;;  %1094 = vrot.lane.b32.xlu0 %v8724_v45, %s10602_s30  ;;  %vm10789_vm8 = vmmov %vm10787_vm12 }
 0x2ad   : > { %2225 = vst.msk [vmem:[#allocation2 + $0xaf] sm:$0x1] %vm10784_vm13, %v2111_v57  ;;  %vm10790_vm13 = vmmov %vm10788_vm10 }
 0x2ae   : > { %v2109_v52 = vpop.permute.xlu1 %2108 }
 0x2af   : > { %2224 = vst.msk [vmem:[#allocation2 + $0xa7] sm:$0xff] %vm2192_vm0, %v2109_v52  ;;  %v2115_v56 = vpop.permute.xlu0 %2114 }
 0x2b0   : > { %1092 = vrot.lane.b32.xlu1 %v8722_v44, %s10602_s30  ;;  %2227 = vst.msk [vmem:[#allocation2 + $0xb7] sm:$0xff] %vm2192_vm0, %v2115_v56  ;;  %1281 = vrot.lane.b32.xlu0 %v8653_v2, %s10600_s5  ;;  %v829_v2 = vld [vmem:[#allocation3 + $0x180] sm:$0xff] }
 0x2b1   : > { %v9038_v49 = vmax.f32 %v829_v2, 0.0  ;;  %v2875_v2 = vld [vmem:[#allocation4 + $0x1] ss:$2 sm:$0xff] }
 0x2b2   : > { %v2113_v55 = vpop.permute.xlu1 %2112 }
 0x2b3   : > { %2226 = vst.msk [vmem:[#allocation2 + $0xaf] sm:$0xfe] %vm10785_vm14, %v2113_v55  ;;  %v2302_v58 = vpop.permute.xlu0 %2301  ;;  %vm10791_vm14 = vcmask 97352  }
 0x2b4   : > { %1096 = vrot.lane.b32.xlu1 %v8961_v23, %s10602_s30  ;;  %2418 = vst.msk [vmem:[#allocation2 + $0x9e] sm:$0xfc] %vm2385_vm3, %v2302_v58  ;;  %1285 = vrot.lane.b32.xlu0 %v8910_v48, %s10600_s5  ;;  %s10620_s30 = smov 96  }
 0x2b6   : > { %v2117_v53 = vpop.permute.xlu1 %2116 }
 0x2b7   : > { %2228 = vst.msk [vmem:[#allocation2 + $0xbf] sm:$0x1] %vm10786_vm11, %v2117_v53  ;;  %v2306_v0 = vpop.permute.xlu0 %2305  ;;  %vm10792_vm11 = vmmov %vm10791_vm14 }
 0x2b8   : > { %1283 = vrot.lane.b32.xlu1 %v8655_v3, %s10600_s5  ;;  %2420 = vst.msk [vmem:[#allocation2 + $0xae] sm:$0x3] %vm2389_vm4, %v2306_v0  ;;  %1289 = vrot.lane.b32.xlu0 %v8724_v45, %s10600_s5  ;;  %v830_v3 = vld [vmem:[#allocation3 + $0x188] sm:$0xff] }
 0x2b9   : > { %v9040_v7 = vmax.f32 %v830_v3, 0.0 }
 0x2ba   : > { %v2304_v62 = vpop.permute.xlu1 %2303 }
 0x2bb   : > { %2419 = vst.msk [vmem:[#allocation2 + $0xa6] sm:$0xff] %vm2387_vm15, %v2304_v62  ;;  %v1077_v4 = vpop.permute.xlu0 %1076 }
 0x2bc   : > { %1287 = vrot.lane.b32.xlu1 %v8722_v44, %s10600_s5  ;;  %1186 = vst.msk [vmem:[#allocation2 + $0xc7] sm:$0xff] %vm10610_vm7, %v1077_v4  ;;  %1450 = vrot.lane.b32.xlu0 %v8722_v44, %s10598_s22 }
 0x2be   : > { %v1075_v1 = vpop.permute.xlu1 %1074 }
 0x2bf   : > { %1185 = vst.msk [vmem:[#allocation2 + $0xbf] sm:$0xfe] %vm1146_vm6, %v1075_v1  ;;  %v2308_v8 = vpop.permute.xlu0 %2307 }
 0x2c0   : > { %1291 = vrot.lane.b32.xlu1 %v8961_v23, %s10600_s5  ;;  %2421 = vst.msk [vmem:[#allocation2 + $0xae] sm:$0xfc] %vm2385_vm3, %v2308_v8  ;;  %1454 = vrot.lane.b32.xlu0 %v9038_v49, %s10598_s22  ;;  %v2879_v8 = vld [vmem:[#allocation4 + $0x61] ss:$2 sm:$0xff]  ;;  %s10614_s5 = smov 88  }
 0x2c2   : > { %v1079_v5 = vpop.permute.xlu1 %1078  ;;  %v2456_v6 = vld [vmem:[#allocation2 + $0xa0] sm:$0xff]  ;;  %v2457_v54 = vld [vmem:[#allocation2 + $0xa8] sm:$0xff] }
 0x2c3   : > { %1187 = vst.msk [vmem:[#allocation2 + $0xcf] sm:$0x1] %vm1150_vm5, %v1079_v5  ;;  %v2478_v9 = vpack.c.bf16 %v2457_v54, %v2456_v6  ;;  %v2312_v10 = vpop.permute.xlu0 %2311  ;;  %v2877_v5 = vld [vmem:[#allocation4 + $0x31] ss:$2 sm:$0xff]  ;;  %v2932_v54 = vld [vmem:[#allocation4 + $0x2] ss:$2 sm:$0xff] }
 0x2c4   : > { %1452 = vrot.lane.b32.xlu1 %v8724_v45, %s10598_s22  ;;  %2423 = vst.msk [vmem:[#allocation2 + $0xbe] sm:$0x3] %vm2389_vm4, %v2312_v10  ;;  %1608 = vrot.lane.b32.xlu0 %v8722_v44, %s7344_s23 }
 0x2c5   : > { %7097 = vmatprep.mubr.msk.bf16.mxu0 %vm889_vm2, %v2478_v9 }
 0x2c6   : > { %v2310_v48 = vpop.permute.xlu1 %2309 }
 0x2c7   : > { %2422 = vst.msk [vmem:[#allocation2 + $0xb6] sm:$0xff] %vm2387_vm15, %v2310_v48  ;;  %v1083_v13 = vpop.permute.xlu0 %1082  ;;  %v2881_v48 = vld [vmem:[#allocation4 + $0x91] ss:$2 sm:$0xff] }
 0x2c8   : > { %1456 = vrot.lane.b32.xlu1 %v9040_v7, %s10598_s22  ;;  %1189 = vst.msk [vmem:[#allocation2 + $0xd7] sm:$0xff] %vm10610_vm7, %v1083_v13  ;;  %1612 = vrot.lane.b32.xlu0 %v8961_v23, %s7344_s23  ;;  %s10616_s22 = smov 80  }
 0x2ca   : > { %v1081_v11 = vpop.permute.xlu1 %1080 }
 0x2cb   : > { %1188 = vst.msk [vmem:[#allocation2 + $0xcf] sm:$0xfe] %vm1146_vm6, %v1081_v11  ;;  %v1270_v16 = vpop.permute.xlu0 %1269  ;;  %v2934_v11 = vld [vmem:[#allocation4 + $0x32] ss:$2 sm:$0xff] }
 0x2cc   : > { %1610 = vrot.lane.b32.xlu1 %v8724_v45, %s7344_s23  ;;  %1380 = vst.msk [vmem:[#allocation2 + $0xbe] sm:$0xfc] %vm1341_vm9, %v1270_v16  ;;  %1616 = vrot.lane.b32.xlu0 %v9040_v7, %s7344_s23  ;;  %v2989_v16 = vld [vmem:[#allocation4 + $0x3] ss:$2 sm:$0xff] }
 0x2ce   : > { %v1085_v14 = vpop.permute.xlu1 %1084  ;;  %v2458_v34 = vld [vmem:[#allocation2 + $0xb0] sm:$0xff]  ;;  %v2459_v35 = vld [vmem:[#allocation2 + $0xb8] sm:$0xff] }
 0x2cf   : > { %1190 = vst.msk [vmem:[#allocation2 + $0xdf] sm:$0x1] %vm1150_vm5, %v1085_v14  ;;  %v2479_v17 = vpack.c.bf16 %v2459_v35, %v2458_v34  ;;  %v1274_v19 = vpop.permute.xlu0 %1273  ;;  %v2936_v14 = vld [vmem:[#allocation4 + $0x62] ss:$2 sm:$0xff]  ;;  %v2991_v35 = vld [vmem:[#allocation4 + $0x33] ss:$2 sm:$0xff] }
 0x2d0   : > { %1614 = vrot.lane.b32.xlu1 %v9038_v49, %s7344_s23  ;;  %1382 = vst.msk [vmem:[#allocation2 + $0xce] sm:$0x3] %vm10788_vm10, %v1274_v19  ;;  %1803 = vrot.lane.b32.xlu0 %v8722_v44, %s7345_s1  ;;  %v832_v44 = vld [vmem:[#allocation3 + $0x198] sm:$0xff]  ;;  %vm10794_vm10 = vmmov %vm10792_vm11 }
 0x2d1   : > { %7098 = vmatmul.mubr.msk.bf16.gmra.mrb[20].mxu0 %vm889_vm2, %v2479_v17 }
 0x2d2   : > { %v1272_v18 = vpop.permute.xlu1 %1271 }
 0x2d3   : > { %1381 = vst.msk [vmem:[#allocation2 + $0xc6] sm:$0xff] %vm10787_vm12, %v1272_v18  ;;  %v1278_v21 = vpop.permute.xlu0 %1277  ;;  %vm10793_vm12 = vmmov %vm10792_vm11 }
 0x2d4   : > { %1618 = vrot.lane.b32.xlu1 %v9061_v15, %s7344_s23  ;;  %1384 = vst.msk [vmem:[#allocation2 + $0xd6] sm:$0xff] %vm10789_vm8, %v1278_v21  ;;  %1807 = vrot.lane.b32.xlu0 %v8961_v23, %s7345_s1  ;;  %v886_v23 = vmax.f32 %v832_v44, 0.0  ;;  %vm10795_vm8 = vcmask 121953   ;;  %v2995_v21 = vld [vmem:[#allocation4 + $0x93] ss:$2 sm:$0xff]  ;;  %s10624_s23 = smov 72  }
 0x2d5   : > { %v3045_v44 = vld [vmem:[#allocation4 + $0x18] ss:$2 sm:$0xff] }
 0x2d6   : > { %v1276_v20 = vpop.permute.xlu1 %1275 }
 0x2d7   : > { %1383 = vst.msk [vmem:[#allocation2 + $0xce] sm:$0xfc] %vm1341_vm9, %v1276_v20  ;;  %v1443_v39 = vpop.permute.xlu0 %1442  ;;  %v2993_v20 = vld [vmem:[#allocation4 + $0x63] ss:$2 sm:$0xff] }
 0x2d8   : > { %1805 = vrot.lane.b32.xlu1 %v8724_v45, %s7345_s1  ;;  %1515 = vst.msk [vmem:[#allocation2 + $0xc0] sm:$0xff] %vm10791_vm14, %v1443_v39  ;;  %1811 = vrot.lane.b32.xlu0 %v9040_v7, %s7345_s1  ;;  %v833_v45 = vld [vmem:[#allocation3 + $0x1a0] sm:$0xff]  ;;  %vm10797_vm14 = vcmask 114784  }
 0x2d9   : > { %v887_v27 = vmax.f32 %v833_v45, 0.0 }
 0x2da   : > { %v1280_v38 = vpop.permute.xlu1 %1279 }
 0x2db   : > { %1385 = vst.msk [vmem:[#allocation2 + $0xde] sm:$0x3] %vm10790_vm13, %v1280_v38  ;;  %v1447_v24 = vpop.permute.xlu0 %1446  ;;  %vm10796_vm13 = vcmask 121952  }
 0x2dc   : > { %1809 = vrot.lane.b32.xlu1 %v9038_v49, %s7345_s1  ;;  %1517 = vst.msk [vmem:[#allocation2 + $0xd0] sm:$0xff] %vm10793_vm12, %v1447_v24  ;;  %1972 = vrot.lane.b32.xlu0 %v9038_v49, %s7346_s24  ;;  %vm10799_vm12 = vmmov %vm10796_vm13 }
 0x2de   : > { %v1445_v22 = vpop.permute.xlu1 %1444 }
 0x2df   : > { %1516 = vst.msk [vmem:[#allocation2 + $0xc8] sm:$0xff] %vm10792_vm11, %v1445_v22  ;;  %v1597_v28 = vpop.permute.xlu0 %1596  ;;  %vm10798_vm11 = vmmov %vm10795_vm8  ;;  %v3047_v22 = vld [vmem:[#allocation4 + $0x48] ss:$2 sm:$0xff] }
 0x2e0   : > { %1813 = vrot.lane.b32.xlu1 %v9061_v15, %s7345_s1  ;;  %1707 = vst.msk [vmem:[#allocation2 + $0xbf] sm:$0xfe] %vm10795_vm8, %v1597_v28  ;;  %1976 = vrot.lane.b32.xlu0 %v886_v23, %s7346_s24  ;;  %vm10801_vm8 = vcmask 146554   ;;  %s10604_s1 = smov 8   ;;  %v3049_v28 = vld [vmem:[#allocation4 + $0x78] ss:$2 sm:$0xff] }
 0x2e2   : > { %v1449_v26 = vpop.permute.xlu1 %1448 }
 0x2e3   : > { %1518 = vst.msk [vmem:[#allocation2 + $0xd8] sm:$0xff] %vm10794_vm10, %v1449_v26  ;;  %v1601_v61 = vpop.permute.xlu0 %1600  ;;  %vm10800_vm10 = vmmov %vm10797_vm14 }
 0x2e4   : > { %1974 = vrot.lane.b32.xlu1 %v9040_v7, %s7346_s24  ;;  %1709 = vst.msk [vmem:[#allocation2 + $0xcf] sm:$0x1] %vm10797_vm14, %v1601_v61  ;;  %2130 = vrot.lane.b32.xlu0 %v9038_v49, %s7347_s2  ;;  %vm10803_vm14 = vcmask 64512  }
 0x2e5   : > { %2866 = vst.msk [vmem:[#allocation5] sm:$0xff] %vm10803_vm14, %v2851_v33 }
 0x2e6   : > { %v1599_v60 = vpop.permute.xlu1 %1598 }
 0x2e7   : > { %1708 = vst.msk [vmem:[#allocation2 + $0xc7] sm:$0xff] %vm10796_vm13, %v1599_v60  ;;  %v1605_v31 = vpop.permute.xlu0 %1604  ;;  %vm10802_vm13 = vcmask 146552  }
 0x2e8   : > { %1978 = vrot.lane.b32.xlu1 %v887_v27, %s7346_s24  ;;  %1711 = vst.msk [vmem:[#allocation2 + $0xd7] sm:$0xff] %vm10799_vm12, %v1605_v31  ;;  %2134 = vrot.lane.b32.xlu0 %v9061_v15, %s7347_s2  ;;  %vm10805_vm12 = vmmov %vm10801_vm8  ;;  %s10606_s24 = smov 16   ;;  %v3102_v31 = vld [vmem:[#allocation4 + $0x19] ss:$2 sm:$0xff] }
 0x2ea   : > { %v1603_v29 = vpop.permute.xlu1 %1602 }
 0x2eb   : > { %1710 = vst.msk [vmem:[#allocation2 + $0xcf] sm:$0xfe] %vm10798_vm11, %v1603_v29  ;;  %v1792_v25 = vpop.permute.xlu0 %1791  ;;  %vm10804_vm11 = vcmask 140408  }
 0x2ec   : > { %2132 = vrot.lane.b32.xlu1 %v9040_v7, %s7347_s2  ;;  %1902 = vst.msk [vmem:[#allocation2 + $0xbe] sm:$0xfc] %vm10801_vm8, %v1792_v25  ;;  %2138 = vrot.lane.b32.xlu0 %v887_v27, %s7347_s2  ;;  %vm10807_vm8 = vmmov %vm10804_vm11 }
 0x2ee   : > { %v1607_v36 = vpop.permute.xlu1 %1606 }
 0x2ef   : > { %1712 = vst.msk [vmem:[#allocation2 + $0xdf] sm:$0x1] %vm10800_vm10, %v1607_v36  ;;  %v1796_v59 = vpop.permute.xlu0 %1795  ;;  %vm10806_vm10 = vmmov %vm10802_vm13 }
 0x2f0   : > { %2136 = vrot.lane.b32.xlu1 %v886_v23, %s7347_s2  ;;  %1904 = vst.msk [vmem:[#allocation2 + $0xce] sm:$0x3] %vm10804_vm11, %v1796_v59  ;;  %2325 = vrot.lane.b32.xlu0 %v9038_v49, %s10608_s25  ;;  %vm10810_vm11 = vcmask 171152  }
 0x2f2   : > { %v1794_v40 = vpop.permute.xlu1 %1793 }
 0x2f3   : > { %1903 = vst.msk [vmem:[#allocation2 + $0xc6] sm:$0xff] %vm10802_vm13, %v1794_v40  ;;  %v1800_v50 = vpop.permute.xlu0 %1799  ;;  %vm10808_vm13 = vmmov %vm10803_vm14  ;;  %v3106_v40 = vld [vmem:[#allocation4 + $0x79] ss:$2 sm:$0xff] }
 0x2f4   : > { %2140 = vrot.lane.b32.xlu1 %v888_v37, %s7347_s2  ;;  %v7091_v42 = vpop.f32.mrb[12].mxu0  ;;  %1906 = vst.msk [vmem:[#allocation2 + $0xd6] sm:$0xff] %vm10806_vm10, %v1800_v50  ;;  %2329 = vrot.lane.b32.xlu0 %v9061_v15, %s10608_s25  ;;  %vm10809_vm14 = vmmov %vm10808_vm13  ;;  %v2938_v15 = vld [vmem:[#allocation4 + $0x92] ss:$2 sm:$0xff]  ;;  %s10612_s2 = smov 32  }
 0x2f5   : > { %v2652_v46 = vadd.f32 %v9123_v43, %v7091_v42  ;;  %v2643_v47 = vpop.f32.mrb[13].mxu0  ;;  %vm10812_vm10 = vmmov %vm10808_vm13 }
 0x2f6   : > { %v1798_v41 = vpop.permute.xlu1 %1797  ;;  %v2644_v63 = vadd.f32 %v9123_v43, %v2643_v47  ;;  %v7092_v32 = vpop.f32.mrb[14].mxu0  ;;  %v3159_v47 = vld [vmem:[#allocation4 + $0x1a] ss:$2 sm:$0xff] }
 0x2f7   : > { %1905 = vst.msk [vmem:[#allocation2 + $0xce] sm:$0xfc] %vm10805_vm12, %v1798_v41  ;;  %v2736_v52 = vmax.f32 %v2652_v46, 0.0  ;;  %v2655_v55 = vadd.f32 %v9123_v43, %v7092_v32  ;;  %v2646_v56 = vpop.f32.mrb[15].mxu0  ;;  %v1965_v62 = vpop.permute.xlu0 %1964  ;;  %vm10811_vm12 = vmmov %vm10810_vm11  ;;  %v3161_v46 = vld [vmem:[#allocation4 + $0x4a] ss:$2 sm:$0xff] }
 0x2f8   : > { %2327 = vrot.lane.b32.xlu1 %v9040_v7, %s10608_s25  ;;  %v2734_v57 = vmax.f32 %v2644_v63, 0.0  ;;  %v2647_v53 = vadd.f32 %v9123_v43, %v2646_v56  ;;  %2037 = vst.msk [vmem:[#allocation2 + $0xc0] sm:$0xff] %vm10810_vm11, %v1965_v62  ;;  %2333 = vrot.lane.b32.xlu0 %v887_v27, %s10608_s25  ;;  %v3163_v32 = vld [vmem:[#allocation4 + $0x7a] ss:$2 sm:$0xff]  ;;  %v3218_v56 = vld [vmem:[#allocation4 + $0x4b] ss:$2 sm:$0xff] }
 0x2f9   : > { %2825 = vst.msk [vmem:[#allocation4 + $0xc1] sm:$0xff] %vm10808_vm13, %v2736_v52  ;;  %v2737_v58 = vmax.f32 %v2655_v55, 0.0  ;;  %vm10814_vm13 = vmmov %vm10810_vm11 }
 0x2fa   : > { %v1802_v51 = vpop.permute.xlu1 %1801  ;;  %2823 = vst.msk [vmem:[#allocation4 + $0xa9] sm:$0xff] %vm10809_vm14, %v2734_v57  ;;  %v2735_v1 = vmax.f32 %v2647_v53, 0.0  ;;  %vm10815_vm14 = vmmov %vm10810_vm11  ;;  %vm10816_vm11 = vcmask 195753   ;;  %v3216_v53 = vld [vmem:[#allocation4 + $0x1b] ss:$2 sm:$0xff] }
 0x2fb   : > { %1907 = vst.msk [vmem:[#allocation2 + $0xde] sm:$0x3] %vm10807_vm8, %v1802_v51  ;;  %vm10813_vm8 = vmmov %vm10812_vm10  ;;  %v1969_v3 = vpop.permute.xlu0 %1968 }
 0x2fc   : > { %2331 = vrot.lane.b32.xlu1 %v886_v23, %s10608_s25  ;;  %2826 = vst.msk [vmem:[#allocation4 + $0xc9] sm:$0xff] %vm10812_vm10, %v2737_v58  ;;  %2898 = vrot.lane.b32.xlu0 %v2875_v2, %s10604_s1  ;;  %vm10818_vm10 = vcmask 188584  }
 0x2fd   : > { %2824 = vst.msk [vmem:[#allocation4 + $0xb1] sm:$0xff] %vm10813_vm8, %v2735_v1  ;;  %v3220_v1 = vld [vmem:[#allocation4 + $0x7b] ss:$2 sm:$0xff] }
 0x2fe   : > { %v1967_v0 = vpop.permute.xlu1 %1966  ;;  %2039 = vst.msk [vmem:[#allocation2 + $0xd0] sm:$0xff] %vm10814_vm13, %v1969_v3  ;;  %vm10820_vm13 = vmmov %vm10818_vm10 }
 0x2ff   : > { %2038 = vst.msk [vmem:[#allocation2 + $0xc8] sm:$0xff] %vm10811_vm12, %v1967_v0  ;;  %v2119_v49 = vpop.permute.xlu0 %2118  ;;  %vm10817_vm12 = vmmov %vm10813_vm8 }
 0x300   : > { %2335 = vrot.lane.b32.xlu1 %v888_v37, %s10608_s25  ;;  %2229 = vst.msk [vmem:[#allocation2 + $0xbf] sm:$0xfe] %vm10816_vm11, %v2119_v49  ;;  %2902 = vrot.lane.b32.xlu0 %v2879_v8, %s10604_s1  ;;  %vm10819_vm8 = vmmov %vm10816_vm11 }
 0x302   : > { %v1971_v4 = vpop.permute.xlu1 %1970 }
 0x303   : > { %2040 = vst.msk [vmem:[#allocation2 + $0xd8] sm:$0xff] %vm10815_vm14, %v1971_v4  ;;  %v2859_v6 = vld [vmem:[#allocation4 + $0xc0] ss:$2 sm:$0xff]  ;;  %v2123_v9 = vpop.permute.xlu0 %2122  ;;  %v2883_v8 = vld [vmem:[#allocation4 + $0xc1] ss:$2 sm:$0xff] }
 0x304   : > { %2900 = vrot.lane.b32.xlu1 %v2877_v5, %s10604_s1  ;;  %2870 = vst.msk [vmem:[#allocation5 + $0x20] sm:$0xff] %vm10817_vm12, %v2859_v6  ;;  %2955 = vrot.lane.b32.xlu0 %v2932_v54, %s10606_s24  ;;  %v3051_v27 = vld [vmem:[#allocation4 + $0xa8] ss:$2 sm:$0xff]  ;;  %v3108_v25 = vld [vmem:[#allocation4 + $0xa9] ss:$2 sm:$0xff] }
 0x305   : > { %2231 = vst.msk [vmem:[#allocation2 + $0xcf] sm:$0x1] %vm10818_vm10, %v2123_v9  ;;  %v3165_v52 = vld [vmem:[#allocation4 + $0xaa] ss:$2 sm:$0xff]  ;;  %v3222_v0 = vld [vmem:[#allocation4 + $0xab] ss:$2 sm:$0xff] }
 0x306   : > { %v2121_v7 = vpop.permute.xlu1 %2120  ;;  %v3275_v4 = vld [vmem:[#allocation4 + $0x60] ss:$2 sm:$0xff]  ;;  %v3273_v5 = vld [vmem:[#allocation4 + $0x30] ss:$2 sm:$0xff] }
 0x307   : > { %2230 = vst.msk [vmem:[#allocation2 + $0xc7] sm:$0xff] %vm2192_vm0, %v2121_v7  ;;  %v2127_v12 = vpop.permute.xlu0 %2126  ;;  %v3277_v54 = vld [vmem:[#allocation4 + $0x90] ss:$2 sm:$0xff] }
 0x308   : > { %2904 = vrot.lane.b32.xlu1 %v2881_v48, %s10604_s1  ;;  %2233 = vst.msk [vmem:[#allocation2 + $0xd7] sm:$0xff] %vm2192_vm0, %v2127_v12  ;;  %2959 = vrot.lane.b32.xlu0 %v2936_v14, %s10606_s24 }
 0x30a   : > { %v2125_v10 = vpop.permute.xlu1 %2124 }
 0x30b   : > { %2232 = vst.msk [vmem:[#allocation2 + $0xcf] sm:$0xfe] %vm10819_vm8, %v2125_v10  ;;  %v2314_v18 = vpop.permute.xlu0 %2313 }
 0x30c   : > { %2957 = vrot.lane.b32.xlu1 %v2934_v11, %s10606_s24  ;;  %2424 = vst.msk [vmem:[#allocation2 + $0xbe] sm:$0xfc] %vm2385_vm3, %v2314_v18  ;;  %3012 = vrot.lane.b32.xlu0 %v2989_v16, %s10608_s25  ;;  %v3330_v11 = vld [vmem:[#allocation4 + $0x31] ss:$2 sm:$0xff] }
 0x30e   : > { %v2129_v13 = vpop.permute.xlu1 %2128 }
 0x30f   : > { %2234 = vst.msk [vmem:[#allocation2 + $0xdf] sm:$0x1] %vm10820_vm13, %v2129_v13  ;;  %v2318_v17 = vpop.permute.xlu0 %2317  ;;  %vm10829_vm13 = vcmask 121953  }
 0x310   : > { %2961 = vrot.lane.b32.xlu1 %v2938_v15, %s10606_s24  ;;  %2426 = vst.msk [vmem:[#allocation2 + $0xce] sm:$0x3] %vm2389_vm4, %v2318_v17  ;;  %3016 = vrot.lane.b32.xlu0 %v2993_v20, %s10608_s25 }
 0x312   : > { %v2316_v34 = vpop.permute.xlu1 %2315 }
 0x313   : > { %2425 = vst.msk [vmem:[#allocation2 + $0xc6] sm:$0xff] %vm2387_vm15, %v2316_v34  ;;  %v1089_v38 = vpop.permute.xlu0 %1088 }
 0x314   : > { %3014 = vrot.lane.b32.xlu1 %v2991_v35, %s10608_s25  ;;  %1192 = vst.msk [vmem:[#allocation2 + $0xe7] sm:$0xff] %vm10610_vm7, %v1089_v38  ;;  %3068 = vrot.lane.b32.xlu0 %v3045_v44, %s10612_s2 }
 0x316   : > { %v1087_v19 = vpop.permute.xlu1 %1086 }
 0x317   : > { %1191 = vst.msk [vmem:[#allocation2 + $0xdf] sm:$0xfe] %vm1146_vm6, %v1087_v19  ;;  %v2320_v45 = vpop.permute.xlu0 %2319 }
 0x318   : > { %3018 = vrot.lane.b32.xlu1 %v2995_v21, %s10608_s25  ;;  %2427 = vst.msk [vmem:[#allocation2 + $0xce] sm:$0xfc] %vm2385_vm3, %v2320_v45  ;;  %3072 = vrot.lane.b32.xlu0 %v3049_v28, %s10612_s2 }
 0x31a   : > { %v1091_v39 = vpop.permute.xlu1 %1090  ;;  %v2460_v26 = vld [vmem:[#allocation2 + $0xc0] sm:$0xff]  ;;  %v2461_v23 = vld [vmem:[#allocation2 + $0xc8] sm:$0xff] }
 0x31b   : > { %1193 = vst.msk [vmem:[#allocation2 + $0xef] sm:$0x1] %vm1150_vm5, %v1091_v39  ;;  %v2480_v60 = vpack.c.bf16 %v2461_v23, %v2460_v26  ;;  %v2324_v61 = vpop.permute.xlu0 %2323 }
 0x31c   : > { %3070 = vrot.lane.b32.xlu1 %v3047_v22, %s10612_s2  ;;  %2429 = vst.msk [vmem:[#allocation2 + $0xde] sm:$0x3] %vm2389_vm4, %v2324_v61  ;;  %3125 = vrot.lane.b32.xlu0 %v3102_v31, %s10618_s0 }
 0x31d   : > { %7101 = vmatprep.mubr.msk.bf16.mxu0 %vm889_vm2, %v2480_v60 }
 0x31e   : > { %v2322_v24 = vpop.permute.xlu1 %2321 }
 0x31f   : > { %2428 = vst.msk [vmem:[#allocation2 + $0xd6] sm:$0xff] %vm2387_vm15, %v2322_v24  ;;  %v1095_v36 = vpop.permute.xlu0 %1094 }
 0x320   : > { %3074 = vrot.lane.b32.xlu1 %v3051_v27, %s10612_s2  ;;  %1195 = vst.msk [vmem:[#allocation2 + $0xf7] sm:$0xff] %vm10610_vm7, %v1095_v36  ;;  %3129 = vrot.lane.b32.xlu0 %v3106_v40, %s10618_s0 }
 0x322   : > { %v1093_v29 = vpop.permute.xlu1 %1092 }
 0x323   : > { %1194 = vst.msk [vmem:[#allocation2 + $0xef] sm:$0xfe] %vm1146_vm6, %v1093_v29  ;;  %v1282_v33 = vpop.permute.xlu0 %1281  ;;  %vm10821_vm6 = vcmask 72752  }
 0x324   : > { %3127 = vrot.lane.b32.xlu1 %v3104_v30, %s10618_s0  ;;  %1386 = vst.msk [vmem:[#allocation2 + $0xde] sm:$0xfc] %vm1341_vm9, %v1282_v33  ;;  %3182 = vrot.lane.b32.xlu0 %v3159_v47, %s10622_s20  ;;  %vm10823_vm14 = vmmov %vm10821_vm6  ;;  %v3332_v33 = vld [vmem:[#allocation4 + $0x61] ss:$2 sm:$0xff] }
 0x326   : > { %v1097_v37 = vpop.permute.xlu1 %1096  ;;  %v2462_v41 = vld [vmem:[#allocation2 + $0xd0] sm:$0xff]  ;;  %v2463_v42 = vld [vmem:[#allocation2 + $0xd8] sm:$0xff] }
 0x327   : > { %1196 = vst.msk [vmem:[#allocation2 + $0xff] sm:$0x1] %vm1150_vm5, %v1097_v37  ;;  %v2481_v63 = vpack.c.bf16 %v2463_v42, %v2462_v41  ;;  %v1286_v50 = vpop.permute.xlu0 %1285  ;;  %vm10822_vm5 = vcmask 66608   ;;  %v3279_v37 = vld [vmem:[#allocation4 + $0xc0] ss:$2 sm:$0xff] }
 0x328   : > { %3131 = vrot.lane.b32.xlu1 %v3108_v25, %s10618_s0  ;;  %1388 = vst.msk [vmem:[#allocation2 + $0xee] sm:$0x3] %vm10822_vm5, %v1286_v50  ;;  %3186 = vrot.lane.b32.xlu0 %v3163_v32, %s10622_s20  ;;  %vm10824_vm11 = vmmov %vm10822_vm5  ;;  %vm10831_vm5 = vcmask 114784  }
 0x329   : > { %7102 = vmatmul.mubr.msk.bf16.gmra.mrb[24].mxu0 %vm889_vm2, %v2481_v63 }
 0x32a   : > { %v1284_v59 = vpop.permute.xlu1 %1283 }
 0x32b   : > { %1387 = vst.msk [vmem:[#allocation2 + $0xe6] sm:$0xff] %vm10821_vm6, %v1284_v59  ;;  %v1290_v57 = vpop.permute.xlu0 %1289  ;;  %vm10830_vm6 = vcmask 121952  }
 0x32c   : > { %3184 = vrot.lane.b32.xlu1 %v3161_v46, %s10622_s20  ;;  %1390 = vst.msk [vmem:[#allocation2 + $0xf6] sm:$0xff] %vm10823_vm14, %v1290_v57  ;;  %3239 = vrot.lane.b32.xlu0 %v3216_v53, %s10640_s3  ;;  %vm10832_vm14 = vmmov %vm10829_vm13 }
 0x32e   : > { %v1288_v51 = vpop.permute.xlu1 %1287 }
 0x32f   : > { %1389 = vst.msk [vmem:[#allocation2 + $0xee] sm:$0xfc] %vm1341_vm9, %v1288_v51  ;;  %v1451_v58 = vpop.permute.xlu0 %1450  ;;  %vm10825_vm9 = vcmask 97352  }
 0x330   : > { %3188 = vrot.lane.b32.xlu1 %v3165_v52, %s10622_s20  ;;  %1519 = vst.msk [vmem:[#allocation2 + $0xe0] sm:$0xff] %vm10825_vm9, %v1451_v58  ;;  %vm10826_vm12 = vmmov %vm10825_vm9  ;;  %3243 = vrot.lane.b32.xlu0 %v3220_v1, %s10640_s3 }
 0x331   : > { %vm10827_vm10 = vmmov %vm10825_vm9 }
 0x332   : > { %v1292_v55 = vpop.permute.xlu1 %1291  ;;  %vm10828_vm8 = vmmov %vm10825_vm9 }
 0x333   : > { %1391 = vst.msk [vmem:[#allocation2 + $0xfe] sm:$0x3] %vm10824_vm11, %v1292_v55  ;;  %v1455_v2 = vpop.permute.xlu0 %1454  ;;  %vm10833_vm11 = vmmov %vm10830_vm6 }
 0x334   : > { %3241 = vrot.lane.b32.xlu1 %v3218_v56, %s10640_s3  ;;  %1521 = vst.msk [vmem:[#allocation2 + $0xf0] sm:$0xff] %vm10827_vm10, %v1455_v2  ;;  %3296 = vrot.lane.b32.xlu0 %v3273_v5, %s10632_s4  ;;  %vm10834_vm9 = vmmov %vm10831_vm5  ;;  %vm10836_vm10 = vcmask 146552  }
 0x336   : > { %v1453_v62 = vpop.permute.xlu1 %1452 }
 0x337   : > { %1520 = vst.msk [vmem:[#allocation2 + $0xe8] sm:$0xff] %vm10826_vm12, %v1453_v62  ;;  %v1609_v49 = vpop.permute.xlu0 %1608  ;;  %vm10835_vm12 = vcmask 146554  }
 0x338   : > { %3245 = vrot.lane.b32.xlu1 %v3222_v0, %s10640_s3  ;;  %1713 = vst.msk [vmem:[#allocation2 + $0xdf] sm:$0xfe] %vm10829_vm13, %v1609_v49  ;;  %2906 = vrot.lane.b32.xlu0 %v2883_v8, %s10604_s1  ;;  %vm10838_vm13 = vmmov %vm10835_vm12 }
 0x33a   : > { %v1457_v3 = vpop.permute.xlu1 %1456 }
 0x33b   : > { %1522 = vst.msk [vmem:[#allocation2 + $0xf8] sm:$0xff] %vm10828_vm8, %v1457_v3  ;;  %v1613_v48 = vpop.permute.xlu0 %1612  ;;  %vm10837_vm8 = vcmask 140408  }
 0x33c   : > { %3298 = vrot.lane.b32.xlu1 %v3275_v4, %s10632_s4  ;;  %1715 = vst.msk [vmem:[#allocation2 + $0xef] sm:$0x1] %vm10831_vm5, %v1613_v48  ;;  %3300 = vrot.lane.b32.xlu0 %v3277_v54, %s10632_s4  ;;  %vm10840_vm5 = vmmov %vm10837_vm8 }
 0x33e   : > { %v1611_v7 = vpop.permute.xlu1 %1610 }
 0x33f   : > { %1714 = vst.msk [vmem:[#allocation2 + $0xe7] sm:$0xff] %vm10830_vm6, %v1611_v7  ;;  %v1617_v9 = vpop.permute.xlu0 %1616  ;;  %vm10839_vm6 = vmmov %vm10836_vm10 }
 0x340   : > { %1717 = vst.msk [vmem:[#allocation2 + $0xf7] sm:$0xff] %vm10833_vm11, %v1617_v9  ;;  %3353 = vrot.lane.b32.xlu0 %v3330_v11, %s10624_s23 }
 0x342   : > { %v1615_v6 = vpop.permute.xlu1 %1614 }
 0x343   : > { %1716 = vst.msk [vmem:[#allocation2 + $0xef] sm:$0xfe] %vm10832_vm14, %v1615_v6  ;;  %v1804_v12 = vpop.permute.xlu0 %1803  ;;  %vm10841_vm14 = vcmask 64512  }
 0x344   : > { %1908 = vst.msk [vmem:[#allocation2 + $0xde] sm:$0xfc] %vm10835_vm12, %v1804_v12  ;;  %vm10842_vm11 = vmmov %vm10841_vm14 }
 0x346   : > { %v1619_v10 = vpop.permute.xlu1 %1618 }
 0x347   : > { %1718 = vst.msk [vmem:[#allocation2 + $0xff] sm:$0x1] %vm10834_vm9, %v1619_v10  ;;  %v1808_v14 = vpop.permute.xlu0 %1807  ;;  %vm10843_vm9 = vcmask 171152  }
 0x348   : > { %1910 = vst.msk [vmem:[#allocation2 + $0xee] sm:$0x3] %vm10837_vm8, %v1808_v14  ;;  %vm10844_vm12 = vmmov %vm10843_vm9 }
 0x34a   : > { %v1806_v13 = vpop.permute.xlu1 %1805 }
 0x34b   : > { %1909 = vst.msk [vmem:[#allocation2 + $0xe6] sm:$0xff] %vm10836_vm10, %v1806_v13  ;;  %v1812_v17 = vpop.permute.xlu0 %1811  ;;  %vm10845_vm10 = vmmov %vm10842_vm11 }
 0x34c   : > { %v7095_v16 = vpop.f32.mrb[16].mxu0  ;;  %1912 = vst.msk [vmem:[#allocation2 + $0xf6] sm:$0xff] %vm10839_vm6, %v1812_v17  ;;  %vm10846_vm8 = vmmov %vm10845_vm10 }
 0x34d   : > { %v2668_v18 = vadd.f32 %v9123_v43, %v7095_v16  ;;  %v2659_v34 = vpop.f32.mrb[17].mxu0  ;;  %vm10848_vm6 = vmmov %vm10843_vm9 }
 0x34e   : > { %v1810_v15 = vpop.permute.xlu1 %1809  ;;  %v2660_v35 = vadd.f32 %v9123_v43, %v2659_v34  ;;  %v7096_v21 = vpop.f32.mrb[18].mxu0 }
 0x34f   : > { %1911 = vst.msk [vmem:[#allocation2 + $0xee] sm:$0xfc] %vm10838_vm13, %v1810_v15  ;;  %v2740_v20 = vmax.f32 %v2668_v18, 0.0  ;;  %v2671_v39 = vadd.f32 %v9123_v43, %v7096_v21  ;;  %v2662_v22 = vpop.f32.mrb[19].mxu0  ;;  %v1973_v24 = vpop.permute.xlu0 %1972  ;;  %vm10847_vm13 = vmmov %vm10843_vm9 }
 0x350   : > { %v2738_v38 = vmax.f32 %v2660_v35, 0.0  ;;  %v2663_v44 = vadd.f32 %v9123_v43, %v2662_v22  ;;  %2041 = vst.msk [vmem:[#allocation2 + $0xe0] sm:$0xff] %vm10843_vm9, %v1973_v24 }
 0x351   : > { %2829 = vst.msk [vmem:[#allocation4 + $0xf1] sm:$0xff] %vm10841_vm14, %v2740_v20  ;;  %v2741_v45 = vmax.f32 %v2671_v39, 0.0  ;;  %vm10850_vm14 = vmmov %vm10846_vm8 }
 0x352   : > { %v1814_v19 = vpop.permute.xlu1 %1813  ;;  %2827 = vst.msk [vmem:[#allocation4 + $0xd9] sm:$0xff] %vm10842_vm11, %v2738_v38  ;;  %v2739_v23 = vmax.f32 %v2663_v44, 0.0  ;;  %vm10851_vm11 = vcmask 188584  }
 0x353   : > { %1913 = vst.msk [vmem:[#allocation2 + $0xfe] sm:$0x3] %vm10840_vm5, %v1814_v19  ;;  %v1977_v27 = vpop.permute.xlu0 %1976  ;;  %vm10849_vm5 = vcmask 195753  }
 0x354   : > { %2830 = vst.msk [vmem:[#allocation4 + $0xf9] sm:$0xff] %vm10845_vm10, %v2741_v45  ;;  %vm10852_vm9 = vmmov %vm10849_vm5  ;;  %vm3206_vm10 = vcmask 458112  }
 0x355   : > { %2828 = vst.msk [vmem:[#allocation4 + $0xe1] sm:$0xff] %vm10846_vm8, %v2739_v23  ;;  %vm3263_vm8 = vcmask 523712  }
 0x356   : > { %v1975_v26 = vpop.permute.xlu1 %1974  ;;  %2043 = vst.msk [vmem:[#allocation2 + $0xf0] sm:$0xff] %vm10847_vm13, %v1977_v27  ;;  %vm3320_vm13 = vcmask 589312  }
 0x357   : > { %2042 = vst.msk [vmem:[#allocation2 + $0xe8] sm:$0xff] %vm10844_vm12, %v1975_v26  ;;  %v2131_v60 = vpop.permute.xlu0 %2130  ;;  %vm10853_vm12 = vmmov %vm10851_vm11 }
 0x358   : > { %2235 = vst.msk [vmem:[#allocation2 + $0xdf] sm:$0xfe] %vm10849_vm5, %v2131_v60 }
 0x35a   : > { %v1979_v28 = vpop.permute.xlu1 %1978 }
 0x35b   : > { %2044 = vst.msk [vmem:[#allocation2 + $0xf8] sm:$0xff] %vm10848_vm6, %v1979_v28  ;;  %v2885_v29 = vld [vmem:[#allocation4 + $0xf1] ss:$2 sm:$0xff]  ;;  %v2861_v30 = vld [vmem:[#allocation4 + $0xf0] ss:$2 sm:$0xff]  ;;  %v2135_v31 = vpop.permute.xlu0 %2134  ;;  %vm10854_vm6 = vmmov %vm10850_vm14 }
 0x35c   : > { %2908 = vrot.lane.b32.xlu1 %v2885_v29, %s10604_s1  ;;  %2871 = vst.msk [vmem:[#allocation5 + $0x28] sm:$0xff] %vm10850_vm14, %v2861_v30  ;;  %vm10855_vm5 = vmmov %vm10854_vm6 }
 0x35d   : > { %2237 = vst.msk [vmem:[#allocation2 + $0xef] sm:$0x1] %vm10851_vm11, %v2135_v31  ;;  %vm10856_vm14 = vmmov %vm10855_vm5 }
 0x35e   : > { %v2133_v61 = vpop.permute.xlu1 %2132  ;;  %vm10857_vm11 = vmmov %vm10855_vm5 }
 0x35f   : > { %2236 = vst.msk [vmem:[#allocation2 + $0xe7] sm:$0xff] %vm2192_vm0, %v2133_v61  ;;  %v2139_v25 = vpop.permute.xlu0 %2138 }
 0x360   : > { %3302 = vrot.lane.b32.xlu1 %v3279_v37, %s10632_s4  ;;  %2239 = vst.msk [vmem:[#allocation2 + $0xf7] sm:$0xff] %vm2192_vm0, %v2139_v25  ;;  %vm2922_vm0 = vcmask 130112   ;;  %v3334_v25 = vld [vmem:[#allocation4 + $0x91] ss:$2 sm:$0xff] }
 0x362   : > { %v2137_v36 = vpop.permute.xlu1 %2136 }
 0x363   : > { %2238 = vst.msk [vmem:[#allocation2 + $0xef] sm:$0xfe] %vm10852_vm9, %v2137_v36  ;;  %v2326_v59 = vpop.permute.xlu0 %2325  ;;  %vm10858_vm9 = vmmov %vm10855_vm5  ;;  %v2940_v36 = vld [vmem:[#allocation4 + $0xc2] ss:$2 sm:$0xff] }
 0x364   : > { %3355 = vrot.lane.b32.xlu1 %v3332_v33, %s10624_s23  ;;  %2430 = vst.msk [vmem:[#allocation2 + $0xde] sm:$0xfc] %vm2385_vm3, %v2326_v59  ;;  %v2997_v59 = vld [vmem:[#allocation4 + $0xc3] ss:$2 sm:$0xff] }
 0x366   : > { %v2141_v40 = vpop.permute.xlu1 %2140 }
 0x367   : > { %2240 = vst.msk [vmem:[#allocation2 + $0xff] sm:$0x1] %vm10853_vm12, %v2141_v40  ;;  %v2330_v42 = vpop.permute.xlu0 %2329  ;;  %vm3377_vm12 = vcmask 654912   ;;  %v3387_v40 = vld [vmem:[#allocation4 + $0x32] ss:$2 sm:$0xff] }
 0x368   : > { %2432 = vst.msk [vmem:[#allocation2 + $0xee] sm:$0x3] %vm2389_vm4, %v2330_v42 }
 0x36a   : > { %v2328_v41 = vpop.permute.xlu1 %2327 }
 0x36b   : > { %2431 = vst.msk [vmem:[#allocation2 + $0xe6] sm:$0xff] %vm2387_vm15, %v2328_v41  ;;  %v2334_v47 = vpop.permute.xlu0 %2333  ;;  %v3391_v41 = vld [vmem:[#allocation4 + $0x92] ss:$2 sm:$0xff] }
 0x36c   : > { %2434 = vst.msk [vmem:[#allocation2 + $0xf6] sm:$0xff] %vm2387_vm15, %v2334_v47  ;;  %vm10626_vm15 = vcmask 261312  }
 0x36e   : > { %v2332_v46 = vpop.permute.xlu1 %2331 }
 0x36f   : > { %2433 = vst.msk [vmem:[#allocation2 + $0xee] sm:$0xfc] %vm2385_vm3, %v2332_v46  ;;  %v2899_v50 = vpop.permute.xlu0 %2898  ;;  %vm3149_vm3 = vcmask 392512   ;;  %v3444_v46 = vld [vmem:[#allocation4 + $0x33] ss:$2 sm:$0xff] }
 0x370   : > { %2923 = vst.msk [vmem:[#allocation5] sm:$0xff] %vm2922_vm0, %v2899_v50 }
 0x372   : > { %v2336_v63 = vpop.permute.xlu1 %2335  ;;  %v2464_v52 = vld [vmem:[#allocation2 + $0xe0] sm:$0xff]  ;;  %v2465_v32 = vld [vmem:[#allocation2 + $0xe8] sm:$0xff] }
 0x373   : > { %2435 = vst.msk [vmem:[#allocation2 + $0xfe] sm:$0x3] %vm2389_vm4, %v2336_v63  ;;  %v2482_v57 = vpack.c.bf16 %v2465_v32, %v2464_v52  ;;  %v2903_v55 = vpop.permute.xlu0 %2902  ;;  %vm2979_vm4 = vcmask 195712   ;;  %v3448_v52 = vld [vmem:[#allocation4 + $0x93] ss:$2 sm:$0xff] }
 0x374   : > { %2925 = vst.msk [vmem:[#allocation5 + $0x10] sm:$0xff] %vm2922_vm0, %v2903_v55  ;;  %v3501_v32 = vld [vmem:[#allocation4 + $0x48] ss:$2 sm:$0xff] }
 0x375   : > { %7105 = vmatprep.mubr.msk.bf16.mxu0 %vm889_vm2, %v2482_v57 }
 0x376   : > { %v2901_v51 = vpop.permute.xlu1 %2900  ;;  %v2466_v53 = vld [vmem:[#allocation2 + $0xf0] sm:$0xff] }
 0x377   : > { %2924 = vst.msk [vmem:[#allocation5 + $0x8] sm:$0xff] %vm2922_vm0, %v2901_v51  ;;  %v2956_v0 = vpop.permute.xlu0 %2955  ;;  %v3053_v51 = vld [vmem:[#allocation4 + $0xd8] ss:$2 sm:$0xff] }
 0x378   : > { %2980 = vst.msk [vmem:[#allocation5] sm:$0xff] %vm2979_vm4, %v2956_v0 }
 0x37a   : > { %v2905_v56 = vpop.permute.xlu1 %2904  ;;  %v2467_v58 = vld [vmem:[#allocation2 + $0xf8] sm:$0xff] }
 0x37b   : > { %2926 = vst.msk [vmem:[#allocation5 + $0x18] sm:$0xff] %vm2922_vm0, %v2905_v56  ;;  %v2483_v62 = vpack.c.bf16 %v2467_v58, %v2466_v53  ;;  %v2960_v2 = vpop.permute.xlu0 %2959 }
 0x37c   : > { %2982 = vst.msk [vmem:[#allocation5 + $0x10] sm:$0xff] %vm2979_vm4, %v2960_v2 }
 0x37d   : > { %7106 = vmatmul.mubr.msk.bf16.gmra.mrb[28].mxu0 %vm889_vm2, %v2483_v62  ;;  %vm3092_vm2 = vcmask 326912  }
 0x37e   : > { %v2958_v1 = vpop.permute.xlu1 %2957 }
 0x37f   : > { %2981 = vst.msk [vmem:[#allocation5 + $0x8] sm:$0xff] %vm2979_vm4, %v2958_v1  ;;  %v3013_v4 = vpop.permute.xlu0 %3012 }
 0x380   : > { %3037 = vst.msk [vmem:[#allocation5] sm:$0xff] %vm10626_vm15, %v3013_v4 }
 0x382   : > { %v2962_v3 = vpop.permute.xlu1 %2961 }
 0x383   : > { %2983 = vst.msk [vmem:[#allocation5 + $0x18] sm:$0xff] %vm2979_vm4, %v2962_v3  ;;  %v3017_v49 = vpop.permute.xlu0 %3016 }
 0x384   : > { %3039 = vst.msk [vmem:[#allocation5 + $0x10] sm:$0xff] %vm10626_vm15, %v3017_v49 }
 0x386   : > { %v3015_v5 = vpop.permute.xlu1 %3014 }
 0x387   : > { %3038 = vst.msk [vmem:[#allocation5 + $0x8] sm:$0xff] %vm10626_vm15, %v3015_v5  ;;  %v3069_v48 = vpop.permute.xlu0 %3068 }
 0x388   : > { %3093 = vst.msk [vmem:[#allocation5] sm:$0xff] %vm3092_vm2, %v3069_v48  ;;  %v2942_v48 = vld [vmem:[#allocation4 + $0xf2] ss:$2 sm:$0xff] }
 0x38a   : > { %v3019_v7 = vpop.permute.xlu1 %3018 }
 0x38b   : > { %3040 = vst.msk [vmem:[#allocation5 + $0x18] sm:$0xff] %vm10626_vm15, %v3019_v7  ;;  %v3073_v54 = vpop.permute.xlu0 %3072 }
 0x38c   : > { %3095 = vst.msk [vmem:[#allocation5 + $0x10] sm:$0xff] %vm3092_vm2, %v3073_v54  ;;  %v3336_v54 = vld [vmem:[#allocation4 + $0xc1] ss:$2 sm:$0xff] }
 0x38e   : > { %v3071_v8 = vpop.permute.xlu1 %3070 }
 0x38f   : > { %3094 = vst.msk [vmem:[#allocation5 + $0x8] sm:$0xff] %vm3092_vm2, %v3071_v8  ;;  %v3126_v10 = vpop.permute.xlu0 %3125 }
 0x390   : > { %3150 = vst.msk [vmem:[#allocation5] sm:$0xff] %vm3149_vm3, %v3126_v10  ;;  %v3389_v10 = vld [vmem:[#allocation4 + $0x62] ss:$2 sm:$0xff] }
 0x392   : > { %v3075_v6 = vpop.permute.xlu1 %3074 }
 0x393   : > { %3096 = vst.msk [vmem:[#allocation5 + $0x18] sm:$0xff] %vm3092_vm2, %v3075_v6  ;;  %v3130_v12 = vpop.permute.xlu0 %3129  ;;  %v3110_v6 = vld [vmem:[#allocation4 + $0xd9] ss:$2 sm:$0xff] }
 0x394   : > { %3152 = vst.msk [vmem:[#allocation5 + $0x10] sm:$0xff] %vm3149_vm3, %v3130_v12 }
 0x396   : > { %v3128_v9 = vpop.permute.xlu1 %3127 }
 0x397   : > { %3151 = vst.msk [vmem:[#allocation5 + $0x8] sm:$0xff] %vm3149_vm3, %v3128_v9  ;;  %v3183_v14 = vpop.permute.xlu0 %3182  ;;  %v3505_v9 = vld [vmem:[#allocation4 + $0xa8] ss:$2 sm:$0xff] }
 0x398   : > { %3207 = vst.msk [vmem:[#allocation5] sm:$0xff] %vm3206_vm10, %v3183_v14  ;;  %v2999_v14 = vld [vmem:[#allocation4 + $0xf3] ss:$2 sm:$0xff] }
 0x39a   : > { %v3132_v11 = vpop.permute.xlu1 %3131 }
 0x39b   : > { %3153 = vst.msk [vmem:[#allocation5 + $0x18] sm:$0xff] %vm3149_vm3, %v3132_v11  ;;  %v3187_v16 = vpop.permute.xlu0 %3186  ;;  %v3558_v11 = vld [vmem:[#allocation4 + $0x49] ss:$2 sm:$0xff] }
 0x39c   : > { %3209 = vst.msk [vmem:[#allocation5 + $0x10] sm:$0xff] %vm3206_vm10, %v3187_v16  ;;  %v3393_v16 = vld [vmem:[#allocation4 + $0xc2] ss:$2 sm:$0xff] }
 0x39e   : > { %v3185_v13 = vpop.permute.xlu1 %3184 }
 0x39f   : > { %3208 = vst.msk [vmem:[#allocation5 + $0x8] sm:$0xff] %vm3206_vm10, %v3185_v13  ;;  %v3240_v34 = vpop.permute.xlu0 %3239 }
 0x3a0   : > { %3264 = vst.msk [vmem:[#allocation5] sm:$0xff] %vm3263_vm8, %v3240_v34 }
 0x3a2   : > { %v3189_v15 = vpop.permute.xlu1 %3188 }
 0x3a3   : > { %3210 = vst.msk [vmem:[#allocation5 + $0x18] sm:$0xff] %vm3206_vm10, %v3189_v15  ;;  %v3244_v44 = vpop.permute.xlu0 %3243  ;;  %v3167_v15 = vld [vmem:[#allocation4 + $0xda] ss:$2 sm:$0xff] }
 0x3a4   : > { %v7099_v35 = vpop.f32.mrb[20].mxu0  ;;  %3266 = vst.msk [vmem:[#allocation5 + $0x10] sm:$0xff] %vm3263_vm8, %v3244_v44 }
 0x3a5   : > { %v2684_v17 = vadd.f32 %v9123_v43, %v7099_v35  ;;  %v2675_v19 = vpop.f32.mrb[21].mxu0  ;;  %v3446_v35 = vld [vmem:[#allocation4 + $0x63] ss:$2 sm:$0xff] }
 0x3a6   : > { %v3242_v18 = vpop.permute.xlu1 %3241  ;;  %v2676_v20 = vadd.f32 %v9123_v43, %v2675_v19  ;;  %v7100_v21 = vpop.f32.mrb[22].mxu0 }
 0x3a7   : > { %3265 = vst.msk [vmem:[#allocation5 + $0x8] sm:$0xff] %vm3263_vm8, %v3242_v18  ;;  %v2744_v39 = vmax.f32 %v2684_v17, 0.0  ;;  %v2687_v22 = vadd.f32 %v9123_v43, %v7100_v21  ;;  %v2678_v45 = vpop.f32.mrb[23].mxu0  ;;  %v3297_v60 = vpop.permute.xlu0 %3296  ;;  %v3562_v18 = vld [vmem:[#allocation4 + $0xa9] ss:$2 sm:$0xff] }
 0x3a8   : > { %v2742_v24 = vmax.f32 %v2676_v20, 0.0  ;;  %v2679_v26 = vadd.f32 %v9123_v43, %v2678_v45  ;;  %3321 = vst.msk [vmem:[#allocation5] sm:$0xff] %vm3320_vm13, %v3297_v60  ;;  %v3615_v17 = vld [vmem:[#allocation4 + $0x4a] ss:$2 sm:$0xff]  ;;  %v3450_v45 = vld [vmem:[#allocation4 + $0xc3] ss:$2 sm:$0xff] }
 0x3a9   : > { %2833 = vst.msk [vmem:[#allocation4 + $0x121] sm:$0xff] %vm10854_vm6, %v2744_v39  ;;  %v2745_v23 = vmax.f32 %v2687_v22, 0.0  ;;  %vm10859_vm6 = vmmov %vm10855_vm5  ;;  %v3224_v22 = vld [vmem:[#allocation4 + $0xdb] ss:$2 sm:$0xff] }
 0x3aa   : > { %v3246_v38 = vpop.permute.xlu1 %3245  ;;  %2831 = vst.msk [vmem:[#allocation4 + $0x109] sm:$0xff] %vm10855_vm5, %v2742_v24  ;;  %v2743_v27 = vmax.f32 %v2679_v26, 0.0  ;;  %v3619_v24 = vld [vmem:[#allocation4 + $0xaa] ss:$2 sm:$0xff] }
 0x3ab   : > { %3267 = vst.msk [vmem:[#allocation5 + $0x18] sm:$0xff] %vm3263_vm8, %v3246_v38  ;;  %v2907_v61 = vpop.permute.xlu0 %2906 }
 0x3ac   : > { %2834 = vst.msk [vmem:[#allocation4 + $0x129] sm:$0xff] %vm10856_vm14, %v2745_v23  ;;  %vm10860_vm14 = vmmov %vm10855_vm5  ;;  %v3503_v23 = vld [vmem:[#allocation4 + $0x78] ss:$2 sm:$0xff] }
 0x3ad   : > { %2832 = vst.msk [vmem:[#allocation4 + $0x111] sm:$0xff] %vm10857_vm11, %v2743_v27  ;;  %vm10861_vm11 = vmmov %vm10855_vm5  ;;  %v3672_v27 = vld [vmem:[#allocation4 + $0x4b] ss:$2 sm:$0xff] }
 0x3ae   : > { %v3299_v28 = vpop.permute.xlu1 %3298  ;;  %2927 = vst.msk [vmem:[#allocation5 + $0x20] sm:$0xff] %vm2922_vm0, %v2907_v61 }
 0x3af   : > { %3322 = vst.msk [vmem:[#allocation5 + $0x8] sm:$0xff] %vm3320_vm13, %v3299_v28  ;;  %v3301_v30 = vpop.permute.xlu0 %3300 }
 0x3b0   : > { %3323 = vst.msk [vmem:[#allocation5 + $0x10] sm:$0xff] %vm3320_vm13, %v3301_v30 }
 0x3b3   : > { %v2887_v29 = vld [vmem:[#allocation4 + $0x121] ss:$2 sm:$0xff]  ;;  %v2863_v31 = vld [vmem:[#allocation4 + $0x120] ss:$2 sm:$0xff]  ;;  %v3354_v37 = vpop.permute.xlu0 %3353 }
 0x3b4   : > { %2910 = vrot.lane.b32.xlu0 %v2887_v29, %s10604_s1  ;;  %2872 = vst.msk [vmem:[#allocation5 + $0x30] sm:$0xff] %vm10858_vm9, %v2863_v31  ;;  %v2944_v33 = vld [vmem:[#allocation4 + $0x122] ss:$2 sm:$0xff]  ;;  %v3001_v63 = vld [vmem:[#allocation4 + $0x123] ss:$2 sm:$0xff]  ;;  %vm10862_vm9 = vmmov %vm10855_vm5 }
 0x3b5   : > { %3378 = vst.msk [vmem:[#allocation5] sm:$0xff] %vm3377_vm12, %v3354_v37  ;;  %v3055_v39 = vld [vmem:[#allocation4 + $0x108] ss:$2 sm:$0xff]  ;;  %v3676_v31 = vld [vmem:[#allocation4 + $0xab] ss:$2 sm:$0xff]  ;;  %vm10864_vm7 = vmmov %vm10862_vm9 }
 0x3b6   : > { %v3281_v29 = vld [vmem:[#allocation4 + $0xf0] ss:$2 sm:$0xff]  ;;  %vm10865_vm1 = vmmov %vm10864_vm7 }
 0x3b8   : > { %2963 = vrot.lane.b32.xlu0 %v2940_v36, %s10606_s24 }
 0x3bc   : > { %3357 = vrot.lane.b32.xlu0 %v3334_v25, %s10624_s23 }
 0x3c0   : > { %3410 = vrot.lane.b32.xlu0 %v3387_v40, %s10616_s22  ;;  %v3338_v40 = vld [vmem:[#allocation4 + $0xf1] ss:$2 sm:$0xff] }
 0x3c4   : > { %2967 = vrot.lane.b32.xlu0 %v2944_v33, %s10606_s24 }
 0x3c8   : > { %3020 = vrot.lane.b32.xlu0 %v2997_v59, %s10608_s25 }
 0x3cc   : > { %3414 = vrot.lane.b32.xlu0 %v3391_v41, %s10616_s22 }
 0x3ce   : > { %v2909_v42 = vpop.permute.xlu1 %2908 }
 0x3cf   : > { %2928 = vst.msk [vmem:[#allocation5 + $0x28] sm:$0xff] %vm2922_vm0, %v2909_v42 }
 0x3d0   : > { %3467 = vrot.lane.b32.xlu0 %v3444_v46, %s10614_s5 }
 0x3d2   : > { %v3303_v47 = vpop.permute.xlu1 %3302 }
 0x3d3   : > { %3324 = vst.msk [vmem:[#allocation5 + $0x18] sm:$0xff] %vm3320_vm13, %v3303_v47 }
 0x3d4   : > { %3024 = vrot.lane.b32.xlu0 %v3001_v63, %s10608_s25 }
 0x3d6   : > { %v3356_v50 = vpop.permute.xlu1 %3355 }
 0x3d7   : > { %3379 = vst.msk [vmem:[#allocation5 + $0x8] sm:$0xff] %vm3377_vm12, %v3356_v50 }
 0x3d8   : > { %3076 = vrot.lane.b32.xlu0 %v3053_v51, %s10612_s2 }
 0x3dc   : > { %3471 = vrot.lane.b32.xlu0 %v3448_v52, %s10614_s5 }
 0x3e0   : > { %3524 = vrot.lane.b32.xlu0 %v3501_v32, %s10620_s30 }
 0x3fc   : > { %v7103_v57 = vpop.f32.mrb[24].mxu0 }
 0x3fd   : > { %v2700_v55 = vadd.f32 %v9123_v43, %v7103_v57  ;;  %v2691_v56 = vpop.f32.mrb[25].mxu0 }
 0x3fe   : > { %v2692_v53 = vadd.f32 %v9123_v43, %v2691_v56  ;;  %v7104_v58 = vpop.f32.mrb[26].mxu0 }
 0x3ff   : > { %v2748_v62 = vmax.f32 %v2700_v55, 0.0  ;;  %v2703_v0 = vadd.f32 %v9123_v43, %v7104_v58  ;;  %v2694_v1 = vpop.f32.mrb[27].mxu0  ;;  %v3395_v58 = vld [vmem:[#allocation4 + $0xf2] ss:$2 sm:$0xff] }
 0x400   : > { %v2746_v2 = vmax.f32 %v2692_v53, 0.0  ;;  %v2695_v3 = vadd.f32 %v9123_v43, %v2694_v1  ;;  %v3112_v1 = vld [vmem:[#allocation4 + $0x109] ss:$2 sm:$0xff] }
 0x401   : > { %2837 = vst.msk [vmem:[#allocation4 + $0x151] sm:$0xff] %vm10859_vm6, %v2748_v62  ;;  %v2749_v4 = vmax.f32 %v2703_v0, 0.0  ;;  %vm3434_vm6 = vcmask 720512   ;;  %v3452_v0 = vld [vmem:[#allocation4 + $0xf3] ss:$2 sm:$0xff] }
 0x402   : > { %2835 = vst.msk [vmem:[#allocation4 + $0x139] sm:$0xff] %vm10855_vm5, %v2746_v2  ;;  %v2747_v5 = vmax.f32 %v2695_v3, 0.0  ;;  %vm3491_vm5 = vcmask 786112   ;;  %v3507_v3 = vld [vmem:[#allocation4 + $0xd8] ss:$2 sm:$0xff] }
 0x403   : > { %2838 = vst.msk [vmem:[#allocation4 + $0x159] sm:$0xff] %vm10860_vm14, %v2749_v4  ;;  %vm3548_vm14 = vcmask 851712   ;;  %v3509_v4 = vld [vmem:[#allocation4 + $0x108] ss:$2 sm:$0xff] }
 0x404   : > { %2836 = vst.msk [vmem:[#allocation4 + $0x141] sm:$0xff] %vm10861_vm11, %v2747_v5  ;;  %vm10863_vm11 = vmmov %vm10862_vm9  ;;  %v3560_v5 = vld [vmem:[#allocation4 + $0x79] ss:$2 sm:$0xff] }
 0x40a   : > { %v2889_v49 = vld [vmem:[#allocation4 + $0x151] ss:$2 sm:$0xff]  ;;  %v2865_v8 = vld [vmem:[#allocation4 + $0x150] ss:$2 sm:$0xff] }
 0x40b   : > { %2912 = vrot.lane.b32.xlu1 %v2889_v49, %s10604_s1  ;;  %v3057_v7 = vld [vmem:[#allocation4 + $0x138] ss:$2 sm:$0xff]  ;;  %2873 = vst.msk [vmem:[#allocation5 + $0x38] sm:$0xff] %vm10862_vm9, %v2865_v8  ;;  %s10630_s1 = smov 104   ;;  %v3114_v13 = vld [vmem:[#allocation4 + $0x139] ss:$2 sm:$0xff] }
 0x40c   : > { %3080 = vrot.lane.b32.xlu0 %v3057_v7, %s10612_s2  ;;  %v2946_v12 = vld [vmem:[#allocation4 + $0x152] ss:$2 sm:$0xff]  ;;  %v3003_v20 = vld [vmem:[#allocation4 + $0x153] ss:$2 sm:$0xff] }
 0x40d   : > { %v3171_v21 = vld [vmem:[#allocation4 + $0x13a] ss:$2 sm:$0xff]  ;;  %v3228_v60 = vld [vmem:[#allocation4 + $0x13b] ss:$2 sm:$0xff] }
 0x40e   : > { %v3285_v37 = vld [vmem:[#allocation4 + $0x150] ss:$2 sm:$0xff]  ;;  %v3342_v52 = vld [vmem:[#allocation4 + $0x151] ss:$2 sm:$0xff] }
 0x40f   : > { %2965 = vrot.lane.b32.xlu1 %v2942_v48, %s10606_s24  ;;  %v3399_v62 = vld [vmem:[#allocation4 + $0x152] ss:$2 sm:$0xff]  ;;  %v3456_v2 = vld [vmem:[#allocation4 + $0x153] ss:$2 sm:$0xff] }
 0x410   : > { %3133 = vrot.lane.b32.xlu0 %v3110_v6, %s10618_s0  ;;  %v3566_v8 = vld [vmem:[#allocation4 + $0x109] ss:$2 sm:$0xff]  ;;  %v3169_v48 = vld [vmem:[#allocation4 + $0x10a] ss:$2 sm:$0xff] }
 0x413   : > { %3359 = vrot.lane.b32.xlu1 %v3336_v54, %s10624_s23 }
 0x414   : > { %3528 = vrot.lane.b32.xlu0 %v3505_v9, %s10620_s30  ;;  %v3564_v9 = vld [vmem:[#allocation4 + $0xd9] ss:$2 sm:$0xff] }
 0x417   : > { %3412 = vrot.lane.b32.xlu1 %v3389_v10, %s10616_s22  ;;  %v3623_v10 = vld [vmem:[#allocation4 + $0x10a] ss:$2 sm:$0xff] }
 0x418   : > { %3581 = vrot.lane.b32.xlu0 %v3558_v11, %s10630_s1 }
 0x41b   : > { %2969 = vrot.lane.b32.xlu1 %v2946_v12, %s10606_s24  ;;  %s10628_s24 = smov 112   ;;  %v3617_v12 = vld [vmem:[#allocation4 + $0x7a] ss:$2 sm:$0xff] }
 0x41c   : > { %3137 = vrot.lane.b32.xlu0 %v3114_v13, %s10618_s0 }
 0x41f   : > { %3022 = vrot.lane.b32.xlu1 %v2999_v14, %s10608_s25 }
 0x420   : > { %3190 = vrot.lane.b32.xlu0 %v3167_v15, %s10622_s20 }
 0x423   : > { %3416 = vrot.lane.b32.xlu1 %v3393_v16, %s10616_s22  ;;  %v3680_v16 = vld [vmem:[#allocation4 + $0x10b] ss:$2 sm:$0xff] }
 0x424   : > { %3585 = vrot.lane.b32.xlu0 %v3562_v18, %s10630_s1 }
 0x426   : > { %v2911_v34 = vpop.permute.xlu0 %2910 }
 0x427   : > { %2929 = vst.msk [vmem:[#allocation5 + $0x30] sm:$0xff] %vm2922_vm0, %v2911_v34  ;;  %3469 = vrot.lane.b32.xlu1 %v3446_v35, %s10614_s5 }
 0x428   : > { %3638 = vrot.lane.b32.xlu0 %v3615_v17, %s10628_s24  ;;  %v3226_v17 = vld [vmem:[#allocation4 + $0x10b] ss:$2 sm:$0xff] }
 0x42a   : > { %v2964_v19 = vpop.permute.xlu0 %2963 }
 0x42b   : > { %2984 = vst.msk [vmem:[#allocation5 + $0x20] sm:$0xff] %vm2979_vm4, %v2964_v19  ;;  %3026 = vrot.lane.b32.xlu1 %v3003_v20, %s10608_s25  ;;  %s10634_s25 = smov 120  }
 0x42c   : > { %3194 = vrot.lane.b32.xlu0 %v3171_v21, %s10622_s20 }
 0x42e   : > { %v3358_v38 = vpop.permute.xlu0 %3357 }
 0x42f   : > { %3380 = vst.msk [vmem:[#allocation5 + $0x10] sm:$0xff] %vm3377_vm12, %v3358_v38  ;;  %3078 = vrot.lane.b32.xlu1 %v3055_v39, %s10612_s2  ;;  %v3910_v38 = vld [vmem:[#allocation3 + $0x1a] ss:$2 sm:$0xff] }
 0x430   : > { %3247 = vrot.lane.b32.xlu0 %v3224_v22, %s10640_s3  ;;  %v3621_v22 = vld [vmem:[#allocation4 + $0xda] ss:$2 sm:$0xff] }
 0x432   : > { %v3411_v44 = vpop.permute.xlu0 %3410 }
 0x433   : > { %3435 = vst.msk [vmem:[#allocation5] sm:$0xff] %vm3434_vm6, %v3411_v44  ;;  %3473 = vrot.lane.b32.xlu1 %v3450_v45, %s10614_s5 }
 0x434   : > { %3642 = vrot.lane.b32.xlu0 %v3619_v24, %s10628_s24  ;;  %v3914_v24 = vld [vmem:[#allocation3 + $0x7a] ss:$2 sm:$0xff] }
 0x436   : > { %v2968_v26 = vpop.permute.xlu0 %2967 }
 0x437   : > { %2986 = vst.msk [vmem:[#allocation5 + $0x30] sm:$0xff] %vm2979_vm4, %v2968_v26  ;;  %3526 = vrot.lane.b32.xlu1 %v3503_v23, %s10620_s30  ;;  %v3674_v23 = vld [vmem:[#allocation4 + $0x7b] ss:$2 sm:$0xff] }
 0x438   : > { %3695 = vrot.lane.b32.xlu0 %v3672_v27, %s10634_s25 }
 0x43a   : > { %v3021_v28 = vpop.permute.xlu0 %3020 }
 0x43b   : > { %3041 = vst.msk [vmem:[#allocation5 + $0x20] sm:$0xff] %vm10626_vm15, %v3021_v28 }
 0x43c   : > { %3251 = vrot.lane.b32.xlu0 %v3228_v60, %s10640_s3  ;;  %v3967_v60 = vld [vmem:[#allocation3 + $0x31] ss:$2 sm:$0xff] }
 0x43e   : > { %v3415_v61 = vpop.permute.xlu0 %3414 }
 0x43f   : > { %3437 = vst.msk [vmem:[#allocation5 + $0x10] sm:$0xff] %vm3434_vm6, %v3415_v61 }
 0x440   : > { %3304 = vrot.lane.b32.xlu0 %v3281_v29, %s10632_s4 }
 0x442   : > { %v3468_v30 = vpop.permute.xlu0 %3467 }
 0x443   : > { %3492 = vst.msk [vmem:[#allocation5] sm:$0xff] %vm3491_vm5, %v3468_v30 }
 0x444   : > { %3699 = vrot.lane.b32.xlu0 %v3676_v31, %s10634_s25 }
 0x446   : > { %v3025_v36 = vpop.permute.xlu0 %3024 }
 0x447   : > { %3043 = vst.msk [vmem:[#allocation5 + $0x30] sm:$0xff] %vm10626_vm15, %v3025_v36  ;;  %v3971_v36 = vld [vmem:[#allocation3 + $0x91] ss:$2 sm:$0xff] }
 0x448   : > { %3308 = vrot.lane.b32.xlu0 %v3285_v37, %s10632_s4 }
 0x44a   : > { %v3077_v25 = vpop.permute.xlu0 %3076 }
 0x44b   : > { %3097 = vst.msk [vmem:[#allocation5 + $0x20] sm:$0xff] %vm3092_vm2, %v3077_v25  ;;  %v3283_v25 = vld [vmem:[#allocation4 + $0x120] ss:$2 sm:$0xff] }
 0x44c   : > { %3361 = vrot.lane.b32.xlu0 %v3338_v40, %s10624_s23 }
 0x44e   : > { %v3472_v42 = vpop.permute.xlu0 %3471 }
 0x44f   : > { %3494 = vst.msk [vmem:[#allocation5 + $0x10] sm:$0xff] %vm3491_vm5, %v3472_v42 }
 0x450   : > { %v7107_v33 = vpop.f32.mrb[28].mxu0  ;;  %3365 = vrot.lane.b32.xlu0 %v3342_v52, %s10624_s23 }
 0x451   : > { %v2716_v59 = vadd.f32 %v9123_v43, %v7107_v33  ;;  %v2707_v41 = vpop.f32.mrb[29].mxu0  ;;  %v4023_v33 = vld [vmem:[#allocation3 + $0x32] ss:$2 sm:$0xff] }
 0x452   : > { %v2708_v46 = vadd.f32 %v9123_v43, %v2707_v41  ;;  %v7108_v47 = vpop.f32.mrb[30].mxu0  ;;  %v3525_v56 = vpop.permute.xlu0 %3524  ;;  %v3678_v41 = vld [vmem:[#allocation4 + $0xdb] ss:$2 sm:$0xff] }
 0x453   : > { %v2752_v63 = vmax.f32 %v2716_v59, 0.0  ;;  %v2719_v50 = vadd.f32 %v9123_v43, %v7108_v47  ;;  %v2710_v51 = vpop.f32.mrb[31].mxu0  ;;  %3549 = vst.msk [vmem:[#allocation5] sm:$0xff] %vm3548_vm14, %v3525_v56 }
 0x454   : > { %v2750_v32 = vmax.f32 %v2708_v46, 0.0  ;;  %v2711_v57 = vadd.f32 %v9123_v43, %v2710_v51  ;;  %3418 = vrot.lane.b32.xlu0 %v3395_v58, %s10616_s22  ;;  %v4027_v46 = vld [vmem:[#allocation3 + $0x92] ss:$2 sm:$0xff] }
 0x455   : > { %2841 = vst.msk [vmem:[#allocation4 + $0x181] sm:$0xff] %vm10863_vm11, %v2752_v63  ;;  %v2753_v55 = vmax.f32 %v2719_v50, 0.0  ;;  %v3918_v51 = vld [vmem:[#allocation3 + $0xda] ss:$2 sm:$0xff]  ;;  %vm10873_vm11 = vcmask 23552  }
 0x456   : > { %2839 = vst.msk [vmem:[#allocation4 + $0x169] sm:$0xff] %vm10862_vm9, %v2750_v32  ;;  %v2751_v53 = vmax.f32 %v2711_v57, 0.0  ;;  %v3340_v32 = vld [vmem:[#allocation4 + $0x121] ss:$2 sm:$0xff]  ;;  %vm10874_vm9 = vmmov %vm10873_vm11 }
 0x457   : > { %2842 = vst.msk [vmem:[#allocation4 + $0x189] sm:$0xff] %vm10864_vm7, %v2753_v55  ;;  %vm3662_vm7 = vcmask 982912   ;;  %v3922_v55 = vld [vmem:[#allocation3 + $0x13a] ss:$2 sm:$0xff] }
 0x458   : > { %2840 = vst.msk [vmem:[#allocation4 + $0x171] sm:$0xff] %vm10865_vm1, %v2751_v53  ;;  %3422 = vrot.lane.b32.xlu0 %v3399_v62, %s10616_s22  ;;  %s10866_s22 = sld [smem:[#allocation22_spill]]  ;;  %vm3605_vm1 = vcmask 917312   ;;  %v3975_v62 = vld [vmem:[#allocation3 + $0xf1] ss:$2 sm:$0xff] }
 0x45c   : > { %3475 = vrot.lane.b32.xlu0 %v3452_v0, %s10614_s5  ;;  %v3397_v0 = vld [vmem:[#allocation4 + $0x122] ss:$2 sm:$0xff] }
 0x45e   : > { %v7275_v54 = vld [vmem:[%s10866_s22] sm:$0xff]   ;;  %v7276_v11 = vld [vmem:[%s10866_s22 + $0x8] sm:$0xff]   ;;  %v7277_v14 = vld [vmem:[%s10866_s22 + $0x10] sm:$0xff]  }
 0x45f   : > { %v3059_v43 = vld [vmem:[#allocation4 + $0x168] ss:$2 sm:$0xff]  ;;  %v3116_v7 = vld [vmem:[#allocation4 + $0x169] ss:$2 sm:$0xff]  ;;  %7109 = vmatprep.subr.bf16.mxu1 %v7275_v54  ;;  %v7280_v44 = vld [vmem:[%s10866_s22 + $0x28] sm:$0xff]  }
 0x460   : > { %3082 = vrot.lane.b32.xlu1 %v3059_v43, %s10612_s2  ;;  %3479 = vrot.lane.b32.xlu0 %v3456_v2, %s10614_s5  ;;  %v3513_v49 = vld [vmem:[#allocation4 + $0x168] ss:$2 sm:$0xff]  ;;  %v3570_v6 = vld [vmem:[#allocation4 + $0x169] ss:$2 sm:$0xff]  ;;  %v7281_v27 = vld [vmem:[%s10866_s22 + $0x30] sm:$0xff]   ;;  %s10868_s5 = smov 6  }
 0x461   : > { %7110 = vmatpush3.bf16.msra.mxu1 %v7275_v54  ;;  %v3627_v13 = vld [vmem:[#allocation4 + $0x16a] ss:$2 sm:$0xff]  ;;  %v3684_v19 = vld [vmem:[#allocation4 + $0x16b] ss:$2 sm:$0xff]  ;;  %s10869_s2 = smov 9  }
 0x462   : > { %7111 = vmatprep.subr.bf16.mxu1 %v7276_v11  ;;  %v3173_v15 = vld [vmem:[#allocation4 + $0x16a] ss:$2 sm:$0xff]  ;;  %v3230_v29 = vld [vmem:[#allocation4 + $0x16b] ss:$2 sm:$0xff] }
 0x463   : > { %v7278_v18 = vld [vmem:[%s10866_s22 + $0x18] sm:$0xff]   ;;  %v7279_v20 = vld [vmem:[%s10866_s22 + $0x20] sm:$0xff]  }
 0x464   : > { %3135 = vrot.lane.b32.xlu1 %v3112_v1, %s10618_s0  ;;  %3532 = vrot.lane.b32.xlu0 %v3509_v4, %s10620_s30  ;;  %v7282_v30 = vld [vmem:[%s10866_s22 + $0x38] sm:$0xff]   ;;  %s10956_s22 = smov 72  }
 0x465   : > { %7112 = vmatpush3.bf16.msra.mxu1 %v7276_v11  ;;  %v3287_v63 = vld [vmem:[#allocation4 + $0x180] ss:$2 sm:$0xff]  ;;  %v3344_v53 = vld [vmem:[#allocation4 + $0x181] ss:$2 sm:$0xff] }
 0x466   : > { %7113 = vmatprep.subr.bf16.mxu1 %v7277_v14  ;;  %v3979_v2 = vld [vmem:[#allocation3 + $0x151] ss:$2 sm:$0xff]  ;;  %v3401_v4 = vld [vmem:[#allocation4 + $0x182] ss:$2 sm:$0xff] }
 0x467   : > { %v3458_v54 = vld [vmem:[#allocation4 + $0x183] ss:$2 sm:$0xff]  ;;  %v3515_v11 = vld [vmem:[#allocation4 + $0x198] ss:$2 sm:$0xff] }
 0x468   : > { %3530 = vrot.lane.b32.xlu1 %v3507_v3, %s10620_s30  ;;  %3536 = vrot.lane.b32.xlu0 %v3513_v49, %s10620_s30  ;;  %s10870_s30 = smov 80   ;;  %v4031_v49 = vld [vmem:[#allocation3 + $0xf2] ss:$2 sm:$0xff] }
 0x469   : > { %7114 = vmatpush3.bf16.msra.mxu1 %v7277_v14  ;;  %v3568_v14 = vld [vmem:[#allocation4 + $0x139] ss:$2 sm:$0xff] }
 0x46a   : > { %7115 = vmatprep.subr.bf16.mxu1 %v7278_v18 }
 0x46c   : > { %3583 = vrot.lane.b32.xlu1 %v3560_v5, %s10630_s1  ;;  %3589 = vrot.lane.b32.xlu0 %v3566_v8, %s10630_s1  ;;  %v3454_v8 = vld [vmem:[#allocation4 + $0x123] ss:$2 sm:$0xff] }
 0x46d   : > { %7116 = vmatpush3.bf16.msra.mxu1 %v7278_v18 }
 0x46e   : > { %7117 = vmatprep.subr.bf16.mxu1 %v7279_v20 }
 0x470   : > { %3139 = vrot.lane.b32.xlu1 %v3116_v7, %s10618_s0  ;;  %3593 = vrot.lane.b32.xlu0 %v3570_v6, %s10630_s1  ;;  %s10871_s0 = smov 88  }
 0x471   : > { %7118 = vmatpush3.bf16.msra.mxu1 %v7279_v20 }
 0x472   : > { %7119 = vmatprep.subr.bf16.mxu1 %v7280_v44 }
 0x474   : > { %3192 = vrot.lane.b32.xlu1 %v3169_v48, %s10622_s20  ;;  %3646 = vrot.lane.b32.xlu0 %v3623_v10, %s10628_s24  ;;  %v4035_v48 = vld [vmem:[#allocation3 + $0x152] ss:$2 sm:$0xff] }
 0x475   : > { %7120 = vmatpush3.bf16.msra.mxu1 %v7280_v44  ;;  %v3511_v10 = vld [vmem:[#allocation4 + $0x138] ss:$2 sm:$0xff]  ;;  %v3890_v44 = vld [vmem:[#allocation3 + $0x79] ss:$2 sm:$0xff] }
 0x476   : > { %7121 = vmatprep.subr.bf16.mxu1 %v7281_v27 }
 0x478   : > { %3587 = vrot.lane.b32.xlu1 %v3564_v9, %s10630_s1  ;;  %3650 = vrot.lane.b32.xlu0 %v3627_v13, %s10628_s24 }
 0x479   : > { %7122 = vmatpush3.bf16.msra.mxu1 %v7281_v27 }
 0x47a   : > { %7123 = vmatprep.subr.bf16.mxu1 %v7282_v30 }
 0x47c   : > { %3640 = vrot.lane.b32.xlu1 %v3617_v12, %s10628_s24  ;;  %3703 = vrot.lane.b32.xlu0 %v3680_v16, %s10634_s25 }
 0x47d   : > { %v2913_v34 = vpop.permute.xlu1 %2912  ;;  %7124 = vmatpush3.bf16.msra.mxu1 %v7282_v30 }
 0x47e   : > { %2930 = vst.msk [vmem:[#allocation5 + $0x38] sm:$0xff] %vm2922_vm0, %v2913_v34  ;;  %v3081_v35 = vpop.permute.xlu0 %3080  ;;  %vm3719_vm0 = vcmask 1048512   ;;  %v3625_v34 = vld [vmem:[#allocation4 + $0x13a] ss:$2 sm:$0xff] }
 0x47f   : > { %3099 = vst.msk [vmem:[#allocation5 + $0x30] sm:$0xff] %vm3092_vm2, %v3081_v35  ;;  %v3888_v35 = vld [vmem:[#allocation3 + $0x49] ss:$2 sm:$0xff] }
 0x480   : > { %3196 = vrot.lane.b32.xlu1 %v3173_v15, %s10622_s20  ;;  %3707 = vrot.lane.b32.xlu0 %v3684_v19, %s10634_s25  ;;  %s10867_s20 = smov 3   ;;  %v3572_v15 = vld [vmem:[#allocation4 + $0x199] ss:$2 sm:$0xff]  ;;  %v3629_v19 = vld [vmem:[#allocation4 + $0x19a] ss:$2 sm:$0xff] }
 0x481   : > { %v2966_v21 = vpop.permute.xlu1 %2965 }
 0x482   : > { %2985 = vst.msk [vmem:[#allocation5 + $0x28] sm:$0xff] %vm2979_vm4, %v2966_v21  ;;  %v3134_v39 = vpop.permute.xlu0 %3133  ;;  %v3886_v21 = vld [vmem:[#allocation3 + $0x19] ss:$2 sm:$0xff] }
 0x483   : > { %3154 = vst.msk [vmem:[#allocation5 + $0x20] sm:$0xff] %vm3149_vm3, %v3134_v39 }
 0x484   : > { %3249 = vrot.lane.b32.xlu1 %v3226_v17, %s10640_s3  ;;  %3933 = vrot.lane.b32.xlu0 %v3910_v38, %s10867_s20  ;;  %v9471_v17 = vld [vmem:[#allocation10] sm:$0xff]  ;;  %v3892_v38 = vld [vmem:[#allocation3 + $0xa9] ss:$2 sm:$0xff] }
 0x485   : > { %v3360_v45 = vpop.permute.xlu1 %3359 }
 0x486   : > { %3381 = vst.msk [vmem:[#allocation5 + $0x18] sm:$0xff] %vm3377_vm12, %v3360_v45  ;;  %v3529_v26 = vpop.permute.xlu0 %3528  ;;  %v3686_v45 = vld [vmem:[#allocation4 + $0x19b] ss:$2 sm:$0xff] }
 0x487   : > { %3551 = vst.msk [vmem:[#allocation5 + $0x10] sm:$0xff] %vm3548_vm14, %v3529_v26 }
 0x488   : > { %3644 = vrot.lane.b32.xlu1 %v3621_v22, %s10628_s24  ;;  %3937 = vrot.lane.b32.xlu0 %v3914_v24, %s10867_s20  ;;  %v3682_v22 = vld [vmem:[#allocation4 + $0x13b] ss:$2 sm:$0xff] }
 0x489   : > { %v3413_v28 = vpop.permute.xlu1 %3412 }
 0x48a   : > { %3436 = vst.msk [vmem:[#allocation5 + $0x8] sm:$0xff] %vm3434_vm6, %v3413_v28  ;;  %v3582_v61 = vpop.permute.xlu0 %3581 }
 0x48b   : > { %3606 = vst.msk [vmem:[#allocation5] sm:$0xff] %vm3605_vm1, %v3582_v61  ;;  %v3916_v61 = vld [vmem:[#allocation3 + $0xaa] ss:$2 sm:$0xff] }
 0x48c   : > { %3697 = vrot.lane.b32.xlu1 %v3674_v23, %s10634_s25  ;;  %3990 = vrot.lane.b32.xlu0 %v3967_v60, %s10868_s5  ;;  %v3912_v23 = vld [vmem:[#allocation3 + $0x4a] ss:$2 sm:$0xff] }
 0x48d   : > { %v2970_v31 = vpop.permute.xlu1 %2969 }
 0x48e   : > { %2987 = vst.msk [vmem:[#allocation5 + $0x38] sm:$0xff] %vm2979_vm4, %v2970_v31  ;;  %v3138_v37 = vpop.permute.xlu0 %3137  ;;  %vm10627_vm4 = vcmask 97280   ;;  %v3969_v31 = vld [vmem:[#allocation3 + $0x61] ss:$2 sm:$0xff] }
 0x48f   : > { %3156 = vst.msk [vmem:[#allocation5 + $0x30] sm:$0xff] %vm3149_vm3, %v3138_v37 }
 0x490   : > { %3253 = vrot.lane.b32.xlu1 %v3230_v29, %s10640_s3  ;;  %3994 = vrot.lane.b32.xlu0 %v3971_v36, %s10868_s5  ;;  %3878 = vst.msk [vmem:[#allocation6 + $0x8] sm:$0xff] %vm10627_vm4, %v9471_v17  ;;  %3877 = vst.msk [vmem:[#allocation6] sm:$0xff] %vm10627_vm4, %v9471_v17 }
 0x491   : > { %v3023_v40 = vpop.permute.xlu1 %3022  ;;  %3879 = vst.msk [vmem:[#allocation6 + $0x10] sm:$0xff] %vm10627_vm4, %v9471_v17  ;;  %3880 = vst.msk [vmem:[#allocation6 + $0x18] sm:$0xff] %vm10627_vm4, %v9471_v17 }
 0x492   : > { %3042 = vst.msk [vmem:[#allocation5 + $0x28] sm:$0xff] %vm10626_vm15, %v3023_v40  ;;  %v3191_v59 = vpop.permute.xlu0 %3190  ;;  %v3973_v40 = vld [vmem:[#allocation3 + $0xc1] ss:$2 sm:$0xff] }
 0x493   : > { %3211 = vst.msk [vmem:[#allocation5 + $0x20] sm:$0xff] %vm3206_vm10, %v3191_v59 }
 0x494   : > { %3306 = vrot.lane.b32.xlu1 %v3283_v25, %s10632_s4  ;;  %4046 = vrot.lane.b32.xlu0 %v4023_v33, %s10869_s2  ;;  %3881 = vst.msk [vmem:[#allocation6 + $0x20] sm:$0xff] %vm10627_vm4, %v9471_v17  ;;  %3882 = vst.msk [vmem:[#allocation6 + $0x28] sm:$0xff] %vm10627_vm4, %v9471_v17  ;;  %v3896_v25 = vld [vmem:[#allocation3 + $0x109] ss:$2 sm:$0xff] }
 0x495   : > { %v3417_v42 = vpop.permute.xlu1 %3416  ;;  %3883 = vst.msk [vmem:[#allocation6 + $0x30] sm:$0xff] %vm10627_vm4, %v9471_v17  ;;  %3884 = vst.msk [vmem:[#allocation6 + $0x38] sm:$0xff] %vm10627_vm4, %v9471_v17 }
 0x496   : > { %3438 = vst.msk [vmem:[#allocation5 + $0x18] sm:$0xff] %vm3434_vm6, %v3417_v42  ;;  %v3586_v47 = vpop.permute.xlu0 %3585  ;;  %vm10876_vm4 = vmmov %vm10874_vm9  ;;  %v4025_v42 = vld [vmem:[#allocation3 + $0x62] ss:$2 sm:$0xff] }
 0x497   : > { %3608 = vst.msk [vmem:[#allocation5 + $0x10] sm:$0xff] %vm3605_vm1, %v3586_v47 }
 0x498   : > { %3701 = vrot.lane.b32.xlu1 %v3678_v41, %s10634_s25  ;;  %4050 = vrot.lane.b32.xlu0 %v4027_v46, %s10869_s2  ;;  %3902 = vst.msk [vmem:[#allocation6 + $0x8] sm:$0xff] %vm10873_vm11, %v3888_v35  ;;  %v3894_v41 = vld [vmem:[#allocation3 + $0xd9] ss:$2 sm:$0xff]  ;;  %v3900_v46 = vld [vmem:[#allocation3 + $0x169] ss:$2 sm:$0xff] }
 0x499   : > { %v3470_v50 = vpop.permute.xlu1 %3469  ;;  %3901 = vst.msk [vmem:[#allocation6] sm:$0xff] %vm10874_vm9, %v3886_v21 }
 0x49a   : > { %3493 = vst.msk [vmem:[#allocation5 + $0x8] sm:$0xff] %vm3491_vm5, %v3470_v50  ;;  %v3639_v52 = vpop.permute.xlu0 %3638  ;;  %v3898_v50 = vld [vmem:[#allocation3 + $0x139] ss:$2 sm:$0xff] }
 0x49b   : > { %3663 = vst.msk [vmem:[#allocation5] sm:$0xff] %vm3662_vm7, %v3639_v52 }
 0x49c   : > { %3310 = vrot.lane.b32.xlu1 %v3287_v63, %s10632_s4  ;;  %3941 = vrot.lane.b32.xlu0 %v3918_v51, %s10867_s20  ;;  %3903 = vst.msk [vmem:[#allocation6 + $0x10] sm:$0xff] %vm10876_vm4, %v3890_v44  ;;  %s10877_s4 = sld [smem:[#allocation24_spill]]  ;;  %v4029_v51 = vld [vmem:[#allocation3 + $0xc2] ss:$2 sm:$0xff] }
 0x49d   : > { %v3027_v57 = vpop.permute.xlu1 %3026 }
 0x49e   : > { %3044 = vst.msk [vmem:[#allocation5 + $0x38] sm:$0xff] %vm10626_vm15, %v3027_v57  ;;  %v3195_v56 = vpop.permute.xlu0 %3194  ;;  %vm10875_vm15 = vmmov %vm10874_vm9  ;;  %v3920_v57 = vld [vmem:[#allocation3 + $0x10a] ss:$2 sm:$0xff]  ;;  %vm10883_vm9 = vcmask 48152  }
 0x49f   : > { %3213 = vst.msk [vmem:[#allocation5 + $0x30] sm:$0xff] %vm3206_vm10, %v3195_v56 }
 0x4a0   : > { %3363 = vrot.lane.b32.xlu1 %v3340_v32, %s10624_s23  ;;  %3945 = vrot.lane.b32.xlu0 %v3922_v55, %s10867_s20  ;;  %3904 = vst.msk [vmem:[#allocation6 + $0x18] sm:$0xff] %vm10875_vm15, %v3892_v38  ;;  %vm10878_vm15 = vcmask 1045504  }
 0x4a1   : > { %v3079_v58 = vpop.permute.xlu1 %3078 }
 0x4a2   : > { %3098 = vst.msk [vmem:[#allocation5 + $0x28] sm:$0xff] %vm3092_vm2, %v3079_v58  ;;  %v3248_v43 = vpop.permute.xlu0 %3247  ;;  %v9505_v60 = vld [vmem:[%s10877_s4] sm:$0x3f]   ;;  %s10912_s4 = sld [smem:[#allocation23_spill]] }
 0x4a3   : > { %3268 = vst.msk [vmem:[#allocation5 + $0x20] sm:$0xff] %vm3263_vm8, %v3248_v43  ;;  %7237 = vmatprep.subr.msk.bf16.mxu1 %vm10878_vm15, %v9505_v60  ;;  %v3977_v43 = vld [vmem:[#allocation3 + $0x121] ss:$2 sm:$0xff]  ;;  %vm10884_vm15 = vmmov %vm10883_vm9 }
 0x4a4   : > { %3367 = vrot.lane.b32.xlu1 %v3344_v53, %s10624_s23  ;;  %3998 = vrot.lane.b32.xlu0 %v3975_v62, %s10868_s5  ;;  %s10872_s23 = smov 96   ;;  %v3924_v53 = vld [vmem:[#allocation3 + $0x16a] ss:$2 sm:$0xff] }
 0x4a5   : > { %v3474_v1 = vpop.permute.xlu1 %3473 }
 0x4a6   : > { %3495 = vst.msk [vmem:[#allocation5 + $0x18] sm:$0xff] %vm3491_vm5, %v3474_v1  ;;  %v3643_v3 = vpop.permute.xlu0 %3642 }
 0x4a7   : > { %3665 = vst.msk [vmem:[#allocation5 + $0x10] sm:$0xff] %vm3662_vm7, %v3643_v3 }
 0x4a8   : > { %3420 = vrot.lane.b32.xlu1 %v3397_v0, %s10870_s30  ;;  %4002 = vrot.lane.b32.xlu0 %v3979_v2, %s10868_s5  ;;  %v3981_v2 = vld [vmem:[#allocation3 + $0x181] ss:$2 sm:$0xff] }
 0x4a9   : > { %v3527_v5 = vpop.permute.xlu1 %3526 }
 0x4aa   : > { %3550 = vst.msk [vmem:[#allocation5 + $0x8] sm:$0xff] %vm3548_vm14, %v3527_v5  ;;  %v3696_v7 = vpop.permute.xlu0 %3695  ;;  %v4033_v5 = vld [vmem:[#allocation3 + $0x122] ss:$2 sm:$0xff] }
 0x4ab   : > { %3720 = vst.msk [vmem:[#allocation5] sm:$0xff] %vm3719_vm0, %v3696_v7 }
 0x4ac   : > { %3424 = vrot.lane.b32.xlu1 %v3401_v4, %s10870_s30  ;;  %4054 = vrot.lane.b32.xlu0 %v4031_v49, %s10869_s2 }
 0x4ae   : > { %v3252_v6 = vpop.permute.xlu0 %3251 }
 0x4af   : > { %3270 = vst.msk [vmem:[#allocation5 + $0x30] sm:$0xff] %vm3263_vm8, %v3252_v6 }
 0x4b0   : > { %3477 = vrot.lane.b32.xlu1 %v3454_v8, %s10871_s0  ;;  %4058 = vrot.lane.b32.xlu0 %v4035_v48, %s10869_s2  ;;  %v4037_v8 = vld [vmem:[#allocation3 + $0x182] ss:$2 sm:$0xff] }
 0x4b2   : > { %v3305_v9 = vpop.permute.xlu0 %3304 }
 0x4b3   : > { %3325 = vst.msk [vmem:[#allocation5 + $0x20] sm:$0xff] %vm3320_vm13, %v3305_v9  ;;  %v3728_v9 = vld [vmem:[#allocation5] sm:$0xff] }
 0x4b4   : > { %3481 = vrot.lane.b32.xlu1 %v3458_v54, %s10871_s0 }
 0x4b6   : > { %v3700_v12 = vpop.permute.xlu0 %3699 }
 0x4b7   : > { %3722 = vst.msk [vmem:[#allocation5 + $0x10] sm:$0xff] %vm3719_vm0, %v3700_v12 }
 0x4b8   : > { %3534 = vrot.lane.b32.xlu1 %v3511_v10, %s10872_s23 }
 0x4ba   : > { %v3309_v13 = vpop.permute.xlu0 %3308 }
 0x4bb   : > { %3327 = vst.msk [vmem:[#allocation5 + $0x30] sm:$0xff] %vm3320_vm13, %v3309_v13 }
 0x4bc   : > { %3538 = vrot.lane.b32.xlu1 %v3515_v11, %s10872_s23 }
 0x4be   : > { %v3362_v16 = vpop.permute.xlu0 %3361 }
 0x4bf   : > { %3382 = vst.msk [vmem:[#allocation5 + $0x20] sm:$0xff] %vm3377_vm12, %v3362_v16 }
 0x4c0   : > { %3591 = vrot.lane.b32.xlu1 %v3568_v14, %s10630_s1 }
 0x4c2   : > { %v3366_v18 = vpop.permute.xlu0 %3365 }
 0x4c3   : > { %3384 = vst.msk [vmem:[#allocation5 + $0x30] sm:$0xff] %vm3377_vm12, %v3366_v18 }
 0x4c4   : > { %3595 = vrot.lane.b32.xlu1 %v3572_v15, %s10630_s1  ;;  %s10910_s1 = smov 8  }
 0x4c6   : > { %v3419_v20 = vpop.permute.xlu0 %3418 }
 0x4c7   : > { %3439 = vst.msk [vmem:[#allocation5 + $0x20] sm:$0xff] %vm3434_vm6, %v3419_v20 }
 0x4c8   : > { %3648 = vrot.lane.b32.xlu1 %v3625_v34, %s10628_s24  ;;  %v3730_v34 = vld [vmem:[#allocation5 + $0x10] sm:$0xff] }
 0x4ca   : > { %v3423_v39 = vpop.permute.xlu0 %3422 }
 0x4cb   : > { %3441 = vst.msk [vmem:[#allocation5 + $0x30] sm:$0xff] %vm3434_vm6, %v3423_v39 }
 0x4cc   : > { %3652 = vrot.lane.b32.xlu1 %v3629_v19, %s10628_s24  ;;  %s10924_s24 = smov 16  }
 0x4ce   : > { %v3476_v26 = vpop.permute.xlu0 %3475 }
 0x4cf   : > { %3496 = vst.msk [vmem:[#allocation5 + $0x20] sm:$0xff] %vm3491_vm5, %v3476_v26 }
 0x4d0   : > { %3705 = vrot.lane.b32.xlu1 %v3682_v22, %s10634_s25 }
 0x4d2   : > { %v3083_v24 = vpop.permute.xlu1 %3082  ;;  %v3480_v28 = vpop.permute.xlu0 %3479 }
 0x4d3   : > { %3100 = vst.msk [vmem:[#allocation5 + $0x38] sm:$0xff] %vm3092_vm2, %v3083_v24  ;;  %vm10879_vm2 = vmmov %vm10876_vm4 }
 0x4d4   : > { %3709 = vrot.lane.b32.xlu1 %v3686_v45, %s10634_s25  ;;  %3498 = vst.msk [vmem:[#allocation5 + $0x30] sm:$0xff] %vm3491_vm5, %v3480_v28  ;;  %vm10880_vm4 = vmmov %vm10879_vm2 }
 0x4d5   : > { %3906 = vst.msk [vmem:[#allocation6 + $0x28] sm:$0xff] %vm10879_vm2, %v3896_v25  ;;  %vm10881_vm11 = vmmov %vm10879_vm2 }
 0x4d6   : > { %v3136_v27 = vpop.permute.xlu1 %3135  ;;  %v3533_v30 = vpop.permute.xlu0 %3532  ;;  %3905 = vst.msk [vmem:[#allocation6 + $0x20] sm:$0xff] %vm10880_vm4, %v3894_v41 }
 0x4d7   : > { %3155 = vst.msk [vmem:[#allocation5 + $0x28] sm:$0xff] %vm3149_vm3, %v3136_v27 }
 0x4d8   : > { %3935 = vrot.lane.b32.xlu1 %v3912_v23, %s10867_s20  ;;  %3553 = vst.msk [vmem:[#allocation5 + $0x20] sm:$0xff] %vm3548_vm14, %v3533_v30 }
 0x4d9   : > { %3908 = vst.msk [vmem:[#allocation6 + $0x38] sm:$0xff] %vm10881_vm11, %v3900_v46  ;;  %vm10887_vm11 = vcmask 97352  }
 0x4da   : > { %v3531_v29 = vpop.permute.xlu1 %3530  ;;  %v3537_v37 = vpop.permute.xlu0 %3536 }
 0x4db   : > { %3552 = vst.msk [vmem:[#allocation5 + $0x18] sm:$0xff] %vm3548_vm14, %v3531_v29  ;;  %3555 = vst.msk [vmem:[#allocation5 + $0x30] sm:$0xff] %vm3548_vm14, %v3537_v37 }
 0x4dc   : > { %3939 = vrot.lane.b32.xlu1 %v3916_v61, %s10867_s20 }
 0x4de   : > { %v3584_v36 = vpop.permute.xlu1 %3583  ;;  %v3590_v59 = vpop.permute.xlu0 %3589 }
 0x4df   : > { %3607 = vst.msk [vmem:[#allocation5 + $0x8] sm:$0xff] %vm3605_vm1, %v3584_v36  ;;  %3610 = vst.msk [vmem:[#allocation5 + $0x20] sm:$0xff] %vm3605_vm1, %v3590_v59 }
 0x4e0   : > { %3992 = vrot.lane.b32.xlu1 %v3969_v31, %s10868_s5 }
 0x4e2   : > { %v3140_v33 = vpop.permute.xlu1 %3139  ;;  %v3594_v63 = vpop.permute.xlu0 %3593 }
 0x4e3   : > { %3157 = vst.msk [vmem:[#allocation5 + $0x38] sm:$0xff] %vm3149_vm3, %v3140_v33  ;;  %vm10882_vm3 = vmmov %vm10879_vm2  ;;  %vm10885_vm2 = vcmask 72752  }
 0x4e4   : > { %3996 = vrot.lane.b32.xlu1 %v3973_v40, %s10868_s5  ;;  %3612 = vst.msk [vmem:[#allocation5 + $0x30] sm:$0xff] %vm3605_vm1, %v3594_v63  ;;  %vm10886_vm4 = vmmov %vm10885_vm2 }
 0x4e5   : > { %3907 = vst.msk [vmem:[#allocation6 + $0x30] sm:$0xff] %vm10882_vm3, %v3898_v50  ;;  %vm10889_vm3 = vcmask 1045504  }
 0x4e6   : > { %v3193_v47 = vpop.permute.xlu1 %3192  ;;  %v3647_v32 = vpop.permute.xlu0 %3646  ;;  %v4117_v21 = vsel %vm10889_vm3, %v9505_v60, 0 }
 0x4e7   : > { %3212 = vst.msk [vmem:[#allocation5 + $0x28] sm:$0xff] %vm3206_vm10, %v3193_v47 }
 0x4e8   : > { %4048 = vrot.lane.b32.xlu1 %v4025_v42, %s10869_s2  ;;  %3667 = vst.msk [vmem:[#allocation5 + $0x20] sm:$0xff] %vm3662_vm7, %v3647_v32 }
 0x4ea   : > { %v3588_v52 = vpop.permute.xlu1 %3587  ;;  %v3651_v56 = vpop.permute.xlu0 %3650 }
 0x4eb   : > { %3609 = vst.msk [vmem:[#allocation5 + $0x18] sm:$0xff] %vm3605_vm1, %v3588_v52 }
 0x4ec   : > { %4052 = vrot.lane.b32.xlu1 %v4029_v51, %s10869_s2  ;;  %3669 = vst.msk [vmem:[#allocation5 + $0x30] sm:$0xff] %vm3662_vm7, %v3651_v56 }
 0x4ee   : > { %v3641_v55 = vpop.permute.xlu1 %3640  ;;  %v3704_v62 = vpop.permute.xlu0 %3703 }
 0x4ef   : > { %3664 = vst.msk [vmem:[#allocation5 + $0x8] sm:$0xff] %vm3662_vm7, %v3641_v55 }
 0x4f0   : > { %3943 = vrot.lane.b32.xlu1 %v3920_v57, %s10867_s20  ;;  %3724 = vst.msk [vmem:[#allocation5 + $0x20] sm:$0xff] %vm3719_vm0, %v3704_v62 }
 0x4f2   : > { %v3197_v58 = vpop.permute.xlu1 %3196  ;;  %v3708_v1 = vpop.permute.xlu0 %3707 }
 0x4f3   : > { %3214 = vst.msk [vmem:[#allocation5 + $0x38] sm:$0xff] %vm3206_vm10, %v3197_v58 }
 0x4f4   : > { %3947 = vrot.lane.b32.xlu1 %v3924_v53, %s10867_s20  ;;  %3726 = vst.msk [vmem:[#allocation5 + $0x30] sm:$0xff] %vm3719_vm0, %v3708_v1  ;;  %s10930_s20 = smov 24  }
 0x4f6   : > { %v3250_v0 = vpop.permute.xlu1 %3249  ;;  %v3934_v4 = vpop.permute.xlu0 %3933 }
 0x4f7   : > { %3269 = vst.msk [vmem:[#allocation5 + $0x28] sm:$0xff] %vm3263_vm8, %v3250_v0  ;;  %v3732_v33 = vld [vmem:[#allocation5 + $0x20] sm:$0xff] }
 0x4f8   : > { %4000 = vrot.lane.b32.xlu1 %v3977_v43, %s10868_s5  ;;  %3957 = vst.msk [vmem:[#allocation6] sm:$0xff] %vm10883_vm9, %v3934_v4 }
 0x4fa   : > { %v3645_v3 = vpop.permute.xlu1 %3644  ;;  %v3938_v7 = vpop.permute.xlu0 %3937 }
 0x4fb   : > { %3666 = vst.msk [vmem:[#allocation5 + $0x18] sm:$0xff] %vm3662_vm7, %v3645_v3  ;;  %v3734_v46 = vld [vmem:[#allocation5 + $0x30] sm:$0xff] }
 0x4fc   : > { %4004 = vrot.lane.b32.xlu1 %v3981_v2, %s10868_s5  ;;  %3959 = vst.msk [vmem:[#allocation6 + $0x10] sm:$0xff] %vm10884_vm15, %v3938_v7  ;;  %vm10891_vm15 = vmmov %vm10885_vm2  ;;  %s10932_s5 = smov 40  }
 0x4fe   : > { %v3698_v49 = vpop.permute.xlu1 %3697  ;;  %v3991_v6 = vpop.permute.xlu0 %3990 }
 0x4ff   : > { %3721 = vst.msk [vmem:[#allocation5 + $0x8] sm:$0xff] %vm3719_vm0, %v3698_v49 }
 0x500   : > { %4056 = vrot.lane.b32.xlu1 %v4033_v5, %s10869_s2  ;;  %4014 = vst.msk [vmem:[#allocation6] sm:$0xff] %vm10885_vm2, %v3991_v6 }
 0x502   : > { %v3254_v48 = vpop.permute.xlu1 %3253  ;;  %v3995_v11 = vpop.permute.xlu0 %3994 }
 0x503   : > { %3271 = vst.msk [vmem:[#allocation5 + $0x38] sm:$0xff] %vm3263_vm8, %v3254_v48  ;;  %vm10888_vm8 = vmmov %vm10887_vm11 }
 0x504   : > { %4060 = vrot.lane.b32.xlu1 %v4037_v8, %s10869_s2  ;;  %4016 = vst.msk [vmem:[#allocation6 + $0x10] sm:$0xff] %vm10886_vm4, %v3995_v11  ;;  %vm10892_vm4 = vmmov %vm10888_vm8  ;;  %s10933_s2 = smov 48  }
 0x506   : > { %v3307_v54 = vpop.permute.xlu1 %3306  ;;  %v3729_v10 = vld [vmem:[#allocation5 + $0x8] sm:$0xff]  ;;  %v4047_v14 = vpop.permute.xlu0 %4046 }
 0x507   : > { %3326 = vst.msk [vmem:[#allocation5 + $0x28] sm:$0xff] %vm3320_vm13, %v3307_v54  ;;  %v3736_v12 = vpack.c.bf16 %v3729_v10, %v3728_v9  ;;  %v9591_v54 = vld [vmem:[#allocation8 + $0x8] sm:$0x3]  ;;  %v4221_v9 = vld [vmem:[#allocation8] sm:$0xff] }
 0x508   : > { %4070 = vst.msk [vmem:[#allocation6] sm:$0xff] %vm10887_vm11, %v4047_v14  ;;  %v4242_v10 = vmax.f32 %v9591_v54, 0.0  ;;  %v9594_v11 = vmax.f32 %v4221_v9, 0.0 }
 0x509   : > { %7125 = vmatprep.mubr.bf16.mxu1 %v3736_v12  ;;  %v6908_v12 = vld [vmem:[%s10912_s4] ss:$0 sm:$0xff]  ;;  %s10931_s4 = smov 32  }
 0x50a   : > { %v3702_v13 = vpop.permute.xlu1 %3701  ;;  %v4051_v16 = vpop.permute.xlu0 %4050  ;;  %4296 = vrot.lane.b32.xlu1 %v4242_v10, %s10910_s1  ;;  %4294 = vrot.lane.b32.xlu0 %v9594_v11, %s10910_s1 }
 0x50b   : > { %3723 = vst.msk [vmem:[#allocation5 + $0x18] sm:$0xff] %vm3719_vm0, %v3702_v13  ;;  %v6917_v13 = vld [vmem:[%s10913_s6] ss:$0 sm:$0xff] }
 0x50c   : > { %4072 = vst.msk [vmem:[#allocation6 + $0x10] sm:$0xff] %vm10888_vm8, %v4051_v16  ;;  %vm10901_vm8 = vcmask 97280   ;;  %v7207_v16 = vadd.f32 %v6917_v13, %v6908_v12 }
 0x50e   : > { %v3311_v15 = vpop.permute.xlu1 %3310  ;;  %v3942_v19 = vpop.permute.xlu0 %3941 }
 0x50f   : > { %3328 = vst.msk [vmem:[#allocation5 + $0x38] sm:$0xff] %vm3320_vm13, %v3311_v15  ;;  %vm10890_vm13 = vmmov %vm10883_vm9  ;;  %v4078_v57 = vld [vmem:[#allocation6] sm:$0xff] }
 0x510   : > { %3961 = vst.msk [vmem:[#allocation6 + $0x20] sm:$0xff] %vm10883_vm9, %v3942_v19 }
 0x512   : > { %v3364_v18 = vpop.permute.xlu1 %3363  ;;  %v3731_v35 = vld [vmem:[#allocation5 + $0x18] sm:$0xff]  ;;  %v3946_v39 = vpop.permute.xlu0 %3945 }
 0x513   : > { %3383 = vst.msk [vmem:[#allocation5 + $0x28] sm:$0xff] %vm3377_vm12, %v3364_v18  ;;  %v3737_v20 = vpack.c.bf16 %v3731_v35, %v3730_v34  ;;  %v4080_v58 = vld [vmem:[#allocation6 + $0x10] sm:$0xff] }
 0x514   : > { %3963 = vst.msk [vmem:[#allocation6 + $0x30] sm:$0xff] %vm10890_vm13, %v3946_v39 }
 0x515   : > { %7126 = vmatmul.mubr.bf16.vlgmr.msra.gmra.mrb[0].mxu1 %v3737_v20 }
 0x516   : > { %v3368_v38 = vpop.permute.xlu1 %3367  ;;  %7134 = vmatpush3.bf16.msra.mxu1 %v4117_v21  ;;  %v3999_v44 = vpop.permute.xlu0 %3998 }
 0x517   : > { %3385 = vst.msk [vmem:[#allocation5 + $0x38] sm:$0xff] %vm3377_vm12, %v3368_v38  ;;  %vm10893_vm12 = vmmov %vm10892_vm4 }
 0x518   : > { %4018 = vst.msk [vmem:[#allocation6 + $0x20] sm:$0xff] %vm10891_vm15, %v3999_v44 }
 0x51a   : > { %v3421_v22 = vpop.permute.xlu1 %3420  ;;  %v4003_v24 = vpop.permute.xlu0 %4002 }
 0x51b   : > { %3440 = vst.msk [vmem:[#allocation5 + $0x28] sm:$0xff] %vm3434_vm6, %v3421_v22 }
 0x51c   : > { %4020 = vst.msk [vmem:[#allocation6 + $0x30] sm:$0xff] %vm10885_vm2, %v4003_v24 }
 0x51e   : > { %v3425_v45 = vpop.permute.xlu1 %3424  ;;  %v4055_v23 = vpop.permute.xlu0 %4054 }
 0x51f   : > { %3442 = vst.msk [vmem:[#allocation5 + $0x38] sm:$0xff] %vm3434_vm6, %v3425_v45  ;;  %vm10894_vm6 = vmmov %vm10883_vm9 }
 0x520   : > { %4074 = vst.msk [vmem:[#allocation6 + $0x20] sm:$0xff] %vm10892_vm4, %v4055_v23  ;;  %vm10903_vm9 = vmmov %vm10901_vm8 }
 0x522   : > { %v3478_v26 = vpop.permute.xlu1 %3477  ;;  %v4059_v28 = vpop.permute.xlu0 %4058 }
 0x523   : > { %3497 = vst.msk [vmem:[#allocation5 + $0x28] sm:$0xff] %vm3491_vm5, %v3478_v26 }
 0x524   : > { %4076 = vst.msk [vmem:[#allocation6 + $0x30] sm:$0xff] %vm10893_vm12, %v4059_v28  ;;  %vm10908_vm12 = vmmov %vm10901_vm8 }
 0x526   : > { %v3482_v27 = vpop.permute.xlu1 %3481 }
 0x527   : > { %3499 = vst.msk [vmem:[#allocation5 + $0x38] sm:$0xff] %vm3491_vm5, %v3482_v27  ;;  %vm10895_vm5 = vmmov %vm10894_vm6  ;;  %v4082_v5 = vld [vmem:[#allocation6 + $0x20] sm:$0xff] }
 0x528   : > { %vm10900_vm11 = vmmov %vm10895_vm5 }
 0x529   : > { %vm10902_vm3 = vmmov %vm10895_vm5 }
 0x52a   : > { %v3535_v60 = vpop.permute.xlu1 %3534 }
 0x52b   : > { %3554 = vst.msk [vmem:[#allocation5 + $0x28] sm:$0xff] %vm3548_vm14, %v3535_v60  ;;  %v4084_v8 = vld [vmem:[#allocation6 + $0x30] sm:$0xff] }
 0x52e   : > { %v3539_v61 = vpop.permute.xlu1 %3538 }
 0x52f   : > { %3556 = vst.msk [vmem:[#allocation5 + $0x38] sm:$0xff] %vm3548_vm14, %v3539_v61  ;;  %vm10896_vm14 = vmmov %vm10885_vm2 }
 0x532   : > { %v3592_v29 = vpop.permute.xlu1 %3591 }
 0x533   : > { %3611 = vst.msk [vmem:[#allocation5 + $0x28] sm:$0xff] %vm3605_vm1, %v3592_v29 }
 0x536   : > { %v3596_v30 = vpop.permute.xlu1 %3595 }
 0x537   : > { %3613 = vst.msk [vmem:[#allocation5 + $0x38] sm:$0xff] %vm3605_vm1, %v3596_v30  ;;  %vm10897_vm1 = vmmov %vm10885_vm2 }
 0x538   : > { %vm10904_vm13 = vmmov %vm10897_vm1 }
 0x539   : > { %vm10905_vm15 = vmmov %vm10897_vm1 }
 0x53a   : > { %v3649_v31 = vpop.permute.xlu1 %3648 }
 0x53b   : > { %3668 = vst.msk [vmem:[#allocation5 + $0x28] sm:$0xff] %vm3662_vm7, %v3649_v31 }
 0x53e   : > { %v3653_v36 = vpop.permute.xlu1 %3652 }
 0x53f   : > { %3670 = vst.msk [vmem:[#allocation5 + $0x38] sm:$0xff] %vm3662_vm7, %v3653_v36  ;;  %vm10898_vm7 = vmmov %vm10892_vm4 }
 0x542   : > { %v3706_v37 = vpop.permute.xlu1 %3705 }
 0x543   : > { %3725 = vst.msk [vmem:[#allocation5 + $0x28] sm:$0xff] %vm3719_vm0, %v3706_v37 }
 0x546   : > { %v3710_v25 = vpop.permute.xlu1 %3709 }
 0x547   : > { %3727 = vst.msk [vmem:[#allocation5 + $0x38] sm:$0xff] %vm3719_vm0, %v3710_v25  ;;  %vm10899_vm0 = vmmov %vm10892_vm4 }
 0x548   : > { %vm10906_vm2 = vmmov %vm10899_vm0 }
 0x549   : > { %vm10907_vm4 = vmmov %vm10899_vm0 }
 0x54a   : > { %v3936_v40 = vpop.permute.xlu1 %3935  ;;  %v3733_v59 = vld [vmem:[#allocation5 + $0x28] sm:$0xff] }
 0x54b   : > { %3958 = vst.msk [vmem:[#allocation6 + $0x8] sm:$0xff] %vm10894_vm6, %v3936_v40  ;;  %v3738_v41 = vpack.c.bf16 %v3733_v59, %v3732_v33  ;;  %vm10909_vm6 = vmmov %vm10901_vm8 }
 0x54d   : > { %7129 = vmatprep.mubr.bf16.mxu1 %v3738_v41 }
 0x54e   : > { %v3940_v42 = vpop.permute.xlu1 %3939  ;;  %v3735_v47 = vld [vmem:[#allocation5 + $0x38] sm:$0xff] }
 0x54f   : > { %3960 = vst.msk [vmem:[#allocation6 + $0x18] sm:$0xff] %vm10895_vm5, %v3940_v42  ;;  %v3739_v63 = vpack.c.bf16 %v3735_v47, %v3734_v46  ;;  %vm4261_vm5 = vcmask 588800  }
 0x550   : > { %4262 = vst.msk [vmem:[#allocation7] sm:$0xff] %vm4261_vm5, %v9471_v17  ;;  %4263 = vst.msk [vmem:[#allocation7 + $0x8] sm:$0xff] %vm4261_vm5, %v9471_v17 }
 0x551   : > { %7130 = vmatmul.mubr.bf16.gmra.mrb[4].mxu1 %v3739_v63  ;;  %4264 = vst.msk [vmem:[#allocation7 + $0x10] sm:$0xff] %vm4261_vm5, %v9471_v17  ;;  %4265 = vst.msk [vmem:[#allocation7 + $0x18] sm:$0xff] %vm4261_vm5, %v9471_v17 }
 0x552   : > { %v3993_v50 = vpop.permute.xlu1 %3992  ;;  %4266 = vst.msk [vmem:[#allocation7 + $0x20] sm:$0xff] %vm4261_vm5, %v9471_v17  ;;  %4267 = vst.msk [vmem:[#allocation7 + $0x28] sm:$0xff] %vm4261_vm5, %v9471_v17 }
 0x553   : > { %4015 = vst.msk [vmem:[#allocation6 + $0x8] sm:$0xff] %vm10896_vm14, %v3993_v50  ;;  %vm10911_vm14 = vcmask 64512  }
 0x554   : > { %4268 = vst.msk [vmem:[#allocation7 + $0x30] sm:$0xff] %vm4261_vm5, %v9471_v17  ;;  %4269 = vst.msk [vmem:[#allocation7 + $0x38] sm:$0xff] %vm4261_vm5, %v9471_v17 }
 0x555   : > { %4270 = vst.msk [vmem:[#allocation7] sm:$0xff] %vm10911_vm14, %v9594_v11 }
 0x556   : > { %v3997_v51 = vpop.permute.xlu1 %3996 }
 0x557   : > { %4017 = vst.msk [vmem:[#allocation6 + $0x18] sm:$0xff] %vm10897_vm1, %v3997_v51  ;;  %vm10642_vm1 = vcmask 261120  }
 0x558   : > { %5508 = vst.msk [vmem:[#allocation11] sm:$0xff] %vm10642_vm1, %v9471_v17  ;;  %5509 = vst.msk [vmem:[#allocation11 + $0x8] sm:$0xff] %vm10642_vm1, %v9471_v17 }
 0x559   : > { %5510 = vst.msk [vmem:[#allocation11 + $0x10] sm:$0xff] %vm10642_vm1, %v9471_v17  ;;  %5511 = vst.msk [vmem:[#allocation11 + $0x18] sm:$0xff] %vm10642_vm1, %v9471_v17 }
 0x55a   : > { %v4049_v52 = vpop.permute.xlu1 %4048 }
 0x55b   : > { %4071 = vst.msk [vmem:[#allocation6 + $0x8] sm:$0xff] %vm10898_vm7, %v4049_v52  ;;  %vm4344_vm7 = vcmask 122944  }
 0x55e   : > { %v4053_v32 = vpop.permute.xlu1 %4052 }
 0x55f   : > { %4073 = vst.msk [vmem:[#allocation6 + $0x18] sm:$0xff] %vm10899_vm0, %v4053_v32  ;;  %vm4342_vm0 = vcmask 130113  }
 0x562   : > { %v3944_v55 = vpop.permute.xlu1 %3943  ;;  %v4079_v56 = vld [vmem:[#allocation6 + $0x8] sm:$0xff] }
 0x563   : > { %3962 = vst.msk [vmem:[#allocation6 + $0x28] sm:$0xff] %vm10900_vm11, %v3944_v55  ;;  %v4086_v53 = vpack.c.bf16 %v4079_v56, %v4078_v57  ;;  %vm10914_vm11 = vmmov %vm10911_vm14 }
 0x565   : > { %7135 = vmatprep.mubr.msk.bf16.mxu1 %vm10901_vm8, %v4086_v53  ;;  %vm10915_vm8 = vmmov %vm10914_vm11 }
 0x566   : > { %v3948_v62 = vpop.permute.xlu1 %3947  ;;  %v4081_v43 = vld [vmem:[#allocation6 + $0x18] sm:$0xff] }
 0x567   : > { %3964 = vst.msk [vmem:[#allocation6 + $0x38] sm:$0xff] %vm10902_vm3, %v3948_v62  ;;  %v4087_v0 = vpack.c.bf16 %v4081_v43, %v4080_v58  ;;  %vm10916_vm3 = vmmov %vm10915_vm8 }
 0x569   : > { %7136 = vmatmul.mubr.msk.bf16.vlgmr.msra.gmra.mrb[0].mxu1 %vm10903_vm9, %v4087_v0  ;;  %vm10917_vm9 = vmmov %vm10916_vm3 }
 0x56a   : > { %v4001_v1 = vpop.permute.xlu1 %4000 }
 0x56b   : > { %4019 = vst.msk [vmem:[#allocation6 + $0x28] sm:$0xff] %vm10904_vm13, %v4001_v1  ;;  %vm10918_vm13 = vmmov %vm10916_vm3 }
 0x56e   : > { %v4005_v2 = vpop.permute.xlu1 %4004 }
 0x56f   : > { %4021 = vst.msk [vmem:[#allocation6 + $0x38] sm:$0xff] %vm10905_vm15, %v4005_v2  ;;  %vm10919_vm15 = vmmov %vm10916_vm3  ;;  %v7284_v2 = vld [vmem:[%s10566_s7] sm:$0xff]  }
 0x570   : > { %7143 = vmatprep.subr.bf16.mxu1 %v7284_v2 }
 0x571   : > { %7144 = vmatpush3.bf16.msra.mxu1 %v7284_v2 }
 0x572   : > { %v4057_v3 = vpop.permute.xlu1 %4056 }
 0x573   : > { %4075 = vst.msk [vmem:[#allocation6 + $0x28] sm:$0xff] %vm10906_vm2, %v4057_v3  ;;  %vm10920_vm2 = vmmov %vm10916_vm3  ;;  %v7285_v3 = vld [vmem:[%s10566_s7 + $0x8] sm:$0xff]  }
 0x574   : > { %vm10923_vm14 = vmmov %vm10920_vm2  ;;  %7145 = vmatprep.subr.bf16.mxu1 %v7285_v3 }
 0x575   : > { %7146 = vmatpush3.bf16.msra.mxu1 %v7285_v3 }
 0x576   : > { %v4061_v4 = vpop.permute.xlu1 %4060 }
 0x577   : > { %4077 = vst.msk [vmem:[#allocation6 + $0x38] sm:$0xff] %vm10907_vm4, %v4061_v4  ;;  %vm10921_vm4 = vmmov %vm10920_vm2  ;;  %v7286_v4 = vld [vmem:[%s10566_s7 + $0x10] sm:$0xff]  }
 0x578   : > { %7147 = vmatprep.subr.bf16.mxu1 %v7286_v4 }
 0x579   : > { %7148 = vmatpush3.bf16.msra.mxu1 %v7286_v4 }
 0x57a   : > { %v4083_v49 = vld [vmem:[#allocation6 + $0x28] sm:$0xff] }
 0x57b   : > { %v4088_v7 = vpack.c.bf16 %v4083_v49, %v4082_v5  ;;  %v7287_v5 = vld [vmem:[%s10566_s7 + $0x18] sm:$0xff]   ;;  %v7288_v49 = vld [vmem:[%s10566_s7 + $0x20] ss:$0 sps:$4 sm:$0xff]  }
 0x57c   : > { %v4297_v14 = vpop.permute.xlu1 %4296  ;;  %v4295_v15 = vpop.permute.xlu0 %4294  ;;  %7149 = vmatprep.subr.bf16.mxu1 %v7287_v5 }
 0x57d   : > { %7139 = vmatprep.mubr.msk.bf16.mxu1 %vm10908_vm12, %v4088_v7  ;;  %4345 = vst.msk [vmem:[#allocation7 + $0x7] sm:$0x1] %vm4344_vm7, %v4297_v14  ;;  %vm10643_vm12 = vcmask 60416   ;;  %7150 = vmatpush3.bf16.msra.mxu1 %v7287_v5 }
 0x57e   : > { %v4085_v48 = vld [vmem:[#allocation6 + $0x38] sm:$0xff]  ;;  %4343 = vst.msk [vmem:[#allocation7 - $0x1] sm:$0xfe] %vm4342_vm0, %v4295_v15 }
 0x57f   : > { %v4089_v6 = vpack.c.bf16 %v4085_v48, %v4084_v8 }
 0x581   : > { %7140 = vmatmul.mubr.msk.bf16.gmra.mrb[4].mxu1 %vm10909_vm6, %v4089_v6  ;;  %vm10922_vm6 = vmmov %vm10920_vm2 }
 0x63c   : > { %v7137_v18 = vpop.f32.mrb[0].mxu1 }
 0x63d   : > { %v7201_v34 = vadd.f32 %v7137_v18, %v6908_v12  ;;  %v4153_v17 = vpop.f32.mrb[1].mxu1 }
 0x63e   : > { %v7203_v35 = vadd.f32 %v6908_v12, %v4153_v17  ;;  %v7138_v19 = vpop.f32.mrb[2].mxu1 }
 0x63f   : > { %v7202_v20 = vadd.f32 %v7201_v34, %v6917_v13  ;;  %v7206_v21 = vadd.f32 %v7207_v16, %v7138_v19  ;;  %v4156_v38 = vpop.f32.mrb[3].mxu1 }
 0x640   : > { %v7204_v39 = vadd.f32 %v7203_v35, %v6917_v13  ;;  %v7208_v22 = vadd.f32 %v7207_v16, %v4156_v38 }
 0x641   : > { %4215 = vst.msk [vmem:[#allocation8 + $0x31] sm:$0xff] %vm10914_vm11, %v7202_v20  ;;  %vm10925_vm11 = vmmov %vm10920_vm2 }
 0x642   : > { %4216 = vst.msk [vmem:[#allocation8 + $0x41] sm:$0xff] %vm10915_vm8, %v7206_v21  ;;  %vm10926_vm8 = vmmov %vm10920_vm2 }
 0x643   : > { %4213 = vst.msk [vmem:[#allocation8 + $0x11] sm:$0xff] %vm10916_vm3, %v7204_v39  ;;  %vm10927_vm3 = vmmov %vm10920_vm2 }
 0x644   : > { %4214 = vst.msk [vmem:[#allocation8 + $0x21] sm:$0xff] %vm10917_vm9, %v7208_v22  ;;  %vm10928_vm9 = vmmov %vm10920_vm2 }
 0x648   : > { %v4227_v44 = vld [vmem:[#allocation8 + $0x30] sm:$0xff]  ;;  %v4228_v36 = vld [vmem:[#allocation8 + $0x38] sm:$0x3] }
 0x649   : > { %v4229_v45 = vld [vmem:[#allocation8 + $0x40] sm:$0xff]  ;;  %v9643_v60 = vmax.f32 %v4227_v44, 0.0  ;;  %v5515_v25 = vld [vmem:[#allocation8 + $0x31] ss:$2 sm:$0xf]  ;;  %v9669_v40 = vmax.f32 %v4228_v36, 0.0 }
 0x64a   : > { %v4224_v24 = vld [vmem:[#allocation8 + $0x18] sm:$0x3]  ;;  %v4223_v26 = vld [vmem:[#allocation8 + $0x10] sm:$0xff]  ;;  %v9647_v30 = vmax.f32 %v4229_v45, 0.0  ;;  %5521 = vst.msk [vmem:[#allocation11 + $0x8] sm:$0xf] %vm10643_vm12, %v5515_v25 }
 0x64b   : > { %v9639_v23 = vmax.f32 %v4224_v24, 0.0  ;;  %v9641_v27 = vmax.f32 %v4223_v26, 0.0  ;;  %v4225_v28 = vld [vmem:[#allocation8 + $0x20] sm:$0xff]  ;;  %v4226_v61 = vld [vmem:[#allocation8 + $0x28] sm:$0x3]  ;;  %4273 = vst.msk [vmem:[#allocation7 + $0x18] sm:$0xff] %vm10919_vm15, %v9643_v60 }
 0x64c   : > { %v9645_v29 = vmax.f32 %v4225_v28, 0.0  ;;  %4274 = vst.msk [vmem:[#allocation7 + $0x20] sm:$0xff] %vm10921_vm4, %v9647_v30  ;;  %v9661_v31 = vmax.f32 %v4226_v61, 0.0  ;;  %v5513_v37 = vld [vmem:[#allocation8 + $0x11] ss:$2 sm:$0xf] }
 0x64d   : > { %4300 = vrot.lane.b32.xlu1 %v9639_v23, %s10910_s1  ;;  %4298 = vrot.lane.b32.xlu0 %v9641_v27, %s10910_s1  ;;  %4271 = vst.msk [vmem:[#allocation7 + $0x8] sm:$0xff] %vm10918_vm13, %v9641_v27  ;;  %vm10929_vm13 = vmmov %vm10920_vm2  ;;  %v4230_v62 = vld [vmem:[#allocation8 + $0x48] sm:$0x3]  ;;  %vm4825_vm15 = vcmask 1043456   ;;  %vm4408_vm4 = vcmask 195714  }
 0x64e   : > { %4272 = vst.msk [vmem:[#allocation7 + $0x10] sm:$0xff] %vm10920_vm2, %v9645_v29  ;;  %v9730_v43 = vmax.f32 %v4230_v62, 0.0  ;;  %7238 = vmatprep.subr.msk.bf16.mxu1 %vm4825_vm15, %v7288_v49  ;;  %v4827_v7 = vsel %vm4825_vm15, %v7288_v49, 0  ;;  %vm4410_vm2 = vcmask 189568   ;;  %vm4574_vm15 = vcmask 392514  }
 0x64f   : > { %5520 = vst.msk [vmem:[#allocation11] sm:$0xf] %vm10643_vm12, %v5513_v37  ;;  %7152 = vmatpush3.bf16.msra.mxu1 %v4827_v7 }
 0x651   : > { %4304 = vrot.lane.b32.xlu1 %v9661_v31, %s10910_s1  ;;  %4302 = vrot.lane.b32.xlu0 %v9645_v29, %s10910_s1 }
 0x654   : > { %v7141_v33 = vpop.f32.mrb[4].mxu1 }
 0x655   : > { %4308 = vrot.lane.b32.xlu1 %v9669_v40, %s10910_s1  ;;  %4306 = vrot.lane.b32.xlu0 %v9643_v60, %s10910_s1  ;;  %v7210_v59 = vadd.f32 %v7207_v16, %v7141_v33  ;;  %v4169_v41 = vpop.f32.mrb[5].mxu1 }
 0x656   : > { %v7212_v42 = vadd.f32 %v7207_v16, %v4169_v41  ;;  %v7142_v46 = vpop.f32.mrb[6].mxu1  ;;  %v4239_v41 = vld [vmem:[#allocation8 + $0x90] sm:$0xff] }
 0x657   : > { %4219 = vst.msk [vmem:[#allocation8 + $0x71] sm:$0xff] %vm10922_vm6, %v7210_v59  ;;  %v7214_v47 = vadd.f32 %v7207_v16, %v7142_v46  ;;  %v4172_v63 = vpop.f32.mrb[7].mxu1  ;;  %vm10935_vm6 = vcmask 261312  }
 0x658   : > { %4217 = vst.msk [vmem:[#allocation8 + $0x51] sm:$0xff] %vm10923_vm14, %v7212_v42  ;;  %v7216_v50 = vadd.f32 %v7207_v16, %v4172_v63  ;;  %vm10936_vm14 = vmmov %vm10935_vm6 }
 0x659   : > { %4362 = vrot.lane.b32.xlu1 %v4242_v10, %s10924_s24  ;;  %4360 = vrot.lane.b32.xlu0 %v9594_v11, %s10924_s24  ;;  %4220 = vst.msk [vmem:[#allocation8 + $0x81] sm:$0xff] %vm10925_vm11, %v7214_v47  ;;  %vm10937_vm11 = vmmov %vm10935_vm6  ;;  %v4259_v47 = vmax.f32 %v4239_v41, 0.0 }
 0x65a   : > { %4218 = vst.msk [vmem:[#allocation8 + $0x61] sm:$0xff] %vm10926_vm8, %v7216_v50  ;;  %vm10938_vm8 = vmmov %vm10935_vm6 }
 0x65d   : > { %4366 = vrot.lane.b32.xlu1 %v9639_v23, %s10924_s24  ;;  %4364 = vrot.lane.b32.xlu0 %v9641_v27, %s10924_s24 }
 0x65e   : > { %v4235_v51 = vld [vmem:[#allocation8 + $0x70] sm:$0xff]  ;;  %v4236_v9 = vld [vmem:[#allocation8 + $0x78] sm:$0x3] }
 0x65f   : > { %v4231_v52 = vld [vmem:[#allocation8 + $0x50] sm:$0xff]  ;;  %v9688_v32 = vmax.f32 %v4235_v51, 0.0  ;;  %v4232_v0 = vld [vmem:[#allocation8 + $0x58] sm:$0x3]  ;;  %v9825_v12 = vmax.f32 %v4236_v9, 0.0 }
 0x660   : > { %v9694_v57 = vmax.f32 %v4231_v52, 0.0  ;;  %v5517_v53 = vld [vmem:[#allocation8 + $0x51] ss:$2 sm:$0xf]  ;;  %v9772_v1 = vmax.f32 %v4232_v0, 0.0  ;;  %v4237_v21 = vld [vmem:[#allocation8 + $0x80] sm:$0xff] }
 0x661   : > { %4370 = vrot.lane.b32.xlu1 %v9661_v31, %s10924_s24  ;;  %4368 = vrot.lane.b32.xlu0 %v9645_v29, %s10924_s24  ;;  %v4233_v55 = vld [vmem:[#allocation8 + $0x60] sm:$0xff]  ;;  %4277 = vst.msk [vmem:[#allocation7 + $0x38] sm:$0xff] %vm10927_vm3, %v9688_v32  ;;  %v5519_v58 = vld [vmem:[#allocation8 + $0x71] ss:$2 sm:$0xf]  ;;  %v9863_v22 = vmax.f32 %v4237_v21, 0.0 }
 0x662   : > { %4275 = vst.msk [vmem:[#allocation7 + $0x28] sm:$0xff] %vm10928_vm9, %v9694_v57  ;;  %v9700_v56 = vmax.f32 %v4233_v55, 0.0  ;;  %v4234_v8 = vld [vmem:[#allocation8 + $0x68] sm:$0x3]  ;;  %vm4510_vm3 = vcmask 319744   ;;  %vm4508_vm9 = vcmask 326913  }
 0x663   : > { %5522 = vst.msk [vmem:[#allocation11 + $0x10] sm:$0xf] %vm10643_vm12, %v5517_v53  ;;  %5523 = vst.msk [vmem:[#allocation11 + $0x18] sm:$0xf] %vm10643_vm12, %v5519_v58  ;;  %v9817_v54 = vmax.f32 %v4234_v8, 0.0 }
 0x664   : > { %4276 = vst.msk [vmem:[#allocation7 + $0x30] sm:$0xff] %vm10929_vm13, %v9700_v56  ;;  %v4238_v28 = vld [vmem:[#allocation8 + $0x88] sm:$0x3]  ;;  %vm4576_vm13 = vcmask 386368   ;;  %v4240_v53 = vld [vmem:[#allocation8 + $0x98] sm:$0x3] }
 0x665   : > { %4374 = vrot.lane.b32.xlu1 %v9669_v40, %s10924_s24  ;;  %4372 = vrot.lane.b32.xlu0 %v9643_v60, %s10924_s24 }
 0x669   : > { %4429 = vrot.lane.b32.xlu1 %v9645_v29, %s10930_s20  ;;  %4427 = vrot.lane.b32.xlu0 %v9641_v27, %s10930_s20 }
 0x66d   : > { %4433 = vrot.lane.b32.xlu1 %v9647_v30, %s10930_s20  ;;  %4431 = vrot.lane.b32.xlu0 %v9643_v60, %s10930_s20 }
 0x671   : > { %4462 = vrot.lane.b32.xlu1 %v9639_v23, %s10931_s4  ;;  %4460 = vrot.lane.b32.xlu0 %v9641_v27, %s10931_s4 }
 0x675   : > { %4466 = vrot.lane.b32.xlu1 %v9661_v31, %s10931_s4  ;;  %4464 = vrot.lane.b32.xlu0 %v9645_v29, %s10931_s4 }
 0x679   : > { %4470 = vrot.lane.b32.xlu1 %v9669_v40, %s10931_s4  ;;  %4468 = vrot.lane.b32.xlu0 %v9643_v60, %s10931_s4 }
 0x67d   : > { %4474 = vrot.lane.b32.xlu1 %v9730_v43, %s10931_s4  ;;  %4472 = vrot.lane.b32.xlu0 %v9647_v30, %s10931_s4 }
 0x681   : > { %4528 = vrot.lane.b32.xlu1 %v9639_v23, %s10932_s5  ;;  %4526 = vrot.lane.b32.xlu0 %v9641_v27, %s10932_s5 }
 0x685   : > { %4532 = vrot.lane.b32.xlu1 %v9661_v31, %s10932_s5  ;;  %4530 = vrot.lane.b32.xlu0 %v9645_v29, %s10932_s5 }
 0x689   : > { %4536 = vrot.lane.b32.xlu1 %v9669_v40, %s10932_s5  ;;  %4534 = vrot.lane.b32.xlu0 %v9643_v60, %s10932_s5 }
 0x68d   : > { %4540 = vrot.lane.b32.xlu1 %v9730_v43, %s10932_s5  ;;  %4538 = vrot.lane.b32.xlu0 %v9647_v30, %s10932_s5 }
 0x691   : > { %4595 = vrot.lane.b32.xlu1 %v9643_v60, %s10933_s2  ;;  %4593 = vrot.lane.b32.xlu0 %v9645_v29, %s10933_s2 }
 0x695   : > { %4597 = vrot.lane.b32.xlu0 %v9647_v30, %s10933_s2  ;;  %4599 = vrot.lane.b32.xlu1 %v9694_v57, %s10933_s2 }
 0x699   : > { %4626 = vrot.lane.b32.xlu0 %v9645_v29, %s10640_s3  ;;  %4628 = vrot.lane.b32.xlu1 %v9661_v31, %s10640_s3 }
 0x69d   : > { %4630 = vrot.lane.b32.xlu0 %v9643_v60, %s10640_s3  ;;  %4632 = vrot.lane.b32.xlu1 %v9669_v40, %s10640_s3 }
 0x6a1   : > { %4634 = vrot.lane.b32.xlu0 %v9647_v30, %s10640_s3  ;;  %4636 = vrot.lane.b32.xlu1 %v9730_v43, %s10640_s3 }
 0x6a5   : > { %4638 = vrot.lane.b32.xlu0 %v9694_v57, %s10640_s3  ;;  %4640 = vrot.lane.b32.xlu1 %v9772_v1, %s10640_s3  ;;  %s10957_s3 = smov 104  }
 0x6a9   : > { %4692 = vrot.lane.b32.xlu0 %v9645_v29, %s10934_s29  ;;  %4694 = vrot.lane.b32.xlu1 %v9661_v31, %s10934_s29  ;;  %v9889_v29 = vmax.f32 %v4238_v28, 0.0 }
 0x6ad   : > { %4696 = vrot.lane.b32.xlu0 %v9643_v60, %s10934_s29  ;;  %4698 = vrot.lane.b32.xlu1 %v9669_v40, %s10934_s29 }
 0x6b1   : > { %4310 = vrot.lane.b32.xlu0 %v9647_v30, %s10910_s1  ;;  %4312 = vrot.lane.b32.xlu1 %v9730_v43, %s10910_s1 }
 0x6b5   : > { %4314 = vrot.lane.b32.xlu0 %v9694_v57, %s10910_s1  ;;  %4316 = vrot.lane.b32.xlu1 %v9772_v1, %s10910_s1 }
 0x6b9   : > { %4700 = vrot.lane.b32.xlu0 %v9647_v30, %s10934_s29  ;;  %4702 = vrot.lane.b32.xlu1 %v9730_v43, %s10934_s29 }
 0x6bd   : > { %4704 = vrot.lane.b32.xlu0 %v9694_v57, %s10934_s29  ;;  %4706 = vrot.lane.b32.xlu1 %v9772_v1, %s10934_s29 }
 0x6bf   : > { %v4301_v48 = vpop.permute.xlu1 %4300  ;;  %v4299_v6 = vpop.permute.xlu0 %4298 }
 0x6c0   : > { %4347 = vst.msk [vmem:[#allocation7 + $0xf] sm:$0x1] %vm4344_vm7, %v4301_v48 }
 0x6c1   : > { %4346 = vst.msk [vmem:[#allocation7 + $0x7] sm:$0xfe] %vm4342_vm0, %v4299_v6  ;;  %4320 = vrot.lane.b32.xlu1 %v9817_v54, %s10910_s1  ;;  %4318 = vrot.lane.b32.xlu0 %v9700_v56, %s10910_s1 }
 0x6c3   : > { %v4305_v10 = vpop.permute.xlu1 %4304  ;;  %v4303_v11 = vpop.permute.xlu0 %4302 }
 0x6c4   : > { %4349 = vst.msk [vmem:[#allocation7 + $0x17] sm:$0x1] %vm4344_vm7, %v4305_v10 }
 0x6c5   : > { %4348 = vst.msk [vmem:[#allocation7 + $0xf] sm:$0xfe] %vm4342_vm0, %v4303_v11  ;;  %4324 = vrot.lane.b32.xlu1 %v9825_v12, %s10910_s1  ;;  %4322 = vrot.lane.b32.xlu0 %v9688_v32, %s10910_s1 }
 0x6c7   : > { %v4309_v13 = vpop.permute.xlu1 %4308  ;;  %v4307_v14 = vpop.permute.xlu0 %4306 }
 0x6c8   : > { %4351 = vst.msk [vmem:[#allocation7 + $0x1f] sm:$0x1] %vm4344_vm7, %v4309_v13 }
 0x6c9   : > { %4350 = vst.msk [vmem:[#allocation7 + $0x17] sm:$0xfe] %vm4342_vm0, %v4307_v14  ;;  %4378 = vrot.lane.b32.xlu1 %v9730_v43, %s10924_s24  ;;  %4376 = vrot.lane.b32.xlu0 %v9647_v30, %s10924_s24  ;;  %v4260_v43 = vmax.f32 %v4240_v53, 0.0 }
 0x6cb   : > { %v4363_v15 = vpop.permute.xlu1 %4362  ;;  %v4361_v16 = vpop.permute.xlu0 %4360 }
 0x6cc   : > { %4411 = vst.msk [vmem:[#allocation7 + $0x6] sm:$0x3] %vm4410_vm2, %v4363_v15 }
 0x6cd   : > { %4409 = vst.msk [vmem:[#allocation7 - $0x2] sm:$0xfc] %vm4408_vm4, %v4361_v16  ;;  %4382 = vrot.lane.b32.xlu1 %v9772_v1, %s10924_s24  ;;  %4380 = vrot.lane.b32.xlu0 %v9694_v57, %s10924_s24 }
 0x6cf   : > { %v4367_v18 = vpop.permute.xlu1 %4366  ;;  %v4365_v34 = vpop.permute.xlu0 %4364 }
 0x6d0   : > { %4413 = vst.msk [vmem:[#allocation7 + $0xe] sm:$0x3] %vm4410_vm2, %v4367_v18 }
 0x6d1   : > { %4412 = vst.msk [vmem:[#allocation7 + $0x6] sm:$0xfc] %vm4408_vm4, %v4365_v34  ;;  %4386 = vrot.lane.b32.xlu1 %v9817_v54, %s10924_s24  ;;  %4384 = vrot.lane.b32.xlu0 %v9700_v56, %s10924_s24 }
 0x6d3   : > { %v4371_v17 = vpop.permute.xlu1 %4370  ;;  %v4369_v35 = vpop.permute.xlu0 %4368 }
 0x6d4   : > { %4415 = vst.msk [vmem:[#allocation7 + $0x16] sm:$0x3] %vm4410_vm2, %v4371_v17 }
 0x6d5   : > { %4414 = vst.msk [vmem:[#allocation7 + $0xe] sm:$0xfc] %vm4408_vm4, %v4369_v35  ;;  %4390 = vrot.lane.b32.xlu1 %v9825_v12, %s10924_s24  ;;  %4388 = vrot.lane.b32.xlu0 %v9688_v32, %s10924_s24 }
 0x6d7   : > { %v4375_v19 = vpop.permute.xlu1 %4374  ;;  %v4373_v20 = vpop.permute.xlu0 %4372 }
 0x6d8   : > { %4417 = vst.msk [vmem:[#allocation7 + $0x1e] sm:$0x3] %vm4410_vm2, %v4375_v19 }
 0x6d9   : > { %4416 = vst.msk [vmem:[#allocation7 + $0x16] sm:$0xfc] %vm4408_vm4, %v4373_v20  ;;  %4437 = vrot.lane.b32.xlu1 %v9700_v56, %s10930_s20  ;;  %4435 = vrot.lane.b32.xlu0 %v9694_v57, %s10930_s20 }
 0x6db   : > { %v4430_v38 = vpop.permute.xlu1 %4429  ;;  %v4428_v39 = vpop.permute.xlu0 %4427 }
 0x6dc   : > { %4452 = vst.msk [vmem:[#allocation7 + $0x8] sm:$0xff] %vm10935_vm6, %v4430_v38  ;;  %vm4676_vm6 = vcmask 516544  }
 0x6dd   : > { %4451 = vst.msk [vmem:[#allocation7] sm:$0xff] %vm10936_vm14, %v4428_v39  ;;  %4441 = vrot.lane.b32.xlu1 %v9863_v22, %s10930_s20  ;;  %4439 = vrot.lane.b32.xlu0 %v9688_v32, %s10930_s20  ;;  %vm4674_vm14 = vcmask 523713  }
 0x6df   : > { %v4434_v44 = vpop.permute.xlu1 %4433  ;;  %v4432_v45 = vpop.permute.xlu0 %4431 }
 0x6e0   : > { %4454 = vst.msk [vmem:[#allocation7 + $0x18] sm:$0xff] %vm10937_vm11, %v4434_v44  ;;  %vm4742_vm11 = vcmask 583168  }
 0x6e1   : > { %4453 = vst.msk [vmem:[#allocation7 + $0x10] sm:$0xff] %vm10938_vm8, %v4432_v45  ;;  %4478 = vrot.lane.b32.xlu1 %v9772_v1, %s10931_s4  ;;  %4476 = vrot.lane.b32.xlu0 %v9694_v57, %s10931_s4  ;;  %vm4740_vm8 = vcmask 589314  }
 0x6e3   : > { %v4463_v24 = vpop.permute.xlu1 %4462  ;;  %v4461_v26 = vpop.permute.xlu0 %4460 }
 0x6e4   : > { %4511 = vst.msk [vmem:[#allocation7 + $0x7] sm:$0x1] %vm4510_vm3, %v4463_v24 }
 0x6e5   : > { %4509 = vst.msk [vmem:[#allocation7 - $0x1] sm:$0xfe] %vm4508_vm9, %v4461_v26  ;;  %4482 = vrot.lane.b32.xlu1 %v9817_v54, %s10931_s4  ;;  %4480 = vrot.lane.b32.xlu0 %v9700_v56, %s10931_s4 }
 0x6e7   : > { %v4467_v23 = vpop.permute.xlu1 %4466  ;;  %v4465_v27 = vpop.permute.xlu0 %4464 }
 0x6e8   : > { %4513 = vst.msk [vmem:[#allocation7 + $0xf] sm:$0x1] %vm4510_vm3, %v4467_v23 }
 0x6e9   : > { %4512 = vst.msk [vmem:[#allocation7 + $0x7] sm:$0xfe] %vm4508_vm9, %v4465_v27  ;;  %4486 = vrot.lane.b32.xlu1 %v9825_v12, %s10931_s4  ;;  %4484 = vrot.lane.b32.xlu0 %v9688_v32, %s10931_s4 }
 0x6eb   : > { %v4471_v60 = vpop.permute.xlu1 %4470  ;;  %v4469_v61 = vpop.permute.xlu0 %4468 }
 0x6ec   : > { %4515 = vst.msk [vmem:[#allocation7 + $0x17] sm:$0x1] %vm4510_vm3, %v4471_v60 }
 0x6ed   : > { %4514 = vst.msk [vmem:[#allocation7 + $0xf] sm:$0xfe] %vm4508_vm9, %v4469_v61  ;;  %4490 = vrot.lane.b32.xlu1 %v9889_v29, %s10931_s4  ;;  %4488 = vrot.lane.b32.xlu0 %v9863_v22, %s10931_s4 }
 0x6ef   : > { %v4475_v30 = vpop.permute.xlu1 %4474  ;;  %v4473_v31 = vpop.permute.xlu0 %4472 }
 0x6f0   : > { %4517 = vst.msk [vmem:[#allocation7 + $0x1f] sm:$0x1] %vm4510_vm3, %v4475_v30 }
 0x6f1   : > { %4516 = vst.msk [vmem:[#allocation7 + $0x17] sm:$0xfe] %vm4508_vm9, %v4473_v31  ;;  %4544 = vrot.lane.b32.xlu1 %v9772_v1, %s10932_s5  ;;  %4542 = vrot.lane.b32.xlu0 %v9694_v57, %s10932_s5 }
 0x6f3   : > { %v4529_v36 = vpop.permute.xlu1 %4528  ;;  %v4527_v37 = vpop.permute.xlu0 %4526 }
 0x6f4   : > { %4577 = vst.msk [vmem:[#allocation7 + $0x6] sm:$0x3] %vm4576_vm13, %v4529_v36 }
 0x6f5   : > { %4575 = vst.msk [vmem:[#allocation7 - $0x2] sm:$0xfc] %vm4574_vm15, %v4527_v37  ;;  %4548 = vrot.lane.b32.xlu1 %v9817_v54, %s10932_s5  ;;  %4546 = vrot.lane.b32.xlu0 %v9700_v56, %s10932_s5 }
 0x6f7   : > { %v4533_v25 = vpop.permute.xlu1 %4532  ;;  %v4531_v40 = vpop.permute.xlu0 %4530 }
 0x6f8   : > { %4579 = vst.msk [vmem:[#allocation7 + $0xe] sm:$0x3] %vm4576_vm13, %v4533_v25 }
 0x6f9   : > { %4578 = vst.msk [vmem:[#allocation7 + $0x6] sm:$0xfc] %vm4574_vm15, %v4531_v40  ;;  %4552 = vrot.lane.b32.xlu1 %v9825_v12, %s10932_s5  ;;  %4550 = vrot.lane.b32.xlu0 %v9688_v32, %s10932_s5 }
 0x6fb   : > { %v4537_v33 = vpop.permute.xlu1 %4536  ;;  %v4535_v59 = vpop.permute.xlu0 %4534 }
 0x6fc   : > { %4581 = vst.msk [vmem:[#allocation7 + $0x16] sm:$0x3] %vm4576_vm13, %v4537_v33 }
 0x6fd   : > { %4580 = vst.msk [vmem:[#allocation7 + $0xe] sm:$0xfc] %vm4574_vm15, %v4535_v59  ;;  %4556 = vrot.lane.b32.xlu1 %v9889_v29, %s10932_s5  ;;  %4554 = vrot.lane.b32.xlu0 %v9863_v22, %s10932_s5 }
 0x6ff   : > { %v4541_v42 = vpop.permute.xlu1 %4540  ;;  %v4539_v46 = vpop.permute.xlu0 %4538 }
 0x700   : > { %4583 = vst.msk [vmem:[#allocation7 + $0x1e] sm:$0x3] %vm4576_vm13, %v4541_v42 }
 0x701   : > { %4582 = vst.msk [vmem:[#allocation7 + $0x16] sm:$0xfc] %vm4574_vm15, %v4539_v46  ;;  %4603 = vrot.lane.b32.xlu1 %v9688_v32, %s10933_s2  ;;  %4601 = vrot.lane.b32.xlu0 %v9700_v56, %s10933_s2 }
 0x703   : > { %v4596_v63 = vpop.permute.xlu1 %4595  ;;  %v4594_v50 = vpop.permute.xlu0 %4593 }
 0x704   : > { %4618 = vst.msk [vmem:[#allocation7 + $0x8] sm:$0xff] %vm3206_vm10, %v4596_v63  ;;  %4617 = vst.msk [vmem:[#allocation7] sm:$0xff] %vm3206_vm10, %v4594_v50 }
 0x705   : > { %4607 = vrot.lane.b32.xlu1 %v4259_v47, %s10933_s2  ;;  %4605 = vrot.lane.b32.xlu0 %v9863_v22, %s10933_s2 }
 0x707   : > { %v4600_v51 = vpop.permute.xlu1 %4599  ;;  %v4598_v52 = vpop.permute.xlu0 %4597 }
 0x708   : > { %4620 = vst.msk [vmem:[#allocation7 + $0x18] sm:$0xff] %vm3206_vm10, %v4600_v51  ;;  %4619 = vst.msk [vmem:[#allocation7 + $0x10] sm:$0xff] %vm3206_vm10, %v4598_v52 }
 0x709   : > { %4644 = vrot.lane.b32.xlu1 %v9817_v54, %s10939_s28  ;;  %4642 = vrot.lane.b32.xlu0 %v9700_v56, %s10939_s28 }
 0x70b   : > { %v4629_v57 = vpop.permute.xlu1 %4628  ;;  %v4627_v55 = vpop.permute.xlu0 %4626 }
 0x70c   : > { %4677 = vst.msk [vmem:[#allocation7 + $0x7] sm:$0x1] %vm4676_vm6, %v4629_v57 }
 0x70d   : > { %4675 = vst.msk [vmem:[#allocation7 - $0x1] sm:$0xfe] %vm4674_vm14, %v4627_v55  ;;  %4648 = vrot.lane.b32.xlu1 %v9825_v12, %s10939_s28  ;;  %4646 = vrot.lane.b32.xlu0 %v9688_v32, %s10939_s28 }
 0x70f   : > { %v4633_v58 = vpop.permute.xlu1 %4632  ;;  %v4631_v62 = vpop.permute.xlu0 %4630 }
 0x710   : > { %4679 = vst.msk [vmem:[#allocation7 + $0xf] sm:$0x1] %vm4676_vm6, %v4633_v58 }
 0x711   : > { %4678 = vst.msk [vmem:[#allocation7 + $0x7] sm:$0xfe] %vm4674_vm14, %v4631_v62  ;;  %4652 = vrot.lane.b32.xlu1 %v9889_v29, %s10939_s28  ;;  %4650 = vrot.lane.b32.xlu0 %v9863_v22, %s10939_s28 }
 0x713   : > { %v4637_v0 = vpop.permute.xlu1 %4636  ;;  %v4635_v1 = vpop.permute.xlu0 %4634 }
 0x714   : > { %4681 = vst.msk [vmem:[#allocation7 + $0x17] sm:$0x1] %vm4676_vm6, %v4637_v0 }
 0x715   : > { %4680 = vst.msk [vmem:[#allocation7 + $0xf] sm:$0xfe] %vm4674_vm14, %v4635_v1  ;;  %4656 = vrot.lane.b32.xlu1 %v4260_v43, %s10939_s28  ;;  %4654 = vrot.lane.b32.xlu0 %v4259_v47, %s10939_s28 }
 0x717   : > { %v4641_v2 = vpop.permute.xlu1 %4640  ;;  %v4639_v3 = vpop.permute.xlu0 %4638 }
 0x718   : > { %4683 = vst.msk [vmem:[#allocation7 + $0x1f] sm:$0x1] %vm4676_vm6, %v4641_v2 }
 0x719   : > { %4682 = vst.msk [vmem:[#allocation7 + $0x17] sm:$0xfe] %vm4674_vm14, %v4639_v3  ;;  %4710 = vrot.lane.b32.xlu1 %v9817_v54, %s10934_s29  ;;  %4708 = vrot.lane.b32.xlu0 %v9700_v56, %s10934_s29 }
 0x71b   : > { %v4695_v4 = vpop.permute.xlu1 %4694  ;;  %v4693_v5 = vpop.permute.xlu0 %4692 }
 0x71c   : > { %4743 = vst.msk [vmem:[#allocation7 + $0x6] sm:$0x3] %vm4742_vm11, %v4695_v4 }
 0x71d   : > { %4741 = vst.msk [vmem:[#allocation7 - $0x2] sm:$0xfc] %vm4740_vm8, %v4693_v5  ;;  %4714 = vrot.lane.b32.xlu1 %v9825_v12, %s10934_s29  ;;  %4712 = vrot.lane.b32.xlu0 %v9688_v32, %s10934_s29 }
 0x71f   : > { %v4699_v49 = vpop.permute.xlu1 %4698  ;;  %v4697_v7 = vpop.permute.xlu0 %4696 }
 0x720   : > { %4745 = vst.msk [vmem:[#allocation7 + $0xe] sm:$0x3] %vm4742_vm11, %v4699_v49 }
 0x721   : > { %4744 = vst.msk [vmem:[#allocation7 + $0x6] sm:$0xfc] %vm4740_vm8, %v4697_v7  ;;  %4718 = vrot.lane.b32.xlu1 %v9889_v29, %s10934_s29  ;;  %4716 = vrot.lane.b32.xlu0 %v9863_v22, %s10934_s29 }
 0x723   : > { %v4313_v56 = vpop.permute.xlu1 %4312  ;;  %v4311_v8 = vpop.permute.xlu0 %4310 }
 0x724   : > { %4353 = vst.msk [vmem:[#allocation7 + $0x27] sm:$0x1] %vm4344_vm7, %v4313_v56  ;;  %v4758_v6 = vld [vmem:[#allocation7] sm:$0xff] }
 0x725   : > { %4352 = vst.msk [vmem:[#allocation7 + $0x1f] sm:$0xfe] %vm4342_vm0, %v4311_v8  ;;  %4722 = vrot.lane.b32.xlu1 %v4260_v43, %s10934_s29  ;;  %4720 = vrot.lane.b32.xlu0 %v4259_v47, %s10934_s29  ;;  %v4948_v56 = vld [vmem:[#allocation9 + $0x1] ss:$2 sm:$0xf] }
 0x727   : > { %v4317_v32 = vpop.permute.xlu1 %4316  ;;  %v4315_v48 = vpop.permute.xlu0 %4314 }
 0x728   : > { %v4759_v54 = vld [vmem:[#allocation7 + $0x8] sm:$0xff]  ;;  %4355 = vst.msk [vmem:[#allocation7 + $0x2f] sm:$0x1] %vm4344_vm7, %v4317_v32 }
 0x729   : > { %4354 = vst.msk [vmem:[#allocation7 + $0x27] sm:$0xfe] %vm4342_vm0, %v4315_v48  ;;  %v4766_v9 = vpack.c.bf16 %v4759_v54, %v4758_v6  ;;  %4959 = vrot.lane.b32.xlu0 %v4948_v56, %s10910_s1 }
 0x72b   : > { %7153 = vmatprep.mubr.msk.bf16.mxu1 %vm4261_vm5, %v4766_v9  ;;  %v4703_v10 = vpop.permute.xlu1 %4702  ;;  %v4701_v11 = vpop.permute.xlu0 %4700 }
 0x72c   : > { %4747 = vst.msk [vmem:[#allocation7 + $0x16] sm:$0x3] %vm4742_vm11, %v4703_v10 }
 0x72d   : > { %4746 = vst.msk [vmem:[#allocation7 + $0xe] sm:$0xfc] %vm4740_vm8, %v4701_v11 }
 0x72f   : > { %v4707_v12 = vpop.permute.xlu1 %4706  ;;  %v4705_v13 = vpop.permute.xlu0 %4704 }
 0x730   : > { %4749 = vst.msk [vmem:[#allocation7 + $0x1e] sm:$0x3] %vm4742_vm11, %v4707_v12  ;;  %v4935_v12 = vld [vmem:[#allocation9] ss:$2 sm:$0xf] }
 0x731   : > { %4748 = vst.msk [vmem:[#allocation7 + $0x16] sm:$0xfc] %vm4740_vm8, %v4705_v13 }
 0x733   : > { %v4321_v14 = vpop.permute.xlu1 %4320  ;;  %v4319_v15 = vpop.permute.xlu0 %4318 }
 0x734   : > { %4357 = vst.msk [vmem:[#allocation7 + $0x37] sm:$0x1] %vm4344_vm7, %v4321_v14  ;;  %v4760_v34 = vld [vmem:[#allocation7 + $0x10] sm:$0xff]  ;;  %v6923_v14 = vld [vmem:[%s10567_s8] ss:$0 sm:$0xff] }
 0x735   : > { %4356 = vst.msk [vmem:[#allocation7 + $0x2f] sm:$0xfe] %vm4342_vm0, %v4319_v15 }
 0x737   : > { %v4325_v16 = vpop.permute.xlu1 %4324  ;;  %v4323_v18 = vpop.permute.xlu0 %4322 }
 0x738   : > { %v4761_v17 = vld [vmem:[#allocation7 + $0x18] sm:$0xff]  ;;  %4359 = vst.msk [vmem:[#allocation7 + $0x3f] sm:$0x1] %vm4344_vm7, %v4325_v16  ;;  %vm10940_vm7 = vcmask 261312  }
 0x739   : > { %4358 = vst.msk [vmem:[#allocation7 + $0x37] sm:$0xfe] %vm4342_vm0, %v4323_v18  ;;  %v4767_v35 = vpack.c.bf16 %v4761_v17, %v4760_v34  ;;  %vm10941_vm0 = vmmov %vm10940_vm7 }
 0x73a   : > { %vm10942_vm1 = vmmov %vm10941_vm0 }
 0x73b   : > { %7154 = vmatmul.mubr.msk.bf16.vlgmr.msra.gmra.mrb[8].mxu1 %vm4261_vm5, %v4767_v35  ;;  %v4379_v19 = vpop.permute.xlu1 %4378  ;;  %v4377_v20 = vpop.permute.xlu0 %4376  ;;  %vm10943_vm12 = vmmov %vm10941_vm0 }
 0x73c   : > { %4419 = vst.msk [vmem:[#allocation7 + $0x26] sm:$0x3] %vm4410_vm2, %v4379_v19 }
 0x73d   : > { %4418 = vst.msk [vmem:[#allocation7 + $0x1e] sm:$0xfc] %vm4408_vm4, %v4377_v20 }
 0x73f   : > { %v4383_v21 = vpop.permute.xlu1 %4382  ;;  %v4381_v38 = vpop.permute.xlu0 %4380 }
 0x740   : > { %4421 = vst.msk [vmem:[#allocation7 + $0x2e] sm:$0x3] %vm4410_vm2, %v4383_v21 }
 0x741   : > { %4420 = vst.msk [vmem:[#allocation7 + $0x26] sm:$0xfc] %vm4408_vm4, %v4381_v38 }
 0x743   : > { %v4387_v39 = vpop.permute.xlu1 %4386  ;;  %v4385_v22 = vpop.permute.xlu0 %4384 }
 0x744   : > { %4423 = vst.msk [vmem:[#allocation7 + $0x36] sm:$0x3] %vm4410_vm2, %v4387_v39 }
 0x745   : > { %4422 = vst.msk [vmem:[#allocation7 + $0x2e] sm:$0xfc] %vm4408_vm4, %v4385_v22 }
 0x747   : > { %v4391_v44 = vpop.permute.xlu1 %4390  ;;  %v4389_v45 = vpop.permute.xlu0 %4388 }
 0x748   : > { %4425 = vst.msk [vmem:[#allocation7 + $0x3e] sm:$0x3] %vm4410_vm2, %v4391_v44 }
 0x749   : > { %4424 = vst.msk [vmem:[#allocation7 + $0x36] sm:$0xfc] %vm4408_vm4, %v4389_v45 }
 0x74b   : > { %v4438_v24 = vpop.permute.xlu1 %4437  ;;  %v4436_v26 = vpop.permute.xlu0 %4435 }
 0x74c   : > { %4456 = vst.msk [vmem:[#allocation7 + $0x28] sm:$0xff] %vm10940_vm7, %v4438_v24  ;;  %v4977_v24 = vld [vmem:[#allocation9 + $0x2] ss:$2 sm:$0xf]  ;;  %vm5029_vm7 = vcmask 257216  }
 0x74d   : > { %4455 = vst.msk [vmem:[#allocation7 + $0x20] sm:$0xff] %vm10941_vm0, %v4436_v26  ;;  %vm5057_vm0 = vcmask 322816  }
 0x74f   : > { %v4442_v23 = vpop.permute.xlu1 %4441  ;;  %v4440_v27 = vpop.permute.xlu0 %4439 }
 0x750   : > { %4458 = vst.msk [vmem:[#allocation7 + $0x38] sm:$0xff] %vm10942_vm1, %v4442_v23  ;;  %vm4971_vm1 = vcmask 126016  }
 0x751   : > { %4457 = vst.msk [vmem:[#allocation7 + $0x30] sm:$0xff] %vm10943_vm12, %v4440_v27 }
 0x753   : > { %v4479_v28 = vpop.permute.xlu1 %4478  ;;  %v4477_v60 = vpop.permute.xlu0 %4476 }
 0x754   : > { %4519 = vst.msk [vmem:[#allocation7 + $0x27] sm:$0x1] %vm4510_vm3, %v4479_v28  ;;  %v5006_v28 = vld [vmem:[#allocation9 + $0x3] ss:$2 sm:$0xf] }
 0x755   : > { %4518 = vst.msk [vmem:[#allocation7 + $0x1f] sm:$0xfe] %vm4508_vm9, %v4477_v60 }
 0x757   : > { %v4483_v61 = vpop.permute.xlu1 %4482  ;;  %v4481_v29 = vpop.permute.xlu0 %4480 }
 0x758   : > { %4521 = vst.msk [vmem:[#allocation7 + $0x2f] sm:$0x1] %vm4510_vm3, %v4483_v61 }
 0x759   : > { %4520 = vst.msk [vmem:[#allocation7 + $0x27] sm:$0xfe] %vm4508_vm9, %v4481_v29 }
 0x75b   : > { %v4487_v30 = vpop.permute.xlu1 %4486  ;;  %v4485_v31 = vpop.permute.xlu0 %4484 }
 0x75c   : > { %4523 = vst.msk [vmem:[#allocation7 + $0x37] sm:$0x1] %vm4510_vm3, %v4487_v30 }
 0x75d   : > { %4522 = vst.msk [vmem:[#allocation7 + $0x2f] sm:$0xfe] %vm4508_vm9, %v4485_v31 }
 0x75f   : > { %v4491_v36 = vpop.permute.xlu1 %4490  ;;  %v4489_v37 = vpop.permute.xlu0 %4488 }
 0x760   : > { %4525 = vst.msk [vmem:[#allocation7 + $0x3f] sm:$0x1] %vm4510_vm3, %v4491_v36 }
 0x761   : > { %4524 = vst.msk [vmem:[#allocation7 + $0x37] sm:$0xfe] %vm4508_vm9, %v4489_v37 }
 0x763   : > { %v4545_v25 = vpop.permute.xlu1 %4544  ;;  %v4543_v40 = vpop.permute.xlu0 %4542 }
 0x764   : > { %4585 = vst.msk [vmem:[#allocation7 + $0x26] sm:$0x3] %vm4576_vm13, %v4545_v25 }
 0x765   : > { %4584 = vst.msk [vmem:[#allocation7 + $0x1e] sm:$0xfc] %vm4574_vm15, %v4543_v40 }
 0x767   : > { %v4549_v33 = vpop.permute.xlu1 %4548  ;;  %v4547_v59 = vpop.permute.xlu0 %4546 }
 0x768   : > { %4587 = vst.msk [vmem:[#allocation7 + $0x2e] sm:$0x3] %vm4576_vm13, %v4549_v33 }
 0x769   : > { %4586 = vst.msk [vmem:[#allocation7 + $0x26] sm:$0xfc] %vm4574_vm15, %v4547_v59 }
 0x76b   : > { %v4553_v41 = vpop.permute.xlu1 %4552  ;;  %v4551_v42 = vpop.permute.xlu0 %4550 }
 0x76c   : > { %4589 = vst.msk [vmem:[#allocation7 + $0x36] sm:$0x3] %vm4576_vm13, %v4553_v41 }
 0x76d   : > { %4588 = vst.msk [vmem:[#allocation7 + $0x2e] sm:$0xfc] %vm4574_vm15, %v4551_v42 }
 0x76f   : > { %v4557_v46 = vpop.permute.xlu1 %4556  ;;  %v4555_v47 = vpop.permute.xlu0 %4554 }
 0x770   : > { %4591 = vst.msk [vmem:[#allocation7 + $0x3e] sm:$0x3] %vm4576_vm13, %v4557_v46 }
 0x771   : > { %4590 = vst.msk [vmem:[#allocation7 + $0x36] sm:$0xfc] %vm4574_vm15, %v4555_v47 }
 0x773   : > { %v4604_v63 = vpop.permute.xlu1 %4603  ;;  %v4602_v50 = vpop.permute.xlu0 %4601 }
 0x774   : > { %4622 = vst.msk [vmem:[#allocation7 + $0x28] sm:$0xff] %vm3206_vm10, %v4604_v63  ;;  %4621 = vst.msk [vmem:[#allocation7 + $0x20] sm:$0xff] %vm3206_vm10, %v4602_v50 }
 0x777   : > { %v4608_v51 = vpop.permute.xlu1 %4607  ;;  %v4606_v52 = vpop.permute.xlu0 %4605 }
 0x778   : > { %4624 = vst.msk [vmem:[#allocation7 + $0x38] sm:$0xff] %vm3206_vm10, %v4608_v51  ;;  %4623 = vst.msk [vmem:[#allocation7 + $0x30] sm:$0xff] %vm3206_vm10, %v4606_v52  ;;  %vm10944_vm10 = vcmask 60416  }
 0x779   : > { %4943 = vst.msk [vmem:[#allocation10] sm:$0xf] %vm10944_vm10, %v4935_v12  ;;  %vm10949_vm3 = vmmov %vm10944_vm10  ;;  %vm5086_vm10 = vcmask 388416  }
 0x77a   : > { %vm10950_vm9 = vmmov %vm10949_vm3 }
 0x77b   : > { %v4645_v57 = vpop.permute.xlu1 %4644  ;;  %v4643_v55 = vpop.permute.xlu0 %4642 }
 0x77c   : > { %4685 = vst.msk [vmem:[#allocation7 + $0x27] sm:$0x1] %vm4676_vm6, %v4645_v57 }
 0x77d   : > { %4684 = vst.msk [vmem:[#allocation7 + $0x1f] sm:$0xfe] %vm4674_vm14, %v4643_v55 }
 0x77f   : > { %v4649_v53 = vpop.permute.xlu1 %4648  ;;  %v4647_v58 = vpop.permute.xlu0 %4646 }
 0x780   : > { %4687 = vst.msk [vmem:[#allocation7 + $0x2f] sm:$0x1] %vm4676_vm6, %v4649_v53 }
 0x781   : > { %4686 = vst.msk [vmem:[#allocation7 + $0x27] sm:$0xfe] %vm4674_vm14, %v4647_v58 }
 0x783   : > { %v4653_v62 = vpop.permute.xlu1 %4652  ;;  %v4651_v43 = vpop.permute.xlu0 %4650 }
 0x784   : > { %4689 = vst.msk [vmem:[#allocation7 + $0x37] sm:$0x1] %vm4676_vm6, %v4653_v62 }
 0x785   : > { %4688 = vst.msk [vmem:[#allocation7 + $0x2f] sm:$0xfe] %vm4674_vm14, %v4651_v43 }
 0x787   : > { %v4657_v0 = vpop.permute.xlu1 %4656  ;;  %v4655_v1 = vpop.permute.xlu0 %4654 }
 0x788   : > { %4691 = vst.msk [vmem:[#allocation7 + $0x3f] sm:$0x1] %vm4676_vm6, %v4657_v0 }
 0x789   : > { %4690 = vst.msk [vmem:[#allocation7 + $0x37] sm:$0xfe] %vm4674_vm14, %v4655_v1 }
 0x78b   : > { %v4711_v2 = vpop.permute.xlu1 %4710  ;;  %v4709_v3 = vpop.permute.xlu0 %4708 }
 0x78c   : > { %4751 = vst.msk [vmem:[#allocation7 + $0x26] sm:$0x3] %vm4742_vm11, %v4711_v2 }
 0x78d   : > { %4750 = vst.msk [vmem:[#allocation7 + $0x1e] sm:$0xfc] %vm4740_vm8, %v4709_v3 }
 0x78f   : > { %v4715_v4 = vpop.permute.xlu1 %4714  ;;  %v4713_v5 = vpop.permute.xlu0 %4712 }
 0x790   : > { %4753 = vst.msk [vmem:[#allocation7 + $0x2e] sm:$0x3] %vm4742_vm11, %v4715_v4 }
 0x791   : > { %4752 = vst.msk [vmem:[#allocation7 + $0x26] sm:$0xfc] %vm4740_vm8, %v4713_v5 }
 0x793   : > { %v4719_v49 = vpop.permute.xlu1 %4718  ;;  %v4717_v7 = vpop.permute.xlu0 %4716 }
 0x794   : > { %4755 = vst.msk [vmem:[#allocation7 + $0x36] sm:$0x3] %vm4742_vm11, %v4719_v49  ;;  %v4762_v48 = vld [vmem:[#allocation7 + $0x20] sm:$0xff] }
 0x795   : > { %4754 = vst.msk [vmem:[#allocation7 + $0x2e] sm:$0xfc] %vm4740_vm8, %v4717_v7 }
 0x797   : > { %v4723_v8 = vpop.permute.xlu1 %4722  ;;  %v4721_v32 = vpop.permute.xlu0 %4720 }
 0x798   : > { %v4763_v6 = vld [vmem:[#allocation7 + $0x28] sm:$0xff]  ;;  %4757 = vst.msk [vmem:[#allocation7 + $0x3e] sm:$0x3] %vm4742_vm11, %v4723_v8  ;;  %vm10955_vm11 = vmmov %vm10949_vm3 }
 0x799   : > { %4756 = vst.msk [vmem:[#allocation7 + $0x36] sm:$0xfc] %vm4740_vm8, %v4721_v32  ;;  %v4768_v54 = vpack.c.bf16 %v4763_v6, %v4762_v48  ;;  %vm5000_vm8 = vcmask 191616  }
 0x79b   : > { %7157 = vmatprep.mubr.msk.bf16.mxu1 %vm4261_vm5, %v4768_v54  ;;  %v4960_v13 = vpop.permute.xlu0 %4959 }
 0x79c   : > { %v4764_v9 = vld [vmem:[#allocation7 + $0x30] sm:$0xff]  ;;  %4972 = vst.msk [vmem:[#allocation10] sm:$0xf] %vm4971_vm1, %v4960_v13 }
 0x7a0   : > { %v4765_v10 = vld [vmem:[#allocation7 + $0x38] sm:$0xff] }
 0x7a1   : > { %v4769_v11 = vpack.c.bf16 %v4765_v10, %v4764_v9 }
 0x7a3   : > { %7158 = vmatmul.mubr.msk.bf16.gmra.mrb[12].mxu1 %vm4261_vm5, %v4769_v11  ;;  %vm10945_vm5 = vcmask 64512  }
 0x7a4   : > { %vm10946_vm12 = vmmov %vm10945_vm5 }
 0x7a5   : > { %vm10947_vm2 = vmmov %vm10945_vm5 }
 0x7a6   : > { %vm10948_vm4 = vmmov %vm10947_vm2 }
 0x7a7   : > { %vm10951_vm13 = vmmov %vm10947_vm2 }
 0x7a8   : > { %vm10952_vm15 = vmmov %vm10947_vm2 }
 0x7a9   : > { %vm10953_vm6 = vmmov %vm10947_vm2 }
 0x7aa   : > { %vm10954_vm14 = vmmov %vm10947_vm2 }
 0x80e   : > { %v7155_v15 = vpop.f32.mrb[8].mxu1 }
 0x80f   : > { %v4872_v16 = vadd.f32 %v7155_v15, %v6923_v14  ;;  %v4863_v18 = vpop.f32.mrb[9].mxu1 }
 0x810   : > { %v4864_v34 = vadd.f32 %v6923_v14, %v4863_v18  ;;  %v7156_v17 = vpop.f32.mrb[10].mxu1 }
 0x811   : > { %v4896_v35 = vmax.f32 %v4872_v16, 0.0  ;;  %v4875_v19 = vadd.f32 %v7156_v17, %v6923_v14  ;;  %v4866_v20 = vpop.f32.mrb[11].mxu1 }
 0x812   : > { %v4894_v21 = vmax.f32 %v4864_v34, 0.0  ;;  %v4867_v38 = vadd.f32 %v6923_v14, %v4866_v20  ;;  %v7289_v20 = vld [vmem:[%s10568_s9] sm:$0xff]  }
 0x813   : > { %4925 = vst.msk [vmem:[#allocation9 + $0x31] sm:$0xff] %vm10945_vm5, %v4896_v35  ;;  %v4897_v39 = vmax.f32 %v4875_v19, 0.0  ;;  %7161 = vmatprep.subr.bf16.mxu0 %v7289_v20  ;;  %vm5115_vm5 = vcmask 454016  }
 0x814   : > { %4923 = vst.msk [vmem:[#allocation9 + $0x11] sm:$0xff] %vm10946_vm12, %v4894_v21  ;;  %v4895_v22 = vmax.f32 %v4867_v38, 0.0  ;;  %7162 = vmatpush3.bf16.msra.mxu0 %v7289_v20  ;;  %vm5144_vm12 = vcmask 519616  }
 0x815   : > { %4926 = vst.msk [vmem:[#allocation9 + $0x41] sm:$0xff] %vm10947_vm2, %v4897_v39  ;;  %vm5173_vm2 = vcmask 585216  }
 0x816   : > { %4924 = vst.msk [vmem:[#allocation9 + $0x21] sm:$0xff] %vm10948_vm4, %v4895_v22  ;;  %vm5202_vm4 = vcmask 650816  }
 0x81a   : > { %v5036_v5 = vld [vmem:[#allocation9 + $0x30] ss:$2 sm:$0xf]  ;;  %v5065_v48 = vld [vmem:[#allocation9 + $0x31] ss:$2 sm:$0xf] }
 0x81b   : > { %v5034_v61 = vld [vmem:[#allocation9 + $0x10] ss:$2 sm:$0xf]  ;;  %v5063_v50 = vld [vmem:[#allocation9 + $0x11] ss:$2 sm:$0xf] }
 0x81c   : > { %v4952_v44 = vld [vmem:[#allocation9 + $0x41] ss:$2 sm:$0xf]  ;;  %v4939_v26 = vld [vmem:[#allocation9 + $0x40] ss:$2 sm:$0xf] }
 0x81d   : > { %4963 = vrot.lane.b32.xlu0 %v4952_v44, %s10910_s1  ;;  %v4950_v45 = vld [vmem:[#allocation9 + $0x21] ss:$2 sm:$0xf]  ;;  %4945 = vst.msk [vmem:[#allocation10 + $0x10] sm:$0xf] %vm10949_vm3, %v4939_v26  ;;  %v7290_v44 = vld [vmem:[%s10568_s9 + $0x8] sm:$0xff]  }
 0x81e   : > { %4961 = vrot.lane.b32.xlu1 %v4950_v45, %s10910_s1  ;;  %v4937_v23 = vld [vmem:[#allocation9 + $0x20] ss:$2 sm:$0xf]  ;;  %v5010_v60 = vld [vmem:[#allocation9 + $0x43] ss:$2 sm:$0xf]  ;;  %7163 = vmatprep.subr.bf16.mxu0 %v7290_v44 }
 0x81f   : > { %4944 = vst.msk [vmem:[#allocation10 + $0x8] sm:$0xf] %vm10950_vm9, %v4937_v23  ;;  %v4981_v27 = vld [vmem:[#allocation9 + $0x42] ss:$2 sm:$0xf]  ;;  %7164 = vmatpush3.bf16.msra.mxu0 %v7290_v44  ;;  %vm5231_vm3 = vcmask 716416  }
 0x820   : > { %v4979_v51 = vld [vmem:[#allocation9 + $0x22] ss:$2 sm:$0xf]  ;;  %v5092_v53 = vld [vmem:[#allocation9 + $0x12] ss:$2 sm:$0xf] }
 0x821   : > { %4988 = vrot.lane.b32.xlu0 %v4977_v24, %s10924_s24  ;;  %v5008_v43 = vld [vmem:[#allocation9 + $0x23] ss:$2 sm:$0xf]  ;;  %v5121_v4 = vld [vmem:[#allocation9 + $0x13] ss:$2 sm:$0xf] }
 0x822   : > { %v5150_v32 = vld [vmem:[#allocation9 + $0x20] ss:$2 sm:$0xf]  ;;  %v5179_v10 = vld [vmem:[#allocation9 + $0x21] ss:$2 sm:$0xf] }
 0x823   : > { %v5094_v11 = vld [vmem:[#allocation9 + $0x32] ss:$2 sm:$0xf]  ;;  %v5123_v15 = vld [vmem:[#allocation9 + $0x33] ss:$2 sm:$0xf] }
 0x824   : > { %v5237_v34 = vld [vmem:[#allocation9 + $0x23] ss:$2 sm:$0xf]  ;;  %v5152_v17 = vld [vmem:[#allocation9 + $0x40] ss:$2 sm:$0xf] }
 0x825   : > { %4992 = vrot.lane.b32.xlu0 %v4981_v27, %s10924_s24  ;;  %v5266_v21 = vld [vmem:[#allocation9 + $0x30] ss:$2 sm:$0xf]  ;;  %v5181_v38 = vld [vmem:[#allocation9 + $0x41] ss:$2 sm:$0xf] }
 0x826   : > { %v5295_v45 = vld [vmem:[#allocation9 + $0x31] ss:$2 sm:$0xf]  ;;  %v5210_v24 = vld [vmem:[#allocation9 + $0x42] ss:$2 sm:$0xf] }
 0x827   : > { %v7291_v27 = vld [vmem:[%s10568_s9 + $0x10] sm:$0xff]   ;;  %vm5260_vm9 = vcmask 782016  }
 0x828   : > { %7165 = vmatprep.subr.bf16.mxu0 %v7291_v27 }
 0x829   : > { %5017 = vrot.lane.b32.xlu0 %v5006_v28, %s10930_s20  ;;  %v5324_v28 = vld [vmem:[#allocation9 + $0x32] ss:$2 sm:$0xf]  ;;  %7166 = vmatpush3.bf16.msra.mxu0 %v7291_v27 }
 0x82d   : > { %5021 = vrot.lane.b32.xlu0 %v5010_v60, %s10930_s20  ;;  %v5239_v60 = vld [vmem:[#allocation9 + $0x43] ss:$2 sm:$0xf] }
 0x831   : > { %5045 = vrot.lane.b32.xlu0 %v5034_v61, %s10931_s4 }
 0x876   : > { %v7159_v29 = vpop.f32.mrb[12].mxu1 }
 0x877   : > { %v4888_v30 = vadd.f32 %v7159_v29, %v6923_v14  ;;  %v4879_v31 = vpop.f32.mrb[13].mxu1 }
 0x878   : > { %v4880_v36 = vadd.f32 %v6923_v14, %v4879_v31  ;;  %v7160_v37 = vpop.f32.mrb[14].mxu1  ;;  %v5353_v31 = vld [vmem:[#allocation9 + $0x33] ss:$2 sm:$0xf] }
 0x879   : > { %v4900_v25 = vmax.f32 %v4888_v30, 0.0  ;;  %v4891_v40 = vadd.f32 %v7160_v37, %v6923_v14  ;;  %v4882_v33 = vpop.f32.mrb[15].mxu1  ;;  %v7292_v30 = vld [vmem:[%s10568_s9 + $0x18] sm:$0xff]  }
 0x87a   : > { %v4898_v59 = vmax.f32 %v4880_v36, 0.0  ;;  %v4883_v41 = vadd.f32 %v6923_v14, %v4882_v33  ;;  %v5208_v14 = vld [vmem:[#allocation9 + $0x22] ss:$2 sm:$0xf]  ;;  %7167 = vmatprep.subr.bf16.mxu0 %v7292_v30 }
 0x87b   : > { %4929 = vst.msk [vmem:[#allocation9 + $0x71] sm:$0xff] %vm10951_vm13, %v4900_v25  ;;  %v4901_v42 = vmax.f32 %v4891_v40, 0.0  ;;  %7168 = vmatpush3.bf16.msra.mxu0 %v7292_v30  ;;  %v5272_v25 = vld [vmem:[#allocation9 + $0x90] ss:$2 sm:$0xf]  ;;  %v7293_v40 = vld [vmem:[%s10568_s9 + $0x20] sm:$0xff]  }
 0x87c   : > { %4927 = vst.msk [vmem:[#allocation9 + $0x51] sm:$0xff] %vm10952_vm15, %v4898_v59  ;;  %v4899_v46 = vmax.f32 %v4883_v41, 0.0  ;;  %v5525_v33 = vld [vmem:[#allocation8 + $0x12] ss:$2 sm:$0xf]  ;;  %7169 = vmatprep.subr.bf16.mxu0 %v7293_v40  ;;  %vm5289_vm13 = vcmask 847616  }
 0x87d   : > { %4930 = vst.msk [vmem:[#allocation9 + $0x81] sm:$0xff] %vm10953_vm6, %v4901_v42  ;;  %v5529_v41 = vld [vmem:[#allocation8 + $0x52] ss:$2 sm:$0xf]  ;;  %vm5318_vm15 = vcmask 913216   ;;  %vm5347_vm6 = vcmask 978816  }
 0x87e   : > { %4928 = vst.msk [vmem:[#allocation9 + $0x61] sm:$0xff] %vm10954_vm14, %v4899_v46  ;;  %v5301_v42 = vld [vmem:[#allocation9 + $0x91] ss:$2 sm:$0xf]  ;;  %v7294_v46 = vld [vmem:[%s10568_s9 + $0x28] sm:$0xff]   ;;  %vm5376_vm14 = vcmask 1044416  }
 0x87f   : > { %7170 = vmatpush3.bf16.msra.mxu0 %v7293_v40 }
 0x880   : > { %7171 = vmatprep.subr.bf16.mxu0 %v7294_v46 }
 0x882   : > { %v5040_v56 = vld [vmem:[#allocation9 + $0x70] ss:$2 sm:$0xf]  ;;  %v5069_v9 = vld [vmem:[#allocation9 + $0x71] ss:$2 sm:$0xf] }
 0x883   : > { %v5038_v47 = vld [vmem:[#allocation9 + $0x50] ss:$2 sm:$0xf]  ;;  %v5067_v52 = vld [vmem:[#allocation9 + $0x51] ss:$2 sm:$0xf]  ;;  %7172 = vmatpush3.bf16.msra.mxu0 %v7294_v46 }
 0x884   : > { %5049 = vrot.lane.b32.xlu0 %v5038_v47, %s10931_s4  ;;  %v5096_v1 = vld [vmem:[#allocation9 + $0x52] ss:$2 sm:$0xf]  ;;  %v5125_v7 = vld [vmem:[#allocation9 + $0x53] ss:$2 sm:$0xf] }
 0x885   : > { %v4954_v63 = vld [vmem:[#allocation9 + $0x61] ss:$2 sm:$0xf]  ;;  %v4983_v57 = vld [vmem:[#allocation9 + $0x62] ss:$2 sm:$0xf] }
 0x886   : > { %4965 = vrot.lane.b32.xlu1 %v4954_v63, %s10910_s1  ;;  %v4941_v58 = vld [vmem:[#allocation9 + $0x60] ss:$2 sm:$0xf]  ;;  %v5012_v2 = vld [vmem:[#allocation9 + $0x63] ss:$2 sm:$0xf] }
 0x887   : > { %4946 = vst.msk [vmem:[#allocation10 + $0x18] sm:$0xf] %vm10955_vm11, %v4941_v58  ;;  %v5154_v54 = vld [vmem:[#allocation9 + $0x60] ss:$2 sm:$0xf] }
 0x888   : > { %5074 = vrot.lane.b32.xlu0 %v5063_v50, %s10932_s5  ;;  %v5183_v12 = vld [vmem:[#allocation9 + $0x61] ss:$2 sm:$0xf]  ;;  %v5098_v13 = vld [vmem:[#allocation9 + $0x72] ss:$2 sm:$0xf] }
 0x889   : > { %v5212_v16 = vld [vmem:[#allocation9 + $0x62] ss:$2 sm:$0xf]  ;;  %v5127_v18 = vld [vmem:[#allocation9 + $0x73] ss:$2 sm:$0xf] }
 0x88a   : > { %4990 = vrot.lane.b32.xlu1 %v4979_v51, %s10924_s24  ;;  %v5241_v35 = vld [vmem:[#allocation9 + $0x63] ss:$2 sm:$0xf]  ;;  %v5156_v19 = vld [vmem:[#allocation9 + $0x80] ss:$2 sm:$0xf] }
 0x88b   : > { %v5270_v39 = vld [vmem:[#allocation9 + $0x70] ss:$2 sm:$0xf]  ;;  %v5185_v22 = vld [vmem:[#allocation9 + $0x81] ss:$2 sm:$0xf] }
 0x88c   : > { %5078 = vrot.lane.b32.xlu0 %v5067_v52, %s10932_s5  ;;  %v5299_v26 = vld [vmem:[#allocation9 + $0x71] ss:$2 sm:$0xf]  ;;  %v5214_v23 = vld [vmem:[#allocation9 + $0x82] ss:$2 sm:$0xf] }
 0x88d   : > { %v5328_v61 = vld [vmem:[#allocation9 + $0x72] ss:$2 sm:$0xf]  ;;  %v5243_v29 = vld [vmem:[#allocation9 + $0x83] ss:$2 sm:$0xf] }
 0x88e   : > { %4994 = vrot.lane.b32.xlu1 %v4983_v57, %s10924_s24  ;;  %v5268_v36 = vld [vmem:[#allocation9 + $0x50] ss:$2 sm:$0xf]  ;;  %v5357_v37 = vld [vmem:[#allocation9 + $0x73] ss:$2 sm:$0xf] }
 0x88f   : > { %v4964_v55 = vpop.permute.xlu0 %4963  ;;  %v5297_v59 = vld [vmem:[#allocation9 + $0x51] ss:$2 sm:$0xf]  ;;  %v5554_v47 = vld [vmem:[#allocation8 + $0x21] ss:$2 sm:$0xf] }
 0x890   : > { %4974 = vst.msk [vmem:[#allocation10 + $0x10] sm:$0xf] %vm4971_vm1, %v4964_v55  ;;  %v4962_v62 = vpop.permute.xlu1 %4961  ;;  %5103 = vrot.lane.b32.xlu0 %v5092_v53, %s10933_s2  ;;  %v5326_v63 = vld [vmem:[#allocation9 + $0x52] ss:$2 sm:$0xf] }
 0x891   : > { %4973 = vst.msk [vmem:[#allocation10 + $0x8] sm:$0xf] %vm4971_vm1, %v4962_v62  ;;  %v7295_v50 = vld [vmem:[%s10568_s9 + $0x30] sm:$0xff]   ;;  %v5558_v51 = vld [vmem:[#allocation8 + $0x61] ss:$2 sm:$0xf] }
 0x892   : > { %5019 = vrot.lane.b32.xlu1 %v5008_v43, %s10930_s20  ;;  %v5330_v52 = vld [vmem:[#allocation9 + $0x92] ss:$2 sm:$0xf]  ;;  %7173 = vmatprep.subr.bf16.mxu0 %v7295_v50  ;;  %v5582_v55 = vld [vmem:[#allocation8 + $0x22] ss:$2 sm:$0xf] }
 0x893   : > { %v4989_v0 = vpop.permute.xlu0 %4988  ;;  %7174 = vmatpush3.bf16.msra.mxu0 %v7295_v50  ;;  %v7296_v57 = vld [vmem:[%s10568_s9 + $0x38] sm:$0xff]   ;;  %v5586_v58 = vld [vmem:[#allocation8 + $0x62] ss:$2 sm:$0xf] }
 0x894   : > { %5001 = vst.msk [vmem:[#allocation10] sm:$0xf] %vm5000_vm8, %v4989_v0  ;;  %5107 = vrot.lane.b32.xlu0 %v5096_v1, %s10933_s2  ;;  %7175 = vmatprep.subr.bf16.mxu0 %v7296_v57  ;;  %v5355_v53 = vld [vmem:[#allocation9 + $0x53] ss:$2 sm:$0xf] }
 0x895   : > { %v5359_v62 = vld [vmem:[#allocation9 + $0x93] ss:$2 sm:$0xf]  ;;  %v5527_v1 = vld [vmem:[#allocation8 + $0x32] ss:$2 sm:$0xf] }
 0x896   : > { %5023 = vrot.lane.b32.xlu1 %v5012_v2, %s10930_s20 }
 0x897   : > { %v4993_v3 = vpop.permute.xlu0 %4992  ;;  %7176 = vmatpush3.bf16.msra.mxu0 %v7296_v57 }
 0x898   : > { %5003 = vst.msk [vmem:[#allocation10 + $0x10] sm:$0xf] %vm5000_vm8, %v4993_v3  ;;  %5132 = vrot.lane.b32.xlu0 %v5121_v4, %s10939_s28  ;;  %v5531_v4 = vld [vmem:[#allocation8 + $0x72] ss:$2 sm:$0xf] }
 0x89a   : > { %5047 = vrot.lane.b32.xlu1 %v5036_v5, %s10931_s4  ;;  %v10159_v5 = vld [vmem:[%s10570_s11] sm:$0xff]  }
 0x89b   : > { %v5018_v49 = vpop.permute.xlu0 %5017  ;;  %7181 = vmatprep.subr.bf16.mxu0 %v10159_v5 }
 0x89c   : > { %5030 = vst.msk [vmem:[#allocation10] sm:$0xf] %vm5029_vm7, %v5018_v49  ;;  %5136 = vrot.lane.b32.xlu0 %v5125_v7, %s10939_s28 }
 0x89e   : > { %5051 = vrot.lane.b32.xlu1 %v5040_v56, %s10931_s4  ;;  %v5556_v56 = vld [vmem:[#allocation8 + $0x41] ss:$2 sm:$0xf] }
 0x89f   : > { %v5022_v8 = vpop.permute.xlu0 %5021 }
 0x8a0   : > { %5032 = vst.msk [vmem:[#allocation10 + $0x10] sm:$0xf] %vm5029_vm7, %v5022_v8  ;;  %5161 = vrot.lane.b32.xlu0 %v5150_v32, %s10934_s29 }
 0x8a2   : > { %5076 = vrot.lane.b32.xlu1 %v5065_v48, %s10932_s5  ;;  %v5560_v48 = vld [vmem:[#allocation8 + $0x81] ss:$2 sm:$0xf] }
 0x8a3   : > { %v5046_v6 = vpop.permute.xlu0 %5045 }
 0x8a4   : > { %5058 = vst.msk [vmem:[#allocation10] sm:$0xf] %vm5057_vm0, %v5046_v6  ;;  %5165 = vrot.lane.b32.xlu0 %v5154_v54, %s10934_s29 }
 0x8a6   : > { %5080 = vrot.lane.b32.xlu1 %v5069_v9, %s10932_s5  ;;  %v5584_v9 = vld [vmem:[#allocation8 + $0x42] ss:$2 sm:$0xf] }
 0x8a8   : > { %5190 = vrot.lane.b32.xlu0 %v5179_v10, %s10956_s22 }
 0x8aa   : > { %5105 = vrot.lane.b32.xlu1 %v5094_v11, %s10933_s2 }
 0x8ac   : > { %5194 = vrot.lane.b32.xlu0 %v5183_v12, %s10956_s22  ;;  %v5588_v12 = vld [vmem:[#allocation8 + $0x82] ss:$2 sm:$0xf] }
 0x8ae   : > { %5109 = vrot.lane.b32.xlu1 %v5098_v13, %s10933_s2 }
 0x8b0   : > { %5219 = vrot.lane.b32.xlu0 %v5208_v14, %s10870_s30 }
 0x8b2   : > { %5134 = vrot.lane.b32.xlu1 %v5123_v15, %s10939_s28 }
 0x8b4   : > { %5223 = vrot.lane.b32.xlu0 %v5212_v16, %s10870_s30 }
 0x8b6   : > { %5138 = vrot.lane.b32.xlu1 %v5127_v18, %s10939_s28  ;;  %s10959_s28 = smov 120  }
 0x8b8   : > { %5248 = vrot.lane.b32.xlu0 %v5237_v34, %s10871_s0 }
 0x8ba   : > { %5163 = vrot.lane.b32.xlu1 %v5152_v17, %s10934_s29 }
 0x8bc   : > { %5252 = vrot.lane.b32.xlu0 %v5241_v35, %s10871_s0 }
 0x8be   : > { %5167 = vrot.lane.b32.xlu1 %v5156_v19, %s10934_s29 }
 0x8c0   : > { %5277 = vrot.lane.b32.xlu0 %v5266_v21, %s10872_s23 }
 0x8c2   : > { %5192 = vrot.lane.b32.xlu1 %v5181_v38, %s10956_s22 }
 0x8c4   : > { %5281 = vrot.lane.b32.xlu0 %v5270_v39, %s10872_s23 }
 0x8c6   : > { %5196 = vrot.lane.b32.xlu1 %v5185_v22, %s10956_s22  ;;  %s10958_s22 = smov 112  }
 0x8c8   : > { %5306 = vrot.lane.b32.xlu0 %v5295_v45, %s10957_s3 }
 0x8ca   : > { %5221 = vrot.lane.b32.xlu1 %v5210_v24, %s10870_s30 }
 0x8cc   : > { %5310 = vrot.lane.b32.xlu0 %v5299_v26, %s10957_s3 }
 0x8ce   : > { %5225 = vrot.lane.b32.xlu1 %v5214_v23, %s10870_s30 }
 0x8d0   : > { %5335 = vrot.lane.b32.xlu0 %v5324_v28, %s10958_s22 }
 0x8d2   : > { %5250 = vrot.lane.b32.xlu1 %v5239_v60, %s10871_s0 }
 0x8d4   : > { %5339 = vrot.lane.b32.xlu0 %v5328_v61, %s10958_s22 }
 0x8d6   : > { %5254 = vrot.lane.b32.xlu1 %v5243_v29, %s10871_s0 }
 0x8d8   : > { %5364 = vrot.lane.b32.xlu0 %v5353_v31, %s10959_s28 }
 0x8da   : > { %5279 = vrot.lane.b32.xlu1 %v5268_v36, %s10872_s23 }
 0x8dc   : > { %5368 = vrot.lane.b32.xlu0 %v5357_v37, %s10959_s28 }
 0x8de   : > { %5283 = vrot.lane.b32.xlu1 %v5272_v25, %s10872_s23 }
 0x8e0   : > { %5536 = vrot.lane.b32.xlu0 %v5525_v33, %s10910_s1 }
 0x8e2   : > { %5308 = vrot.lane.b32.xlu1 %v5297_v59, %s10957_s3 }
 0x8e4   : > { %5540 = vrot.lane.b32.xlu0 %v5529_v41, %s10910_s1 }
 0x8e6   : > { %5312 = vrot.lane.b32.xlu1 %v5301_v42, %s10957_s3 }
 0x8e8   : > { %5565 = vrot.lane.b32.xlu0 %v5554_v47, %s10924_s24 }
 0x8ea   : > { %5337 = vrot.lane.b32.xlu1 %v5326_v63, %s10958_s22 }
 0x8ec   : > { %5569 = vrot.lane.b32.xlu0 %v5558_v51, %s10924_s24 }
 0x8ee   : > { %5341 = vrot.lane.b32.xlu1 %v5330_v52, %s10958_s22 }
 0x8f0   : > { %5593 = vrot.lane.b32.xlu0 %v5582_v55, %s10930_s20 }
 0x8f2   : > { %5366 = vrot.lane.b32.xlu1 %v5355_v53, %s10959_s28 }
 0x8f4   : > { %5597 = vrot.lane.b32.xlu0 %v5586_v58, %s10930_s20 }
 0x8f6   : > { %5370 = vrot.lane.b32.xlu1 %v5359_v62, %s10959_s28  ;;  %v5050_v43 = vpop.permute.xlu0 %5049 }
 0x8f7   : > { %5060 = vst.msk [vmem:[#allocation10 + $0x10] sm:$0xf] %vm5057_vm0, %v5050_v43 }
 0x8f8   : > { %v4966_v0 = vpop.permute.xlu1 %4965 }
 0x8f9   : > { %4975 = vst.msk [vmem:[#allocation10 + $0x18] sm:$0xf] %vm4971_vm1, %v4966_v0 }
 0x8fa   : > { %5538 = vrot.lane.b32.xlu1 %v5527_v1, %s10910_s1  ;;  %v5075_v2 = vpop.permute.xlu0 %5074 }
 0x8fb   : > { %5087 = vst.msk [vmem:[#allocation10] sm:$0xf] %vm5086_vm10, %v5075_v2 }
 0x8fc   : > { %v4991_v3 = vpop.permute.xlu1 %4990 }
 0x8fd   : > { %5002 = vst.msk [vmem:[#allocation10 + $0x8] sm:$0xf] %vm5000_vm8, %v4991_v3 }
 0x8fe   : > { %5542 = vrot.lane.b32.xlu1 %v5531_v4, %s10910_s1  ;;  %v5079_v49 = vpop.permute.xlu0 %5078 }
 0x8ff   : > { %5089 = vst.msk [vmem:[#allocation10 + $0x10] sm:$0xf] %vm5086_vm10, %v5079_v49 }
 0x900   : > { %v4995_v7 = vpop.permute.xlu1 %4994 }
 0x901   : > { %5004 = vst.msk [vmem:[#allocation10 + $0x18] sm:$0xf] %vm5000_vm8, %v4995_v7 }
 0x902   : > { %5567 = vrot.lane.b32.xlu1 %v5556_v56, %s10924_s24  ;;  %v5104_v8 = vpop.permute.xlu0 %5103 }
 0x903   : > { %5116 = vst.msk [vmem:[#allocation10] sm:$0xf] %vm5115_vm5, %v5104_v8  ;;  %v7298_v8 = vld [vmem:[%s10570_s11 + $0x8] sm:$0xff]  }
 0x904   : > { %v5020_v32 = vpop.permute.xlu1 %5019 }
 0x905   : > { %5031 = vst.msk [vmem:[#allocation10 + $0x8] sm:$0xf] %vm5029_vm7, %v5020_v32 }
 0x906   : > { %5571 = vrot.lane.b32.xlu1 %v5560_v48, %s10924_s24  ;;  %v5108_v6 = vpop.permute.xlu0 %5107 }
 0x907   : > { %5118 = vst.msk [vmem:[#allocation10 + $0x10] sm:$0xf] %vm5115_vm5, %v5108_v6 }
 0x908   : > { %v5024_v54 = vpop.permute.xlu1 %5023 }
 0x909   : > { %5033 = vst.msk [vmem:[#allocation10 + $0x18] sm:$0xf] %vm5029_vm7, %v5024_v54 }
 0x90a   : > { %5595 = vrot.lane.b32.xlu1 %v5584_v9, %s10930_s20  ;;  %v5133_v10 = vpop.permute.xlu0 %5132 }
 0x90b   : > { %5145 = vst.msk [vmem:[#allocation10] sm:$0xf] %vm5144_vm12, %v5133_v10 }
 0x90c   : > { %v5048_v11 = vpop.permute.xlu1 %5047 }
 0x90d   : > { %5059 = vst.msk [vmem:[#allocation10 + $0x8] sm:$0xf] %vm5057_vm0, %v5048_v11 }
 0x90e   : > { %5599 = vrot.lane.b32.xlu1 %v5588_v12, %s10930_s20  ;;  %v5137_v13 = vpop.permute.xlu0 %5136 }
 0x90f   : > { %5147 = vst.msk [vmem:[#allocation10 + $0x10] sm:$0xf] %vm5144_vm12, %v5137_v13 }
 0x910   : > { %v5052_v14 = vpop.permute.xlu1 %5051 }
 0x911   : > { %5061 = vst.msk [vmem:[#allocation10 + $0x18] sm:$0xf] %vm5057_vm0, %v5052_v14  ;;  %vm5697_vm0 = vcmask 128000   ;;  %v10233_v14 = vld [vmem:[#allocation12] sm:$0xff] }
 0x912   : > { %v5162_v15 = vpop.permute.xlu0 %5161  ;;  %5701 = vst.msk [vmem:[#allocation13 + $0x18] sm:$0x3f] %vm5697_vm0, %v10233_v14  ;;  %5698 = vst.msk [vmem:[#allocation13] sm:$0x3f] %vm5697_vm0, %v10233_v14 }
 0x913   : > { %5174 = vst.msk [vmem:[#allocation10] sm:$0xf] %vm5173_vm2, %v5162_v15 }
 0x914   : > { %v5077_v16 = vpop.permute.xlu1 %5076  ;;  %5699 = vst.msk [vmem:[#allocation13 + $0x8] sm:$0x3f] %vm5697_vm0, %v10233_v14  ;;  %5700 = vst.msk [vmem:[#allocation13 + $0x10] sm:$0x3f] %vm5697_vm0, %v10233_v14 }
 0x915   : > { %5088 = vst.msk [vmem:[#allocation10 + $0x8] sm:$0xf] %vm5086_vm10, %v5077_v16 }
 0x916   : > { %v5166_v18 = vpop.permute.xlu0 %5165  ;;  %5702 = vst.msk [vmem:[#allocation13 + $0x20] sm:$0x3f] %vm5697_vm0, %v10233_v14  ;;  %5703 = vst.msk [vmem:[#allocation13 + $0x28] sm:$0x3f] %vm5697_vm0, %v10233_v14 }
 0x917   : > { %5176 = vst.msk [vmem:[#allocation10 + $0x10] sm:$0xf] %vm5173_vm2, %v5166_v18 }
 0x918   : > { %v5081_v34 = vpop.permute.xlu1 %5080  ;;  %6030 = vst.msk [vmem:[#allocation14] sm:$0x3f] %vm5697_vm0, %v10233_v14  ;;  %6031 = vst.msk [vmem:[#allocation14 + $0x8] sm:$0x3f] %vm5697_vm0, %v10233_v14 }
 0x919   : > { %5090 = vst.msk [vmem:[#allocation10 + $0x18] sm:$0xf] %vm5086_vm10, %v5081_v34  ;;  %v5710_v15 = vld [vmem:[#allocation13] sm:$0x3f]  ;;  %vm5723_vm10 = vcmask 130048  }
 0x91a   : > { %v5191_v17 = vpop.permute.xlu0 %5190  ;;  %6032 = vst.msk [vmem:[#allocation14 + $0x10] sm:$0x3f] %vm5697_vm0, %v10233_v14  ;;  %6033 = vst.msk [vmem:[#allocation14 + $0x18] sm:$0x3f] %vm5697_vm0, %v10233_v14  ;;  %v5716_v16 = vmax.f32 %v5710_v15, 0.0 }
 0x91b   : > { %5203 = vst.msk [vmem:[#allocation10] sm:$0xf] %vm5202_vm4, %v5191_v17 }
 0x91c   : > { %v5106_v35 = vpop.permute.xlu1 %5105  ;;  %6034 = vst.msk [vmem:[#allocation14 + $0x20] sm:$0x3f] %vm5697_vm0, %v10233_v14  ;;  %6035 = vst.msk [vmem:[#allocation14 + $0x28] sm:$0x3f] %vm5697_vm0, %v10233_v14  ;;  %v5739_v18 = vrot.slane %v5716_v16, 1  ;;  %v5760_v34 = vrot.slane %v5716_v16, 2 }
 0x91d   : > { %5117 = vst.msk [vmem:[#allocation10 + $0x8] sm:$0xf] %vm5115_vm5, %v5106_v35  ;;  %v5715_v17 = vld [vmem:[#allocation13 + $0x28] sm:$0x3f]  ;;  %vm6107_vm0 = vcmask 648704  }
 0x91e   : > { %v5195_v19 = vpop.permute.xlu0 %5194  ;;  %5743 = vrot.lane.b32.xlu0 %v5739_v18, %s10924_s24  ;;  %v10254_v35 = vmax.f32 %v5715_v17, 0.0  ;;  %5724 = vst.msk [vmem:[#allocation12 + $0x8] sm:$0xff] %vm5723_vm10, %v10233_v14  ;;  %5726 = vst.msk [vmem:[#allocation12 + $0x18] sm:$0xff] %vm5723_vm10, %v10233_v14 }
 0x91f   : > { %5205 = vst.msk [vmem:[#allocation10 + $0x10] sm:$0xf] %vm5202_vm4, %v5195_v19 }
 0x920   : > { %v5110_v20 = vpop.permute.xlu1 %5109  ;;  %5730 = vst.msk [vmem:[#allocation12 + $0x38] sm:$0xff] %vm5723_vm10, %v10233_v14  ;;  %5728 = vst.msk [vmem:[#allocation12 + $0x28] sm:$0xff] %vm5723_vm10, %v10233_v14  ;;  %v5871_v19 = vrot.slane %v10254_v35, 2 }
 0x921   : > { %5119 = vst.msk [vmem:[#allocation10 + $0x18] sm:$0xf] %vm5115_vm5, %v5110_v20  ;;  %v6933_v20 = vld [vmem:[%s10569_s10] ss:$0 sm:$0xff]  ;;  %vm5755_vm5 = vcmask 257152  }
 0x922   : > { %v5220_v21 = vpop.permute.xlu0 %5219  ;;  %5764 = vrot.lane.b32.xlu0 %v5760_v34, %s10931_s4 }
 0x923   : > { %5232 = vst.msk [vmem:[#allocation10] sm:$0xf] %vm5231_vm3, %v5220_v21  ;;  %v6942_v21 = vld [vmem:[%s10571_s12] ss:$0 sm:$0xff] }
 0x924   : > { %v5135_v38 = vpop.permute.xlu1 %5134  ;;  %v6248_v15 = vld [vmem:[#allocation14 + $0x2b] ss:$2 sm:$0x3] }
 0x925   : > { %5146 = vst.msk [vmem:[#allocation10 + $0x8] sm:$0xf] %vm5144_vm12, %v5135_v38  ;;  %v7223_v38 = vadd.f32 %v6942_v21, %v6933_v20 }
 0x926   : > { %v5224_v39 = vpop.permute.xlu0 %5223 }
 0x927   : > { %5234 = vst.msk [vmem:[#allocation10 + $0x10] sm:$0xf] %vm5231_vm3, %v5224_v39 }
 0x928   : > { %v5139_v22 = vpop.permute.xlu1 %5138 }
 0x929   : > { %5148 = vst.msk [vmem:[#allocation10 + $0x18] sm:$0xf] %vm5144_vm12, %v5139_v22  ;;  %vm5776_vm12 = vcmask 388352  }
 0x92a   : > { %v5249_v44 = vpop.permute.xlu0 %5248 }
 0x92b   : > { %5261 = vst.msk [vmem:[#allocation10] sm:$0xf] %vm5260_vm9, %v5249_v44 }
 0x92c   : > { %v5164_v45 = vpop.permute.xlu1 %5163 }
 0x92d   : > { %5175 = vst.msk [vmem:[#allocation10 + $0x8] sm:$0xf] %vm5173_vm2, %v5164_v45 }
 0x92e   : > { %v5253_v24 = vpop.permute.xlu0 %5252 }
 0x92f   : > { %5263 = vst.msk [vmem:[#allocation10 + $0x10] sm:$0xf] %vm5260_vm9, %v5253_v24 }
 0x930   : > { %v5168_v26 = vpop.permute.xlu1 %5167 }
 0x931   : > { %5177 = vst.msk [vmem:[#allocation10 + $0x18] sm:$0xf] %vm5173_vm2, %v5168_v26  ;;  %vm6048_vm2 = vcmask 123904  }
 0x932   : > { %v5278_v23 = vpop.permute.xlu0 %5277 }
 0x933   : > { %5290 = vst.msk [vmem:[#allocation10] sm:$0xf] %vm5289_vm13, %v5278_v23 }
 0x934   : > { %v5193_v27 = vpop.permute.xlu1 %5192 }
 0x935   : > { %5204 = vst.msk [vmem:[#allocation10 + $0x8] sm:$0xf] %vm5202_vm4, %v5193_v27 }
 0x936   : > { %v5282_v28 = vpop.permute.xlu0 %5281 }
 0x937   : > { %5292 = vst.msk [vmem:[#allocation10 + $0x10] sm:$0xf] %vm5289_vm13, %v5282_v28 }
 0x938   : > { %v5197_v60 = vpop.permute.xlu1 %5196 }
 0x939   : > { %5206 = vst.msk [vmem:[#allocation10 + $0x18] sm:$0xf] %vm5202_vm4, %v5197_v60  ;;  %vm5794_vm4 = vcmask 519552  }
 0x93a   : > { %v5307_v61 = vpop.permute.xlu0 %5306 }
 0x93b   : > { %5319 = vst.msk [vmem:[#allocation10] sm:$0xf] %vm5318_vm15, %v5307_v61 }
 0x93c   : > { %v5222_v29 = vpop.permute.xlu1 %5221 }
 0x93d   : > { %5233 = vst.msk [vmem:[#allocation10 + $0x8] sm:$0xf] %vm5231_vm3, %v5222_v29 }
 0x93e   : > { %v5311_v30 = vpop.permute.xlu0 %5310 }
 0x93f   : > { %5321 = vst.msk [vmem:[#allocation10 + $0x10] sm:$0xf] %vm5318_vm15, %v5311_v30 }
 0x940   : > { %v5226_v31 = vpop.permute.xlu1 %5225 }
 0x941   : > { %5235 = vst.msk [vmem:[#allocation10 + $0x18] sm:$0xf] %vm5231_vm3, %v5226_v31  ;;  %vm5812_vm3 = vcmask 650752  }
 0x942   : > { %v5336_v36 = vpop.permute.xlu0 %5335 }
 0x943   : > { %5348 = vst.msk [vmem:[#allocation10] sm:$0xf] %vm5347_vm6, %v5336_v36 }
 0x944   : > { %v5251_v37 = vpop.permute.xlu1 %5250 }
 0x945   : > { %5262 = vst.msk [vmem:[#allocation10 + $0x8] sm:$0xf] %vm5260_vm9, %v5251_v37 }
 0x946   : > { %v5340_v25 = vpop.permute.xlu0 %5339 }
 0x947   : > { %5350 = vst.msk [vmem:[#allocation10 + $0x10] sm:$0xf] %vm5347_vm6, %v5340_v25 }
 0x948   : > { %v5255_v40 = vpop.permute.xlu1 %5254 }
 0x949   : > { %5264 = vst.msk [vmem:[#allocation10 + $0x18] sm:$0xf] %vm5260_vm9, %v5255_v40  ;;  %vm5830_vm9 = vcmask 781952  }
 0x94a   : > { %v5365_v33 = vpop.permute.xlu0 %5364 }
 0x94b   : > { %5377 = vst.msk [vmem:[#allocation10] sm:$0xf] %vm5376_vm14, %v5365_v33 }
 0x94c   : > { %v5280_v59 = vpop.permute.xlu1 %5279 }
 0x94d   : > { %5291 = vst.msk [vmem:[#allocation10 + $0x8] sm:$0xf] %vm5289_vm13, %v5280_v59 }
 0x94e   : > { %v5369_v41 = vpop.permute.xlu0 %5368 }
 0x94f   : > { %5379 = vst.msk [vmem:[#allocation10 + $0x10] sm:$0xf] %vm5376_vm14, %v5369_v41 }
 0x950   : > { %v5284_v42 = vpop.permute.xlu1 %5283 }
 0x951   : > { %5293 = vst.msk [vmem:[#allocation10 + $0x18] sm:$0xf] %vm5289_vm13, %v5284_v42  ;;  %vm5848_vm13 = vcmask 913152  }
 0x952   : > { %v5537_v46 = vpop.permute.xlu0 %5536  ;;  %v5381_v1 = vld [vmem:[#allocation10] sm:$0xff] }
 0x953   : > { %5548 = vst.msk [vmem:[#allocation11] sm:$0xf] %vm4971_vm1, %v5537_v46 }
 0x954   : > { %v5309_v47 = vpop.permute.xlu1 %5308 }
 0x955   : > { %5320 = vst.msk [vmem:[#allocation10 + $0x8] sm:$0xf] %vm5318_vm15, %v5309_v47  ;;  %v7299_v47 = vld [vmem:[%s10572_s13] sm:$0xff]  }
 0x956   : > { %v5541_v63 = vpop.permute.xlu0 %5540  ;;  %v5383_v49 = vld [vmem:[#allocation10 + $0x10] sm:$0xff] }
 0x957   : > { %5550 = vst.msk [vmem:[#allocation11 + $0x10] sm:$0xf] %vm4971_vm1, %v5541_v63 }
 0x958   : > { %v5313_v50 = vpop.permute.xlu1 %5312 }
 0x959   : > { %5322 = vst.msk [vmem:[#allocation10 + $0x18] sm:$0xf] %vm5318_vm15, %v5313_v50  ;;  %vm5866_vm15 = vcmask 1044352  }
 0x95a   : > { %v5566_v51 = vpop.permute.xlu0 %5565 }
 0x95b   : > { %5577 = vst.msk [vmem:[#allocation11] sm:$0xf] %vm5000_vm8, %v5566_v51  ;;  %v7364_v51 = vmov 0  }
 0x95c   : > { %v5338_v52 = vpop.permute.xlu1 %5337  ;;  %5977 = vmatprep.subr.bf16.mxu1 %v7364_v51 }
 0x95d   : > { %5349 = vst.msk [vmem:[#allocation10 + $0x8] sm:$0xf] %vm5347_vm6, %v5338_v52  ;;  %5978 = vmatpush1.bf16.msra.mxu1 %v7299_v47  ;;  %v7300_v52 = vld [vmem:[%s10572_s13 + $0x8] sm:$0xff]  }
 0x95e   : > { %v5570_v57 = vpop.permute.xlu0 %5569  ;;  %5979 = vmatprep.subr.bf16.mxu1 %v7364_v51 }
 0x95f   : > { %5579 = vst.msk [vmem:[#allocation11 + $0x10] sm:$0xf] %vm5000_vm8, %v5570_v57 }
 0x960   : > { %v5342_v55 = vpop.permute.xlu1 %5341 }
 0x961   : > { %5351 = vst.msk [vmem:[#allocation10 + $0x18] sm:$0xf] %vm5347_vm6, %v5342_v55  ;;  %5980 = vmatpush1.bf16.msra.mxu1 %v7300_v52  ;;  %vm6063_vm6 = vcmask 255104  }
 0x962   : > { %v5594_v53 = vpop.permute.xlu0 %5593  ;;  %5981 = vmatprep.subr.bf16.mxu1 %v7364_v51 }
 0x963   : > { %5605 = vst.msk [vmem:[#allocation11] sm:$0xf] %vm5029_vm7, %v5594_v53 }
 0x964   : > { %v5367_v58 = vpop.permute.xlu1 %5366 }
 0x965   : > { %5378 = vst.msk [vmem:[#allocation10 + $0x8] sm:$0xf] %vm5376_vm14, %v5367_v58 }
 0x966   : > { %v5598_v62 = vpop.permute.xlu0 %5597 }
 0x967   : > { %5607 = vst.msk [vmem:[#allocation11 + $0x10] sm:$0xf] %vm5029_vm7, %v5598_v62  ;;  %v7301_v62 = vld [vmem:[%s10572_s13 + $0x10] sm:$0xff]  }
 0x968   : > { %v5371_v43 = vpop.permute.xlu1 %5370  ;;  %5982 = vmatpush1.bf16.msra.mxu1 %v7301_v62 }
 0x969   : > { %5380 = vst.msk [vmem:[#allocation10 + $0x18] sm:$0xf] %vm5376_vm14, %v5371_v43  ;;  %5983 = vmatprep.subr.bf16.mxu1 %v7364_v51  ;;  %v7302_v43 = vld [vmem:[%s10572_s13 + $0x18] sm:$0xff]   ;;  %vm6078_vm14 = vcmask 386304  }
 0x96a   : > { %v5609_v9 = vld [vmem:[#allocation11] sm:$0xff] }
 0x96c   : > { %v5539_v0 = vpop.permute.xlu1 %5538  ;;  %v5382_v2 = vld [vmem:[#allocation10 + $0x8] sm:$0xff]  ;;  %5984 = vmatpush1.bf16.msra.mxu1 %v7302_v43 }
 0x96d   : > { %5549 = vst.msk [vmem:[#allocation11 + $0x8] sm:$0xf] %vm4971_vm1, %v5539_v0  ;;  %v5385_v3 = vpack.c.bf16 %v5382_v2, %v5381_v1  ;;  %5985 = vmatprep.subr.bf16.mxu1 %v7364_v51  ;;  %v7303_v1 = vld [vmem:[%s10572_s13 + $0x20] sm:$0xff]  }
 0x96e   : > { %v5611_v12 = vld [vmem:[#allocation11 + $0x10] sm:$0xff] }
 0x96f   : > { %7177 = vmatprep.mubr.bf16.mxu0 %v5385_v3 }
 0x970   : > { %v5543_v4 = vpop.permute.xlu1 %5542  ;;  %v5384_v7 = vld [vmem:[#allocation10 + $0x18] sm:$0xff]  ;;  %5986 = vmatpush1.bf16.msra.mxu1 %v7303_v1 }
 0x971   : > { %5551 = vst.msk [vmem:[#allocation11 + $0x18] sm:$0xf] %vm4971_vm1, %v5543_v4  ;;  %v5386_v56 = vpack.c.bf16 %v5384_v7, %v5383_v49  ;;  %vm10960_vm1 = vcmask 261120   ;;  %5987 = vmatprep.subr.bf16.mxu1 %v7364_v51  ;;  %v7304_v49 = vld [vmem:[%s10572_s13 + $0x28] sm:$0xff]   ;;  %v7305_v7 = vld [vmem:[%s10572_s13 + $0x30] sm:$0xff]  }
 0x972   : > { %vm10961_vm11 = vmmov %vm10960_vm1 }
 0x973   : > { %7178 = vmatmul.mubr.bf16.vlgmr.msra.gmra.mrb[32].mxu0 %v5386_v56  ;;  %v7306_v56 = vld [vmem:[%s10572_s13 + $0x38] sm:$0xff]  }
 0x974   : > { %v5568_v32 = vpop.permute.xlu1 %5567  ;;  %7182 = vmatpush3.bf16.msra.mxu0 %v10159_v5  ;;  %5988 = vmatpush1.bf16.msra.mxu1 %v7304_v49 }
 0x975   : > { %5578 = vst.msk [vmem:[#allocation11 + $0x8] sm:$0xf] %vm5000_vm8, %v5568_v32  ;;  %7183 = vmatprep.subr.bf16.mxu0 %v7298_v8  ;;  %5989 = vmatprep.subr.bf16.mxu1 %v7364_v51  ;;  %v7307_v32 = vld [vmem:[%s10572_s13 + $0x40] sm:$0xff]  }
 0x978   : > { %v5572_v48 = vpop.permute.xlu1 %5571  ;;  %7184 = vmatpush3.bf16.msra.mxu0 %v7298_v8  ;;  %5990 = vmatpush1.bf16.msra.mxu1 %v7305_v7  ;;  %v6045_v8 = vld [vmem:[#allocation14] ss:$2 sm:$0x3] }
 0x979   : > { %5580 = vst.msk [vmem:[#allocation11 + $0x18] sm:$0xf] %vm5000_vm8, %v5572_v48  ;;  %vm5705_vm8 = vcmask 125952   ;;  %5991 = vmatprep.subr.bf16.mxu1 %v7364_v51  ;;  %v6052_v48 = vld [vmem:[#allocation14 + $0x1] ss:$2 sm:$0x3] }
 0x97a   : > { %5731 = vst.msk [vmem:[#allocation12] sm:$0xf] %vm5705_vm8, %v5716_v16  ;;  %5879 = vst.msk [vmem:[#allocation12 + $0x38] sm:$0xf] %vm5705_vm8, %v5871_v19 }
 0x97b   : > { %6049 = vst.msk [vmem:[#allocation15] sm:$0x3] %vm6048_vm2, %v6045_v8 }
 0x97c   : > { %v5596_v6 = vpop.permute.xlu1 %5595  ;;  %5992 = vmatpush1.bf16.msra.mxu1 %v7306_v56 }
 0x97d   : > { %5606 = vst.msk [vmem:[#allocation11 + $0x8] sm:$0xf] %vm5029_vm7, %v5596_v6  ;;  %5993 = vmatprep.subr.bf16.mxu1 %v7364_v51  ;;  %v5853_v6 = vrot.slane %v10254_v35, 1 }
 0x980   : > { %v5600_v54 = vpop.permute.xlu1 %5599  ;;  %5994 = vmatpush1.bf16.msra.mxu1 %v7307_v32 }
 0x981   : > { %5608 = vst.msk [vmem:[#allocation11 + $0x18] sm:$0xf] %vm5029_vm7, %v5600_v54  ;;  %vm6441_vm7 = vcmask 523264   ;;  %7189 = vmatprep.subr.bf16.mxu1 %v10233_v14  ;;  %v6067_v54 = vld [vmem:[#allocation14 + $0x2] ss:$2 sm:$0x3] }
 0x982   : > { %6442 = vst.msk [vmem:[#allocation16] sm:$0xff] %vm6441_vm7, %v10233_v14  ;;  %6443 = vst.msk [vmem:[#allocation16 + $0x8] sm:$0xff] %vm6441_vm7, %v10233_v14 }
 0x984   : > { %v5610_v10 = vld [vmem:[#allocation11 + $0x8] sm:$0xff] }
 0x985   : > { %v5613_v11 = vpack.c.bf16 %v5610_v10, %v5609_v9  ;;  %v6082_v9 = vld [vmem:[#allocation14 + $0x3] ss:$2 sm:$0x3]  ;;  %v6206_v10 = vld [vmem:[#allocation14 + $0x28] ss:$2 sm:$0x3] }
 0x987   : > { %7185 = vmatprep.mubr.msk.bf16.mxu0 %vm10960_vm1, %v5613_v11  ;;  %v6220_v11 = vld [vmem:[#allocation14 + $0x29] ss:$2 sm:$0x3]  ;;  %vm6093_vm1 = vcmask 517504  }
 0x988   : > { %v5612_v5 = vld [vmem:[#allocation11 + $0x18] sm:$0xff] }
 0x989   : > { %v5614_v13 = vpack.c.bf16 %v5612_v5, %v5611_v12  ;;  %v6234_v5 = vld [vmem:[#allocation14 + $0x2a] ss:$2 sm:$0x3] }
 0x98b   : > { %7186 = vmatmul.mubr.msk.bf16.vlgmr.msra.gmra.mrb[32].mxu0 %vm10961_vm11, %v5614_v13  ;;  %vm7365_vm11 = vmmov 0  }
 0x990   : > { %v5744_v26 = vpop.permute.xlu0 %5743 }
 0x991   : > { %5756 = vst.msk [vmem:[#allocation12] sm:$0xf] %vm5755_vm5, %v5744_v26 }
 0x994   : > { %v5765_v29 = vpop.permute.xlu0 %5764 }
 0x995   : > { %5777 = vst.msk [vmem:[#allocation12] sm:$0xf] %vm5776_vm12, %v5765_v29 }
 0xa5e   : > { %v7187_v39 = vpop.f32.mrb[32].mxu0 }
 0xa5f   : > { %v7217_v22 = vadd.f32 %v7187_v39, %v6933_v20  ;;  %v5678_v44 = vpop.f32.mrb[33].mxu0 }
 0xa60   : > { %v7219_v45 = vadd.f32 %v6933_v20, %v5678_v44  ;;  %v7188_v24 = vpop.f32.mrb[34].mxu0 }
 0xa61   : > { %v7218_v23 = vadd.f32 %v7217_v22, %v6942_v21  ;;  %v7222_v27 = vadd.f32 %v7223_v38, %v7188_v24  ;;  %v5681_v28 = vpop.f32.mrb[35].mxu0 }
 0xa62   : > { %v7220_v60 = vadd.f32 %v7219_v45, %v6942_v21  ;;  %v7224_v61 = vadd.f32 %v7223_v38, %v5681_v28 }
 0xa63   : > { %5708 = vst.msk [vmem:[#allocation13 + $0x19] sm:$0xf] %vm5705_vm8, %v7218_v23  ;;  %5709 = vst.msk [vmem:[#allocation13 + $0x21] sm:$0xf] %vm5705_vm8, %v7222_v27 }
 0xa64   : > { %5706 = vst.msk [vmem:[#allocation13 + $0x9] sm:$0xf] %vm5705_vm8, %v7220_v60  ;;  %5707 = vst.msk [vmem:[#allocation13 + $0x11] sm:$0xf] %vm5705_vm8, %v7224_v61 }
 0xa6a   : > { %v5713_v30 = vld [vmem:[#allocation13 + $0x18] sm:$0x3f]  ;;  %v5714_v31 = vld [vmem:[#allocation13 + $0x20] sm:$0x3f] }
 0xa6b   : > { %v5719_v36 = vmax.f32 %v5713_v30, 0.0  ;;  %v5711_v37 = vld [vmem:[#allocation13 + $0x8] sm:$0x3f]  ;;  %v10278_v25 = vmax.f32 %v5714_v31, 0.0  ;;  %v5712_v40 = vld [vmem:[#allocation13 + $0x10] sm:$0x3f] }
 0xa6c   : > { %v5717_v33 = vmax.f32 %v5711_v37, 0.0  ;;  %v5718_v59 = vmax.f32 %v5712_v40, 0.0  ;;  %v6445_v63 = vld [vmem:[#allocation13 + $0x9] ss:$2 sm:$0x3] }
 0xa6d   : > { %5786 = vrot.lane.b32.xlu0 %v5719_v36, %s10933_s2  ;;  %5734 = vst.msk [vmem:[#allocation12 + $0x30] sm:$0xf] %vm5705_vm8, %v5719_v36  ;;  %5838 = vrot.lane.b32.xlu1 %v5719_v36, %s10872_s23  ;;  %v5763_v41 = vrot.slane %v5719_v36, 2  ;;  %v5817_v42 = vrot.slane %v10278_v25, 2  ;;  %v5742_v55 = vrot.slane %v5719_v36, 1  ;;  %v5799_v3 = vrot.slane %v10278_v25, 1 }
 0xa6e   : > { %5732 = vst.msk [vmem:[#allocation12 + $0x10] sm:$0xf] %vm5705_vm8, %v5717_v33  ;;  %5733 = vst.msk [vmem:[#allocation12 + $0x20] sm:$0xf] %vm5705_vm8, %v5718_v59  ;;  %v10286_v46 = vrot.slane %v5718_v59, 2  ;;  %v5740_v0 = vrot.slane %v5717_v33, 1 }
 0xa6f   : > { %5877 = vst.msk [vmem:[#allocation12 + $0x18] sm:$0xf] %vm5705_vm8, %v5763_v41  ;;  %5878 = vst.msk [vmem:[#allocation12 + $0x28] sm:$0xf] %vm5705_vm8, %v5817_v42  ;;  %v5761_v2 = vrot.slane %v5717_v33, 2  ;;  %v5741_v4 = vrot.slane %v5718_v59, 1 }
 0xa70   : > { %5876 = vst.msk [vmem:[#allocation12 + $0x8] sm:$0xf] %vm5705_vm8, %v10286_v46  ;;  %v6447_v50 = vld [vmem:[#allocation13 + $0x19] ss:$2 sm:$0x3] }
 0xa71   : > { %5782 = vrot.lane.b32.xlu0 %v5717_v33, %s10933_s2  ;;  %5788 = vrot.lane.b32.xlu1 %v10278_v25, %s10933_s2  ;;  %6448 = vst.msk [vmem:[#allocation16] sm:$0x3] %vm6048_vm2, %v6445_v63  ;;  %6449 = vst.msk [vmem:[#allocation16 + $0x8] sm:$0x3] %vm6048_vm2, %v6447_v50 }
 0xa72   : > { %v6451_v12 = vld [vmem:[#allocation13 + $0xa] ss:$2 sm:$0x3]  ;;  %v6466_v13 = vld [vmem:[#allocation13 + $0x11] ss:$2 sm:$0x3] }
 0xa73   : > { %v6453_v16 = vld [vmem:[#allocation13 + $0x1a] ss:$2 sm:$0x3] }
 0xa75   : > { %5836 = vrot.lane.b32.xlu0 %v5718_v59, %s10872_s23  ;;  %5784 = vrot.lane.b32.xlu1 %v5718_v59, %s10933_s2  ;;  %v5887_v59 = vld [vmem:[#allocation12 + $0x38] sm:$0xff] }
 0xa76   : > { %v5883_v57 = vld [vmem:[#allocation12 + $0x18] sm:$0xff]  ;;  %v5885_v33 = vld [vmem:[#allocation12 + $0x28] sm:$0xff] }
 0xa77   : > { %v5881_v53 = vld [vmem:[#allocation12 + $0x8] sm:$0xff]  ;;  %v5891_v50 = vpack.c.bf16 %v5887_v59, %v5885_v33  ;;  %v7317_v59 = vld [vmem:[%s10574_s15 + $0x20] sm:$0xff]  }
 0xa78   : > { %v5889_v58 = vpack.c.bf16 %v5883_v57, %v5881_v53 }
 0xa79   : > { %5804 = vrot.lane.b32.xlu0 %v5742_v55, %s10934_s29  ;;  %5856 = vrot.lane.b32.xlu1 %v5742_v55, %s10958_s22 }
 0xa7a   : > { %6957 = vmatprep.mubr.msk.bf16.mxu1 %vm5723_vm10, %v5889_v58 }
 0xa7d   : > { %5822 = vrot.lane.b32.xlu0 %v5763_v41, %s10870_s30  ;;  %5749 = vrot.lane.b32.xlu1 %v5742_v55, %s10924_s24 }
 0xa81   : > { %5800 = vrot.lane.b32.xlu0 %v5740_v0, %s10934_s29  ;;  %5770 = vrot.lane.b32.xlu1 %v5763_v41, %s10931_s4 }
 0xa85   : > { %5818 = vrot.lane.b32.xlu0 %v5761_v2, %s10870_s30  ;;  %5806 = vrot.lane.b32.xlu1 %v5799_v3, %s10934_s29 }
 0xa89   : > { %5745 = vrot.lane.b32.xlu1 %v5740_v0, %s10924_s24  ;;  %5854 = vrot.lane.b32.xlu0 %v5741_v4, %s10958_s22 }
 0xa8d   : > { %5766 = vrot.lane.b32.xlu1 %v5761_v2, %s10931_s4  ;;  %5747 = vrot.lane.b32.xlu0 %v5741_v4, %s10924_s24 }
 0xa91   : > { %5768 = vrot.lane.b32.xlu0 %v10286_v46, %s10931_s4  ;;  %5802 = vrot.lane.b32.xlu1 %v5741_v4, %s10934_s29 }
 0xa95   : > { %5840 = vrot.lane.b32.xlu0 %v10278_v25, %s10872_s23  ;;  %5820 = vrot.lane.b32.xlu1 %v10286_v46, %s10870_s30 }
 0xa99   : > { %5858 = vrot.lane.b32.xlu0 %v5799_v3, %s10958_s22  ;;  %5824 = vrot.lane.b32.xlu1 %v5817_v42, %s10870_s30  ;;  %v6947_v3 = vld [vmem:[%s10573_s14] ss:$0 sm:$0xff] }
 0xa9d   : > { %6057 = vrot.lane.b32.xlu0 %v6052_v48, %s10924_s24  ;;  %5842 = vrot.lane.b32.xlu1 %v10254_v35, %s10872_s23 }
 0xaa1   : > { %6072 = vrot.lane.b32.xlu0 %v6067_v54, %s10931_s4  ;;  %5860 = vrot.lane.b32.xlu1 %v5853_v6, %s10958_s22 }
 0xaa5   : > { %6087 = vrot.lane.b32.xlu0 %v6082_v9, %s10933_s2  ;;  %6211 = vrot.lane.b32.xlu1 %v6206_v10, %s10934_s29 }
 0xaa9   : > { %6456 = vrot.lane.b32.xlu0 %v6451_v12, %s10924_s24  ;;  %6225 = vrot.lane.b32.xlu1 %v6220_v11, %s10870_s30 }
 0xaad   : > { %6471 = vrot.lane.b32.xlu0 %v6466_v13, %s10931_s4  ;;  %6239 = vrot.lane.b32.xlu1 %v6234_v5, %s10872_s23 }
 0xab1   : > { %6253 = vrot.lane.b32.xlu1 %v6248_v15, %s10958_s22 }
 0xab5   : > { %6458 = vrot.lane.b32.xlu1 %v6453_v16, %s10924_s24 }
 0xadf   : > { %v5839_v18 = vpop.permute.xlu1 %5838  ;;  %v5787_v34 = vpop.permute.xlu0 %5786 }
 0xae3   : > { %v5789_v17 = vpop.permute.xlu1 %5788  ;;  %v5783_v35 = vpop.permute.xlu0 %5782 }
 0xae4   : > { %5795 = vst.msk [vmem:[#allocation12] sm:$0xf] %vm5794_vm4, %v5783_v35 }
 0xae7   : > { %v5785_v19 = vpop.permute.xlu1 %5784  ;;  %v5837_v20 = vpop.permute.xlu0 %5836 }
 0xaeb   : > { %v5857_v21 = vpop.permute.xlu1 %5856  ;;  %v5805_v38 = vpop.permute.xlu0 %5804 }
 0xaef   : > { %v5750_v39 = vpop.permute.xlu1 %5749  ;;  %v5823_v22 = vpop.permute.xlu0 %5822 }
 0xaf0   : > { %5759 = vst.msk [vmem:[#allocation12 + $0x30] sm:$0xf] %vm5755_vm5, %v5750_v39 }
 0xaf3   : > { %v5771_v44 = vpop.permute.xlu1 %5770  ;;  %v5801_v45 = vpop.permute.xlu0 %5800 }
 0xaf4   : > { %5780 = vst.msk [vmem:[#allocation12 + $0x30] sm:$0xf] %vm5776_vm12, %v5771_v44  ;;  %v7309_v44 = vld [vmem:[%s10574_s15] sm:$0xff]  }
 0xaf5   : > { %5813 = vst.msk [vmem:[#allocation12] sm:$0xf] %vm5812_vm3, %v5801_v45  ;;  %v7310_v45 = vld [vmem:[%s10574_s15 + $0x48] sm:$0xff]  }
 0xaf6   : > { %5798 = vst.msk [vmem:[#allocation12 + $0x30] sm:$0xf] %vm5794_vm4, %v5789_v17 }
 0xaf7   : > { %v5807_v24 = vpop.permute.xlu1 %5806  ;;  %v5819_v26 = vpop.permute.xlu0 %5818 }
 0xaf8   : > { %5816 = vst.msk [vmem:[#allocation12 + $0x30] sm:$0xf] %vm5812_vm3, %v5807_v24 }
 0xaf9   : > { %5831 = vst.msk [vmem:[#allocation12] sm:$0xf] %vm5830_vm9, %v5819_v26 }
 0xafa   : > { %5849 = vst.msk [vmem:[#allocation12] sm:$0xf] %vm5848_vm13, %v5837_v20 }
 0xafb   : > { %v5746_v23 = vpop.permute.xlu1 %5745  ;;  %v5855_v27 = vpop.permute.xlu0 %5854 }
 0xafc   : > { %5757 = vst.msk [vmem:[#allocation12 + $0x10] sm:$0xf] %vm5755_vm5, %v5746_v23  ;;  %v7311_v23 = vld [vmem:[%s10574_s15 + $0x8] sm:$0xff]  }
 0xafd   : > { %5867 = vst.msk [vmem:[#allocation12] sm:$0xf] %vm5866_vm15, %v5855_v27 }
 0xaff   : > { %v5767_v28 = vpop.permute.xlu1 %5766  ;;  %v5748_v60 = vpop.permute.xlu0 %5747 }
 0xb00   : > { %5778 = vst.msk [vmem:[#allocation12 + $0x10] sm:$0xf] %vm5776_vm12, %v5767_v28  ;;  %v7312_v28 = vld [vmem:[%s10574_s15 + $0x50] sm:$0xff]  }
 0xb01   : > { %5758 = vst.msk [vmem:[#allocation12 + $0x20] sm:$0xf] %vm5755_vm5, %v5748_v60  ;;  %vm6152_vm5 = vcmask 1042304  }
 0xb02   : > { %5796 = vst.msk [vmem:[#allocation12 + $0x10] sm:$0xf] %vm5794_vm4, %v5785_v19 }
 0xb03   : > { %v5803_v61 = vpop.permute.xlu1 %5802  ;;  %v5769_v29 = vpop.permute.xlu0 %5768 }
 0xb04   : > { %5814 = vst.msk [vmem:[#allocation12 + $0x10] sm:$0xf] %vm5812_vm3, %v5803_v61  ;;  %v5880_v41 = vld [vmem:[#allocation12] sm:$0xff]  ;;  %v7313_v61 = vld [vmem:[%s10574_s15 + $0x10] sm:$0xff]  }
 0xb05   : > { %5779 = vst.msk [vmem:[#allocation12 + $0x20] sm:$0xf] %vm5776_vm12, %v5769_v29 }
 0xb06   : > { %5797 = vst.msk [vmem:[#allocation12 + $0x20] sm:$0xf] %vm5794_vm4, %v5787_v34 }
 0xb07   : > { %5815 = vst.msk [vmem:[#allocation12 + $0x20] sm:$0xf] %vm5812_vm3, %v5805_v38  ;;  %v5821_v30 = vpop.permute.xlu1 %5820  ;;  %v5841_v31 = vpop.permute.xlu0 %5840 }
 0xb08   : > { %5833 = vst.msk [vmem:[#allocation12 + $0x20] sm:$0xf] %vm5830_vm9, %v5823_v22  ;;  %5832 = vst.msk [vmem:[#allocation12 + $0x10] sm:$0xf] %vm5830_vm9, %v5821_v30  ;;  %v7314_v30 = vld [vmem:[%s10574_s15 + $0x58] sm:$0xff]  }
 0xb09   : > { %5851 = vst.msk [vmem:[#allocation12 + $0x20] sm:$0xf] %vm5848_vm13, %v5841_v31  ;;  %5850 = vst.msk [vmem:[#allocation12 + $0x10] sm:$0xf] %vm5848_vm13, %v5839_v18 }
 0xb0a   : > { %5868 = vst.msk [vmem:[#allocation12 + $0x10] sm:$0xf] %vm5866_vm15, %v5857_v21  ;;  %v7308_v21 = vld [vmem:[%s10574_s15 + $0x40] sm:$0xff]  }
 0xb0b   : > { %v5825_v36 = vpop.permute.xlu1 %5824  ;;  %v5859_v37 = vpop.permute.xlu0 %5858  ;;  %7046 = vmatprep.subr.bf16.mxu0 %v7308_v21 }
 0xb0c   : > { %5834 = vst.msk [vmem:[#allocation12 + $0x30] sm:$0xf] %vm5830_vm9, %v5825_v36  ;;  %7047 = vmatpush3.bf16.msra.mxu0 %v7309_v44  ;;  %v7315_v36 = vld [vmem:[%s10574_s15 + $0x18] sm:$0xff]  }
 0xb0d   : > { %5869 = vst.msk [vmem:[#allocation12 + $0x20] sm:$0xf] %vm5866_vm15, %v5859_v37  ;;  %7048 = vmatprep.subr.bf16.mxu0 %v7310_v45 }
 0xb0f   : > { %v5843_v25 = vpop.permute.xlu1 %5842  ;;  %v6058_v40 = vpop.permute.xlu0 %6057 }
 0xb10   : > { %5852 = vst.msk [vmem:[#allocation12 + $0x30] sm:$0xf] %vm5848_vm13, %v5843_v25  ;;  %7049 = vmatpush3.bf16.msra.mxu0 %v7311_v23  ;;  %v7316_v25 = vld [vmem:[%s10574_s15 + $0x60] sm:$0xff]  }
 0xb11   : > { %6064 = vst.msk [vmem:[#allocation15] sm:$0x3] %vm6063_vm6, %v6058_v40  ;;  %v5882_v42 = vld [vmem:[#allocation12 + $0x10] sm:$0xff]  ;;  %7050 = vmatprep.subr.bf16.mxu0 %v7312_v28  ;;  %v6959_v28 = vld [vmem:[%s10575_s16] ss:$0 sm:$0xff] }
 0xb12   : > { %v5888_v46 = vpack.c.bf16 %v5882_v42, %v5880_v41  ;;  %v7318_v41 = vld [vmem:[%s10576_s17] sm:$0xff]   ;;  %v7319_v42 = vld [vmem:[%s10574_s15 + $0x68] sm:$0xff]  }
 0xb13   : > { %v5861_v47 = vpop.permute.xlu1 %5860  ;;  %v6073_v63 = vpop.permute.xlu0 %6072 }
 0xb14   : > { %5870 = vst.msk [vmem:[#allocation12 + $0x30] sm:$0xf] %vm5866_vm15, %v5861_v47  ;;  %6010 = vmatmul.mubr.bf16.vlgmr.msra.gmra.mrb[16].mxu1 %v5888_v46  ;;  %v5884_v53 = vld [vmem:[#allocation12 + $0x20] sm:$0xff]  ;;  %7051 = vmatpush3.bf16.msra.mxu0 %v7313_v61  ;;  %v7321_v47 = vld [vmem:[%s10576_s17 + $0x8] sm:$0xff]  }
 0xb15   : > { %6079 = vst.msk [vmem:[#allocation15] sm:$0x3] %vm6078_vm14, %v6073_v63  ;;  %6958 = vmatprep.mubr.msk.bf16.mxu1 %vm5723_vm10, %v5891_v50  ;;  %7052 = vmatprep.subr.bf16.mxu0 %v7314_v30  ;;  %v7320_v63 = vld [vmem:[%s10574_s15 + $0x28] sm:$0xff]   ;;  %vm6137_vm10 = vcmask 911104   ;;  %v6976_v61 = vld [vmem:[%s10577_s18] ss:$0 sm:$0xff] }
 0xb16   : > { %7190 = vmatpush3.bf16.msra.mxu1 %v7318_v41 }
 0xb17   : > { %v10398_v51 = vpop.permute.xlu1 %6211  ;;  %v6088_v52 = vpop.permute.xlu0 %6087  ;;  %7191 = vmatprep.subr.bf16.mxu1 %v10233_v14 }
 0xb18   : > { %6094 = vst.msk [vmem:[#allocation15] sm:$0x3] %vm6093_vm1, %v6088_v52  ;;  %7053 = vmatpush3.bf16.msra.mxu0 %v7315_v36  ;;  %v7322_v52 = vld [vmem:[%s10574_s15 + $0x70] sm:$0xff]  }
 0xb19   : > { %7054 = vmatprep.subr.bf16.mxu0 %v7316_v25 }
 0xb1a   : > { %7192 = vmatpush3.bf16.msra.mxu1 %v7321_v47 }
 0xb1b   : > { %v10401_v57 = vpop.permute.xlu1 %6225  ;;  %v6457_v55 = vpop.permute.xlu0 %6456  ;;  %v5886_v58 = vld [vmem:[#allocation12 + $0x30] sm:$0xff]  ;;  %7193 = vmatprep.subr.bf16.mxu1 %v10233_v14 }
 0xb1c   : > { %6462 = vst.msk [vmem:[#allocation16] sm:$0x3] %vm6063_vm6, %v6457_v55  ;;  %v5890_v62 = vpack.c.bf16 %v5886_v58, %v5884_v53  ;;  %7055 = vmatpush3.bf16.msra.mxu0 %v7317_v59  ;;  %v7324_v53 = vld [vmem:[%s10576_s17 + $0x10] sm:$0xff]  }
 0xb1d   : > { %7056 = vmatprep.subr.bf16.mxu0 %v7319_v42  ;;  %v7323_v58 = vld [vmem:[%s10574_s15 + $0x30] sm:$0xff]  }
 0xb1e   : > { %6018 = vmatmul.mubr.bf16.gmra.mrb[20].mxu1 %v5890_v62 }
 0xb1f   : > { %v10404_v43 = vpop.permute.xlu1 %6239  ;;  %v6472_v0 = vpop.permute.xlu0 %6471  ;;  %7194 = vmatpush3.bf16.msra.mxu1 %v7324_v53  ;;  %7197 = vmatprep.mubr.msk.bf16.mxu1 %vm7365_vm11, %v10233_v14 }
 0xb20   : > { %6477 = vst.msk [vmem:[#allocation16] sm:$0x3] %vm6078_vm14, %v6472_v0  ;;  %7057 = vmatpush3.bf16.msra.mxu0 %v7320_v63  ;;  %v7325_v0 = vld [vmem:[%s10574_s15 + $0x78] sm:$0xff]   ;;  %7195 = vmatprep.subr.bf16.mxu1 %v10233_v14  ;;  %v6982_v63 = vld [vmem:[%s10578_s19] ss:$0 sm:$0xff] }
 0xb21   : > { %7058 = vmatprep.subr.bf16.mxu0 %v7322_v52 }
 0xb23   : > { %v10407_v1 = vpop.permute.xlu1 %6253 }
 0xb24   : > { %7059 = vmatpush3.bf16.msra.mxu0 %v7323_v58 }
 0xb25   : > { %7060 = vmatprep.subr.bf16.mxu0 %v7325_v0 }
 0xb27   : > { %v6459_v2 = vpop.permute.xlu1 %6458 }
 0xb28   : > { %6463 = vst.msk [vmem:[#allocation16 + $0x8] sm:$0x3] %vm6063_vm6, %v6459_v2 }
 0xbe7   : > { %v6011_v4 = vpop.f32.mrb[16].mxu1 }
 0xbe8   : > { %v6012_v49 = vadd.f32 %v6947_v3, %v6011_v4  ;;  %v6013_v7 = vpop.f32.mrb[17].mxu1  ;;  %v7326_v4 = vld [vmem:[%s10574_s15 + $0x38] sm:$0xff]  }
 0xbe9   : > { %v6014_v56 = vpop.f32.mrb[18].mxu1  ;;  %v6480_v7 = vld [vmem:[#allocation13 + $0x12] ss:$2 sm:$0x3]  ;;  %7061 = vmatpush3.bf16.msra.mxu0 %v7326_v4 }
 0xbea   : > { %v6026_v8 = vmax.f32 %v6012_v49, 0.0  ;;  %v6015_v32 = vadd.f32 %v6947_v3, %v6014_v56  ;;  %v6016_v48 = vpop.f32.mrb[19].mxu1  ;;  %v6468_v49 = vld [vmem:[#allocation13 + $0x21] ss:$2 sm:$0x3] }
 0xbeb   : > { %v6482_v56 = vld [vmem:[#allocation13 + $0x22] ss:$2 sm:$0x3] }
 0xbec   : > { %6037 = vst.msk [vmem:[#allocation14 + $0x9] sm:$0xf] %vm5705_vm8, %v6026_v8  ;;  %v6027_v6 = vmax.f32 %v6015_v32, 0.0 }
 0xbee   : > { %6038 = vst.msk [vmem:[#allocation14 + $0x11] sm:$0xf] %vm5705_vm8, %v6027_v6 }
 0xbf1   : > { %v6019_v54 = vpop.f32.mrb[20].mxu1 }
 0xbf2   : > { %v6020_v9 = vadd.f32 %v6947_v3, %v6019_v54  ;;  %v6021_v10 = vpop.f32.mrb[21].mxu1 }
 0xbf3   : > { %v6022_v11 = vpop.f32.mrb[22].mxu1  ;;  %v6096_v12 = vld [vmem:[#allocation14 + $0x8] ss:$2 sm:$0x3] }
 0xbf4   : > { %v6028_v5 = vmax.f32 %v6020_v9, 0.0  ;;  %v6023_v13 = vadd.f32 %v6947_v3, %v6022_v11  ;;  %6101 = vrot.lane.b32.xlu0 %v6096_v12, %s10934_s29  ;;  %v6024_v15 = vpop.f32.mrb[23].mxu1  ;;  %v6111_v34 = vld [vmem:[#allocation14 + $0x9] ss:$2 sm:$0x3] }
 0xbf5   : > { %v6054_v16 = vld [vmem:[#allocation14 + $0x11] ss:$2 sm:$0x3]  ;;  %v6069_v17 = vld [vmem:[#allocation14 + $0x12] ss:$2 sm:$0x3] }
 0xbf6   : > { %6039 = vst.msk [vmem:[#allocation14 + $0x19] sm:$0xf] %vm5705_vm8, %v6028_v5  ;;  %v6029_v18 = vmax.f32 %v6023_v13, 0.0  ;;  %6059 = vrot.lane.b32.xlu1 %v6054_v16, %s10924_s24  ;;  %v6047_v35 = vld [vmem:[#allocation14 + $0x10] ss:$2 sm:$0x3] }
 0xbf7   : > { %6050 = vst.msk [vmem:[#allocation15 + $0x10] sm:$0x3] %vm6048_vm2, %v6047_v35  ;;  %v6156_v19 = vld [vmem:[#allocation14 + $0x10] ss:$2 sm:$0x3]  ;;  %v7327_v3 = vld [vmem:[%s10576_s17 + $0x18] sm:$0xff]  }
 0xbf8   : > { %6040 = vst.msk [vmem:[#allocation14 + $0x21] sm:$0xf] %vm5705_vm8, %v6029_v18  ;;  %6116 = vrot.lane.b32.xlu0 %v6111_v34, %s10870_s30  ;;  %v6126_v20 = vld [vmem:[#allocation14 + $0xa] ss:$2 sm:$0x3]  ;;  %7196 = vmatpush3.bf16.msra.mxu1 %v7327_v3  ;;  %vm6122_vm8 = vcmask 779904  }
 0xbf9   : > { %6159 = vst.msk [vmem:[#allocation15 + $0x8] sm:$0x3] %vm6048_vm2, %v6156_v19  ;;  %v6084_v38 = vld [vmem:[#allocation14 + $0x13] ss:$2 sm:$0x3] }
 0xbfa   : > { %6074 = vrot.lane.b32.xlu1 %v6069_v17, %s10931_s4  ;;  %v6141_v39 = vld [vmem:[#allocation14 + $0xb] ss:$2 sm:$0x3]  ;;  %v6162_v24 = vld [vmem:[#allocation14 + $0x11] ss:$2 sm:$0x3] }
 0xbfb   : > { %v6176_v60 = vld [vmem:[#allocation14 + $0x12] ss:$2 sm:$0x3]  ;;  %v6190_v31 = vld [vmem:[#allocation14 + $0x13] ss:$2 sm:$0x3] }
 0xbfc   : > { %6131 = vrot.lane.b32.xlu0 %v6126_v20, %s10872_s23 }
 0xbfd   : > { %v6098_v22 = vld [vmem:[#allocation14 + $0x18] ss:$2 sm:$0x3]  ;;  %v6113_v27 = vld [vmem:[#allocation14 + $0x19] ss:$2 sm:$0x3] }
 0xbfe   : > { %6089 = vrot.lane.b32.xlu1 %v6084_v38, %s10933_s2  ;;  %v6128_v29 = vld [vmem:[#allocation14 + $0x1a] ss:$2 sm:$0x3]  ;;  %v6143_v37 = vld [vmem:[#allocation14 + $0x1b] ss:$2 sm:$0x3] }
 0xbff   : > { %v6158_v26 = vld [vmem:[#allocation14 + $0x20] ss:$2 sm:$0x3]  ;;  %v6204_v40 = vld [vmem:[#allocation14 + $0x18] ss:$2 sm:$0x3] }
 0xc00   : > { %6146 = vrot.lane.b32.xlu0 %v6141_v39, %s10958_s22  ;;  %6160 = vst.msk [vmem:[#allocation15 + $0x18] sm:$0x3] %vm6048_vm2, %v6158_v26  ;;  %v6164_v33 = vld [vmem:[#allocation14 + $0x21] ss:$2 sm:$0x3]  ;;  %vm6607_vm2 = vcmask 7168  }
 0xc01   : > { %v6218_v46 = vld [vmem:[#allocation14 + $0x19] ss:$2 sm:$0x3]  ;;  %v6178_v50 = vld [vmem:[#allocation14 + $0x22] ss:$2 sm:$0x3] }
 0xc02   : > { %6103 = vrot.lane.b32.xlu1 %v6098_v22, %s10934_s29  ;;  %v6232_v55 = vld [vmem:[#allocation14 + $0x1a] ss:$2 sm:$0x3]  ;;  %v6192_v62 = vld [vmem:[#allocation14 + $0x23] ss:$2 sm:$0x3] }
 0xc03   : > { %v6246_v2 = vld [vmem:[#allocation14 + $0x1b] ss:$2 sm:$0x3] }
 0xc04   : > { %6167 = vrot.lane.b32.xlu0 %v6162_v24, %s10924_s24 }
 0xc06   : > { %6118 = vrot.lane.b32.xlu1 %v6113_v27, %s10870_s30 }
 0xc08   : > { %6181 = vrot.lane.b32.xlu0 %v6176_v60, %s10931_s4 }
 0xc0a   : > { %6133 = vrot.lane.b32.xlu1 %v6128_v29, %s10872_s23 }
 0xc0c   : > { %6195 = vrot.lane.b32.xlu0 %v6190_v31, %s10933_s2 }
 0xc0e   : > { %6148 = vrot.lane.b32.xlu1 %v6143_v37, %s10958_s22 }
 0xc10   : > { %6209 = vrot.lane.b32.xlu0 %v6204_v40, %s10934_s29 }
 0xc12   : > { %6169 = vrot.lane.b32.xlu1 %v6164_v33, %s10924_s24  ;;  %s6987_s24 = sshll.u32 %s10966_s27, 4 }
 0xc13   : > { %s658_s28 = scalar_lea.vmem %s10580_s21, %s6987_s24 }
 0xc14   : > { %6223 = vrot.lane.b32.xlu0 %v6218_v46, %s10870_s30 }
 0xc16   : > { %6183 = vrot.lane.b32.xlu1 %v6178_v50, %s10931_s4 }
 0xc18   : > { %6237 = vrot.lane.b32.xlu0 %v6232_v55, %s10872_s23 }
 0xc1a   : > { %6197 = vrot.lane.b32.xlu1 %v6192_v62, %s10933_s2 }
 0xc1c   : > { %6251 = vrot.lane.b32.xlu0 %v6246_v2, %s10958_s22  ;;  %v6983_v2 = vld [vmem:[#allocation17] ss:$0 sm:$0xff] }
 0xc1e   : > { %6473 = vrot.lane.b32.xlu1 %v6468_v49, %s10931_s4 }
 0xc20   : > { %6485 = vrot.lane.b32.xlu0 %v6480_v7, %s10933_s2 }
 0xc22   : > { %6487 = vrot.lane.b32.xlu1 %v6482_v56, %s10933_s2 }
 0xc66   : > { %v6102_v8 = vpop.permute.xlu0 %6101 }
 0xc67   : > { %6108 = vst.msk [vmem:[#allocation15] sm:$0x3] %vm6107_vm0, %v6102_v8 }
 0xc68   : > { %v6060_v32 = vpop.permute.xlu1 %6059 }
 0xc69   : > { %6065 = vst.msk [vmem:[#allocation15 + $0x10] sm:$0x3] %vm6063_vm6, %v6060_v32 }
 0xc6a   : > { %v6117_v48 = vpop.permute.xlu0 %6116 }
 0xc6b   : > { %6123 = vst.msk [vmem:[#allocation15] sm:$0x3] %vm6122_vm8, %v6117_v48 }
 0xc6c   : > { %v6075_v14 = vpop.permute.xlu1 %6074 }
 0xc6d   : > { %6080 = vst.msk [vmem:[#allocation15 + $0x10] sm:$0x3] %vm6078_vm14, %v6075_v14 }
 0xc6e   : > { %v6132_v6 = vpop.permute.xlu0 %6131 }
 0xc6f   : > { %6138 = vst.msk [vmem:[#allocation15] sm:$0x3] %vm6137_vm10, %v6132_v6 }
 0xc70   : > { %v6090_v54 = vpop.permute.xlu1 %6089 }
 0xc71   : > { %6095 = vst.msk [vmem:[#allocation15 + $0x10] sm:$0x3] %vm6093_vm1, %v6090_v54 }
 0xc72   : > { %v6147_v9 = vpop.permute.xlu0 %6146 }
 0xc73   : > { %6153 = vst.msk [vmem:[#allocation15] sm:$0x3] %vm6152_vm5, %v6147_v9 }
 0xc74   : > { %v6104_v10 = vpop.permute.xlu1 %6103 }
 0xc75   : > { %6109 = vst.msk [vmem:[#allocation15 + $0x10] sm:$0x3] %vm6107_vm0, %v6104_v10 }
 0xc76   : > { %v6168_v11 = vpop.permute.xlu0 %6167 }
 0xc77   : > { %6173 = vst.msk [vmem:[#allocation15 + $0x8] sm:$0x3] %vm6063_vm6, %v6168_v11 }
 0xc78   : > { %v6119_v12 = vpop.permute.xlu1 %6118 }
 0xc79   : > { %6124 = vst.msk [vmem:[#allocation15 + $0x10] sm:$0x3] %vm6122_vm8, %v6119_v12 }
 0xc7a   : > { %v6182_v5 = vpop.permute.xlu0 %6181  ;;  %v6259_v24 = vld [vmem:[#allocation15] sm:$0xff] }
 0xc7b   : > { %6187 = vst.msk [vmem:[#allocation15 + $0x8] sm:$0x3] %vm6078_vm14, %v6182_v5 }
 0xc7c   : > { %v6134_v13 = vpop.permute.xlu1 %6133 }
 0xc7d   : > { %6139 = vst.msk [vmem:[#allocation15 + $0x10] sm:$0x3] %vm6137_vm10, %v6134_v13 }
 0xc7e   : > { %v6196_v15 = vpop.permute.xlu0 %6195 }
 0xc7f   : > { %6201 = vst.msk [vmem:[#allocation15 + $0x8] sm:$0x3] %vm6093_vm1, %v6196_v15 }
 0xc80   : > { %v6149_v16 = vpop.permute.xlu1 %6148 }
 0xc81   : > { %6154 = vst.msk [vmem:[#allocation15 + $0x10] sm:$0x3] %vm6152_vm5, %v6149_v16 }
 0xc82   : > { %v6210_v18 = vpop.permute.xlu0 %6209 }
 0xc83   : > { %6215 = vst.msk [vmem:[#allocation15 + $0x8] sm:$0x3] %vm6107_vm0, %v6210_v18 }
 0xc84   : > { %v6170_v34 = vpop.permute.xlu1 %6169 }
 0xc85   : > { %6174 = vst.msk [vmem:[#allocation15 + $0x18] sm:$0x3] %vm6063_vm6, %v6170_v34 }
 0xc86   : > { %v6224_v17 = vpop.permute.xlu0 %6223 }
 0xc87   : > { %6229 = vst.msk [vmem:[#allocation15 + $0x8] sm:$0x3] %vm6122_vm8, %v6224_v17 }
 0xc88   : > { %v6184_v35 = vpop.permute.xlu1 %6183 }
 0xc89   : > { %6188 = vst.msk [vmem:[#allocation15 + $0x18] sm:$0x3] %vm6078_vm14, %v6184_v35 }
 0xc8a   : > { %v6238_v19 = vpop.permute.xlu0 %6237 }
 0xc8b   : > { %6243 = vst.msk [vmem:[#allocation15 + $0x8] sm:$0x3] %vm6137_vm10, %v6238_v19 }
 0xc8c   : > { %v6198_v20 = vpop.permute.xlu1 %6197 }
 0xc8d   : > { %6202 = vst.msk [vmem:[#allocation15 + $0x18] sm:$0x3] %vm6093_vm1, %v6198_v20 }
 0xc8e   : > { %6216 = vst.msk [vmem:[#allocation15 + $0x18] sm:$0x3] %vm6107_vm0, %v10398_v51  ;;  %v6252_v21 = vpop.permute.xlu0 %6251  ;;  %v6261_v51 = vld [vmem:[#allocation15 + $0x10] sm:$0xff] }
 0xc8f   : > { %6230 = vst.msk [vmem:[#allocation15 + $0x18] sm:$0x3] %vm6122_vm8, %v10401_v57  ;;  %v6263_v26 = vpack.c.bf16 %v6261_v51, %v6259_v24 }
 0xc90   : > { %6257 = vst.msk [vmem:[#allocation15 + $0x8] sm:$0x3] %vm6152_vm5, %v6252_v21  ;;  %v6474_v38 = vpop.permute.xlu1 %6473 }
 0xc91   : > { %6244 = vst.msk [vmem:[#allocation15 + $0x18] sm:$0x3] %vm6137_vm10, %v10404_v43 }
 0xc92   : > { %6258 = vst.msk [vmem:[#allocation15 + $0x18] sm:$0x3] %vm6152_vm5, %v10407_v1  ;;  %v6486_v39 = vpop.permute.xlu0 %6485 }
 0xc93   : > { %6478 = vst.msk [vmem:[#allocation16 + $0x8] sm:$0x3] %vm6078_vm14, %v6474_v38 }
 0xc94   : > { %6491 = vst.msk [vmem:[#allocation16] sm:$0x3] %vm6093_vm1, %v6486_v39  ;;  %v6488_v22 = vpop.permute.xlu1 %6487 }
 0xc95   : > { %6492 = vst.msk [vmem:[#allocation16 + $0x8] sm:$0x3] %vm6093_vm1, %v6488_v22 }
 0xc97   : > { %v6260_v44 = vld [vmem:[#allocation15 + $0x8] sm:$0xff] }
 0xc99   : > { %v6262_v57 = vld [vmem:[#allocation15 + $0x18] sm:$0xff] }
 0xc9a   : > { %v6264_v45 = vpack.c.bf16 %v6262_v57, %v6260_v44 }
 0xc9b   : > { %v6493_v43 = vld [vmem:[#allocation16] sm:$0xff] }
 0xc9c   : > { %6432 = vmatprep.mubr.bf16.mxu0 %v6264_v45  ;;  %v6494_v23 = vld [vmem:[#allocation16 + $0x8] sm:$0xff] }
 0xc9d   : > { %6433 = vmatmul.mubr.bf16.vlgmr.msra.gmra.mrb[36].mxu0 %v6263_v26  ;;  %v6495_v27 = vpack.c.bf16 %v6494_v23, %v6493_v43 }
 0xc9f   : > { %7198 = vmatmul.mubr.msk.bf16.vlgmr.msra.gmra.mrb[24].mxu1 %vm6441_vm7, %v6495_v27  ;;  %vm10962_vm7 = vcmask 261120  }
 0xca0   : > { %vm10963_vm12 = vmmov %vm10962_vm7 }
 0xd70   : > { %v7062_v1 = vpop.f32.mrb[36].mxu0 }
 0xd71   : > { %v7063_v60 = vpop.f32.mrb[37].mxu0 }
 0xd72   : > { %v7064_v29 = vadd.f32 %v7063_v60, %v7062_v1  ;;  %v7065_v30 = vpop.f32.mrb[38].mxu0  ;;  %v6572_v36 = vpop.f32.mrb[24].mxu1 }
 0xd73   : > { %v7066_v31 = vpop.f32.mrb[39].mxu0  ;;  %v6573_v40 = vadd.f32 %v6976_v61, %v6572_v36  ;;  %v7199_v33 = vpop.f32.mrb[25].mxu1 }
 0xd74   : > { %v6435_v37 = vadd.f32 %v7064_v29, %v6959_v28  ;;  %v7067_v25 = vadd.f32 %v7066_v31, %v7065_v30  ;;  %v6575_v59 = vpop.f32.mrb[26].mxu1 }
 0xd75   : > { %v6576_v46 = vadd.f32 %v6976_v61, %v6575_v59  ;;  %v7200_v47 = vpop.f32.mrb[27].mxu1 }
 0xd76   : > { %v6438_v41 = vadd.f32 %v7067_v25, %v6959_v28  ;;  %v6579_v42 = vadd.f32 %v6573_v40, %v6435_v37 }
 0xd78   : > { %v6581_v50 = vmax.f32 %v6579_v42, 0.0  ;;  %v6580_v52 = vadd.f32 %v6576_v46, %v6438_v41 }
 0xd7a   : > { %v6582_v55 = vmax.f32 %v6580_v52, 0.0  ;;  %v6590_v53 = vmul.f32 %v6982_v63, %v6581_v50 }
 0xd7c   : > { %v6592_v58 = vsel %vm10962_vm7, %v6590_v53, 0.0  ;;  %v6591_v62 = vmul.f32 %v6982_v63, %v6582_v55 }
 0xd7d   : > { %6593 = vadd.xlane.f32.xlu0 %v6592_v58 }
 0xd7e   : > { %v6595_v0 = vsel %vm10963_vm12, %v6591_v62, 0.0 }
 0xd7f   : > { %6596 = vadd.xlane.f32.xlu1 %v6595_v0 }
 0xe0a   : > { %v6594_v3 = vpop.xlane.xlu0 %6593 }
 0xe0b   : > { %v6605_v4 = vadd.f32 %v6983_v2, %v6594_v3 }
 0xe0c   : > { %v6597_v49 = vpop.xlane.xlu1 %6596 }
 0xe0d   : > { %6608 = vst.msk [vmem:[%s658_s28] sm:$0xff] %vm6607_vm2, %v6605_v4  ;;  %v6606_v7 = vadd.f32 %v6983_v2, %v6597_v49 }
 0xe0f   : > { %6609 = vst.msk [vmem:[%s658_s28 + $0x8] sm:$0xff] %vm6607_vm2, %v6606_v7 }
 0xe10 PF: > { %s10964_s25 = sld [smem:[#allocation18_spill]] }
 0xe16   : > { %s33_s26 = sadd.s32 1, %s10964_s25  }
 0xe17   : > { %p30_p4 = scmp.ge.s32.totalorder %s33_s26, 4  }
 0xe19   :  { %32 = sbr.rel (!%p30_p4) target bundleno = 8 (0x8), region = 417 }

</bundles_post_ra>
